<compile_context>
chip_gen: v6e
topology: v6e:2x2x1
jax: 0.10.0
libtpu: 0.0.40
codegen_flags: <defaults>
</compile_context>

<pallas_src>
import functools

import jax
import jax.numpy as jnp
from jax import lax
from jax.experimental import pallas as pl
from jax.experimental.pallas import tpu as pltpu

_BN_EPS = 1e-5
_VMEM_LIMIT = 48 * 1024 * 1024   # safe on v5e/v6e (128 MiB) and v7x (64 MiB)


def _compiler_params(n_axes):
    return pltpu.CompilerParams(
        dimension_semantics=("parallel",) * n_axes,
        vmem_limit_bytes=_VMEM_LIMIT)


def _pick_tile(m, target=1024):
    """Largest tile <= target that divides m and keeps sublane (8) alignment."""
    if m <= target:
        return m
    for cand in range(target, 7, -1):
        if cand % 8 == 0 and m % cand == 0:
            return cand
    return m


def _bn_affine(stats, count):
    """stats rows = [sum; sum_sq] per channel -> (scale, shift) of shape (1, C)."""
    mean = stats[0] / count
    var = jnp.maximum(stats[1] / count - mean * mean, 0.0)
    scale = lax.rsqrt(var + _BN_EPS)
    shift = -mean * scale
    return scale[None, :], shift[None, :]


def _pack_complex_matrix(wr, wi):
    # [xr | xi] @ [[Wr, Wi], [-Wi, Wr]] == [xr@Wr - xi@Wi | xr@Wi + xi@Wr]
    return jnp.block([[wr, wi], [-wi, wr]])


# ----------------------------------------------------------------------------
# K1: expand 1x1 complex conv (merged real matmul) + BN0 partial stats.
# ----------------------------------------------------------------------------
def _expand_kernel(x_ref, w_ref, o_ref, st_ref):
    out = jnp.dot(x_ref[...].astype(jnp.bfloat16), w_ref[...],
                  preferred_element_type=jnp.float32)
    o_ref[...] = out
    st_ref[0, 0:1, :] = jnp.sum(out, axis=0, keepdims=True)
    st_ref[0, 1:2, :] = jnp.sum(out * out, axis=0, keepdims=True)


# ----------------------------------------------------------------------------
# K2: BN0+SiLU prologue -> complex depthwise KxK conv (zero-pad in a VMEM
#     scratch, stride handled in-kernel) -> BN1 partial stats.
# ----------------------------------------------------------------------------
def _make_dw_kernel(k, pad, stride, apply_prologue):
    def kernel(e_ref, sc_ref, sh_ref, wa_ref, wb_ref, o_ref, st_ref, pad_ref):
        _, h, w, c2 = e_ref.shape
        _, ho, wo, _ = o_ref.shape
        half = c2 // 2

        y = e_ref[0]
        if apply_prologue:                      # BN0 + complex SiLU
            y = y * sc_ref[0] + sh_ref[0]
            y = y * jax.nn.sigmoid(y)

        # Zero-pad into VMEM scratch (no HBM round trip for the padded copy).
        pad_ref[...] = jnp.zeros_like(pad_ref)
        pad_ref[pad:pad + h, pad:pad + w, :] = y
        xp = pad_ref[...]
        # Swapped halves [imag | real] for the cross terms of the complex product.
        xq = jnp.concatenate([xp[:, :, half:], xp[:, :, :half]], axis=-1)

        wa = wa_ref[...]                        # per tap: [ wr | wr ]
        wb = wb_ref[...]                        # per tap: [-wi | wi ]
        acc = jnp.zeros((ho, wo, c2), jnp.float32)
        for t in range(k * k):
            u, v = t // k, t % k
            if stride == 1:
                pa = xp[u:u + ho, v:v + wo, :]
                qa = xq[u:u + ho, v:v + wo, :]
            else:
                lim_u = u + stride * (ho - 1) + 1
                lim_v = v + stride * (wo - 1) + 1
                pa = lax.slice(xp, (u, v, 0), (lim_u, lim_v, c2), (stride, stride, 1))
                qa = lax.slice(xq, (u, v, 0), (lim_u, lim_v, c2), (stride, stride, 1))
            acc = acc + pa * wa[t] + qa * wb[t]

        o_ref[0] = acc
        st_ref[0, 0:1, :] = jnp.sum(acc, axis=(0, 1))[None, :]
        st_ref[0, 1:2, :] = jnp.sum(acc * acc, axis=(0, 1))[None, :]
    return kernel


# ----------------------------------------------------------------------------
# K3: BN1 + complex SiLU + SE global average pool (sums; mean taken outside).
# ----------------------------------------------------------------------------
def _se_pool_kernel(d_ref, sc_ref, sh_ref, o_ref):
    y = d_ref[0]
    y = y * sc_ref[0] + sh_ref[0]
    y = y * jax.nn.sigmoid(y)
    o_ref[0] = jnp.sum(y, axis=(0, 1))[None, :]


# ----------------------------------------------------------------------------
# K4: BN1 + SiLU + SE gate (per batch/channel) + project matmul + BN2 stats.
# ----------------------------------------------------------------------------
def _project_kernel(d_ref, sc_ref, sh_ref, g_ref, w_ref, o_ref, st_ref):
    y = d_ref[0]                                  # (TM, 2*Cmid)
    y = y * sc_ref[...] + sh_ref[...]             # BN1
    y = y * jax.nn.sigmoid(y)                     # complex SiLU
    y = y * g_ref[0]                              # SE gate
    out = jnp.dot(y.astype(jnp.bfloat16), w_ref[...],
                  preferred_element_type=jnp.float32)
    o_ref[0] = out
    st_ref[0, 0, 0:1, :] = jnp.sum(out, axis=0, keepdims=True)
    st_ref[0, 0, 1:2, :] = jnp.sum(out * out, axis=0, keepdims=True)


# ----------------------------------------------------------------------------
# K5: BN2 (+ optional residual add).  Drop-connect is a no-op at inference.
# ----------------------------------------------------------------------------
def _final_res_kernel(p_ref, idn_ref, sc_ref, sh_ref, o_ref):
    o_ref[...] = p_ref[...] * sc_ref[...] + sh_ref[...] + idn_ref[...]


def _final_kernel(p_ref, sc_ref, sh_ref, o_ref):
    o_ref[...] = p_ref[...] * sc_ref[...] + sh_ref[...]


# ----------------------------------------------------------------------------
# Full MBConv forward.
# ----------------------------------------------------------------------------
def mbconv_forward(xr_nchw, xi_nchw, params, *, expansion, stride, kernel_size):
    b, cin, h, w = xr_nchw.shape
    pad = (kernel_size - 1) // 2
    mid = params["wdw_r"].shape[-1]
    cout = params["wp_r"].shape[1]
    use_residual = (stride == 1) and (cin == cout)

    # NCHW -> NHWC, pack [real | imag] along the channel (lane) axis.
    xr = jnp.transpose(xr_nchw, (0, 2, 3, 1)).astype(jnp.float32)
    xi = jnp.transpose(xi_nchw, (0, 2, 3, 1)).astype(jnp.float32)
    x_packed = jnp.concatenate([xr, xi], axis=-1)            # (B, H, W, 2*Cin)

    # ---------------- K1: expand + BN0 partial stats ----------------
    if expansion != 1:
        m = b * h * w
        we = _pack_complex_matrix(params["we_r"], params["we_i"]).astype(jnp.bfloat16)
        tm = _pick_tile(m)
        nm = m // tm
        e_flat, st0 = pl.pallas_call(
            _expand_kernel,
            out_shape=(jax.ShapeDtypeStruct((m, 2 * mid), jnp.float32),
                       jax.ShapeDtypeStruct((nm, 2, 2 * mid), jnp.float32)),
            grid=(nm,),
            in_specs=[pl.BlockSpec((tm, 2 * cin), lambda i: (i, 0)),
                      pl.BlockSpec((2 * cin, 2 * mid), lambda i: (0, 0))],
            out_specs=(pl.BlockSpec((tm, 2 * mid), lambda i: (i, 0)),
                       pl.BlockSpec((1, 2, 2 * mid), lambda i: (i, 0, 0))),
            compiler_params=_compiler_params(1),
        )(x_packed.reshape(m, 2 * cin), we)
        sc0, sh0 = _bn_affine(jnp.sum(st0, axis=0), m)
        e = e_flat.reshape(b, h, w, 2 * mid)
        apply_prologue = True
    else:
        e = x_packed
        sc0 = jnp.ones((1, 2 * mid), jnp.float32)
        sh0 = jnp.zeros((1, 2 * mid), jnp.float32)
        apply_prologue = False

    # -------- K2: BN0+SiLU + depthwise complex conv + BN1 stats --------
    kk = kernel_size * kernel_size
    wa = jnp.concatenate([params["wdw_r"], params["wdw_r"]], axis=-1).reshape(kk, 2 * mid)
    wb = jnp.concatenate([-params["wdw_i"], params["wdw_i"]], axis=-1).reshape(kk, 2 * mid)
    ho = (h + 2 * pad - kernel_size) // stride + 1
    wo = (w + 2 * pad - kernel_size) // stride + 1
    dw_out, st1 = pl.pallas_call(
        _make_dw_kernel(kernel_size, pad, stride, apply_prologue),
        out_shape=(jax.ShapeDtypeStruct((b, ho, wo, 2 * mid), jnp.float32),
                   jax.ShapeDtypeStruct((b, 2, 2 * mid), jnp.float32)),
        grid=(b,),
        in_specs=[pl.BlockSpec((1, h, w, 2 * mid), lambda i: (i, 0, 0, 0)),
                  pl.BlockSpec((1, 2 * mid), lambda i: (0, 0)),
                  pl.BlockSpec((1, 2 * mid), lambda i: (0, 0)),
                  pl.BlockSpec((kk, 2 * mid), lambda i: (0, 0)),
                  pl.BlockSpec((kk, 2 * mid), lambda i: (0, 0))],
        out_specs=(pl.BlockSpec((1, ho, wo, 2 * mid), lambda i: (i, 0, 0, 0)),
                   pl.BlockSpec((1, 2, 2 * mid), lambda i: (i, 0, 0))),
        scratch_shapes=[pltpu.VMEM((h + 2 * pad, w + 2 * pad, 2 * mid), jnp.float32)],
        compiler_params=_compiler_params(1),
    )(e, sc0, sh0, wa, wb)
    m2 = b * ho * wo
    sc1, sh1 = _bn_affine(jnp.sum(st1, axis=0), m2)

    # -------- K3: SE global average pool of BN1+SiLU activations --------
    pool_sums = pl.pallas_call(
        _se_pool_kernel,
        out_shape=jax.ShapeDtypeStruct((b, 1, 2 * mid), jnp.float32),
        grid=(b,),
        in_specs=[pl.BlockSpec((1, ho, wo, 2 * mid), lambda i: (i, 0, 0, 0)),
                  pl.BlockSpec((1, 2 * mid), lambda i: (0, 0)),
                  pl.BlockSpec((1, 2 * mid), lambda i: (0, 0))],
        out_specs=pl.BlockSpec((1, 1, 2 * mid), lambda i: (i, 0, 0)),
        compiler_params=_compiler_params(1),
    )(dw_out, sc1, sh1)
    pooled = pool_sums.reshape(b, 2 * mid) / float(ho * wo)

    # TODO(synk): SE fc1/fc2/sigmoid(|z|) gate acts on a tiny (B, 2C) tensor;
    # left in plain JAX (too small to benefit from a Pallas kernel).
    w1 = _pack_complex_matrix(params["se_w1_r"], params["se_w1_i"])
    b1 = jnp.concatenate([params["se_b1_r"], params["se_b1_i"]], axis=-1)
    w2 = _pack_complex_matrix(params["se_w2_r"], params["se_w2_i"])
    b2 = jnp.concatenate([params["se_b2_r"], params["se_b2_i"]], axis=-1)
    hse = pooled @ w1 + b1
    hse = hse * jax.nn.sigmoid(hse)
    sse = hse @ w2 + b2
    s_r, s_i = sse[:, :mid], sse[:, mid:]
    mag = jax.nn.sigmoid(jnp.sqrt(s_r * s_r + s_i * s_i + 1e-9))
    gate = jnp.concatenate([mag, mag], axis=-1).reshape(b, 1, 2 * mid)

    # ---- K4: BN1+SiLU + SE gate + project 1x1 complex conv + BN2 stats ----
    wp = _pack_complex_matrix(params["wp_r"], params["wp_i"]).astype(jnp.bfloat16)
    hw2 = ho * wo
    tm2 = _pick_tile(hw2, 512)
    nt = hw2 // tm2
    d_flat = dw_out.reshape(b, hw2, 2 * mid)
    proj, st2 = pl.pallas_call(
        _project_kernel,
        out_shape=(jax.ShapeDtypeStruct((b, hw2, 2 * cout), jnp.float32),
                   jax.ShapeDtypeStruct((b, nt, 2, 2 * cout), jnp.float32)),
        grid=(b, nt),
        in_specs=[pl.BlockSpec((1, tm2, 2 * mid), lambda i, j: (i, j, 0)),
                  pl.BlockSpec((1, 2 * mid), lambda i, j: (0, 0)),
                  pl.BlockSpec((1, 2 * mid), lambda i, j: (0, 0)),
                  pl.BlockSpec((1, 1, 2 * mid), lambda i, j: (i, 0, 0)),
                  pl.BlockSpec((2 * mid, 2 * cout), lambda i, j: (0, 0))],
        out_specs=(pl.BlockSpec((1, tm2, 2 * cout), lambda i, j: (i, j, 0)),
                   pl.BlockSpec((1, 1, 2, 2 * cout), lambda i, j: (i, j, 0, 0))),
        compiler_params=_compiler_params(2),
    )(d_flat, sc1, sh1, gate, wp)
    sc2, sh2 = _bn_affine(jnp.sum(st2, axis=(0, 1)), m2)

    # ---------------- K5: BN2 + residual add ----------------
    proj_flat = proj.reshape(m2, 2 * cout)
    tmf = _pick_tile(m2)
    nf = m2 // tmf
    row_spec = pl.BlockSpec((tmf, 2 * cout), lambda i: (i, 0))
    vec_spec = pl.BlockSpec((1, 2 * cout), lambda i: (0, 0))
    common = dict(
        out_shape=jax.ShapeDtypeStruct((m2, 2 * cout), jnp.float32),
        grid=(nf,),
        out_specs=pl.BlockSpec((tmf, 2 * cout), lambda i: (i, 0)),
        compiler_params=_compiler_params(1))
    if use_residual:
        identity = x_packed.reshape(m2, 2 * cout)     # stride==1 and Cin==Cout
        out_flat = pl.pallas_call(
            _final_res_kernel,
            in_specs=[row_spec, row_spec, vec_spec, vec_spec],
            **common)(proj_flat, identity, sc2, sh2)
    else:
        out_flat = pl.pallas_call(
            _final_kernel,
            in_specs=[row_spec, vec_spec, vec_spec],
            **common)(proj_flat, sc2, sh2)

    out_packed = out_flat.reshape(b, ho, wo, 2 * cout)
    out_r = jnp.transpose(out_packed[..., :cout], (0, 3, 1, 2))
    out_i = jnp.transpose(out_packed[..., cout:], (0, 3, 1, 2))
    return out_r, out_i


# ----------------------------------------------------------------------------
# Deterministic parameters (kaiming-normal-style scaling).
# ----------------------------------------------------------------------------
def make_params(key, in_channels, out_channels, expansion, kernel_size, se_ratio):
    mid = in_channels * expansion
    reduced = max(1, int(mid * se_ratio))
    ks = jax.random.split(key, 16)

    def kn(k, shape, fan_in):
        return jax.random.normal(k, shape, jnp.float32) * jnp.sqrt(2.0 / fan_in)

    return {
        "we_r": kn(ks[0], (in_channels, mid), in_channels),
        "we_i": kn(ks[1], (in_channels, mid), in_channels),
        "wdw_r": kn(ks[2], (kernel_size, kernel_size, mid), kernel_size * kernel_size),
        "wdw_i": kn(ks[3], (kernel_size, kernel_size, mid), kernel_size * kernel_size),
        "wp_r": kn(ks[4], (mid, out_channels), mid),
        "wp_i": kn(ks[5], (mid, out_channels), mid),
        "se_w1_r": kn(ks[6], (mid, reduced), mid),
        "se_w1_i": kn(ks[7], (mid, reduced), mid),
        "se_b1_r": jax.random.normal(ks[8], (1, reduced), jnp.float32) * 0.01,
        "se_b1_i": jax.random.normal(ks[9], (1, reduced), jnp.float32) * 0.01,
        "se_w2_r": kn(ks[10], (reduced, mid), reduced),
        "se_w2_i": kn(ks[11], (reduced, mid), reduced),
        "se_b2_r": jax.random.normal(ks[12], (1, mid), jnp.float32) * 0.01,
        "se_b2_i": jax.random.normal(ks[13], (1, mid), jnp.float32) * 0.01,
    }


# ----------------------------------------------------------------------------
# Pure-JAX f32 reference (mirrors the PyTorch forward at inference).
# ----------------------------------------------------------------------------
def reference_forward(xr_nchw, xi_nchw, params, *, expansion, stride, kernel_size):
    xr = jnp.transpose(xr_nchw, (0, 2, 3, 1)).astype(jnp.float32)
    xi = jnp.transpose(xi_nchw, (0, 2, 3, 1)).astype(jnp.float32)
    cin = xr.shape[-1]
    pad = (kernel_size - 1) // 2

    def bn(t):
        mu = jnp.mean(t, axis=(0, 1, 2), keepdims=True)
        var = jnp.mean((t - mu) ** 2, axis=(0, 1, 2), keepdims=True)
        return (t - mu) / jnp.sqrt(var + _BN_EPS)

    def silu(t):
        return t * jax.nn.sigmoid(t)

    if expansion != 1:
        er = xr @ params["we_r"] - xi @ params["we_i"]
        ei = xr @ params["we_i"] + xi @ params["we_r"]
        er, ei = silu(bn(er)), silu(bn(ei))
    else:
        er, ei = xr, xi

    def dwconv(t, wgt):
        tp = jnp.pad(t, ((0, 0), (pad, pad), (pad, pad), (0, 0)))
        ho = (t.shape[1] + 2 * pad - kernel_size) // stride + 1
        wo = (t.shape[2] + 2 * pad - kernel_size) // stride + 1
        acc = jnp.zeros((t.shape[0], ho, wo, t.shape[3]), jnp.float32)
        for u in range(kernel_size):
            for v in range(kernel_size):
                sl = tp[:, u:u + stride * (ho - 1) + 1:stride,
                        v:v + stride * (wo - 1) + 1:stride, :]
                acc = acc + sl * wgt[u, v]
        return acc

    dr = dwconv(er, params["wdw_r"]) - dwconv(ei, params["wdw_i"])
    di = dwconv(er, params["wdw_i"]) + dwconv(ei, params["wdw_r"])
    dr, di = silu(bn(dr)), silu(bn(di))

    pr, pi = jnp.mean(dr, axis=(1, 2)), jnp.mean(di, axis=(1, 2))
    hr = pr @ params["se_w1_r"] - pi @ params["se_w1_i"] + params["se_b1_r"]
    hi = pr @ params["se_w1_i"] + pi @ params["se_w1_r"] + params["se_b1_i"]
    hr, hi = silu(hr), silu(hi)
    sr = hr @ params["se_w2_r"] - hi @ params["se_w2_i"] + params["se_b2_r"]
    si = hr @ params["se_w2_i"] + hi @ params["se_w2_r"] + params["se_b2_i"]
    mag = jax.nn.sigmoid(jnp.sqrt(sr * sr + si * si + 1e-9))[:, None, None, :]
    gr, gi = dr * mag, di * mag

    qr = gr @ params["wp_r"] - gi @ params["wp_i"]
    qi = gr @ params["wp_i"] + gi @ params["wp_r"]
    qr, qi = bn(qr), bn(qi)
    if stride == 1 and cin == qr.shape[-1]:
        qr, qi = qr + xr, qi + xi
    return jnp.transpose(qr, (0, 3, 1, 2)), jnp.transpose(qi, (0, 3, 1, 2))


if __name__ == "__main__":
    B, C_IN, C_OUT, H, W = 2, 8, 8, 16, 16
    EXPANSION, STRIDE, KSIZE, SE_RATIO = 2, 1, 3, 0.25

    key = jax.random.PRNGKey(0)
    kx, kxi, kp = jax.random.split(key, 3)
    x_r = jax.random.normal(kx, (B, C_IN, H, W), jnp.float32)
    x_i = jax.random.normal(kxi, (B, C_IN, H, W), jnp.float32)
    params = make_params(kp, C_IN, C_OUT, EXPANSION, KSIZE, SE_RATIO)

    fwd = jax.jit(functools.partial(
        mbconv_forward, expansion=EXPANSION, stride=STRIDE, kernel_size=KSIZE))
    out_r, out_i = fwd(x_r, x_i, params)
    jax.block_until_ready((out_r, out_i))

    assert out_r.shape == (B, C_OUT, H, W) and out_i.shape == (B, C_OUT, H, W)
    assert bool(jnp.all(jnp.isfinite(out_r))) and bool(jnp.all(jnp.isfinite(out_i)))

    # Correctness check against the pure-JAX f32 reference (tolerance accounts
    # for bf16 MXU inputs with f32 accumulation).
    ref_r, ref_i = reference_forward(
        x_r, x_i, params, expansion=EXPANSION, stride=STRIDE, kernel_size=KSIZE)
    err = max(float(jnp.max(jnp.abs(out_r - ref_r))),
              float(jnp.max(jnp.abs(out_i - ref_i))))
    assert err < 0.2, f"mismatch vs reference: max abs err = {err}"

    print("KERNEL_OK")
</pallas_src>

<mosaic_0001>
module attributes {stable_mosaic.version = 11 : i64} {
  func.func @_expand_kernel(%arg0: i32, %arg1: memref<512x16xf32, #tpu.memory_space<vmem>>, %arg2: memref<16x32xbf16, #tpu.memory_space<vmem>>, %arg3: memref<512x32xf32, #tpu.memory_space<vmem>>, %arg4: memref<1x2x32xf32, #tpu.memory_space<vmem>>) attributes {dimension_semantics = [#tpu.dimension_semantics<parallel>], iteration_bounds = array<i64: 1>, scalar_prefetch = 0 : i64, scratch_operands = 0 : i64, tpu.core_type = #tpu.core_type<tc>, window_params = [{transform_indices = @transform_0, window_bounds = array<i64: 512, 16>}, {pipeline_mode = #tpu.pipeline_mode<synchronous>, transform_indices = @transform_1, window_bounds = array<i64: 16, 32>}, {transform_indices = @transform_2, window_bounds = array<i64: 512, 32>}, {transform_indices = @transform_3, window_bounds = array<i64: 1, 2, 32>}]} {
    %c0 = arith.constant 0 : index
    %c0_0 = arith.constant 0 : index
    %0 = vector.load %arg1[%c0, %c0_0] : memref<512x16xf32, #tpu.memory_space<vmem>>, vector<512x16xf32>
    %1 = arith.truncf %0 : vector<512x16xf32> to vector<512x16xbf16>
    %c0_1 = arith.constant 0 : index
    %c0_2 = arith.constant 0 : index
    %2 = vector.load %arg2[%c0_1, %c0_2] : memref<16x32xbf16, #tpu.memory_space<vmem>>, vector<16x32xbf16>
    %cst = arith.constant dense<0.000000e+00> : vector<512x32xf32>
    %3 = tpu.matmul %1, %2, %cst {dimension_numbers = #tpu.dot_dimension_numbers<[1], [0], [0], [1], [0, 0, 1, 1], [], []>} : vector<512x16xbf16>, vector<16x32xbf16>, vector<512x32xf32> -> vector<512x32xf32>
    %c0_3 = arith.constant 0 : index
    %c0_4 = arith.constant 0 : index
    %4 = vector.load %arg3[%c0_3, %c0_4] : memref<512x32xf32, #tpu.memory_space<vmem>>, vector<512x32xf32>
    tpu.vector_store %arg3[%c0_3, %c0_4], %3 {strides = array<i32>} : memref<512x32xf32, #tpu.memory_space<vmem>>, vector<512x32xf32>,
    %cst_5 = arith.constant dense<0.000000e+00> : vector<32xf32>
    %5 = vector.multi_reduction <add>, %3, %cst_5 [0] : vector<512x32xf32> to vector<32xf32>
    %6 = vector.shape_cast %5 : vector<32xf32> to vector<1x32xf32>
    %c0_6 = arith.constant 0 : index
    %c0_7 = arith.constant 0 : index
    %c0_8 = arith.constant 0 : index
    %7 = vector.load %arg4[%c0_6, %c0_7, %c0_8] : memref<1x2x32xf32, #tpu.memory_space<vmem>>, vector<1x1x32xf32>
    %8 = vector.shape_cast %7 : vector<1x1x32xf32> to vector<1x32xf32>
    %9 = vector.shape_cast %6 : vector<1x32xf32> to vector<1x1x32xf32>
    tpu.vector_store %arg4[%c0_6, %c0_7, %c0_8], %9 {strides = array<i32>} : memref<1x2x32xf32, #tpu.memory_space<vmem>>, vector<1x1x32xf32>,
    %10 = arith.mulf %3, %3 : vector<512x32xf32>
    %cst_9 = arith.constant dense<0.000000e+00> : vector<32xf32>
    %11 = vector.multi_reduction <add>, %10, %cst_9 [0] : vector<512x32xf32> to vector<32xf32>
    %12 = vector.shape_cast %11 : vector<32xf32> to vector<1x32xf32>
    %c0_10 = arith.constant 0 : index
    %c1 = arith.constant 1 : index
    %c0_11 = arith.constant 0 : index
    %13 = vector.load %arg4[%c0_10, %c1, %c0_11] : memref<1x2x32xf32, #tpu.memory_space<vmem>>, vector<1x1x32xf32>
    %14 = vector.shape_cast %13 : vector<1x1x32xf32> to vector<1x32xf32>
    %15 = vector.shape_cast %12 : vector<1x32xf32> to vector<1x1x32xf32>
    tpu.vector_store %arg4[%c0_10, %c1, %c0_11], %15 {strides = array<i32>} : memref<1x2x32xf32, #tpu.memory_space<vmem>>, vector<1x1x32xf32>,
    return
  }
  func.func @transform_0(%arg0: i32) -> (i32, i32) {
    %c0_i32 = arith.constant 0 : i32
    %c0_i32_0 = arith.constant 0 : i32
    return %arg0, %c0_i32 : i32, i32
  }
  func.func @transform_1(%arg0: i32) -> (i32, i32) {
    %c0_i32 = arith.constant 0 : i32
    %c0_i32_0 = arith.constant 0 : i32
    %c0_i32_1 = arith.constant 0 : i32
    return %c0_i32, %c0_i32_0 : i32, i32
  }
  func.func @transform_2(%arg0: i32) -> (i32, i32) {
    %c0_i32 = arith.constant 0 : i32
    %c0_i32_0 = arith.constant 0 : i32
    return %arg0, %c0_i32 : i32, i32
  }
  func.func @transform_3(%arg0: i32) -> (i32, i32, i32) {
    %c0_i32 = arith.constant 0 : i32
    %c0_i32_0 = arith.constant 0 : i32
    %c0_i32_1 = arith.constant 0 : i32
    return %arg0, %c0_i32, %c0_i32_0 : i32, i32, i32
  }
}

module attributes {stable_mosaic.version = 11 : i64} {
  func.func @kernel(%arg0: i32, %arg1: memref<1x16x16x32xf32, #tpu.memory_space<vmem>>, %arg2: memref<1x32xf32, #tpu.memory_space<vmem>>, %arg3: memref<1x32xf32, #tpu.memory_space<vmem>>, %arg4: memref<9x32xf32, #tpu.memory_space<vmem>>, %arg5: memref<9x32xf32, #tpu.memory_space<vmem>>, %arg6: memref<1x16x16x32xf32, #tpu.memory_space<vmem>>, %arg7: memref<1x2x32xf32, #tpu.memory_space<vmem>>, %arg8: memref<18x18x32xf32, #tpu.memory_space<vmem>>) attributes {dimension_semantics = [#tpu.dimension_semantics<parallel>], iteration_bounds = array<i64: 2>, scalar_prefetch = 0 : i64, scratch_operands = 1 : i64, tpu.core_type = #tpu.core_type<tc>, window_params = [{transform_indices = @transform_0, window_bounds = array<i64: 1, 16, 16, 32>}, {pipeline_mode = #tpu.pipeline_mode<synchronous>, transform_indices = @transform_1, window_bounds = array<i64: 1, 32>}, {pipeline_mode = #tpu.pipeline_mode<synchronous>, transform_indices = @transform_2, window_bounds = array<i64: 1, 32>}, {pipeline_mode = #tpu.pipeline_mode<synchronous>, transform_indices = @transform_3, window_bounds = array<i64: 9, 32>}, {pipeline_mode = #tpu.pipeline_mode<synchronous>, transform_indices = @transform_4, window_bounds = array<i64: 9, 32>}, {transform_indices = @transform_5, window_bounds = array<i64: 1, 16, 16, 32>}, {transform_indices = @transform_6, window_bounds = array<i64: 1, 2, 32>}]} {
    %c0 = arith.constant 0 : index
    %c0_0 = arith.constant 0 : index
    %c0_1 = arith.constant 0 : index
    %c0_2 = arith.constant 0 : index
    %0 = vector.load %arg1[%c0, %c0_0, %c0_1, %c0_2] : memref<1x16x16x32xf32, #tpu.memory_space<vmem>>, vector<1x16x16x32xf32>
    %1 = vector.shape_cast %0 : vector<1x16x16x32xf32> to vector<16x16x32xf32>
    %c0_3 = arith.constant 0 : index
    %c0_4 = arith.constant 0 : index
    %2 = vector.load %arg2[%c0_3, %c0_4] : memref<1x32xf32, #tpu.memory_space<vmem>>, vector<1x32xf32>
    %3 = vector.shape_cast %2 : vector<1x32xf32> to vector<32xf32>
    %4 = vector.shape_cast %3 : vector<32xf32> to vector<1x1x32xf32>
    %5 = vector.broadcast %4 : vector<1x1x32xf32> to vector<16x16x32xf32>
    %6 = arith.mulf %1, %5 : vector<16x16x32xf32>
    %c0_5 = arith.constant 0 : index
    %c0_6 = arith.constant 0 : index
    %7 = vector.load %arg3[%c0_5, %c0_6] : memref<1x32xf32, #tpu.memory_space<vmem>>, vector<1x32xf32>
    %8 = vector.shape_cast %7 : vector<1x32xf32> to vector<32xf32>
    %9 = vector.shape_cast %8 : vector<32xf32> to vector<1x1x32xf32>
    %10 = vector.broadcast %9 : vector<1x1x32xf32> to vector<16x16x32xf32>
    %11 = arith.addf %6, %10 : vector<16x16x32xf32>
    %12 = arith.negf %11 : vector<16x16x32xf32>
    %13 = math.exp %12 : vector<16x16x32xf32>
    %cst = arith.constant 1.000000e+00 : f32
    %14 = vector.broadcast %cst : f32 to vector<16x16x32xf32>
    %15 = arith.addf %14, %13 : vector<16x16x32xf32>
    %16 = arith.divf %14, %15 : vector<16x16x32xf32>
    %17 = arith.mulf %11, %16 : vector<16x16x32xf32>
    %cst_7 = arith.constant 0.000000e+00 : f32
    %18 = vector.broadcast %cst_7 : f32 to vector<18x18x32xf32>
    %c0_8 = arith.constant 0 : index
    %c0_9 = arith.constant 0 : index
    %c0_10 = arith.constant 0 : index
    %19 = vector.load %arg8[%c0_8, %c0_9, %c0_10] : memref<18x18x32xf32, #tpu.memory_space<vmem>>, vector<18x18x32xf32>
    tpu.vector_store %arg8[%c0_8, %c0_9, %c0_10], %18 {strides = array<i32>} : memref<18x18x32xf32, #tpu.memory_space<vmem>>, vector<18x18x32xf32>,
    %c1 = arith.constant 1 : index
    %c1_11 = arith.constant 1 : index
    %c0_12 = arith.constant 0 : index
    %20 = vector.load %arg8[%c1, %c1_11, %c0_12] : memref<18x18x32xf32, #tpu.memory_space<vmem>>, vector<16x16x32xf32>
    tpu.vector_store %arg8[%c1, %c1_11, %c0_12], %17 {strides = array<i32>} : memref<18x18x32xf32, #tpu.memory_space<vmem>>, vector<16x16x32xf32>,
    %c0_13 = arith.constant 0 : index
    %c0_14 = arith.constant 0 : index
    %c0_15 = arith.constant 0 : index
    %21 = vector.load %arg8[%c0_13, %c0_14, %c0_15] : memref<18x18x32xf32, #tpu.memory_space<vmem>>, vector<18x18x32xf32>
    %22 = vector.extract_strided_slice %21 {offsets = [0, 0, 16], sizes = [18, 18, 16], strides = [1, 1, 1]} : vector<18x18x32xf32> to vector<18x18x16xf32>
    %23 = vector.extract_strided_slice %21 {offsets = [0, 0, 0], sizes = [18, 18, 16], strides = [1, 1, 1]} : vector<18x18x32xf32> to vector<18x18x16xf32>
    %24 = tpu.concatenate %22, %23 in 2 : vector<18x18x16xf32>, vector<18x18x16xf32> -> vector<18x18x32xf32>
    %c0_16 = arith.constant 0 : index
    %c0_17 = arith.constant 0 : index
    %25 = vector.load %arg4[%c0_16, %c0_17] : memref<9x32xf32, #tpu.memory_space<vmem>>, vector<9x32xf32>
    %c0_18 = arith.constant 0 : index
    %c0_19 = arith.constant 0 : index
    %26 = vector.load %arg5[%c0_18, %c0_19] : memref<9x32xf32, #tpu.memory_space<vmem>>, vector<9x32xf32>
    %cst_20 = arith.constant 0.000000e+00 : f32
    %27 = vector.broadcast %cst_20 : f32 to vector<16x16x32xf32>
    %28 = vector.extract_strided_slice %21 {offsets = [0, 0, 0], sizes = [16, 16, 32], strides = [1, 1, 1]} : vector<18x18x32xf32> to vector<16x16x32xf32>
    %29 = vector.extract_strided_slice %24 {offsets = [0, 0, 0], sizes = [16, 16, 32], strides = [1, 1, 1]} : vector<18x18x32xf32> to vector<16x16x32xf32>
    %30 = vector.extract_strided_slice %25 {offsets = [0, 0], sizes = [1, 32], strides = [1, 1]} : vector<9x32xf32> to vector<1x32xf32>
    %31 = vector.shape_cast %30 : vector<1x32xf32> to vector<32xf32>
    %32 = vector.shape_cast %31 : vector<32xf32> to vector<1x1x32xf32>
    %33 = vector.broadcast %32 : vector<1x1x32xf32> to vector<16x16x32xf32>
    %34 = arith.mulf %28, %33 : vector<16x16x32xf32>
    %35 = arith.addf %27, %34 : vector<16x16x32xf32>
    %36 = vector.extract_strided_slice %26 {offsets = [0, 0], sizes = [1, 32], strides = [1, 1]} : vector<9x32xf32> to vector<1x32xf32>
    %37 = vector.shape_cast %36 : vector<1x32xf32> to vector<32xf32>
    %38 = vector.shape_cast %37 : vector<32xf32> to vector<1x1x32xf32>
    %39 = vector.broadcast %38 : vector<1x1x32xf32> to vector<16x16x32xf32>
    %40 = arith.mulf %29, %39 : vector<16x16x32xf32>
    %41 = arith.addf %35, %40 : vector<16x16x32xf32>
    %42 = vector.extract_strided_slice %21 {offsets = [0, 1, 0], sizes = [16, 16, 32], strides = [1, 1, 1]} : vector<18x18x32xf32> to vector<16x16x32xf32>
    %43 = vector.extract_strided_slice %24 {offsets = [0, 1, 0], sizes = [16, 16, 32], strides = [1, 1, 1]} : vector<18x18x32xf32> to vector<16x16x32xf32>
    %44 = vector.extract_strided_slice %25 {offsets = [1, 0], sizes = [1, 32], strides = [1, 1]} : vector<9x32xf32> to vector<1x32xf32>
    %45 = vector.shape_cast %44 : vector<1x32xf32> to vector<32xf32>
    %46 = vector.shape_cast %45 : vector<32xf32> to vector<1x1x32xf32>
    %47 = vector.broadcast %46 : vector<1x1x32xf32> to vector<16x16x32xf32>
    %48 = arith.mulf %42, %47 : vector<16x16x32xf32>
    %49 = arith.addf %41, %48 : vector<16x16x32xf32>
    %50 = vector.extract_strided_slice %26 {offsets = [1, 0], sizes = [1, 32], strides = [1, 1]} : vector<9x32xf32> to vector<1x32xf32>
    %51 = vector.shape_cast %50 : vector<1x32xf32> to vector<32xf32>
    %52 = vector.shape_cast %51 : vector<32xf32> to vector<1x1x32xf32>
    %53 = vector.broadcast %52 : vector<1x1x32xf32> to vector<16x16x32xf32>
    %54 = arith.mulf %43, %53 : vector<16x16x32xf32>
    %55 = arith.addf %49, %54 : vector<16x16x32xf32>
    %56 = vector.extract_strided_slice %21 {offsets = [0, 2, 0], sizes = [16, 16, 32], strides = [1, 1, 1]} : vector<18x18x32xf32> to vector<16x16x32xf32>
    %57 = vector.extract_strided_slice %24 {offsets = [0, 2, 0], sizes = [16, 16, 32], strides = [1, 1, 1]} : vector<18x18x32xf32> to vector<16x16x32xf32>
    %58 = vector.extract_strided_slice %25 {offsets = [2, 0], sizes = [1, 32], strides = [1, 1]} : vector<9x32xf32> to vector<1x32xf32>
    %59 = vector.shape_cast %58 : vector<1x32xf32> to vector<32xf32>
    %60 = vector.shape_cast %59 : vector<32xf32> to vector<1x1x32xf32>
    %61 = vector.broadcast %60 : vector<1x1x32xf32> to vector<16x16x32xf32>
    %62 = arith.mulf %56, %61 : vector<16x16x32xf32>
    %63 = arith.addf %55, %62 : vector<16x16x32xf32>
    %64 = vector.extract_strided_slice %26 {offsets = [2, 0], sizes = [1, 32], strides = [1, 1]} : vector<9x32xf32> to vector<1x32xf32>
    %65 = vector.shape_cast %64 : vector<1x32xf32> to vector<32xf32>
    %66 = vector.shape_cast %65 : vector<32xf32> to vector<1x1x32xf32>
    %67 = vector.broadcast %66 : vector<1x1x32xf32> to vector<16x16x32xf32>
    %68 = arith.mulf %57, %67 : vector<16x16x32xf32>
    %69 = arith.addf %63, %68 : vector<16x16x32xf32>
    %70 = vector.extract_strided_slice %21 {offsets = [1, 0, 0], sizes = [16, 16, 32], strides = [1, 1, 1]} : vector<18x18x32xf32> to vector<16x16x32xf32>
    %71 = vector.extract_strided_slice %24 {offsets = [1, 0, 0], sizes = [16, 16, 32], strides = [1, 1, 1]} : vector<18x18x32xf32> to vector<16x16x32xf32>
    %72 = vector.extract_strided_slice %25 {offsets = [3, 0], sizes = [1, 32], strides = [1, 1]} : vector<9x32xf32> to vector<1x32xf32>
    %73 = vector.shape_cast %72 : vector<1x32xf32> to vector<32xf32>
    %74 = vector.shape_cast %73 : vector<32xf32> to vector<1x1x32xf32>
    %75 = vector.broadcast %74 : vector<1x1x32xf32> to vector<16x16x32xf32>
    %76 = arith.mulf %70, %75 : vector<16x16x32xf32>
    %77 = arith.addf %69, %76 : vector<16x16x32xf32>
    %78 = vector.extract_strided_slice %26 {offsets = [3, 0], sizes = [1, 32], strides = [1, 1]} : vector<9x32xf32> to vector<1x32xf32>
    %79 = vector.shape_cast %78 : vector<1x32xf32> to vector<32xf32>
    %80 = vector.shape_cast %79 : vector<32xf32> to vector<1x1x32xf32>
    %81 = vector.broadcast %80 : vector<1x1x32xf32> to vector<16x16x32xf32>
    %82 = arith.mulf %71, %81 : vector<16x16x32xf32>
    %83 = arith.addf %77, %82 : vector<16x16x32xf32>
    %84 = vector.extract_strided_slice %21 {offsets = [1, 1, 0], sizes = [16, 16, 32], strides = [1, 1, 1]} : vector<18x18x32xf32> to vector<16x16x32xf32>
    %85 = vector.extract_strided_slice %24 {offsets = [1, 1, 0], sizes = [16, 16, 32], strides = [1, 1, 1]} : vector<18x18x32xf32> to vector<16x16x32xf32>
    %86 = vector.extract_strided_slice %25 {offsets = [4, 0], sizes = [1, 32], strides = [1, 1]} : vector<9x32xf32> to vector<1x32xf32>
    %87 = vector.shape_cast %86 : vector<1x32xf32> to vector<32xf32>
    %88 = vector.shape_cast %87 : vector<32xf32> to vector<1x1x32xf32>
    %89 = vector.broadcast %88 : vector<1x1x32xf32> to vector<16x16x32xf32>
    %90 = arith.mulf %84, %89 : vector<16x16x32xf32>
    %91 = arith.addf %83, %90 : vector<16x16x32xf32>
    %92 = vector.extract_strided_slice %26 {offsets = [4, 0], sizes = [1, 32], strides = [1, 1]} : vector<9x32xf32> to vector<1x32xf32>
    %93 = vector.shape_cast %92 : vector<1x32xf32> to vector<32xf32>
    %94 = vector.shape_cast %93 : vector<32xf32> to vector<1x1x32xf32>
    %95 = vector.broadcast %94 : vector<1x1x32xf32> to vector<16x16x32xf32>
    %96 = arith.mulf %85, %95 : vector<16x16x32xf32>
    %97 = arith.addf %91, %96 : vector<16x16x32xf32>
    %98 = vector.extract_strided_slice %21 {offsets = [1, 2, 0], sizes = [16, 16, 32], strides = [1, 1, 1]} : vector<18x18x32xf32> to vector<16x16x32xf32>
    %99 = vector.extract_strided_slice %24 {offsets = [1, 2, 0], sizes = [16, 16, 32], strides = [1, 1, 1]} : vector<18x18x32xf32> to vector<16x16x32xf32>
    %100 = vector.extract_strided_slice %25 {offsets = [5, 0], sizes = [1, 32], strides = [1, 1]} : vector<9x32xf32> to vector<1x32xf32>
    %101 = vector.shape_cast %100 : vector<1x32xf32> to vector<32xf32>
    %102 = vector.shape_cast %101 : vector<32xf32> to vector<1x1x32xf32>
    %103 = vector.broadcast %102 : vector<1x1x32xf32> to vector<16x16x32xf32>
    %104 = arith.mulf %98, %103 : vector<16x16x32xf32>
    %105 = arith.addf %97, %104 : vector<16x16x32xf32>
    %106 = vector.extract_strided_slice %26 {offsets = [5, 0], sizes = [1, 32], strides = [1, 1]} : vector<9x32xf32> to vector<1x32xf32>
    %107 = vector.shape_cast %106 : vector<1x32xf32> to vector<32xf32>
    %108 = vector.shape_cast %107 : vector<32xf32> to vector<1x1x32xf32>
    %109 = vector.broadcast %108 : vector<1x1x32xf32> to vector<16x16x32xf32>
    %110 = arith.mulf %99, %109 : vector<16x16x32xf32>
    %111 = arith.addf %105, %110 : vector<16x16x32xf32>
    %112 = vector.extract_strided_slice %21 {offsets = [2, 0, 0], sizes = [16, 16, 32], strides = [1, 1, 1]} : vector<18x18x32xf32> to vector<16x16x32xf32>
    %113 = vector.extract_strided_slice %24 {offsets = [2, 0, 0], sizes = [16, 16, 32], strides = [1, 1, 1]} : vector<18x18x32xf32> to vector<16x16x32xf32>
    %114 = vector.extract_strided_slice %25 {offsets = [6, 0], sizes = [1, 32], strides = [1, 1]} : vector<9x32xf32> to vector<1x32xf32>
    %115 = vector.shape_cast %114 : vector<1x32xf32> to vector<32xf32>
    %116 = vector.shape_cast %115 : vector<32xf32> to vector<1x1x32xf32>
    %117 = vector.broadcast %116 : vector<1x1x32xf32> to vector<16x16x32xf32>
    %118 = arith.mulf %112, %117 : vector<16x16x32xf32>
    %119 = arith.addf %111, %118 : vector<16x16x32xf32>
    %120 = vector.extract_strided_slice %26 {offsets = [6, 0], sizes = [1, 32], strides = [1, 1]} : vector<9x32xf32> to vector<1x32xf32>
    %121 = vector.shape_cast %120 : vector<1x32xf32> to vector<32xf32>
    %122 = vector.shape_cast %121 : vector<32xf32> to vector<1x1x32xf32>
    %123 = vector.broadcast %122 : vector<1x1x32xf32> to vector<16x16x32xf32>
    %124 = arith.mulf %113, %123 : vector<16x16x32xf32>
    %125 = arith.addf %119, %124 : vector<16x16x32xf32>
    %126 = vector.extract_strided_slice %21 {offsets = [2, 1, 0], sizes = [16, 16, 32], strides = [1, 1, 1]} : vector<18x18x32xf32> to vector<16x16x32xf32>
    %127 = vector.extract_strided_slice %24 {offsets = [2, 1, 0], sizes = [16, 16, 32], strides = [1, 1, 1]} : vector<18x18x32xf32> to vector<16x16x32xf32>
    %128 = vector.extract_strided_slice %25 {offsets = [7, 0], sizes = [1, 32], strides = [1, 1]} : vector<9x32xf32> to vector<1x32xf32>
    %129 = vector.shape_cast %128 : vector<1x32xf32> to vector<32xf32>
    %130 = vector.shape_cast %129 : vector<32xf32> to vector<1x1x32xf32>
    %131 = vector.broadcast %130 : vector<1x1x32xf32> to vector<16x16x32xf32>
    %132 = arith.mulf %126, %131 : vector<16x16x32xf32>
    %133 = arith.addf %125, %132 : vector<16x16x32xf32>
    %134 = vector.extract_strided_slice %26 {offsets = [7, 0], sizes = [1, 32], strides = [1, 1]} : vector<9x32xf32> to vector<1x32xf32>
    %135 = vector.shape_cast %134 : vector<1x32xf32> to vector<32xf32>
    %136 = vector.shape_cast %135 : vector<32xf32> to vector<1x1x32xf32>
    %137 = vector.broadcast %136 : vector<1x1x32xf32> to vector<16x16x32xf32>
    %138 = arith.mulf %127, %137 : vector<16x16x32xf32>
    %139 = arith.addf %133, %138 : vector<16x16x32xf32>
    %140 = vector.extract_strided_slice %21 {offsets = [2, 2, 0], sizes = [16, 16, 32], strides = [1, 1, 1]} : vector<18x18x32xf32> to vector<16x16x32xf32>
    %141 = vector.extract_strided_slice %24 {offsets = [2, 2, 0], sizes = [16, 16, 32], strides = [1, 1, 1]} : vector<18x18x32xf32> to vector<16x16x32xf32>
    %142 = vector.extract_strided_slice %25 {offsets = [8, 0], sizes = [1, 32], strides = [1, 1]} : vector<9x32xf32> to vector<1x32xf32>
    %143 = vector.shape_cast %142 : vector<1x32xf32> to vector<32xf32>
    %144 = vector.shape_cast %143 : vector<32xf32> to vector<1x1x32xf32>
    %145 = vector.broadcast %144 : vector<1x1x32xf32> to vector<16x16x32xf32>
    %146 = arith.mulf %140, %145 : vector<16x16x32xf32>
    %147 = arith.addf %139, %146 : vector<16x16x32xf32>
    %148 = vector.extract_strided_slice %26 {offsets = [8, 0], sizes = [1, 32], strides = [1, 1]} : vector<9x32xf32> to vector<1x32xf32>
    %149 = vector.shape_cast %148 : vector<1x32xf32> to vector<32xf32>
    %150 = vector.shape_cast %149 : vector<32xf32> to vector<1x1x32xf32>
    %151 = vector.broadcast %150 : vector<1x1x32xf32> to vector<16x16x32xf32>
    %152 = arith.mulf %141, %151 : vector<16x16x32xf32>
    %153 = arith.addf %147, %152 : vector<16x16x32xf32>
    %c0_21 = arith.constant 0 : index
    %c0_22 = arith.constant 0 : index
    %c0_23 = arith.constant 0 : index
    %c0_24 = arith.constant 0 : index
    %154 = vector.load %arg6[%c0_21, %c0_22, %c0_23, %c0_24] : memref<1x16x16x32xf32, #tpu.memory_space<vmem>>, vector<1x16x16x32xf32>
    %155 = vector.shape_cast %154 : vector<1x16x16x32xf32> to vector<16x16x32xf32>
    %156 = vector.shape_cast %153 : vector<16x16x32xf32> to vector<1x16x16x32xf32>
    tpu.vector_store %arg6[%c0_21, %c0_22, %c0_23, %c0_24], %156 {strides = array<i32>} : memref<1x16x16x32xf32, #tpu.memory_space<vmem>>, vector<1x16x16x32xf32>,
    %cst_25 = arith.constant dense<0.000000e+00> : vector<32xf32>
    %157 = vector.multi_reduction <add>, %153, %cst_25 [0, 1] : vector<16x16x32xf32> to vector<32xf32>
    %158 = vector.shape_cast %157 : vector<32xf32> to vector<1x32xf32>
    %c0_26 = arith.constant 0 : index
    %c0_27 = arith.constant 0 : index
    %c0_28 = arith.constant 0 : index
    %159 = vector.load %arg7[%c0_26, %c0_27, %c0_28] : memref<1x2x32xf32, #tpu.memory_space<vmem>>, vector<1x1x32xf32>
    %160 = vector.shape_cast %159 : vector<1x1x32xf32> to vector<1x32xf32>
    %161 = vector.shape_cast %158 : vector<1x32xf32> to vector<1x1x32xf32>
    tpu.vector_store %arg7[%c0_26, %c0_27, %c0_28], %161 {strides = array<i32>} : memref<1x2x32xf32, #tpu.memory_space<vmem>>, vector<1x1x32xf32>,
    %162 = arith.mulf %153, %153 : vector<16x16x32xf32>
    %cst_29 = arith.constant dense<0.000000e+00> : vector<32xf32>
    %163 = vector.multi_reduction <add>, %162, %cst_29 [0, 1] : vector<16x16x32xf32> to vector<32xf32>
    %164 = vector.shape_cast %163 : vector<32xf32> to vector<1x32xf32>
    %c0_30 = arith.constant 0 : index
    %c1_31 = arith.constant 1 : index
    %c0_32 = arith.constant 0 : index
    %165 = vector.load %arg7[%c0_30, %c1_31, %c0_32] : memref<1x2x32xf32, #tpu.memory_space<vmem>>, vector<1x1x32xf32>
    %166 = vector.shape_cast %165 : vector<1x1x32xf32> to vector<1x32xf32>
    %167 = vector.shape_cast %164 : vector<1x32xf32> to vector<1x1x32xf32>
    tpu.vector_store %arg7[%c0_30, %c1_31, %c0_32], %167 {strides = array<i32>} : memref<1x2x32xf32, #tpu.memory_space<vmem>>, vector<1x1x32xf32>,
    return
  }
  func.func @transform_0(%arg0: i32) -> (i32, i32, i32, i32) {
    %c0_i32 = arith.constant 0 : i32
    %c0_i32_0 = arith.constant 0 : i32
    %c0_i32_1 = arith.constant 0 : i32
    %c0_i32_2 = arith.constant 0 : i32
    return %arg0, %c0_i32, %c0_i32_0, %c0_i32_1 : i32, i32, i32, i32
  }
  func.func @transform_1(%arg0: i32) -> (i32, i32) {
    %c0_i32 = arith.constant 0 : i32
    %c0_i32_0 = arith.constant 0 : i32
    %c0_i32_1 = arith.constant 0 : i32
    return %c0_i32, %c0_i32_0 : i32, i32
  }
  func.func @transform_2(%arg0: i32) -> (i32, i32) {
    %c0_i32 = arith.constant 0 : i32
    %c0_i32_0 = arith.constant 0 : i32
    %c0_i32_1 = arith.constant 0 : i32
    return %c0_i32, %c0_i32_0 : i32, i32
  }
  func.func @transform_3(%arg0: i32) -> (i32, i32) {
    %c0_i32 = arith.constant 0 : i32
    %c0_i32_0 = arith.constant 0 : i32
    %c0_i32_1 = arith.constant 0 : i32
    return %c0_i32, %c0_i32_0 : i32, i32
  }
  func.func @transform_4(%arg0: i32) -> (i32, i32) {
    %c0_i32 = arith.constant 0 : i32
    %c0_i32_0 = arith.constant 0 : i32
    %c0_i32_1 = arith.constant 0 : i32
    return %c0_i32, %c0_i32_0 : i32, i32
  }
  func.func @transform_5(%arg0: i32) -> (i32, i32, i32, i32) {
    %c0_i32 = arith.constant 0 : i32
    %c0_i32_0 = arith.constant 0 : i32
    %c0_i32_1 = arith.constant 0 : i32
    %c0_i32_2 = arith.constant 0 : i32
    return %arg0, %c0_i32, %c0_i32_0, %c0_i32_1 : i32, i32, i32, i32
  }
  func.func @transform_6(%arg0: i32) -> (i32, i32, i32) {
    %c0_i32 = arith.constant 0 : i32
    %c0_i32_0 = arith.constant 0 : i32
    %c0_i32_1 = arith.constant 0 : i32
    return %arg0, %c0_i32, %c0_i32_0 : i32, i32, i32
  }
}

module attributes {stable_mosaic.version = 11 : i64} {
  func.func @_se_pool_kernel(%arg0: i32, %arg1: memref<1x16x16x32xf32, #tpu.memory_space<vmem>>, %arg2: memref<1x32xf32, #tpu.memory_space<vmem>>, %arg3: memref<1x32xf32, #tpu.memory_space<vmem>>, %arg4: memref<1x1x32xf32, #tpu.memory_space<vmem>>) attributes {dimension_semantics = [#tpu.dimension_semantics<parallel>], iteration_bounds = array<i64: 2>, scalar_prefetch = 0 : i64, scratch_operands = 0 : i64, tpu.core_type = #tpu.core_type<tc>, window_params = [{transform_indices = @transform_0, window_bounds = array<i64: 1, 16, 16, 32>}, {pipeline_mode = #tpu.pipeline_mode<synchronous>, transform_indices = @transform_1, window_bounds = array<i64: 1, 32>}, {pipeline_mode = #tpu.pipeline_mode<synchronous>, transform_indices = @transform_2, window_bounds = array<i64: 1, 32>}, {transform_indices = @transform_3, window_bounds = array<i64: 1, 1, 32>}]} {
    %c0 = arith.constant 0 : index
    %c0_0 = arith.constant 0 : index
    %c0_1 = arith.constant 0 : index
    %c0_2 = arith.constant 0 : index
    %0 = vector.load %arg1[%c0, %c0_0, %c0_1, %c0_2] : memref<1x16x16x32xf32, #tpu.memory_space<vmem>>, vector<1x16x16x32xf32>
    %1 = vector.shape_cast %0 : vector<1x16x16x32xf32> to vector<16x16x32xf32>
    %c0_3 = arith.constant 0 : index
    %c0_4 = arith.constant 0 : index
    %2 = vector.load %arg2[%c0_3, %c0_4] : memref<1x32xf32, #tpu.memory_space<vmem>>, vector<1x32xf32>
    %3 = vector.shape_cast %2 : vector<1x32xf32> to vector<32xf32>
    %4 = vector.shape_cast %3 : vector<32xf32> to vector<1x1x32xf32>
    %5 = vector.broadcast %4 : vector<1x1x32xf32> to vector<16x16x32xf32>
    %6 = arith.mulf %1, %5 : vector<16x16x32xf32>
    %c0_5 = arith.constant 0 : index
    %c0_6 = arith.constant 0 : index
    %7 = vector.load %arg3[%c0_5, %c0_6] : memref<1x32xf32, #tpu.memory_space<vmem>>, vector<1x32xf32>
    %8 = vector.shape_cast %7 : vector<1x32xf32> to vector<32xf32>
    %9 = vector.shape_cast %8 : vector<32xf32> to vector<1x1x32xf32>
    %10 = vector.broadcast %9 : vector<1x1x32xf32> to vector<16x16x32xf32>
    %11 = arith.addf %6, %10 : vector<16x16x32xf32>
    %12 = arith.negf %11 : vector<16x16x32xf32>
    %13 = math.exp %12 : vector<16x16x32xf32>
    %cst = arith.constant 1.000000e+00 : f32
    %14 = vector.broadcast %cst : f32 to vector<16x16x32xf32>
    %15 = arith.addf %14, %13 : vector<16x16x32xf32>
    %16 = arith.divf %14, %15 : vector<16x16x32xf32>
    %17 = arith.mulf %11, %16 : vector<16x16x32xf32>
    %cst_7 = arith.constant dense<0.000000e+00> : vector<32xf32>
    %18 = vector.multi_reduction <add>, %17, %cst_7 [0, 1] : vector<16x16x32xf32> to vector<32xf32>
    %19 = vector.shape_cast %18 : vector<32xf32> to vector<1x32xf32>
    %c0_8 = arith.constant 0 : index
    %c0_9 = arith.constant 0 : index
    %c0_10 = arith.constant 0 : index
    %20 = vector.load %arg4[%c0_8, %c0_9, %c0_10] : memref<1x1x32xf32, #tpu.memory_space<vmem>>, vector<1x1x32xf32>
    %21 = vector.shape_cast %20 : vector<1x1x32xf32> to vector<1x32xf32>
    %22 = vector.shape_cast %19 : vector<1x32xf32> to vector<1x1x32xf32>
    tpu.vector_store %arg4[%c0_8, %c0_9, %c0_10], %22 {strides = array<i32>} : memref<1x1x32xf32, #tpu.memory_space<vmem>>, vector<1x1x32xf32>,
    return
  }
  func.func @transform_0(%arg0: i32) -> (i32, i32, i32, i32) {
    %c0_i32 = arith.constant 0 : i32
    %c0_i32_0 = arith.constant 0 : i32
    %c0_i32_1 = arith.constant 0 : i32
    %c0_i32_2 = arith.constant 0 : i32
    return %arg0, %c0_i32, %c0_i32_0, %c0_i32_1 : i32, i32, i32, i32
  }
  func.func @transform_1(%arg0: i32) -> (i32, i32) {
    %c0_i32 = arith.constant 0 : i32
    %c0_i32_0 = arith.constant 0 : i32
    %c0_i32_1 = arith.constant 0 : i32
    return %c0_i32, %c0_i32_0 : i32, i32
  }
  func.func @transform_2(%arg0: i32) -> (i32, i32) {
    %c0_i32 = arith.constant 0 : i32
    %c0_i32_0 = arith.constant 0 : i32
    %c0_i32_1 = arith.constant 0 : i32
    return %c0_i32, %c0_i32_0 : i32, i32
  }
  func.func @transform_3(%arg0: i32) -> (i32, i32, i32) {
    %c0_i32 = arith.constant 0 : i32
    %c0_i32_0 = arith.constant 0 : i32
    %c0_i32_1 = arith.constant 0 : i32
    return %arg0, %c0_i32, %c0_i32_0 : i32, i32, i32
  }
}

module attributes {stable_mosaic.version = 11 : i64} {
  func.func @_project_kernel(%arg0: i32, %arg1: i32, %arg2: memref<1x256x32xf32, #tpu.memory_space<vmem>>, %arg3: memref<1x32xf32, #tpu.memory_space<vmem>>, %arg4: memref<1x32xf32, #tpu.memory_space<vmem>>, %arg5: memref<1x1x32xf32, #tpu.memory_space<vmem>>, %arg6: memref<32x16xbf16, #tpu.memory_space<vmem>>, %arg7: memref<1x256x16xf32, #tpu.memory_space<vmem>>, %arg8: memref<1x1x2x16xf32, #tpu.memory_space<vmem>>) attributes {dimension_semantics = [#tpu.dimension_semantics<parallel>, #tpu.dimension_semantics<parallel>], iteration_bounds = array<i64: 2, 1>, scalar_prefetch = 0 : i64, scratch_operands = 0 : i64, tpu.core_type = #tpu.core_type<tc>, window_params = [{transform_indices = @transform_0, window_bounds = array<i64: 1, 256, 32>}, {pipeline_mode = #tpu.pipeline_mode<synchronous>, transform_indices = @transform_1, window_bounds = array<i64: 1, 32>}, {pipeline_mode = #tpu.pipeline_mode<synchronous>, transform_indices = @transform_2, window_bounds = array<i64: 1, 32>}, {transform_indices = @transform_3, window_bounds = array<i64: 1, 1, 32>}, {pipeline_mode = #tpu.pipeline_mode<synchronous>, transform_indices = @transform_4, window_bounds = array<i64: 32, 16>}, {transform_indices = @transform_5, window_bounds = array<i64: 1, 256, 16>}, {transform_indices = @transform_6, window_bounds = array<i64: 1, 1, 2, 16>}]} {
    %c0 = arith.constant 0 : index
    %c0_0 = arith.constant 0 : index
    %c0_1 = arith.constant 0 : index
    %0 = vector.load %arg2[%c0, %c0_0, %c0_1] : memref<1x256x32xf32, #tpu.memory_space<vmem>>, vector<1x256x32xf32>
    %1 = vector.shape_cast %0 : vector<1x256x32xf32> to vector<256x32xf32>
    %c0_2 = arith.constant 0 : index
    %c0_3 = arith.constant 0 : index
    %2 = vector.load %arg3[%c0_2, %c0_3] : memref<1x32xf32, #tpu.memory_space<vmem>>, vector<1x32xf32>
    %3 = vector.broadcast %2 : vector<1x32xf32> to vector<256x32xf32>
    %4 = arith.mulf %1, %3 : vector<256x32xf32>
    %c0_4 = arith.constant 0 : index
    %c0_5 = arith.constant 0 : index
    %5 = vector.load %arg4[%c0_4, %c0_5] : memref<1x32xf32, #tpu.memory_space<vmem>>, vector<1x32xf32>
    %6 = vector.broadcast %5 : vector<1x32xf32> to vector<256x32xf32>
    %7 = arith.addf %4, %6 : vector<256x32xf32>
    %8 = arith.negf %7 : vector<256x32xf32>
    %9 = math.exp %8 : vector<256x32xf32>
    %cst = arith.constant 1.000000e+00 : f32
    %10 = vector.broadcast %cst : f32 to vector<256x32xf32>
    %11 = arith.addf %10, %9 : vector<256x32xf32>
    %12 = arith.divf %10, %11 : vector<256x32xf32>
    %13 = arith.mulf %7, %12 : vector<256x32xf32>
    %c0_6 = arith.constant 0 : index
    %c0_7 = arith.constant 0 : index
    %c0_8 = arith.constant 0 : index
    %14 = vector.load %arg5[%c0_6, %c0_7, %c0_8] : memref<1x1x32xf32, #tpu.memory_space<vmem>>, vector<1x1x32xf32>
    %15 = vector.shape_cast %14 : vector<1x1x32xf32> to vector<1x32xf32>
    %16 = vector.broadcast %15 : vector<1x32xf32> to vector<256x32xf32>
    %17 = arith.mulf %13, %16 : vector<256x32xf32>
    %18 = arith.truncf %17 : vector<256x32xf32> to vector<256x32xbf16>
    %c0_9 = arith.constant 0 : index
    %c0_10 = arith.constant 0 : index
    %19 = vector.load %arg6[%c0_9, %c0_10] : memref<32x16xbf16, #tpu.memory_space<vmem>>, vector<32x16xbf16>
    %cst_11 = arith.constant dense<0.000000e+00> : vector<256x16xf32>
    %20 = tpu.matmul %18, %19, %cst_11 {dimension_numbers = #tpu.dot_dimension_numbers<[1], [0], [0], [1], [0, 0, 1, 1], [], []>} : vector<256x32xbf16>, vector<32x16xbf16>, vector<256x16xf32> -> vector<256x16xf32>
    %c0_12 = arith.constant 0 : index
    %c0_13 = arith.constant 0 : index
    %c0_14 = arith.constant 0 : index
    %21 = vector.load %arg7[%c0_12, %c0_13, %c0_14] : memref<1x256x16xf32, #tpu.memory_space<vmem>>, vector<1x256x16xf32>
    %22 = vector.shape_cast %21 : vector<1x256x16xf32> to vector<256x16xf32>
    %23 = vector.shape_cast %20 : vector<256x16xf32> to vector<1x256x16xf32>
    tpu.vector_store %arg7[%c0_12, %c0_13, %c0_14], %23 {strides = array<i32>} : memref<1x256x16xf32, #tpu.memory_space<vmem>>, vector<1x256x16xf32>,
    %cst_15 = arith.constant dense<0.000000e+00> : vector<16xf32>
    %24 = vector.multi_reduction <add>, %20, %cst_15 [0] : vector<256x16xf32> to vector<16xf32>
    %25 = vector.shape_cast %24 : vector<16xf32> to vector<1x16xf32>
    %c0_16 = arith.constant 0 : index
    %c0_17 = arith.constant 0 : index
    %c0_18 = arith.constant 0 : index
    %c0_19 = arith.constant 0 : index
    %26 = vector.load %arg8[%c0_16, %c0_17, %c0_18, %c0_19] : memref<1x1x2x16xf32, #tpu.memory_space<vmem>>, vector<1x1x1x16xf32>
    %27 = vector.shape_cast %26 : vector<1x1x1x16xf32> to vector<1x16xf32>
    %28 = vector.shape_cast %25 : vector<1x16xf32> to vector<1x1x1x16xf32>
    tpu.vector_store %arg8[%c0_16, %c0_17, %c0_18, %c0_19], %28 {strides = array<i32>} : memref<1x1x2x16xf32, #tpu.memory_space<vmem>>, vector<1x1x1x16xf32>,
    %29 = arith.mulf %20, %20 : vector<256x16xf32>
    %cst_20 = arith.constant dense<0.000000e+00> : vector<16xf32>
    %30 = vector.multi_reduction <add>, %29, %cst_20 [0] : vector<256x16xf32> to vector<16xf32>
    %31 = vector.shape_cast %30 : vector<16xf32> to vector<1x16xf32>
    %c0_21 = arith.constant 0 : index
    %c0_22 = arith.constant 0 : index
    %c1 = arith.constant 1 : index
    %c0_23 = arith.constant 0 : index
    %32 = vector.load %arg8[%c0_21, %c0_22, %c1, %c0_23] : memref<1x1x2x16xf32, #tpu.memory_space<vmem>>, vector<1x1x1x16xf32>
    %33 = vector.shape_cast %32 : vector<1x1x1x16xf32> to vector<1x16xf32>
    %34 = vector.shape_cast %31 : vector<1x16xf32> to vector<1x1x1x16xf32>
    tpu.vector_store %arg8[%c0_21, %c0_22, %c1, %c0_23], %34 {strides = array<i32>} : memref<1x1x2x16xf32, #tpu.memory_space<vmem>>, vector<1x1x1x16xf32>,
    return
  }
  func.func @transform_0(%arg0: i32, %arg1: i32) -> (i32, i32, i32) {
    %c0_i32 = arith.constant 0 : i32
    %c0_i32_0 = arith.constant 0 : i32
    return %arg0, %arg1, %c0_i32 : i32, i32, i32
  }
  func.func @transform_1(%arg0: i32, %arg1: i32) -> (i32, i32) {
    %c0_i32 = arith.constant 0 : i32
    %c0_i32_0 = arith.constant 0 : i32
    %c0_i32_1 = arith.constant 0 : i32
    return %c0_i32, %c0_i32_0 : i32, i32
  }
  func.func @transform_2(%arg0: i32, %arg1: i32) -> (i32, i32) {
    %c0_i32 = arith.constant 0 : i32
    %c0_i32_0 = arith.constant 0 : i32
    %c0_i32_1 = arith.constant 0 : i32
    return %c0_i32, %c0_i32_0 : i32, i32
  }
  func.func @transform_3(%arg0: i32, %arg1: i32) -> (i32, i32, i32) {
    %c0_i32 = arith.constant 0 : i32
    %c0_i32_0 = arith.constant 0 : i32
    %c0_i32_1 = arith.constant 0 : i32
    return %arg0, %c0_i32, %c0_i32_0 : i32, i32, i32
  }
  func.func @transform_4(%arg0: i32, %arg1: i32) -> (i32, i32) {
    %c0_i32 = arith.constant 0 : i32
    %c0_i32_0 = arith.constant 0 : i32
    %c0_i32_1 = arith.constant 0 : i32
    return %c0_i32, %c0_i32_0 : i32, i32
  }
  func.func @transform_5(%arg0: i32, %arg1: i32) -> (i32, i32, i32) {
    %c0_i32 = arith.constant 0 : i32
    %c0_i32_0 = arith.constant 0 : i32
    return %arg0, %arg1, %c0_i32 : i32, i32, i32
  }
  func.func @transform_6(%arg0: i32, %arg1: i32) -> (i32, i32, i32, i32) {
    %c0_i32 = arith.constant 0 : i32
    %c0_i32_0 = arith.constant 0 : i32
    %c0_i32_1 = arith.constant 0 : i32
    return %arg0, %arg1, %c0_i32, %c0_i32_0 : i32, i32, i32, i32
  }
}

module attributes {stable_mosaic.version = 11 : i64} {
  func.func @_final_res_kernel(%arg0: i32, %arg1: memref<512x16xf32, #tpu.memory_space<vmem>>, %arg2: memref<512x16xf32, #tpu.memory_space<vmem>>, %arg3: memref<1x16xf32, #tpu.memory_space<vmem>>, %arg4: memref<1x16xf32, #tpu.memory_space<vmem>>, %arg5: memref<512x16xf32, #tpu.memory_space<vmem>>) attributes {dimension_semantics = [#tpu.dimension_semantics<parallel>], iteration_bounds = array<i64: 1>, scalar_prefetch = 0 : i64, scratch_operands = 0 : i64, tpu.core_type = #tpu.core_type<tc>, window_params = [{transform_indices = @transform_0, window_bounds = array<i64: 512, 16>}, {transform_indices = @transform_1, window_bounds = array<i64: 512, 16>}, {pipeline_mode = #tpu.pipeline_mode<synchronous>, transform_indices = @transform_2, window_bounds = array<i64: 1, 16>}, {pipeline_mode = #tpu.pipeline_mode<synchronous>, transform_indices = @transform_3, window_bounds = array<i64: 1, 16>}, {transform_indices = @transform_4, window_bounds = array<i64: 512, 16>}]} {
    %c0 = arith.constant 0 : index
    %c0_0 = arith.constant 0 : index
    %0 = vector.load %arg1[%c0, %c0_0] : memref<512x16xf32, #tpu.memory_space<vmem>>, vector<512x16xf32>
    %c0_1 = arith.constant 0 : index
    %c0_2 = arith.constant 0 : index
    %1 = vector.load %arg3[%c0_1, %c0_2] : memref<1x16xf32, #tpu.memory_space<vmem>>, vector<1x16xf32>
    %2 = vector.broadcast %1 : vector<1x16xf32> to vector<512x16xf32>
    %3 = arith.mulf %0, %2 : vector<512x16xf32>
    %c0_3 = arith.constant 0 : index
    %c0_4 = arith.constant 0 : index
    %4 = vector.load %arg4[%c0_3, %c0_4] : memref<1x16xf32, #tpu.memory_space<vmem>>, vector<1x16xf32>
    %5 = vector.broadcast %4 : vector<1x16xf32> to vector<512x16xf32>
    %6 = arith.addf %3, %5 : vector<512x16xf32>
    %c0_5 = arith.constant 0 : index
    %c0_6 = arith.constant 0 : index
    %7 = vector.load %arg2[%c0_5, %c0_6] : memref<512x16xf32, #tpu.memory_space<vmem>>, vector<512x16xf32>
    %8 = arith.addf %6, %7 : vector<512x16xf32>
    %c0_7 = arith.constant 0 : index
    %c0_8 = arith.constant 0 : index
    %9 = vector.load %arg5[%c0_7, %c0_8] : memref<512x16xf32, #tpu.memory_space<vmem>>, vector<512x16xf32>
    tpu.vector_store %arg5[%c0_7, %c0_8], %8 {strides = array<i32>} : memref<512x16xf32, #tpu.memory_space<vmem>>, vector<512x16xf32>,
    return
  }
  func.func @transform_0(%arg0: i32) -> (i32, i32) {
    %c0_i32 = arith.constant 0 : i32
    %c0_i32_0 = arith.constant 0 : i32
    return %arg0, %c0_i32 : i32, i32
  }
  func.func @transform_1(%arg0: i32) -> (i32, i32) {
    %c0_i32 = arith.constant 0 : i32
    %c0_i32_0 = arith.constant 0 : i32
    return %arg0, %c0_i32 : i32, i32
  }
  func.func @transform_2(%arg0: i32) -> (i32, i32) {
    %c0_i32 = arith.constant 0 : i32
    %c0_i32_0 = arith.constant 0 : i32
    %c0_i32_1 = arith.constant 0 : i32
    return %c0_i32, %c0_i32_0 : i32, i32
  }
  func.func @transform_3(%arg0: i32) -> (i32, i32) {
    %c0_i32 = arith.constant 0 : i32
    %c0_i32_0 = arith.constant 0 : i32
    %c0_i32_1 = arith.constant 0 : i32
    return %c0_i32, %c0_i32_0 : i32, i32
  }
  func.func @transform_4(%arg0: i32) -> (i32, i32) {
    %c0_i32 = arith.constant 0 : i32
    %c0_i32_0 = arith.constant 0 : i32
    return %arg0, %c0_i32 : i32, i32
  }
}

</mosaic_0001>

<bundles_post_ra>
// kernel: neg.12
= control target key start
LH: loop header
LB: loop body
LE: loop exit
PB: predicated region body
PF: predicated region fallthrough
CT: control target
= control target key end

     0   :  { %s56_s0 = inlined_call_operand.vmem [shape: f32[3,3,16], index: 0, kind: input, shape index: {}]   ;;  %s57_s1 = inlined_call_operand.vmem [shape: f32[3,3,16], index: 1, kind: output, shape index: {}]  }
   0x1   :  { %v2_v0 = vld [vmem:[%s56_s0] sm:$0x7]  ;;  %v24_v1 = vld [vmem:[%s56_s0 + $0x4] sm:$0x7]  ;;  %v26_v2 = vld [vmem:[%s56_s0 + $0x8] sm:$0x7] }
   0x2   :  { %v5_v3 = vxor.u32 2147483648, %v2_v0  ;;  %v12_v4 = vxor.u32 2147483648, %v24_v1  ;;  %v20_v5 = vxor.u32 2147483648, %v26_v2 }
   0x4   :  { %7 = vst [vmem:[%s57_s1] sm:$0xf] %v5_v3  ;;  %25 = vst [vmem:[%s57_s1 + $0x4] sm:$0xf] %v12_v4 }
   0x5   :  { %27 = vst [vmem:[%s57_s1 + $0x8] sm:$0xf] %v20_v5 }

// kernel: neg.14
= control target key start
LH: loop header
LB: loop body
LE: loop exit
PB: predicated region body
PF: predicated region fallthrough
CT: control target
= control target key end

     0   :  { %v10_v2 = vmov 0.0   ;;  %s27_s0 = inlined_call_operand.vmem [shape: f32[16,4], index: 0, kind: input, shape index: {}]   ;;  %s28_s1 = inlined_call_operand.vmem [shape: bf16[16,4], index: 1, kind: output, shape index: {}]  }
   0x1   :  { %v2_v0 = vld [vmem:[%s27_s0] sm:$0xf] }
   0x2   :  { %v5_v1 = vxor.u32 2147483648, %v2_v0 }
   0x4   :  { %v7_v3 = vpack.c.bf16 %v10_v2, %v5_v1 }
   0x6   :  { %8 = vst [vmem:[%s28_s1] sm:$0x3] %v7_v3 }

// kernel: neg.15
= control target key start
LH: loop header
LB: loop body
LE: loop exit
PB: predicated region body
PF: predicated region fallthrough
CT: control target
= control target key end

     0   :  { %v10_v2 = vmov 0.0   ;;  %s27_s0 = inlined_call_operand.vmem [shape: f32[4,16], index: 0, kind: input, shape index: {}]   ;;  %s28_s1 = inlined_call_operand.vmem [shape: bf16[4,16], index: 1, kind: output, shape index: {}]  }
   0x1   :  { %v2_v0 = vld [vmem:[%s27_s0] sm:$0xf] }
   0x2   :  { %v5_v1 = vxor.u32 2147483648, %v2_v0 }
   0x4   :  { %v7_v3 = vpack.c.bf16 %v10_v2, %v5_v1 }
   0x6   :  { %8 = vst [vmem:[%s28_s1] sm:$0x3] %v7_v3 }

// kernel: mbconv_forward.7
= control target key start
LH: loop header
LB: loop body
LE: loop exit
PB: predicated region body
PF: predicated region fallthrough
CT: control target
= control target key end

     0   :  { %s828_s12 = smov 0   ;;  %s1120_s0 = inlined_call_operand.vmem [shape: f32[2,16,16,32], index: 0, kind: input, shape index: {}]   ;;  %s1121_s1 = inlined_call_operand.vmem [shape: f32[1,32], index: 1, kind: input, shape index: {}]   ;;  %s1122_s2 = inlined_call_operand.vmem [shape: f32[1,32], index: 2, kind: input, shape index: {}]   ;;  %s1123_s3 = inlined_call_operand.vmem [shape: f32[2,1,32], index: 3, kind: output, shape index: {}]  }
   0x1 LB: > { %s620_s13 = sadd.s32 4294967295, %s806_s12   ;;  %p624_p0 = scmp.ge.s32.totalorder %s806_s12, 1  ;;  %s806_s12 = sphi %s828_s12, %s13_s12  }
   0x2   : > { %p137_p1 = scmp.lt.s32.totalorder %s806_s12, 3 }
   0x4   : > { %p138_p2 = pnand %p624_p0, %p137_p1 }
   0x5   : > { %p159_p3 = scmp.lt.s32.totalorder (!%p138_p2), %s620_s13, 1 }
   0x6   : > { %141 = sbr.rel (%p138_p2) target bundleno = 132 (0x84), region = 32 }
   0xb   : > { %s1125_s13 = smov (!%p159_p3, %s620_s13), 1  ;;  %v848_v1 = vld [vmem:[%s1121_s1] ss:$0 sm:$0xff]  ;;  %vm501_vm0 = vcmask 261120   ;;  %vm571_vm1 = vcmask 253952  }
   0xc   : > { %s663_s14 = sshll.u32 %s1125_s13, 8  ;;  %v859_v8 = vld [vmem:[%s1122_s2] ss:$0 sm:$0xff]  ;;  %s166_s24 = scalar_lea.vmem %s1123_s3, %s1125_s13 }
   0xd   : > { %s842_s17 = scalar_lea.vmem %s1120_s0, %s663_s14 }
   0xe   : > { %v167_v0 = vld [vmem:[%s842_s17] sm:$0xff]  ;;  %v168_v2 = vld [vmem:[%s842_s17 + $0x8] sm:$0xff]  ;;  %v169_v3 = vld [vmem:[%s842_s17 + $0x10] sm:$0xff] }
   0xf   : > { %v170_v4 = vld [vmem:[%s842_s17 + $0x18] sm:$0xff]  ;;  %v206_v5 = vmul.f32 %v848_v1, %v167_v0  ;;  %v171_v6 = vld [vmem:[%s842_s17 + $0x20] sm:$0xff]  ;;  %v207_v7 = vmul.f32 %v848_v1, %v168_v2  ;;  %v172_v9 = vld [vmem:[%s842_s17 + $0x28] sm:$0xff]  ;;  %v208_v10 = vmul.f32 %v848_v1, %v169_v3 }
  0x10   : > { %v173_v11 = vld [vmem:[%s842_s17 + $0x30] sm:$0xff]  ;;  %v209_v12 = vmul.f32 %v848_v1, %v170_v4  ;;  %v174_v13 = vld [vmem:[%s842_s17 + $0x38] sm:$0xff]  ;;  %v210_v14 = vmul.f32 %v848_v1, %v171_v6  ;;  %v211_v16 = vmul.f32 %v848_v1, %v172_v9  ;;  %v175_v18 = vld [vmem:[%s842_s17 + $0x40] sm:$0xff] }
  0x11   : > { %v868_v15 = vadd.f32 %v859_v8, %v206_v5  ;;  %v872_v17 = vadd.f32 %v859_v8, %v207_v7  ;;  %v212_v19 = vmul.f32 %v848_v1, %v173_v11  ;;  %v877_v20 = vadd.f32 %v859_v8, %v208_v10  ;;  %v176_v23 = vld [vmem:[%s842_s17 + $0x48] sm:$0xff]  ;;  %v177_v26 = vld [vmem:[%s842_s17 + $0x50] sm:$0xff]  ;;  %v178_v30 = vld [vmem:[%s842_s17 + $0x58] sm:$0xff] }
  0x12   : > { %v213_v21 = vmul.f32 %v848_v1, %v174_v13  ;;  %v881_v22 = vadd.f32 %v859_v8, %v209_v12  ;;  %v885_v24 = vadd.f32 %v859_v8, %v210_v14  ;;  %v214_v27 = vmul.f32 %v848_v1, %v175_v18  ;;  %v179_v33 = vld [vmem:[%s842_s17 + $0x60] sm:$0xff]  ;;  %v180_v37 = vld [vmem:[%s842_s17 + $0x68] sm:$0xff]  ;;  %v181_v40 = vld [vmem:[%s842_s17 + $0x70] sm:$0xff] }
  0x13   : > { %v629_v25 = vmul.f32 -1.442695, %v868_v15  ;;  %v891_v28 = vadd.f32 %v859_v8, %v211_v16  ;;  %v630_v29 = vmul.f32 -1.442695, %v872_v17  ;;  %v896_v31 = vadd.f32 %v859_v8, %v212_v19  ;;  %v182_v44 = vld [vmem:[%s842_s17 + $0x78] sm:$0xff]  ;;  %v183_v47 = vld [vmem:[%s842_s17 + $0x80] sm:$0xff] }
  0x14   : > { %v631_v32 = vmul.f32 -1.442695, %v877_v20  ;;  %v215_v34 = vmul.f32 %v848_v1, %v176_v23  ;;  %v902_v35 = vadd.f32 %v859_v8, %v213_v21  ;;  %v632_v36 = vmul.f32 -1.442695, %v881_v22  ;;  %v184_v51 = vld [vmem:[%s842_s17 + $0x88] sm:$0xff]  ;;  %v185_v10 = vld [vmem:[%s842_s17 + $0x90] sm:$0xff] }
  0x15   : > { %v216_v38 = vmul.f32 %v848_v1, %v177_v26  ;;  %672 = vpow2.f32 %v629_v25  ;;  %v633_v39 = vmul.f32 -1.442695, %v885_v24  ;;  %v217_v41 = vmul.f32 %v848_v1, %v178_v30  ;;  %v186_v16 = vld [vmem:[%s842_s17 + $0x98] sm:$0xff]  ;;  %v187_v26 = vld [vmem:[%s842_s17 + $0xa0] sm:$0xff] }
  0x16   : > { %v911_v42 = vadd.f32 %v859_v8, %v214_v27  ;;  %674 = vpow2.f32 %v630_v29  ;;  %v634_v43 = vmul.f32 -1.442695, %v891_v28  ;;  %v218_v45 = vmul.f32 %v848_v1, %v179_v33 }
  0x17   : > { %676 = vpow2.f32 %v631_v32  ;;  %v635_v46 = vmul.f32 -1.442695, %v896_v31  ;;  %v219_v48 = vmul.f32 %v848_v1, %v180_v37  ;;  %v920_v49 = vadd.f32 %v859_v8, %v215_v34  ;;  %v188_v34 = vld [vmem:[%s842_s17 + $0xa8] sm:$0xff] }
  0x18   : > { %678 = vpow2.f32 %v632_v36  ;;  %v636_v50 = vmul.f32 -1.442695, %v902_v35  ;;  %v220_v52 = vmul.f32 %v848_v1, %v181_v40  ;;  %v926_v53 = vadd.f32 %v859_v8, %v216_v38 }
  0x19   : > { %680 = vpow2.f32 %v633_v39  ;;  %v221_v54 = vmul.f32 %v848_v1, %v182_v44  ;;  %v930_v55 = vadd.f32 %v859_v8, %v217_v41  ;;  %v637_v56 = vmul.f32 -1.442695, %v911_v42  ;;  %v189_v41 = vld [vmem:[%s842_s17 + $0xb0] sm:$0xff] }
  0x1a   : > { %682 = vpow2.f32 %v634_v43  ;;  %v222_v57 = vmul.f32 %v848_v1, %v183_v47  ;;  %v935_v58 = vadd.f32 %v859_v8, %v218_v45  ;;  %v223_v59 = vmul.f32 %v848_v1, %v184_v51 }
  0x1b   : > { %684 = vpow2.f32 %v635_v46  ;;  %v939_v60 = vadd.f32 %v859_v8, %v219_v48  ;;  %v638_v61 = vmul.f32 -1.442695, %v920_v49  ;;  %v943_v62 = vadd.f32 %v859_v8, %v220_v52  ;;  %v190_v48 = vld [vmem:[%s842_s17 + $0xb8] sm:$0xff]  ;;  %v191_v52 = vld [vmem:[%s842_s17 + $0xc0] sm:$0xff] }
  0x1c   : > { %686 = vpow2.f32 %v636_v50  ;;  %v639_v63 = vmul.f32 -1.442695, %v926_v53  ;;  %v947_v0 = vadd.f32 %v859_v8, %v221_v54  ;;  %v640_v2 = vmul.f32 -1.442695, %v930_v55 }
  0x1d   : > { %688 = vpow2.f32 %v637_v56  ;;  %v951_v3 = vadd.f32 %v859_v8, %v222_v57  ;;  %v641_v4 = vmul.f32 -1.442695, %v935_v58  ;;  %v955_v5 = vadd.f32 %v859_v8, %v223_v59 }
  0x1e   : > { %690 = vpow2.f32 %v638_v61  ;;  %v642_v6 = vmul.f32 -1.442695, %v939_v60  ;;  %v643_v7 = vmul.f32 -1.442695, %v943_v62  ;;  %v644_v11 = vmul.f32 -1.442695, %v947_v0 }
  0x1f   : > { %692 = vpow2.f32 %v639_v63  ;;  %v645_v13 = vmul.f32 -1.442695, %v951_v3  ;;  %v646_v18 = vmul.f32 -1.442695, %v955_v5  ;;  %v224_v21 = vmul.f32 %v848_v1, %v185_v10  ;;  %v192_v61 = vld [vmem:[%s842_s17 + $0xc8] sm:$0xff] }
  0x20   : > { %694 = vpow2.f32 %v640_v2  ;;  %v225_v30 = vmul.f32 %v848_v1, %v186_v16  ;;  %v226_v38 = vmul.f32 %v848_v1, %v187_v26  ;;  %v227_v45 = vmul.f32 %v848_v1, %v188_v34  ;;  %v197_v26 = vld [vmem:[%s842_s17 + $0xf0] sm:$0xff] }
  0x21   : > { %696 = vpow2.f32 %v641_v4  ;;  %v970_v39 = vadd.f32 %v859_v8, %v224_v21  ;;  %v228_v54 = vmul.f32 %v848_v1, %v189_v41  ;;  %v193_v4 = vld [vmem:[%s842_s17 + $0xd0] sm:$0xff] }
  0x22   : > { %v673_v9 = vpop.eup %672  ;;  %698 = vpow2.f32 %v642_v6  ;;  %v975_v46 = vadd.f32 %v859_v8, %v225_v30  ;;  %v981_v56 = vadd.f32 %v859_v8, %v226_v38  ;;  %v194_v6 = vld [vmem:[%s842_s17 + $0xd8] sm:$0xff] }
  0x23   : > { %v675_v12 = vpop.eup %674  ;;  %700 = vpow2.f32 %v643_v7  ;;  %v373_v23 = vadd.f32 1.0, %v673_v9  ;;  %v647_v57 = vmul.f32 -1.442695, %v970_v39  ;;  %v229_v7 = vmul.f32 %v848_v1, %v190_v48 }
  0x24   : > { %v677_v14 = vpop.eup %676  ;;  %702 = vpow2.f32 %v644_v11  ;;  %v374_v27 = vadd.f32 1.0, %v675_v12  ;;  %v989_v9 = vadd.f32 %v859_v8, %v227_v45  ;;  %v648_v10 = vmul.f32 -1.442695, %v975_v46  ;;  %v195_v12 = vld [vmem:[%s842_s17 + $0xe0] sm:$0xff] }
  0x25   : > { %v679_v19 = vpop.eup %678  ;;  %704 = vpow2.f32 %v645_v13  ;;  %v375_v32 = vadd.f32 1.0, %v677_v14  ;;  %v230_v13 = vmul.f32 %v848_v1, %v191_v52  ;;  %v997_v21 = vadd.f32 %v859_v8, %v228_v54 }
  0x26   : > { %v681_v25 = vpop.eup %680  ;;  %706 = vpow2.f32 %v646_v18  ;;  %v376_v36 = vadd.f32 1.0, %v679_v19  ;;  %v196_v18 = vld [vmem:[%s842_s17 + $0xe8] sm:$0xff]  ;;  %v231_v19 = vmul.f32 %v848_v1, %v192_v61  ;;  %v234_v34 = vmul.f32 %v848_v1, %v195_v12 }
  0x27   : > { %v683_v29 = vpop.eup %682  ;;  %v377_v40 = vadd.f32 1.0, %v681_v25  ;;  %708 = vrcp.f32 %v373_v23  ;;  %v649_v23 = vmul.f32 -1.442695, %v981_v56  ;;  %v1011_v41 = vadd.f32 %v859_v8, %v230_v13 }
  0x28   : > { %v685_v33 = vpop.eup %684  ;;  %v378_v43 = vadd.f32 1.0, %v683_v29  ;;  %710 = vrcp.f32 %v374_v27  ;;  %v232_v27 = vmul.f32 %v848_v1, %v193_v4  ;;  %v233_v29 = vmul.f32 %v848_v1, %v194_v6 }
  0x29   : > { %v687_v37 = vpop.eup %686  ;;  %v379_v47 = vadd.f32 1.0, %v685_v33  ;;  %712 = vrcp.f32 %v375_v32  ;;  %v198_v33 = vld [vmem:[%s842_s17 + $0xf8] sm:$0xff]  ;;  %v236_v45 = vmul.f32 %v848_v1, %v197_v26  ;;  %v651_v48 = vmul.f32 -1.442695, %v997_v21 }
  0x2a   : > { %v689_v44 = vpop.eup %688  ;;  %v380_v50 = vadd.f32 1.0, %v687_v37  ;;  %714 = vrcp.f32 %v376_v36  ;;  %v1006_v36 = vadd.f32 %v859_v8, %v229_v7  ;;  %v650_v37 = vmul.f32 -1.442695, %v989_v9 }
  0x2b   : > { %v691_v51 = vpop.eup %690  ;;  %716 = vrcp.f32 %v377_v40  ;;  %v381_v63 = vadd.f32 1.0, %v689_v44  ;;  %v235_v40 = vmul.f32 %v848_v1, %v196_v18  ;;  %v1022_v52 = vadd.f32 %v859_v8, %v232_v27 }
  0x2c   : > { %v693_v59 = vpop.eup %692  ;;  %718 = vrcp.f32 %v378_v43  ;;  %v382_v14 = vadd.f32 1.0, %v691_v51  ;;  %v1019_v51 = vmul.f32 %v848_v1, %v198_v33  ;;  %v652_v61 = vmul.f32 -1.442695, %v1006_v36 }
  0x2d   : > { %v695_v2 = vpop.eup %694  ;;  %720 = vrcp.f32 %v379_v47  ;;  %v383_v30 = vadd.f32 1.0, %v693_v59  ;;  %v1015_v47 = vadd.f32 %v859_v8, %v231_v19  ;;  %v1025_v59 = vadd.f32 %v859_v8, %v233_v29 }
  0x2e   : > { %v697_v11 = vpop.eup %696  ;;  %722 = vrcp.f32 %v380_v50  ;;  %v384_v43 = vadd.f32 1.0, %v695_v2  ;;  %v653_v4 = vmul.f32 -1.442695, %v1011_v41 }
  0x2f   : > { %v699_v16 = vpop.eup %698  ;;  %724 = vpow2.f32 %v647_v57  ;;  %v385_v54 = vadd.f32 1.0, %v697_v11 }
  0x30   : > { %v701_v25 = vpop.eup %700  ;;  %726 = vrcp.f32 %v381_v63  ;;  %v386_v6 = vadd.f32 1.0, %v699_v16 }
  0x31   : > { %v703_v32 = vpop.eup %702  ;;  %728 = vpow2.f32 %v648_v10  ;;  %v654_v10 = vmul.f32 -1.442695, %v1015_v47 }
  0x32   : > { %v705_v38 = vpop.eup %704  ;;  %730 = vrcp.f32 %v382_v14  ;;  %v387_v14 = vadd.f32 1.0, %v701_v25  ;;  %v388_v27 = vadd.f32 1.0, %v703_v32 }
  0x33   : > { %v707_v44 = vpop.eup %706  ;;  %732 = vpow2.f32 %v649_v23 }
  0x34   : > { %v709_v50 = vpop.eup %708  ;;  %734 = vrcp.f32 %v383_v30  ;;  %v1041_v30 = vadd.f32 %v859_v8, %v234_v34 }
  0x35   : > { %v711_v57 = vpop.eup %710  ;;  %736 = vpow2.f32 %v650_v37  ;;  %v469_v63 = vmul.f32 %v709_v50, %v868_v15  ;;  %v656_v50 = vmul.f32 -1.442695, %v1025_v59 }
  0x36   : > { %v713_v2 = vpop.eup %712  ;;  %738 = vrcp.f32 %v384_v43  ;;  %v470_v1 = vmul.f32 %v711_v57, %v872_v17  ;;  %v390_v57 = vadd.f32 1.0, %v707_v44 }
  0x37   : > { %v715_v7 = vpop.eup %714  ;;  %740 = vpow2.f32 %v651_v48  ;;  %v471_v11 = vmul.f32 %v713_v2, %v877_v20  ;;  %v502_v12 = vsel %vm501_vm0, %v469_v63, 0.0  ;;  %v657_v2 = vmul.f32 -1.442695, %v1041_v30 }
  0x38   : > { %v717_v13 = vpop.eup %716  ;;  %742 = vrcp.f32 %v385_v54  ;;  %v472_v15 = vmul.f32 %v715_v7, %v881_v22  ;;  %v503_v18 = vsel %vm501_vm0, %v470_v1, 0.0  ;;  %v655_v22 = vmul.f32 -1.442695, %v1022_v52 }
  0x39   : > { %v719_v19 = vpop.eup %718  ;;  %744 = vpow2.f32 %v652_v61  ;;  %v473_v16 = vmul.f32 %v717_v13, %v885_v24  ;;  %v504_v17 = vadd.f32 %v503_v18, %v502_v12  ;;  %v505_v23 = vsel %vm501_vm0, %v471_v11, 0.0 }
  0x3a   : > { %v721_v26 = vpop.eup %720  ;;  %746 = vrcp.f32 %v386_v6  ;;  %v474_v20 = vmul.f32 %v719_v19, %v891_v28  ;;  %v507_v29 = vsel %vm501_vm0, %v472_v15, 0.0  ;;  %v389_v24 = vadd.f32 1.0, %v705_v38 }
  0x3b   : > { %v723_v25 = vpop.eup %722  ;;  %748 = vpow2.f32 %v653_v4  ;;  %v506_v33 = vadd.f32 %v505_v23, %v504_v17  ;;  %v475_v43 = vmul.f32 %v721_v26, %v896_v31  ;;  %v509_v32 = vsel %vm501_vm0, %v473_v16, 0.0 }
  0x3c   : > { %v725_v37 = vpop.eup %724  ;;  %750 = vrcp.f32 %v387_v14  ;;  %v1047_v28 = vadd.f32 %v859_v8, %v235_v40  ;;  %v476_v61 = vmul.f32 %v723_v25, %v902_v35  ;;  %v511_v38 = vsel %vm501_vm0, %v474_v20, 0.0 }
  0x3d   : > { %v727_v48 = vpop.eup %726  ;;  %752 = vpow2.f32 %v654_v10  ;;  %v508_v34 = vadd.f32 %v507_v29, %v506_v33  ;;  %v1053_v31 = vadd.f32 %v859_v8, %v236_v45  ;;  %v391_v6 = vadd.f32 1.0, %v725_v37 }
  0x3e   : > { %v729_v54 = vpop.eup %728  ;;  %754 = vrcp.f32 %v388_v27  ;;  %v477_v1 = vmul.f32 %v727_v48, %v911_v42  ;;  %v513_v44 = vsel %vm501_vm0, %v475_v43, 0.0  ;;  %v1060_v35 = vadd.f32 %v859_v8, %v1019_v51 }
  0x3f   : > { %v731_v63 = vpop.eup %730  ;;  %756 = vpow2.f32 %v655_v22  ;;  %v510_v40 = vadd.f32 %v509_v32, %v508_v34  ;;  %v658_v45 = vmul.f32 -1.442695, %v1047_v28  ;;  %v392_v12 = vadd.f32 1.0, %v729_v54 }
  0x40   : > { %v733_v4 = vpop.eup %732  ;;  %758 = vrcp.f32 %v389_v24  ;;  %v478_v13 = vmul.f32 %v731_v63, %v920_v49  ;;  %v515_v14 = vsel %vm501_vm0, %v476_v61, 0.0  ;;  %v659_v42 = vmul.f32 -1.442695, %v1053_v31 }
  0x41   : > { %v735_v7 = vpop.eup %734  ;;  %760 = vpow2.f32 %v656_v50  ;;  %v512_v10 = vadd.f32 %v511_v38, %v510_v40  ;;  %v393_v16 = vadd.f32 1.0, %v733_v4  ;;  %v517_v51 = vsel %vm501_vm0, %v477_v1, 0.0 }
  0x42   : > { %v737_v11 = vpop.eup %736  ;;  %762 = vrcp.f32 %v390_v57  ;;  %v479_v8 = vmul.f32 %v735_v7, %v926_v53  ;;  %v660_v23 = vmul.f32 -1.442695, %v1060_v35  ;;  %v519_v29 = vsel %vm501_vm0, %v478_v13, 0.0 }
  0x43   : > { %v739_v15 = vpop.eup %738  ;;  %764 = vpow2.f32 %v657_v2  ;;  %v514_v18 = vadd.f32 %v513_v44, %v512_v10  ;;  %v394_v27 = vadd.f32 1.0, %v737_v11 }
  0x44   : > { %v741_v19 = vpop.eup %740  ;;  %766 = vrcp.f32 %v391_v6  ;;  %v480_v20 = vmul.f32 %v739_v15, %v930_v55  ;;  %v521_v24 = vsel %vm501_vm0, %v479_v8, 0.0 }
  0x45   : > { %v743_v17 = vpop.eup %742  ;;  %768 = vpow2.f32 %v658_v45  ;;  %v516_v26 = vadd.f32 %v515_v14, %v514_v18  ;;  %v395_v37 = vadd.f32 1.0, %v741_v19 }
  0x46   : > { %v745_v49 = vpop.eup %744  ;;  %770 = vrcp.f32 %v392_v12  ;;  %v481_v53 = vmul.f32 %v743_v17, %v935_v58  ;;  %v523_v34 = vsel %vm501_vm0, %v480_v20, 0.0 }
  0x47   : > { %v747_v25 = vpop.eup %746  ;;  %772 = vpow2.f32 %v659_v42  ;;  %v518_v22 = vadd.f32 %v517_v51, %v516_v26  ;;  %v396_v50 = vadd.f32 1.0, %v745_v49 }
  0x48   : > { %v749_v33 = vpop.eup %748  ;;  %774 = vrcp.f32 %v393_v16  ;;  %v482_v55 = vmul.f32 %v747_v25, %v939_v60  ;;  %v525_v58 = vsel %vm501_vm0, %v481_v53, 0.0 }
  0x49   : > { %v751_v43 = vpop.eup %750  ;;  %776 = vpow2.f32 %v660_v23  ;;  %v520_v32 = vadd.f32 %v519_v29, %v518_v22  ;;  %v397_v38 = vadd.f32 1.0, %v749_v33 }
  0x4a   : > { %v753_v48 = vpop.eup %752  ;;  %778 = vrcp.f32 %v394_v27  ;;  %v483_v63 = vmul.f32 %v751_v43, %v943_v62  ;;  %v527_v60 = vsel %vm501_vm0, %v482_v55, 0.0 }
  0x4b   : > { %v755_v54 = vpop.eup %754  ;;  %v522_v57 = vadd.f32 %v521_v24, %v520_v32  ;;  %780 = vrcp.f32 %v395_v37  ;;  %v398_v6 = vadd.f32 1.0, %v753_v48 }
  0x4c   : > { %v757_v61 = vpop.eup %756  ;;  %782 = vrcp.f32 %v396_v50  ;;  %v484_v1 = vmul.f32 %v755_v54, %v947_v0  ;;  %v529_v62 = vsel %vm501_vm0, %v483_v63, 0.0 }
  0x4d   : > { %v759_v2 = vpop.eup %758  ;;  %v524_v40 = vadd.f32 %v523_v34, %v522_v57  ;;  %v399_v10 = vadd.f32 1.0, %v757_v61  ;;  %784 = vrcp.f32 %v397_v38 }
  0x4e   : > { %v761_v4 = vpop.eup %760  ;;  %v485_v11 = vmul.f32 %v759_v2, %v951_v3  ;;  %786 = vrcp.f32 %v398_v6  ;;  %v531_v0 = vsel %vm501_vm0, %v484_v1, 0.0 }
  0x4f   : > { %v763_v44 = vpop.eup %762  ;;  %v526_v7 = vadd.f32 %v525_v58, %v524_v40  ;;  %v400_v15 = vadd.f32 1.0, %v761_v4  ;;  %788 = vrcp.f32 %v399_v10 }
  0x50   : > { %v765_v45 = vpop.eup %764  ;;  %v486_v42 = vmul.f32 %v763_v44, %v955_v5  ;;  %v533_v3 = vsel %vm501_vm0, %v485_v11, 0.0 }
  0x51   : > { %v767_v12 = vpop.eup %766  ;;  %v528_v13 = vadd.f32 %v527_v60, %v526_v7  ;;  %v401_v8 = vadd.f32 1.0, %v765_v45  ;;  %790 = vrcp.f32 %v400_v15 }
  0x52   : > { %v769_v14 = vpop.eup %768  ;;  %v487_v51 = vmul.f32 %v767_v12, %v970_v39  ;;  %v535_v5 = vsel %vm501_vm0, %v486_v42, 0.0 }
  0x53   : > { %v771_v18 = vpop.eup %770  ;;  %v530_v19 = vadd.f32 %v529_v62, %v528_v13  ;;  %v402_v49 = vadd.f32 1.0, %v769_v14  ;;  %792 = vrcp.f32 %v401_v8 }
  0x54   : > { %v773_v16 = vpop.eup %772  ;;  %v488_v27 = vmul.f32 %v771_v18, %v975_v46  ;;  %v537_v33 = vsel %vm501_vm0, %v487_v51, 0.0 }
  0x55   : > { %v775_v17 = vpop.eup %774  ;;  %v532_v23 = vadd.f32 %v531_v0, %v530_v19  ;;  %v403_v25 = vadd.f32 1.0, %v773_v16  ;;  %794 = vrcp.f32 %v402_v49 }
  0x56   : > { %v777_v26 = vpop.eup %776  ;;  %v489_v22 = vmul.f32 %v775_v17, %v981_v56  ;;  %v539_v43 = vsel %vm501_vm0, %v488_v27, 0.0 }
  0x57   : > { %v779_v20 = vpop.eup %778  ;;  %v534_v29 = vadd.f32 %v533_v3, %v532_v23  ;;  %v404_v53 = vadd.f32 1.0, %v777_v26  ;;  %796 = vrcp.f32 %v403_v25 }
  0x58   : > { %v781_v39 = vpop.eup %780  ;;  %v490_v24 = vmul.f32 %v779_v20, %v989_v9  ;;  %v541_v50 = vsel %vm501_vm0, %v489_v22, 0.0 }
  0x59   : > { %v536_v37 = vadd.f32 %v535_v5, %v534_v29  ;;  %v783_v32 = vpop.eup %782  ;;  %v491_v48 = vmul.f32 %v781_v39, %v997_v21  ;;  %798 = vrcp.f32 %v404_v53 }
  0x5a   : > { %v785_v55 = vpop.eup %784  ;;  %v492_v56 = vmul.f32 %v783_v32, %v1006_v36  ;;  %v543_v54 = vsel %vm501_vm0, %v490_v24, 0.0 }
  0x5b   : > { %v538_v46 = vadd.f32 %v537_v33, %v536_v37  ;;  %v787_v57 = vpop.eup %786  ;;  %v493_v9 = vmul.f32 %v785_v55, %v1011_v41  ;;  %v545_v38 = vsel %vm501_vm0, %v491_v48, 0.0 }
  0x5c   : > { %v789_v63 = vpop.eup %788  ;;  %v494_v2 = vmul.f32 %v787_v57, %v1015_v47  ;;  %v547_v21 = vsel %vm501_vm0, %v492_v56, 0.0 }
  0x5d   : > { %v540_v34 = vadd.f32 %v539_v43, %v538_v46  ;;  %v495_v6 = vmul.f32 %v789_v63, %v1022_v52  ;;  %v549_v36 = vsel %vm501_vm0, %v493_v9, 0.0 }
  0x5e   : > { %v791_v40 = vpop.eup %790  ;;  %v551_v41 = vsel %vm501_vm0, %v494_v2, 0.0 }
  0x5f   : > { %v542_v61 = vadd.f32 %v541_v50, %v540_v34  ;;  %v496_v44 = vmul.f32 %v791_v40, %v1025_v59  ;;  %v553_v47 = vsel %vm501_vm0, %v495_v6, 0.0 }
  0x60   : > { %v793_v1 = vpop.eup %792 }
  0x61   : > { %v544_v58 = vadd.f32 %v543_v54, %v542_v61  ;;  %v497_v10 = vmul.f32 %v793_v1, %v1041_v30  ;;  %v555_v52 = vsel %vm501_vm0, %v496_v44, 0.0 }
  0x62   : > { %v795_v7 = vpop.eup %794 }
  0x63   : > { %v546_v4 = vadd.f32 %v545_v38, %v544_v58  ;;  %v498_v12 = vmul.f32 %v795_v7, %v1047_v28  ;;  %v557_v59 = vsel %vm501_vm0, %v497_v10, 0.0 }
  0x64   : > { %v797_v11 = vpop.eup %796 }
  0x65   : > { %v548_v60 = vadd.f32 %v547_v21, %v546_v4  ;;  %v499_v15 = vmul.f32 %v797_v11, %v1053_v31  ;;  %v559_v30 = vsel %vm501_vm0, %v498_v12, 0.0 }
  0x66   : > { %v799_v13 = vpop.eup %798 }
  0x67   : > { %v550_v45 = vadd.f32 %v549_v36, %v548_v60  ;;  %v500_v0 = vmul.f32 %v799_v13, %v1060_v35  ;;  %v561_v19 = vsel %vm501_vm0, %v499_v15, 0.0 }
  0x69   : > { %v552_v62 = vadd.f32 %v551_v41, %v550_v45  ;;  %v563_v28 = vsel %vm501_vm0, %v500_v0, 0.0 }
  0x6b   : > { %v554_v14 = vadd.f32 %v553_v47, %v552_v62 }
  0x6d   : > { %v556_v42 = vadd.f32 %v555_v52, %v554_v14 }
  0x6f   : > { %v558_v18 = vadd.f32 %v557_v59, %v556_v42 }
  0x71   : > { %v560_v16 = vadd.f32 %v559_v30, %v558_v18 }
  0x73   : > { %v562_v8 = vadd.f32 %v561_v19, %v560_v16 }
  0x75   : > { %v564_v51 = vadd.f32 %v563_v28, %v562_v8 }
  0x77   : > { %v565_v3 = vrot.slane %v564_v51, 4 }
  0x79   : > { %v566_v17 = vadd.f32 %v565_v3, %v564_v51 }
  0x7b   : > { %v567_v23 = vrot.slane %v566_v17, 2 }
  0x7d   : > { %v568_v31 = vadd.f32 %v567_v23, %v566_v17 }
  0x7f   : > { %v569_v26 = vrot.slane %v568_v31, 1 }
  0x81   : > { %v570_v35 = vadd.f32 %v569_v26, %v568_v31 }
  0x83   : > { %572 = vst.msk [vmem:[%s166_s24] sm:$0x1] %vm571_vm1, %v570_v35 }
  0x84 PF: > { %s13_s12 = sadd.s32 1, %s806_s12  }
  0x85   : > { %p10_p4 = scmp.ge.s32.totalorder %s13_s12, 4  }
  0x87   :  { %12 = sbr.rel (!%p10_p4) target bundleno = 1 (0x1), region = 62 }

// kernel: neg.18
= control target key start
LH: loop header
LB: loop body
LE: loop exit
PB: predicated region body
PF: predicated region fallthrough
CT: control target
= control target key end

     0   :  { %v10_v2 = vmov 0.0   ;;  %s27_s0 = inlined_call_operand.vmem [shape: f32[16,8], index: 0, kind: input, shape index: {}]   ;;  %s28_s1 = inlined_call_operand.vmem [shape: bf16[16,8], index: 1, kind: output, shape index: {}]  }
   0x1   :  { %v2_v0 = vld [vmem:[%s27_s0] sm:$0xff] }
   0x2   :  { %v5_v1 = vxor.u32 2147483648, %v2_v0 }
   0x4   :  { %v7_v3 = vpack.c.bf16 %v10_v2, %v5_v1 }
   0x6   :  { %8 = vst [vmem:[%s28_s1] sm:$0xf] %v7_v3 }

// kernel: mbconv_forward.5
= control target key start
LH: loop header
LB: loop body
LE: loop exit
PB: predicated region body
PF: predicated region fallthrough
CT: control target
= control target key end

     0   :  { %vm118_vm0 = vcmask 130048   ;;  %vm504_vm1 = vcmask 261120   ;;  %vm702_vm2 = vcmask 253952   ;;  %s1874_s1 = inlined_call_operand.vmem [shape: bf16[16,32], index: 1, kind: input, shape index: {}]   ;;  %s1875_s0 = inlined_call_operand.vmem [shape: f32[512,16], index: 0, kind: input, shape index: {}]   ;;  %s1876_s2 = inlined_call_operand.vmem [shape: f32[512,32], index: 2, kind: output, shape index: {0}]   ;;  %s1877_s3 = inlined_call_operand.vmem [shape: f32[1,2,32], index: 3, kind: output, shape index: {1}]  }
   0x1   :  { %v1044_v0 = vld [vmem:[%s1874_s1] sm:$0xff]   ;;  %v15_v2 = vld [vmem:[%s1875_s0 + $0x8] sm:$0xff]  ;;  %v16_v3 = vld [vmem:[%s1875_s0 + $0x10] sm:$0xff] }
   0x2   :  { %v14_v1 = vld [vmem:[%s1875_s0] sm:$0xff]  ;;  %976 = vmatprep.subr.bf16.mxu0 %v1044_v0  ;;  %v17_v5 = vld [vmem:[%s1875_s0 + $0x18] sm:$0xff]  ;;  %v19_v7 = vld [vmem:[%s1875_s0 + $0x28] sm:$0xff]  ;;  %1042 = vmatprep.subr.bf16.mxu1 %v1044_v0 }
   0x3   :  { %v78_v4 = vpack.c.bf16 %v15_v2, %v14_v1  ;;  %v18_v6 = vld [vmem:[%s1875_s0 + $0x20] sm:$0xff]  ;;  %977 = vmatpush3.bf16.msra.mxu0 %v1044_v0  ;;  %v79_v8 = vpack.c.bf16 %v17_v5, %v16_v3  ;;  %1043 = vmatpush3.bf16.msra.mxu1 %v1044_v0  ;;  %v20_v10 = vld [vmem:[%s1875_s0 + $0x30] sm:$0xff]  ;;  %v21_v11 = vld [vmem:[%s1875_s0 + $0x38] sm:$0xff] }
   0x4   :  { %v80_v9 = vpack.c.bf16 %v19_v7, %v18_v6  ;;  %v22_v12 = vld [vmem:[%s1875_s0 + $0x40] sm:$0xff]  ;;  %v23_v13 = vld [vmem:[%s1875_s0 + $0x48] sm:$0xff]  ;;  %v81_v14 = vpack.c.bf16 %v21_v11, %v20_v10  ;;  %v48_v18 = vld [vmem:[%s1875_s0 + $0x110] sm:$0xff] }
   0x5   :  { %978 = vmatprep.mubr.msk.bf16.mxu0 %vm118_vm0, %v78_v4  ;;  %v82_v15 = vpack.c.bf16 %v23_v13, %v22_v12  ;;  %v46_v16 = vld [vmem:[%s1875_s0 + $0x100] sm:$0xff]  ;;  %v47_v17 = vld [vmem:[%s1875_s0 + $0x108] sm:$0xff]  ;;  %v49_v19 = vld [vmem:[%s1875_s0 + $0x118] sm:$0xff] }
   0x6   :  { %979 = vmatmul.mubr.msk.bf16.vlgmr.msra.gmra.mxu0 %vm118_vm0, %v79_v8  ;;  %v94_v20 = vpack.c.bf16 %v47_v17, %v46_v16  ;;  %v95_v21 = vpack.c.bf16 %v49_v19, %v48_v18  ;;  %v50_v22 = vld [vmem:[%s1875_s0 + $0x120] sm:$0xff]  ;;  %v51_v23 = vld [vmem:[%s1875_s0 + $0x128] sm:$0xff]  ;;  %v24_v25 = vld [vmem:[%s1875_s0 + $0x50] sm:$0xff] }
   0x7   :  { %982 = vmatprep.mubr.msk.bf16.mxu0 %vm118_vm0, %v80_v9  ;;  %v96_v24 = vpack.c.bf16 %v51_v23, %v50_v22  ;;  %v25_v26 = vld [vmem:[%s1875_s0 + $0x58] sm:$0xff]  ;;  %v26_v27 = vld [vmem:[%s1875_s0 + $0x60] sm:$0xff]  ;;  %v27_v28 = vld [vmem:[%s1875_s0 + $0x68] sm:$0xff] }
   0x8   :  { %1010 = vmatprep.mubr.msk.bf16.mxu1 %vm118_vm0, %v94_v20  ;;  %v52_v29 = vld [vmem:[%s1875_s0 + $0x130] sm:$0xff]  ;;  %v53_v30 = vld [vmem:[%s1875_s0 + $0x138] sm:$0xff]  ;;  %v83_v31 = vpack.c.bf16 %v25_v26, %v24_v25  ;;  %v54_v32 = vld [vmem:[%s1875_s0 + $0x140] sm:$0xff]  ;;  %v84_v34 = vpack.c.bf16 %v27_v28, %v26_v27 }
   0x9   :  { %1011 = vmatmul.mubr.msk.bf16.vlgmr.msra.gmra.mxu1 %vm118_vm0, %v95_v21  ;;  %v55_v33 = vld [vmem:[%s1875_s0 + $0x148] sm:$0xff]  ;;  %v97_v35 = vpack.c.bf16 %v53_v30, %v52_v29  ;;  %v28_v37 = vld [vmem:[%s1875_s0 + $0x70] sm:$0xff]  ;;  %v29_v38 = vld [vmem:[%s1875_s0 + $0x78] sm:$0xff] }
   0xa   :  { %1014 = vmatprep.mubr.msk.bf16.mxu1 %vm118_vm0, %v96_v24  ;;  %v98_v36 = vpack.c.bf16 %v55_v33, %v54_v32  ;;  %v30_v39 = vld [vmem:[%s1875_s0 + $0x80] sm:$0xff]  ;;  %v31_v40 = vld [vmem:[%s1875_s0 + $0x88] sm:$0xff]  ;;  %v56_v41 = vld [vmem:[%s1875_s0 + $0x150] sm:$0xff]  ;;  %v85_v43 = vpack.c.bf16 %v29_v38, %v28_v37 }
   0xb   :  { %v57_v42 = vld [vmem:[%s1875_s0 + $0x158] sm:$0xff]  ;;  %v58_v44 = vld [vmem:[%s1875_s0 + $0x160] sm:$0xff]  ;;  %v59_v45 = vld [vmem:[%s1875_s0 + $0x168] sm:$0xff]  ;;  %v86_v46 = vpack.c.bf16 %v31_v40, %v30_v39 }
   0xc   :  { %v99_v47 = vpack.c.bf16 %v57_v42, %v56_v41  ;;  %v100_v48 = vpack.c.bf16 %v59_v45, %v58_v44  ;;  %v32_v49 = vld [vmem:[%s1875_s0 + $0x90] sm:$0xff]  ;;  %v33_v50 = vld [vmem:[%s1875_s0 + $0x98] sm:$0xff]  ;;  %v34_v51 = vld [vmem:[%s1875_s0 + $0xa0] sm:$0xff] }
   0xd   :  { %v35_v52 = vld [vmem:[%s1875_s0 + $0xa8] sm:$0xff]  ;;  %v60_v53 = vld [vmem:[%s1875_s0 + $0x170] sm:$0xff]  ;;  %v61_v54 = vld [vmem:[%s1875_s0 + $0x178] sm:$0xff]  ;;  %v87_v55 = vpack.c.bf16 %v33_v50, %v32_v49 }
   0xe   :  { %983 = vmatmul.mubr.msk.bf16.gmra.mxu0 %vm118_vm0, %v81_v14  ;;  %v62_v56 = vld [vmem:[%s1875_s0 + $0x180] sm:$0xff]  ;;  %v63_v57 = vld [vmem:[%s1875_s0 + $0x188] sm:$0xff]  ;;  %v88_v58 = vpack.c.bf16 %v35_v52, %v34_v51  ;;  %v101_v59 = vpack.c.bf16 %v61_v54, %v60_v53  ;;  %v36_v61 = vld [vmem:[%s1875_s0 + $0xb0] sm:$0xff] }
   0xf   :  { %986 = vmatprep.mubr.msk.bf16.mxu0 %vm118_vm0, %v82_v15  ;;  %v102_v60 = vpack.c.bf16 %v63_v57, %v62_v56  ;;  %v37_v62 = vld [vmem:[%s1875_s0 + $0xb8] sm:$0xff]  ;;  %v38_v63 = vld [vmem:[%s1875_s0 + $0xc0] sm:$0xff]  ;;  %v39_v0 = vld [vmem:[%s1875_s0 + $0xc8] sm:$0xff] }
  0x10   :  { %v64_v1 = vld [vmem:[%s1875_s0 + $0x190] sm:$0xff]  ;;  %v65_v2 = vld [vmem:[%s1875_s0 + $0x198] sm:$0xff]  ;;  %v89_v3 = vpack.c.bf16 %v37_v62, %v36_v61  ;;  %v66_v4 = vld [vmem:[%s1875_s0 + $0x1a0] sm:$0xff]  ;;  %v90_v6 = vpack.c.bf16 %v39_v0, %v38_v63 }
  0x11   :  { %1015 = vmatmul.mubr.msk.bf16.gmra.mxu1 %vm118_vm0, %v97_v35  ;;  %v67_v5 = vld [vmem:[%s1875_s0 + $0x1a8] sm:$0xff]  ;;  %v103_v7 = vpack.c.bf16 %v65_v2, %v64_v1  ;;  %v40_v9 = vld [vmem:[%s1875_s0 + $0xd0] sm:$0xff]  ;;  %v41_v10 = vld [vmem:[%s1875_s0 + $0xd8] sm:$0xff] }
  0x12   :  { %1018 = vmatprep.mubr.msk.bf16.mxu1 %vm118_vm0, %v98_v36  ;;  %v104_v8 = vpack.c.bf16 %v67_v5, %v66_v4  ;;  %v42_v11 = vld [vmem:[%s1875_s0 + $0xe0] sm:$0xff]  ;;  %v43_v12 = vld [vmem:[%s1875_s0 + $0xe8] sm:$0xff]  ;;  %v68_v13 = vld [vmem:[%s1875_s0 + $0x1b0] sm:$0xff]  ;;  %v91_v15 = vpack.c.bf16 %v41_v10, %v40_v9 }
  0x13   :  { %v69_v14 = vld [vmem:[%s1875_s0 + $0x1b8] sm:$0xff]  ;;  %v70_v16 = vld [vmem:[%s1875_s0 + $0x1c0] sm:$0xff]  ;;  %v71_v17 = vld [vmem:[%s1875_s0 + $0x1c8] sm:$0xff]  ;;  %v92_v18 = vpack.c.bf16 %v43_v12, %v42_v11 }
  0x14   :  { %v105_v19 = vpack.c.bf16 %v69_v14, %v68_v13  ;;  %v106_v20 = vpack.c.bf16 %v71_v17, %v70_v16  ;;  %v44_v21 = vld [vmem:[%s1875_s0 + $0xf0] sm:$0xff]  ;;  %v45_v22 = vld [vmem:[%s1875_s0 + $0xf8] sm:$0xff]  ;;  %v74_v26 = vld [vmem:[%s1875_s0 + $0x1e0] sm:$0xff] }
  0x15   :  { %v72_v23 = vld [vmem:[%s1875_s0 + $0x1d0] sm:$0xff]  ;;  %v73_v24 = vld [vmem:[%s1875_s0 + $0x1d8] sm:$0xff]  ;;  %v93_v25 = vpack.c.bf16 %v45_v22, %v44_v21  ;;  %v75_v27 = vld [vmem:[%s1875_s0 + $0x1e8] sm:$0xff] }
  0x16   :  { %987 = vmatmul.mubr.msk.bf16.gmra.mxu0 %vm118_vm0, %v83_v31  ;;  %v107_v28 = vpack.c.bf16 %v73_v24, %v72_v23  ;;  %v108_v29 = vpack.c.bf16 %v75_v27, %v74_v26  ;;  %v76_v30 = vld [vmem:[%s1875_s0 + $0x1f0] sm:$0xff]  ;;  %v77_v31 = vld [vmem:[%s1875_s0 + $0x1f8] sm:$0xff] }
  0x17   :  { %990 = vmatprep.mubr.msk.bf16.mxu0 %vm118_vm0, %v84_v34  ;;  %v109_v32 = vpack.c.bf16 %v77_v31, %v76_v30 }
  0x19   :  { %1019 = vmatmul.mubr.msk.bf16.gmra.mxu1 %vm118_vm0, %v99_v47 }
  0x1a   :  { %1022 = vmatprep.mubr.msk.bf16.mxu1 %vm118_vm0, %v100_v48 }
  0x1e   :  { %991 = vmatmul.mubr.msk.bf16.gmra.mxu0 %vm118_vm0, %v85_v43 }
  0x1f   :  { %994 = vmatprep.mubr.msk.bf16.mxu0 %vm118_vm0, %v86_v46 }
  0x21   :  { %1023 = vmatmul.mubr.msk.bf16.gmra.mxu1 %vm118_vm0, %v101_v59 }
  0x22   :  { %1026 = vmatprep.mubr.msk.bf16.mxu1 %vm118_vm0, %v102_v60 }
  0x26   :  { %995 = vmatmul.mubr.msk.bf16.gmra.mxu0 %vm118_vm0, %v87_v55 }
  0x27   :  { %998 = vmatprep.mubr.msk.bf16.mxu0 %vm118_vm0, %v88_v58 }
  0x29   :  { %1027 = vmatmul.mubr.msk.bf16.gmra.mxu1 %vm118_vm0, %v103_v7 }
  0x2a   :  { %1030 = vmatprep.mubr.msk.bf16.mxu1 %vm118_vm0, %v104_v8 }
  0x2e   :  { %999 = vmatmul.mubr.msk.bf16.gmra.mxu0 %vm118_vm0, %v89_v3 }
  0x2f   :  { %1002 = vmatprep.mubr.msk.bf16.mxu0 %vm118_vm0, %v90_v6 }
  0x31   :  { %1031 = vmatmul.mubr.msk.bf16.gmra.mxu1 %vm118_vm0, %v105_v19 }
  0x32   :  { %1034 = vmatprep.mubr.msk.bf16.mxu1 %vm118_vm0, %v106_v20 }
  0x36   :  { %1003 = vmatmul.mubr.msk.bf16.gmra.mxu0 %vm118_vm0, %v91_v15 }
  0x37   :  { %1006 = vmatprep.mubr.msk.bf16.mxu0 %vm118_vm0, %v92_v18 }
  0x39   :  { %1035 = vmatmul.mubr.msk.bf16.gmra.mxu1 %vm118_vm0, %v107_v28 }
  0x3a   :  { %1038 = vmatprep.mubr.msk.bf16.mxu1 %vm118_vm0, %v108_v29 }
  0x3e   :  { %1007 = vmatmul.mubr.msk.bf16.gmra.mxu0 %vm118_vm0, %v93_v25 }
  0x41   :  { %1039 = vmatmul.mubr.msk.bf16.gmra.mxu1 %vm118_vm0, %v109_v32 }
  0xc6   :  { %v980_v33 = vpop.f32.mrf.mxu0 }
  0xc7   :  { %507 = vst.msk [vmem:[%s1876_s2 + $0x10] sm:$0xff] %vm504_vm1, %v980_v33  ;;  %v706_v38 = vmul.f32 %v980_v33, %v980_v33  ;;  %v572_v44 = vsel %vm504_vm1, %v980_v33, 0.0 }
  0xc8   :  { %v249_v34 = vpop.f32.mrf.mxu0 }
  0xc9   :  { %505 = vst.msk [vmem:[%s1876_s2] sm:$0xff] %vm504_vm1, %v249_v34  ;;  %v704_v36 = vmul.f32 %v249_v34, %v249_v34  ;;  %v569_v39 = vsel %vm504_vm1, %v249_v34, 0.0  ;;  %v1317_v51 = vpop.f32.mrf.mxu1  ;;  %v771_v52 = vsel %vm504_vm1, %v706_v38, 0.0 }
  0xca   :  { %v981_v35 = vpop.f32.mrf.mxu0  ;;  %539 = vst.msk [vmem:[%s1876_s2 + $0x110] sm:$0xff] %vm504_vm1, %v1317_v51 }
  0xcb   :  { %508 = vst.msk [vmem:[%s1876_s2 + $0x18] sm:$0xff] %vm504_vm1, %v981_v35  ;;  %v768_v45 = vsel %vm504_vm1, %v704_v36, 0.0  ;;  %v707_v46 = vmul.f32 %v981_v35, %v981_v35  ;;  %v574_v53 = vsel %vm504_vm1, %v981_v35, 0.0  ;;  %v1330_v58 = vpop.f32.mrf.mxu1 }
  0xcc   :  { %v252_v37 = vpop.f32.mrf.mxu0  ;;  %537 = vst.msk [vmem:[%s1876_s2 + $0x100] sm:$0xff] %vm504_vm1, %v1330_v58 }
  0xcd   :  { %506 = vst.msk [vmem:[%s1876_s2 + $0x8] sm:$0xff] %vm504_vm1, %v252_v37  ;;  %v570_v40 = vsel %vm504_vm1, %v252_v37, 0.0  ;;  %v705_v41 = vmul.f32 %v252_v37, %v252_v37  ;;  %v773_v59 = vsel %vm504_vm1, %v707_v46, 0.0  ;;  %v1343_v0 = vpop.f32.mrf.mxu1 }
  0xce   :  { %v571_v42 = vadd.f32 %v570_v40, %v569_v39  ;;  %v984_v43 = vpop.f32.mrf.mxu0  ;;  %540 = vst.msk [vmem:[%s1876_s2 + $0x118] sm:$0xff] %vm504_vm1, %v1343_v0 }
  0xcf   :  { %v769_v47 = vsel %vm504_vm1, %v705_v41, 0.0  ;;  %511 = vst.msk [vmem:[%s1876_s2 + $0x30] sm:$0xff] %vm504_vm1, %v984_v43  ;;  %v710_v1 = vmul.f32 %v984_v43, %v984_v43  ;;  %v1356_v8 = vpop.f32.mrf.mxu1  ;;  %v580_v9 = vsel %vm504_vm1, %v984_v43, 0.0 }
  0xd0   :  { %v573_v48 = vadd.f32 %v572_v44, %v571_v42  ;;  %v770_v49 = vadd.f32 %v769_v47, %v768_v45  ;;  %v265_v50 = vpop.f32.mrf.mxu0  ;;  %538 = vst.msk [vmem:[%s1876_s2 + $0x108] sm:$0xff] %vm504_vm1, %v1356_v8 }
  0xd1   :  { %509 = vst.msk [vmem:[%s1876_s2 + $0x20] sm:$0xff] %vm504_vm1, %v265_v50  ;;  %v708_v54 = vmul.f32 %v265_v50, %v265_v50  ;;  %v576_v60 = vsel %vm504_vm1, %v265_v50, 0.0  ;;  %v1369_v15 = vpop.f32.mrf.mxu1  ;;  %v779_v16 = vsel %vm504_vm1, %v710_v1, 0.0 }
  0xd2   :  { %v772_v55 = vadd.f32 %v771_v52, %v770_v49  ;;  %v575_v56 = vadd.f32 %v574_v53, %v573_v48  ;;  %v985_v57 = vpop.f32.mrf.mxu0  ;;  %543 = vst.msk [vmem:[%s1876_s2 + $0x130] sm:$0xff] %vm504_vm1, %v1369_v15 }
  0xd3   :  { %512 = vst.msk [vmem:[%s1876_s2 + $0x38] sm:$0xff] %vm504_vm1, %v985_v57  ;;  %v775_v2 = vsel %vm504_vm1, %v708_v54, 0.0  ;;  %v711_v10 = vmul.f32 %v985_v57, %v985_v57  ;;  %v582_v17 = vsel %vm504_vm1, %v985_v57, 0.0  ;;  %v1382_v22 = vpop.f32.mrf.mxu1 }
  0xd4   :  { %v577_v61 = vadd.f32 %v576_v60, %v575_v56  ;;  %v774_v62 = vadd.f32 %v773_v59, %v772_v55  ;;  %v268_v63 = vpop.f32.mrf.mxu0  ;;  %541 = vst.msk [vmem:[%s1876_s2 + $0x120] sm:$0xff] %vm504_vm1, %v1382_v22 }
  0xd5   :  { %510 = vst.msk [vmem:[%s1876_s2 + $0x28] sm:$0xff] %vm504_vm1, %v268_v63  ;;  %v578_v3 = vsel %vm504_vm1, %v268_v63, 0.0  ;;  %v709_v4 = vmul.f32 %v268_v63, %v268_v63  ;;  %v781_v23 = vsel %vm504_vm1, %v711_v10, 0.0  ;;  %v1395_v28 = vpop.f32.mrf.mxu1 }
  0xd6   :  { %v776_v5 = vadd.f32 %v775_v2, %v774_v62  ;;  %v579_v6 = vadd.f32 %v578_v3, %v577_v61  ;;  %v988_v7 = vpop.f32.mrf.mxu0  ;;  %544 = vst.msk [vmem:[%s1876_s2 + $0x138] sm:$0xff] %vm504_vm1, %v1395_v28 }
  0xd7   :  { %v777_v11 = vsel %vm504_vm1, %v709_v4, 0.0  ;;  %515 = vst.msk [vmem:[%s1876_s2 + $0x50] sm:$0xff] %vm504_vm1, %v988_v7  ;;  %v714_v29 = vmul.f32 %v988_v7, %v988_v7  ;;  %v1408_v36 = vpop.f32.mrf.mxu1  ;;  %v588_v37 = vsel %vm504_vm1, %v988_v7, 0.0 }
  0xd8   :  { %v581_v12 = vadd.f32 %v580_v9, %v579_v6  ;;  %v778_v13 = vadd.f32 %v777_v11, %v776_v5  ;;  %v281_v14 = vpop.f32.mrf.mxu0  ;;  %542 = vst.msk [vmem:[%s1876_s2 + $0x128] sm:$0xff] %vm504_vm1, %v1408_v36 }
  0xd9   :  { %513 = vst.msk [vmem:[%s1876_s2 + $0x40] sm:$0xff] %vm504_vm1, %v281_v14  ;;  %v712_v18 = vmul.f32 %v281_v14, %v281_v14  ;;  %v584_v24 = vsel %vm504_vm1, %v281_v14, 0.0  ;;  %v1421_v43 = vpop.f32.mrf.mxu1  ;;  %v787_v44 = vsel %vm504_vm1, %v714_v29, 0.0 }
  0xda   :  { %v780_v19 = vadd.f32 %v779_v16, %v778_v13  ;;  %v583_v20 = vadd.f32 %v582_v17, %v581_v12  ;;  %v989_v21 = vpop.f32.mrf.mxu0  ;;  %547 = vst.msk [vmem:[%s1876_s2 + $0x150] sm:$0xff] %vm504_vm1, %v1421_v43 }
  0xdb   :  { %516 = vst.msk [vmem:[%s1876_s2 + $0x58] sm:$0xff] %vm504_vm1, %v989_v21  ;;  %v783_v30 = vsel %vm504_vm1, %v712_v18, 0.0  ;;  %v715_v38 = vmul.f32 %v989_v21, %v989_v21  ;;  %v590_v45 = vsel %vm504_vm1, %v989_v21, 0.0  ;;  %v1434_v50 = vpop.f32.mrf.mxu1 }
  0xdc   :  { %v585_v25 = vadd.f32 %v584_v24, %v583_v20  ;;  %v782_v26 = vadd.f32 %v781_v23, %v780_v19  ;;  %v284_v27 = vpop.f32.mrf.mxu0  ;;  %545 = vst.msk [vmem:[%s1876_s2 + $0x140] sm:$0xff] %vm504_vm1, %v1434_v50 }
  0xdd   :  { %514 = vst.msk [vmem:[%s1876_s2 + $0x48] sm:$0xff] %vm504_vm1, %v284_v27  ;;  %v586_v31 = vsel %vm504_vm1, %v284_v27, 0.0  ;;  %v713_v32 = vmul.f32 %v284_v27, %v284_v27  ;;  %v789_v52 = vsel %vm504_vm1, %v715_v38, 0.0  ;;  %v1447_v57 = vpop.f32.mrf.mxu1 }
  0xde   :  { %v784_v33 = vadd.f32 %v783_v30, %v782_v26  ;;  %v587_v34 = vadd.f32 %v586_v31, %v585_v25  ;;  %v992_v35 = vpop.f32.mrf.mxu0  ;;  %548 = vst.msk [vmem:[%s1876_s2 + $0x158] sm:$0xff] %vm504_vm1, %v1447_v57 }
  0xdf   :  { %v785_v39 = vsel %vm504_vm1, %v713_v32, 0.0  ;;  %519 = vst.msk [vmem:[%s1876_s2 + $0x70] sm:$0xff] %vm504_vm1, %v992_v35  ;;  %v718_v59 = vmul.f32 %v992_v35, %v992_v35  ;;  %v1460_v3 = vpop.f32.mrf.mxu1  ;;  %v596_v4 = vsel %vm504_vm1, %v992_v35, 0.0 }
  0xe0   :  { %v589_v40 = vadd.f32 %v588_v37, %v587_v34  ;;  %v786_v41 = vadd.f32 %v785_v39, %v784_v33  ;;  %v297_v42 = vpop.f32.mrf.mxu0  ;;  %546 = vst.msk [vmem:[%s1876_s2 + $0x148] sm:$0xff] %vm504_vm1, %v1460_v3 }
  0xe1   :  { %517 = vst.msk [vmem:[%s1876_s2 + $0x60] sm:$0xff] %vm504_vm1, %v297_v42  ;;  %v716_v46 = vmul.f32 %v297_v42, %v297_v42  ;;  %v592_v53 = vsel %vm504_vm1, %v297_v42, 0.0  ;;  %v1473_v11 = vpop.f32.mrf.mxu1  ;;  %v795_v12 = vsel %vm504_vm1, %v718_v59, 0.0 }
  0xe2   :  { %v788_v47 = vadd.f32 %v787_v44, %v786_v41  ;;  %v591_v48 = vadd.f32 %v590_v45, %v589_v40  ;;  %v993_v49 = vpop.f32.mrf.mxu0  ;;  %551 = vst.msk [vmem:[%s1876_s2 + $0x170] sm:$0xff] %vm504_vm1, %v1473_v11 }
  0xe3   :  { %520 = vst.msk [vmem:[%s1876_s2 + $0x78] sm:$0xff] %vm504_vm1, %v993_v49  ;;  %v791_v60 = vsel %vm504_vm1, %v716_v46, 0.0  ;;  %v719_v5 = vmul.f32 %v993_v49, %v993_v49  ;;  %v598_v13 = vsel %vm504_vm1, %v993_v49, 0.0  ;;  %v1486_v19 = vpop.f32.mrf.mxu1 }
  0xe4   :  { %v593_v54 = vadd.f32 %v592_v53, %v591_v48  ;;  %v790_v55 = vadd.f32 %v789_v52, %v788_v47  ;;  %v300_v56 = vpop.f32.mrf.mxu0  ;;  %549 = vst.msk [vmem:[%s1876_s2 + $0x160] sm:$0xff] %vm504_vm1, %v1486_v19 }
  0xe5   :  { %518 = vst.msk [vmem:[%s1876_s2 + $0x68] sm:$0xff] %vm504_vm1, %v300_v56  ;;  %v594_v61 = vsel %vm504_vm1, %v300_v56, 0.0  ;;  %v717_v62 = vmul.f32 %v300_v56, %v300_v56  ;;  %v797_v20 = vsel %vm504_vm1, %v719_v5, 0.0  ;;  %v1499_v26 = vpop.f32.mrf.mxu1 }
  0xe6   :  { %v792_v63 = vadd.f32 %v791_v60, %v790_v55  ;;  %v595_v1 = vadd.f32 %v594_v61, %v593_v54  ;;  %v996_v2 = vpop.f32.mrf.mxu0  ;;  %552 = vst.msk [vmem:[%s1876_s2 + $0x178] sm:$0xff] %vm504_vm1, %v1499_v26 }
  0xe7   :  { %v793_v6 = vsel %vm504_vm1, %v717_v62, 0.0  ;;  %523 = vst.msk [vmem:[%s1876_s2 + $0x90] sm:$0xff] %vm504_vm1, %v996_v2  ;;  %v722_v27 = vmul.f32 %v996_v2, %v996_v2  ;;  %v1512_v35 = vpop.f32.mrf.mxu1  ;;  %v604_v37 = vsel %vm504_vm1, %v996_v2, 0.0 }
  0xe8   :  { %v597_v7 = vadd.f32 %v596_v4, %v595_v1  ;;  %v794_v9 = vadd.f32 %v793_v6, %v792_v63  ;;  %v313_v10 = vpop.f32.mrf.mxu0  ;;  %550 = vst.msk [vmem:[%s1876_s2 + $0x168] sm:$0xff] %vm504_vm1, %v1512_v35 }
  0xe9   :  { %521 = vst.msk [vmem:[%s1876_s2 + $0x80] sm:$0xff] %vm504_vm1, %v313_v10  ;;  %v720_v14 = vmul.f32 %v313_v10, %v313_v10  ;;  %v600_v21 = vsel %vm504_vm1, %v313_v10, 0.0  ;;  %v1525_v44 = vpop.f32.mrf.mxu1  ;;  %v803_v45 = vsel %vm504_vm1, %v722_v27, 0.0 }
  0xea   :  { %v796_v16 = vadd.f32 %v795_v12, %v794_v9  ;;  %v599_v17 = vadd.f32 %v598_v13, %v597_v7  ;;  %v997_v18 = vpop.f32.mrf.mxu0  ;;  %555 = vst.msk [vmem:[%s1876_s2 + $0x190] sm:$0xff] %vm504_vm1, %v1525_v44 }
  0xeb   :  { %524 = vst.msk [vmem:[%s1876_s2 + $0x98] sm:$0xff] %vm504_vm1, %v997_v18  ;;  %v799_v29 = vsel %vm504_vm1, %v720_v14, 0.0  ;;  %v723_v38 = vmul.f32 %v997_v18, %v997_v18  ;;  %v606_v46 = vsel %vm504_vm1, %v997_v18, 0.0  ;;  %v1538_v53 = vpop.f32.mrf.mxu1 }
  0xec   :  { %v601_v23 = vadd.f32 %v600_v21, %v599_v17  ;;  %v798_v24 = vadd.f32 %v797_v20, %v796_v16  ;;  %v316_v25 = vpop.f32.mrf.mxu0  ;;  %553 = vst.msk [vmem:[%s1876_s2 + $0x180] sm:$0xff] %vm504_vm1, %v1538_v53 }
  0xed   :  { %522 = vst.msk [vmem:[%s1876_s2 + $0x88] sm:$0xff] %vm504_vm1, %v316_v25  ;;  %v602_v30 = vsel %vm504_vm1, %v316_v25, 0.0  ;;  %v721_v31 = vmul.f32 %v316_v25, %v316_v25  ;;  %v805_v54 = vsel %vm504_vm1, %v723_v38, 0.0  ;;  %v1551_v61 = vpop.f32.mrf.mxu1 }
  0xee   :  { %v800_v32 = vadd.f32 %v799_v29, %v798_v24  ;;  %v603_v33 = vadd.f32 %v602_v30, %v601_v23  ;;  %v1000_v34 = vpop.f32.mrf.mxu0  ;;  %556 = vst.msk [vmem:[%s1876_s2 + $0x198] sm:$0xff] %vm504_vm1, %v1551_v61 }
  0xef   :  { %v801_v39 = vsel %vm504_vm1, %v721_v31, 0.0  ;;  %527 = vst.msk [vmem:[%s1876_s2 + $0xb0] sm:$0xff] %vm504_vm1, %v1000_v34  ;;  %v726_v62 = vmul.f32 %v1000_v34, %v1000_v34  ;;  %v1564_v7 = vpop.f32.mrf.mxu1  ;;  %v612_v9 = vsel %vm504_vm1, %v1000_v34, 0.0 }
  0xf0   :  { %v605_v40 = vadd.f32 %v604_v37, %v603_v33  ;;  %v802_v41 = vadd.f32 %v801_v39, %v800_v32  ;;  %v329_v42 = vpop.f32.mrf.mxu0  ;;  %554 = vst.msk [vmem:[%s1876_s2 + $0x188] sm:$0xff] %vm504_vm1, %v1564_v7 }
  0xf1   :  { %525 = vst.msk [vmem:[%s1876_s2 + $0xa0] sm:$0xff] %vm504_vm1, %v329_v42  ;;  %v724_v47 = vmul.f32 %v329_v42, %v329_v42  ;;  %v608_v55 = vsel %vm504_vm1, %v329_v42, 0.0  ;;  %v1577_v17 = vpop.f32.mrf.mxu1  ;;  %v811_v18 = vsel %vm504_vm1, %v726_v62, 0.0 }
  0xf2   :  { %v804_v48 = vadd.f32 %v803_v45, %v802_v41  ;;  %v607_v49 = vadd.f32 %v606_v46, %v605_v40  ;;  %v1001_v52 = vpop.f32.mrf.mxu0  ;;  %559 = vst.msk [vmem:[%s1876_s2 + $0x1b0] sm:$0xff] %vm504_vm1, %v1577_v17 }
  0xf3   :  { %528 = vst.msk [vmem:[%s1876_s2 + $0xb8] sm:$0xff] %vm504_vm1, %v1001_v52  ;;  %v807_v63 = vsel %vm504_vm1, %v724_v47, 0.0  ;;  %v727_v10 = vmul.f32 %v1001_v52, %v1001_v52  ;;  %v614_v20 = vsel %vm504_vm1, %v1001_v52, 0.0  ;;  %v1590_v27 = vpop.f32.mrf.mxu1 }
  0xf4   :  { %v609_v56 = vadd.f32 %v608_v55, %v607_v49  ;;  %v806_v59 = vadd.f32 %v805_v54, %v804_v48  ;;  %v332_v60 = vpop.f32.mrf.mxu0  ;;  %557 = vst.msk [vmem:[%s1876_s2 + $0x1a0] sm:$0xff] %vm504_vm1, %v1590_v27 }
  0xf5   :  { %526 = vst.msk [vmem:[%s1876_s2 + $0xa8] sm:$0xff] %vm504_vm1, %v332_v60  ;;  %v610_v1 = vsel %vm504_vm1, %v332_v60, 0.0  ;;  %v725_v2 = vmul.f32 %v332_v60, %v332_v60  ;;  %v813_v29 = vsel %vm504_vm1, %v727_v10, 0.0  ;;  %v1603_v34 = vpop.f32.mrf.mxu1 }
  0xf6   :  { %v808_v4 = vadd.f32 %v807_v63, %v806_v59  ;;  %v611_v5 = vadd.f32 %v610_v1, %v609_v56  ;;  %v1004_v6 = vpop.f32.mrf.mxu0  ;;  %560 = vst.msk [vmem:[%s1876_s2 + $0x1b8] sm:$0xff] %vm504_vm1, %v1603_v34 }
  0xf7   :  { %v809_v12 = vsel %vm504_vm1, %v725_v2, 0.0  ;;  %531 = vst.msk [vmem:[%s1876_s2 + $0xd0] sm:$0xff] %vm504_vm1, %v1004_v6  ;;  %v730_v37 = vmul.f32 %v1004_v6, %v1004_v6  ;;  %v1616_v46 = vpop.f32.mrf.mxu1  ;;  %v620_v47 = vsel %vm504_vm1, %v1004_v6, 0.0 }
  0xf8   :  { %v613_v13 = vadd.f32 %v612_v9, %v611_v5  ;;  %v810_v14 = vadd.f32 %v809_v12, %v808_v4  ;;  %v345_v16 = vpop.f32.mrf.mxu0  ;;  %558 = vst.msk [vmem:[%s1876_s2 + $0x1a8] sm:$0xff] %vm504_vm1, %v1616_v46 }
  0xf9   :  { %529 = vst.msk [vmem:[%s1876_s2 + $0xc0] sm:$0xff] %vm504_vm1, %v345_v16  ;;  %v728_v21 = vmul.f32 %v345_v16, %v345_v16  ;;  %v616_v30 = vsel %vm504_vm1, %v345_v16, 0.0  ;;  %v1629_v56 = vpop.f32.mrf.mxu1  ;;  %v819_v59 = vsel %vm504_vm1, %v730_v37, 0.0 }
  0xfa   :  { %v812_v23 = vadd.f32 %v811_v18, %v810_v14  ;;  %v615_v24 = vadd.f32 %v614_v20, %v613_v13  ;;  %v1005_v25 = vpop.f32.mrf.mxu0  ;;  %563 = vst.msk [vmem:[%s1876_s2 + $0x1d0] sm:$0xff] %vm504_vm1, %v1629_v56 }
  0xfb   :  { %532 = vst.msk [vmem:[%s1876_s2 + $0xd8] sm:$0xff] %vm504_vm1, %v1005_v25  ;;  %v815_v38 = vsel %vm504_vm1, %v728_v21, 0.0  ;;  %v731_v48 = vmul.f32 %v1005_v25, %v1005_v25  ;;  %v622_v60 = vsel %vm504_vm1, %v1005_v25, 0.0  ;;  %v1642_v4 = vpop.f32.mrf.mxu1 }
  0xfc   :  { %v617_v31 = vadd.f32 %v616_v30, %v615_v24  ;;  %v814_v32 = vadd.f32 %v813_v29, %v812_v23  ;;  %v348_v33 = vpop.f32.mrf.mxu0  ;;  %561 = vst.msk [vmem:[%s1876_s2 + $0x1c0] sm:$0xff] %vm504_vm1, %v1642_v4 }
  0xfd   :  { %530 = vst.msk [vmem:[%s1876_s2 + $0xc8] sm:$0xff] %vm504_vm1, %v348_v33  ;;  %v618_v39 = vsel %vm504_vm1, %v348_v33, 0.0  ;;  %v729_v40 = vmul.f32 %v348_v33, %v348_v33  ;;  %v821_v5 = vsel %vm504_vm1, %v731_v48, 0.0  ;;  %v1655_v13 = vpop.f32.mrf.mxu1  ;;  %v737_v48 = vmul.f32 %v1356_v8, %v1356_v8 }
  0xfe   :  { %v816_v41 = vadd.f32 %v815_v38, %v814_v32  ;;  %v619_v42 = vadd.f32 %v618_v39, %v617_v31  ;;  %v1008_v45 = vpop.f32.mrf.mxu0  ;;  %564 = vst.msk [vmem:[%s1876_s2 + $0x1d8] sm:$0xff] %vm504_vm1, %v1655_v13  ;;  %v736_v39 = vmul.f32 %v1330_v58, %v1330_v58 }
  0xff   :  { %v817_v49 = vsel %vm504_vm1, %v729_v40, 0.0  ;;  %535 = vst.msk [vmem:[%s1876_s2 + $0xf0] sm:$0xff] %vm504_vm1, %v1008_v45  ;;  %v734_v14 = vmul.f32 %v1008_v45, %v1008_v45  ;;  %v1668_v24 = vpop.f32.mrf.mxu1  ;;  %v628_v25 = vsel %vm504_vm1, %v1008_v45, 0.0 }
 0x100   :  { %v621_v52 = vadd.f32 %v620_v47, %v619_v42  ;;  %v818_v54 = vadd.f32 %v817_v49, %v816_v41  ;;  %v361_v55 = vpop.f32.mrf.mxu0  ;;  %562 = vst.msk [vmem:[%s1876_s2 + $0x1c8] sm:$0xff] %vm504_vm1, %v1668_v24  ;;  %v632_v47 = vsel %vm504_vm1, %v1330_v58, 0.0  ;;  %v634_v58 = vsel %vm504_vm1, %v1356_v8, 0.0 }
 0x101   :  { %533 = vst.msk [vmem:[%s1876_s2 + $0xe0] sm:$0xff] %vm504_vm1, %v361_v55  ;;  %v732_v62 = vmul.f32 %v361_v55, %v361_v55  ;;  %v624_v6 = vsel %vm504_vm1, %v361_v55, 0.0  ;;  %v1677_v33 = vpop.f32.mrf.mxu1  ;;  %v827_v37 = vsel %vm504_vm1, %v734_v14, 0.0  ;;  %v738_v55 = vmul.f32 %v1317_v51, %v1317_v51 }
 0x102   :  { %v820_v63 = vadd.f32 %v819_v59, %v818_v54  ;;  %v623_v1 = vadd.f32 %v622_v60, %v621_v52  ;;  %v1009_v2 = vpop.f32.mrf.mxu0  ;;  %567 = vst.msk [vmem:[%s1876_s2 + $0x1f0] sm:$0xff] %vm504_vm1, %v1677_v33  ;;  %v831_v59 = vsel %vm504_vm1, %v736_v39, 0.0 }
 0x103   :  { %536 = vst.msk [vmem:[%s1876_s2 + $0xf8] sm:$0xff] %vm504_vm1, %v1009_v2  ;;  %v823_v16 = vsel %vm504_vm1, %v732_v62, 0.0  ;;  %v735_v29 = vmul.f32 %v1009_v2, %v1009_v2  ;;  %v630_v38 = vsel %vm504_vm1, %v1009_v2, 0.0  ;;  %v1688_v42 = vpop.f32.mrf.mxu1  ;;  %v739_v2 = vmul.f32 %v1343_v0, %v1343_v0 }
 0x104   :  { %v625_v9 = vadd.f32 %v624_v6, %v623_v1  ;;  %v822_v10 = vadd.f32 %v821_v5, %v820_v63  ;;  %v364_v12 = vpop.f32.mrf.mxu0  ;;  %565 = vst.msk [vmem:[%s1876_s2 + $0x1e0] sm:$0xff] %vm504_vm1, %v1688_v42  ;;  %v636_v1 = vsel %vm504_vm1, %v1317_v51, 0.0  ;;  %v833_v5 = vsel %vm504_vm1, %v737_v48, 0.0 }
 0x105   :  { %534 = vst.msk [vmem:[%s1876_s2 + $0xe8] sm:$0xff] %vm504_vm1, %v364_v12  ;;  %v626_v18 = vsel %vm504_vm1, %v364_v12, 0.0  ;;  %v733_v20 = vmul.f32 %v364_v12, %v364_v12  ;;  %v829_v45 = vsel %vm504_vm1, %v735_v29, 0.0  ;;  %v1700_v54 = vpop.f32.mrf.mxu1  ;;  %v740_v51 = vmul.f32 %v1382_v22, %v1382_v22 }
 0x106   :  { %v824_v21 = vadd.f32 %v823_v16, %v822_v10  ;;  %v627_v23 = vadd.f32 %v626_v18, %v625_v9  ;;  %568 = vst.msk [vmem:[%s1876_s2 + $0x1f8] sm:$0xff] %vm504_vm1, %v1700_v54  ;;  %v835_v9 = vsel %vm504_vm1, %v738_v55, 0.0  ;;  %v638_v10 = vsel %vm504_vm1, %v1343_v0, 0.0 }
 0x107   :  { %v825_v30 = vsel %vm504_vm1, %v733_v20, 0.0  ;;  %v1712_v63 = vpop.f32.mrf.mxu1  ;;  %v837_v16 = vsel %vm504_vm1, %v739_v2, 0.0  ;;  %v640_v18 = vsel %vm504_vm1, %v1382_v22, 0.0  ;;  %v741_v20 = vmul.f32 %v1408_v36, %v1408_v36 }
 0x108   :  { %v629_v31 = vadd.f32 %v628_v25, %v627_v23  ;;  %v826_v32 = vadd.f32 %v825_v30, %v824_v21  ;;  %566 = vst.msk [vmem:[%s1876_s2 + $0x1e8] sm:$0xff] %vm504_vm1, %v1712_v63  ;;  %v742_v25 = vmul.f32 %v1369_v15, %v1369_v15  ;;  %v839_v0 = vsel %vm504_vm1, %v740_v51, 0.0 }
 0x109   :  { %v642_v29 = vsel %vm504_vm1, %v1408_v36, 0.0  ;;  %v743_v22 = vmul.f32 %v1395_v28, %v1395_v28  ;;  %v744_v36 = vmul.f32 %v1434_v50, %v1434_v50 }
 0x10a   :  { %v631_v40 = vadd.f32 %v630_v38, %v629_v31  ;;  %v828_v41 = vadd.f32 %v827_v37, %v826_v32  ;;  %v644_v32 = vsel %vm504_vm1, %v1369_v15, 0.0  ;;  %v841_v37 = vsel %vm504_vm1, %v741_v20, 0.0 }
 0x10b   :  { %v845_v48 = vsel %vm504_vm1, %v743_v22, 0.0  ;;  %v648_v15 = vsel %vm504_vm1, %v1434_v50, 0.0  ;;  %v747_v50 = vmul.f32 %v1447_v57, %v1447_v57  ;;  %v750_v20 = vmul.f32 %v1473_v11, %v1473_v11 }
 0x10c   :  { %v830_v49 = vadd.f32 %v829_v45, %v828_v41  ;;  %v633_v52 = vadd.f32 %v632_v47, %v631_v40  ;;  %v843_v40 = vsel %vm504_vm1, %v742_v25, 0.0  ;;  %v646_v41 = vsel %vm504_vm1, %v1395_v28, 0.0 }
 0x10d   :  { %v847_v28 = vsel %vm504_vm1, %v744_v36, 0.0  ;;  %v662_v22 = vsel %vm504_vm1, %v1499_v26, 0.0 }
 0x10e   :  { %v635_v60 = vadd.f32 %v634_v58, %v633_v52  ;;  %v832_v62 = vadd.f32 %v831_v59, %v830_v49  ;;  %v745_v49 = vmul.f32 %v1460_v3, %v1460_v3  ;;  %v746_v59 = vmul.f32 %v1421_v43, %v1421_v43 }
 0x10f   :  { %v650_v58 = vsel %vm504_vm1, %v1460_v3, 0.0  ;;  %v748_v3 = vmul.f32 %v1486_v19, %v1486_v19 }
 0x110   :  { %v637_v8 = vadd.f32 %v636_v1, %v635_v60  ;;  %v834_v6 = vadd.f32 %v833_v5, %v832_v62  ;;  %v652_v1 = vsel %vm504_vm1, %v1421_v43, 0.0  ;;  %v849_v2 = vsel %vm504_vm1, %v745_v49, 0.0 }
 0x111   :  { %v656_v43 = vsel %vm504_vm1, %v1486_v19, 0.0  ;;  %v751_v19 = vmul.f32 %v1499_v26, %v1499_v26  ;;  %v668_v49 = vsel %vm504_vm1, %v1525_v44, 0.0 }
 0x112   :  { %v836_v12 = vadd.f32 %v835_v9, %v834_v6  ;;  %v639_v14 = vadd.f32 %v638_v10, %v637_v8  ;;  %v851_v6 = vsel %vm504_vm1, %v746_v59, 0.0  ;;  %v654_v9 = vsel %vm504_vm1, %v1447_v57, 0.0 }
 0x113   :  { %v855_v57 = vsel %vm504_vm1, %v748_v3, 0.0 }
 0x114   :  { %v641_v21 = vadd.f32 %v640_v18, %v639_v14  ;;  %v838_v23 = vadd.f32 %v837_v16, %v836_v12  ;;  %v853_v12 = vsel %vm504_vm1, %v747_v50, 0.0  ;;  %v749_v14 = vmul.f32 %v1512_v35, %v1512_v35 }
 0x115   :  { %v757_v50 = vmul.f32 %v1616_v46, %v1616_v46 }
 0x116   :  { %v840_v30 = vadd.f32 %v839_v0, %v838_v23  ;;  %v643_v31 = vadd.f32 %v642_v29, %v641_v21  ;;  %v658_v21 = vsel %vm504_vm1, %v1512_v35, 0.0  ;;  %v660_v0 = vsel %vm504_vm1, %v1473_v11, 0.0 }
 0x117   :  { %v857_v29 = vsel %vm504_vm1, %v749_v14, 0.0  ;;  %v752_v35 = vmul.f32 %v1538_v53, %v1538_v53  ;;  %v664_v11 = vsel %vm504_vm1, %v1538_v53, 0.0  ;;  %v755_v53 = vmul.f32 %v1551_v61, %v1551_v61 }
 0x118   :  { %v645_v38 = vadd.f32 %v644_v32, %v643_v31  ;;  %v842_v39 = vadd.f32 %v841_v37, %v840_v30  ;;  %v859_v32 = vsel %vm504_vm1, %v750_v20, 0.0 }
 0x119   :  { %v863_v26 = vsel %vm504_vm1, %v752_v35, 0.0 }
 0x11a   :  { %v844_v45 = vadd.f32 %v843_v40, %v842_v39  ;;  %v647_v47 = vadd.f32 %v646_v41, %v645_v38  ;;  %v861_v39 = vsel %vm504_vm1, %v751_v19, 0.0  ;;  %v753_v40 = vmul.f32 %v1564_v7, %v1564_v7 }
 0x11b   :  { %v682_v19 = vsel %vm504_vm1, %v1668_v24, 0.0 }
 0x11c   :  { %v649_v52 = vadd.f32 %v648_v15, %v647_v47  ;;  %v846_v55 = vadd.f32 %v845_v48, %v844_v45  ;;  %v754_v45 = vmul.f32 %v1525_v44, %v1525_v44  ;;  %v666_v47 = vsel %vm504_vm1, %v1564_v7, 0.0 }
 0x11d   :  { %v756_v7 = vmul.f32 %v1590_v27, %v1590_v27  ;;  %v672_v44 = vsel %vm504_vm1, %v1590_v27, 0.0  ;;  %v759_v27 = vmul.f32 %v1603_v34, %v1603_v34 }
 0x11e   :  { %v848_v60 = vadd.f32 %v847_v28, %v846_v55  ;;  %v651_v62 = vadd.f32 %v650_v58, %v649_v52  ;;  %v865_v52 = vsel %vm504_vm1, %v753_v40, 0.0  ;;  %v867_v28 = vsel %vm504_vm1, %v754_v45, 0.0 }
 0x11f   :  { %v670_v58 = vsel %vm504_vm1, %v1551_v61, 0.0  ;;  %v871_v61 = vsel %vm504_vm1, %v756_v7, 0.0 }
 0x120   :  { %v653_v5 = vadd.f32 %v652_v1, %v651_v62  ;;  %v850_v8 = vadd.f32 %v849_v2, %v848_v60  ;;  %v869_v1 = vsel %vm504_vm1, %v755_v53, 0.0 }
 0x122   :  { %v852_v10 = vadd.f32 %v851_v6, %v850_v8  ;;  %v655_v51 = vadd.f32 %v654_v9, %v653_v5  ;;  %v758_v8 = vmul.f32 %v1577_v17, %v1577_v17  ;;  %v674_v6 = vsel %vm504_vm1, %v1616_v46, 0.0 }
 0x123   :  { %v760_v46 = vmul.f32 %v1642_v4, %v1642_v4 }
 0x124   :  { %v657_v16 = vadd.f32 %v656_v43, %v655_v51  ;;  %v854_v18 = vadd.f32 %v853_v12, %v852_v10  ;;  %v676_v10 = vsel %vm504_vm1, %v1577_v17, 0.0  ;;  %v873_v51 = vsel %vm504_vm1, %v757_v50, 0.0 }
 0x125   :  { %v875_v14 = vsel %vm504_vm1, %v758_v8, 0.0  ;;  %v680_v17 = vsel %vm504_vm1, %v1642_v4, 0.0  ;;  %v763_v4 = vmul.f32 %v1655_v13, %v1655_v13 }
 0x126   :  { %v856_v23 = vadd.f32 %v855_v57, %v854_v18  ;;  %v659_v25 = vadd.f32 %v658_v21, %v657_v16  ;;  %v678_v16 = vsel %vm504_vm1, %v1603_v34, 0.0  ;;  %v877_v57 = vsel %vm504_vm1, %v759_v27, 0.0 }
 0x127   :  { %v761_v21 = vmul.f32 %v1668_v24, %v1668_v24  ;;  %v879_v34 = vsel %vm504_vm1, %v760_v46, 0.0  ;;  %v764_v24 = vmul.f32 %v1688_v42, %v1688_v42  ;;  %v885_v40 = vsel %vm504_vm1, %v763_v4, 0.0 }
 0x128   :  { %v661_v30 = vadd.f32 %v660_v0, %v659_v25  ;;  %v858_v31 = vadd.f32 %v857_v29, %v856_v23  ;;  %v762_v0 = vmul.f32 %v1629_v56, %v1629_v56 }
 0x12a   :  { %v860_v37 = vadd.f32 %v859_v32, %v858_v31  ;;  %v663_v38 = vadd.f32 %v662_v22, %v661_v30  ;;  %v684_v31 = vsel %vm504_vm1, %v1629_v56, 0.0  ;;  %v881_v32 = vsel %vm504_vm1, %v761_v21, 0.0 }
 0x12b   :  { %v688_v56 = vsel %vm504_vm1, %v1688_v42, 0.0  ;;  %v767_v42 = vmul.f32 %v1700_v54, %v1700_v54 }
 0x12c   :  { %v665_v41 = vadd.f32 %v664_v11, %v663_v38  ;;  %v862_v36 = vadd.f32 %v861_v39, %v860_v37  ;;  %v883_v37 = vsel %vm504_vm1, %v762_v0, 0.0  ;;  %v686_v38 = vsel %vm504_vm1, %v1655_v13, 0.0 }
 0x12d   :  { %v887_v13 = vsel %vm504_vm1, %v764_v24, 0.0 }
 0x12e   :  { %v864_v48 = vadd.f32 %v863_v26, %v862_v36  ;;  %v667_v15 = vadd.f32 %v666_v47, %v665_v41  ;;  %v765_v41 = vmul.f32 %v1712_v63, %v1712_v63  ;;  %v766_v26 = vmul.f32 %v1677_v33, %v1677_v33 }
 0x12f   :  { %v690_v47 = vsel %vm504_vm1, %v1712_v63, 0.0  ;;  %v893_v63 = vsel %vm504_vm1, %v767_v42, 0.0 }
 0x130   :  { %v669_v55 = vadd.f32 %v668_v49, %v667_v15  ;;  %v866_v59 = vadd.f32 %v865_v52, %v864_v48  ;;  %v692_v49 = vsel %vm504_vm1, %v1677_v33, 0.0  ;;  %v889_v53 = vsel %vm504_vm1, %v765_v41, 0.0 }
 0x132   :  { %v868_v60 = vadd.f32 %v867_v28, %v866_v59  ;;  %v671_v62 = vadd.f32 %v670_v58, %v669_v55  ;;  %v891_v59 = vsel %vm504_vm1, %v766_v26, 0.0  ;;  %v694_v28 = vsel %vm504_vm1, %v1700_v54, 0.0 }
 0x134   :  { %v673_v2 = vadd.f32 %v672_v44, %v671_v62  ;;  %v870_v5 = vadd.f32 %v869_v1, %v868_v60 }
 0x136   :  { %v872_v9 = vadd.f32 %v871_v61, %v870_v5  ;;  %v675_v3 = vadd.f32 %v674_v6, %v673_v2 }
 0x138   :  { %v677_v12 = vadd.f32 %v676_v10, %v675_v3  ;;  %v874_v43 = vadd.f32 %v873_v51, %v872_v9 }
 0x13a   :  { %v876_v18 = vadd.f32 %v875_v14, %v874_v43  ;;  %v679_v20 = vadd.f32 %v678_v16, %v677_v12 }
 0x13c   :  { %v681_v23 = vadd.f32 %v680_v17, %v679_v20  ;;  %v878_v25 = vadd.f32 %v877_v57, %v876_v18 }
 0x13e   :  { %v880_v29 = vadd.f32 %v879_v34, %v878_v25  ;;  %v683_v30 = vadd.f32 %v682_v19, %v681_v23 }
 0x140   :  { %v685_v22 = vadd.f32 %v684_v31, %v683_v30  ;;  %v882_v35 = vadd.f32 %v881_v32, %v880_v29 }
 0x142   :  { %v884_v39 = vadd.f32 %v883_v37, %v882_v35  ;;  %v687_v11 = vadd.f32 %v686_v38, %v685_v22 }
 0x144   :  { %v689_v36 = vadd.f32 %v688_v56, %v687_v11  ;;  %v886_v45 = vadd.f32 %v885_v40, %v884_v39 }
 0x146   :  { %v888_v48 = vadd.f32 %v887_v13, %v886_v45  ;;  %v691_v15 = vadd.f32 %v690_v47, %v689_v36 }
 0x148   :  { %v693_v52 = vadd.f32 %v692_v49, %v691_v15  ;;  %v890_v55 = vadd.f32 %v889_v53, %v888_v48 }
 0x14a   :  { %v695_v58 = vadd.f32 %v694_v28, %v693_v52  ;;  %v892_v7 = vadd.f32 %v891_v59, %v890_v55 }
 0x14c   :  { %v696_v60 = vrot.slane %v695_v58, 4  ;;  %v894_v62 = vadd.f32 %v893_v63, %v892_v7 }
 0x14e   :  { %v697_v1 = vadd.f32 %v696_v60, %v695_v58  ;;  %v895_v33 = vrot.slane %v894_v62, 4 }
 0x150   :  { %v698_v44 = vrot.slane %v697_v1, 2  ;;  %v896_v50 = vadd.f32 %v895_v33, %v894_v62 }
 0x152   :  { %v699_v2 = vadd.f32 %v698_v44, %v697_v1  ;;  %v897_v5 = vrot.slane %v896_v50, 2 }
 0x154   :  { %v700_v8 = vrot.slane %v699_v2, 1  ;;  %v898_v61 = vadd.f32 %v897_v5, %v896_v50 }
 0x156   :  { %v701_v6 = vadd.f32 %v700_v8, %v699_v2  ;;  %v899_v9 = vrot.slane %v898_v61, 1 }
 0x158   :  { %703 = vst.msk [vmem:[%s1877_s3] sm:$0x1] %vm702_vm2, %v701_v6  ;;  %v900_v54 = vadd.f32 %v899_v9, %v898_v61 }
 0x15a   :  { %901 = vst.msk [vmem:[%s1877_s3 + $0x1] sm:$0x1] %vm702_vm2, %v900_v54 }

// kernel: mbconv_forward.9
= control target key start
LH: loop header
LB: loop body
LE: loop exit
PB: predicated region body
PF: predicated region fallthrough
CT: control target
= control target key end

     0   :  { %vm351_vm0 = vcmask 130048   ;;  %s1225_s0 = inlined_call_operand.vmem [shape: f32[512,16], index: 0, kind: input, shape index: {}]   ;;  %s1226_s1 = inlined_call_operand.vmem [shape: f32[512,16], index: 1, kind: input, shape index: {}]   ;;  %s1227_s2 = inlined_call_operand.vmem [shape: f32[1,16], index: 2, kind: input, shape index: {}]   ;;  %s1228_s3 = inlined_call_operand.vmem [shape: f32[1,16], index: 3, kind: input, shape index: {}]   ;;  %s1229_s4 = inlined_call_operand.vmem [shape: f32[512,16], index: 4, kind: output, shape index: {}]  }
   0x1   :  { %v17_v0 = vld [vmem:[%s1225_s0] sm:$0xff]  ;;  %v18_v4 = vld [vmem:[%s1225_s0 + $0x8] sm:$0xff]  ;;  %v19_v7 = vld [vmem:[%s1225_s0 + $0x10] sm:$0xff] }
   0x2   :  { %v453_v1 = vld [vmem:[%s1227_s2] ss:$0 sm:$0xff]  ;;  %v20_v8 = vld [vmem:[%s1225_s0 + $0x18] sm:$0xff]  ;;  %v224_v10 = vld [vmem:[%s1226_s1 + $0x8] sm:$0xff] }
   0x3   :  { %v458_v2 = vld [vmem:[%s1228_s3] ss:$0 sm:$0xff]  ;;  %v88_v3 = vmul.f32 %v453_v1, %v17_v0  ;;  %v89_v6 = vmul.f32 %v453_v1, %v18_v4  ;;  %v90_v11 = vmul.f32 %v453_v1, %v19_v7  ;;  %v225_v12 = vld [vmem:[%s1226_s1 + $0x10] sm:$0xff]  ;;  %v91_v13 = vmul.f32 %v453_v1, %v20_v8  ;;  %v226_v16 = vld [vmem:[%s1226_s1 + $0x18] sm:$0xff] }
   0x4   :  { %v223_v5 = vld [vmem:[%s1226_s1] sm:$0xff]  ;;  %v22_v18 = vld [vmem:[%s1225_s0 + $0x28] sm:$0xff]  ;;  %v23_v19 = vld [vmem:[%s1225_s0 + $0x30] sm:$0xff] }
   0x5   :  { %v159_v9 = vadd.f32 %v458_v2, %v88_v3  ;;  %v21_v14 = vld [vmem:[%s1225_s0 + $0x20] sm:$0xff]  ;;  %v160_v15 = vadd.f32 %v458_v2, %v89_v6  ;;  %v161_v21 = vadd.f32 %v458_v2, %v90_v11  ;;  %v162_v22 = vadd.f32 %v458_v2, %v91_v13  ;;  %v24_v25 = vld [vmem:[%s1225_s0 + $0x38] sm:$0xff]  ;;  %v228_v28 = vld [vmem:[%s1226_s1 + $0x28] sm:$0xff] }
   0x6   :  { %v92_v17 = vmul.f32 %v453_v1, %v21_v14  ;;  %v227_v23 = vld [vmem:[%s1226_s1 + $0x20] sm:$0xff]  ;;  %v93_v24 = vmul.f32 %v453_v1, %v22_v18  ;;  %v94_v29 = vmul.f32 %v453_v1, %v23_v19  ;;  %v95_v30 = vmul.f32 %v453_v1, %v24_v25  ;;  %v26_v32 = vld [vmem:[%s1225_s0 + $0x48] sm:$0xff]  ;;  %v229_v36 = vld [vmem:[%s1226_s1 + $0x30] sm:$0xff] }
   0x7   :  { %v287_v20 = vadd.f32 %v223_v5, %v159_v9  ;;  %v288_v26 = vadd.f32 %v224_v10, %v160_v15  ;;  %v25_v31 = vld [vmem:[%s1225_s0 + $0x40] sm:$0xff]  ;;  %v289_v33 = vadd.f32 %v225_v12, %v161_v21  ;;  %v290_v34 = vadd.f32 %v226_v16, %v162_v22  ;;  %v230_v37 = vld [vmem:[%s1226_s1 + $0x38] sm:$0xff]  ;;  %v27_v39 = vld [vmem:[%s1225_s0 + $0x50] sm:$0xff] }
   0x8   :  { %v163_v27 = vadd.f32 %v458_v2, %v92_v17  ;;  %v164_v35 = vadd.f32 %v458_v2, %v93_v24  ;;  %v96_v38 = vmul.f32 %v453_v1, %v25_v31  ;;  %v165_v41 = vadd.f32 %v458_v2, %v94_v29  ;;  %v231_v43 = vld [vmem:[%s1226_s1 + $0x40] sm:$0xff]  ;;  %v28_v45 = vld [vmem:[%s1225_s0 + $0x58] sm:$0xff]  ;;  %v232_v49 = vld [vmem:[%s1226_s1 + $0x48] sm:$0xff] }
   0x9   :  { %352 = vst.msk [vmem:[%s1229_s4] sm:$0xff] %vm351_vm0, %v287_v20  ;;  %353 = vst.msk [vmem:[%s1229_s4 + $0x8] sm:$0xff] %vm351_vm0, %v288_v26  ;;  %v166_v42 = vadd.f32 %v458_v2, %v95_v30  ;;  %v97_v44 = vmul.f32 %v453_v1, %v26_v32  ;;  %v29_v46 = vld [vmem:[%s1225_s0 + $0x60] sm:$0xff]  ;;  %v98_v50 = vmul.f32 %v453_v1, %v27_v39  ;;  %v233_v51 = vld [vmem:[%s1226_s1 + $0x50] sm:$0xff] }
   0xa   :  { %v291_v40 = vadd.f32 %v227_v23, %v163_v27  ;;  %354 = vst.msk [vmem:[%s1229_s4 + $0x10] sm:$0xff] %vm351_vm0, %v289_v33  ;;  %355 = vst.msk [vmem:[%s1229_s4 + $0x18] sm:$0xff] %vm351_vm0, %v290_v34  ;;  %v292_v47 = vadd.f32 %v228_v28, %v164_v35  ;;  %v167_v48 = vadd.f32 %v458_v2, %v96_v38  ;;  %v30_v53 = vld [vmem:[%s1225_s0 + $0x68] sm:$0xff]  ;;  %v234_v57 = vld [vmem:[%s1226_s1 + $0x58] sm:$0xff] }
   0xb   :  { %v99_v52 = vmul.f32 %v453_v1, %v28_v45  ;;  %v293_v54 = vadd.f32 %v229_v36, %v165_v41  ;;  %v294_v55 = vadd.f32 %v230_v37, %v166_v42  ;;  %v168_v56 = vadd.f32 %v458_v2, %v97_v44  ;;  %v31_v59 = vld [vmem:[%s1225_s0 + $0x70] sm:$0xff]  ;;  %v32_v60 = vld [vmem:[%s1225_s0 + $0x78] sm:$0xff]  ;;  %v235_v0 = vld [vmem:[%s1226_s1 + $0x60] sm:$0xff] }
   0xc   :  { %356 = vst.msk [vmem:[%s1229_s4 + $0x20] sm:$0xff] %vm351_vm0, %v291_v40  ;;  %v100_v58 = vmul.f32 %v453_v1, %v29_v46  ;;  %357 = vst.msk [vmem:[%s1229_s4 + $0x28] sm:$0xff] %vm351_vm0, %v292_v47  ;;  %v295_v61 = vadd.f32 %v231_v43, %v167_v48  ;;  %v169_v62 = vadd.f32 %v458_v2, %v98_v50  ;;  %v33_v4 = vld [vmem:[%s1225_s0 + $0x80] sm:$0xff]  ;;  %v236_v7 = vld [vmem:[%s1226_s1 + $0x68] sm:$0xff] }
   0xd   :  { %v170_v63 = vadd.f32 %v458_v2, %v99_v52  ;;  %v101_v3 = vmul.f32 %v453_v1, %v30_v53  ;;  %358 = vst.msk [vmem:[%s1229_s4 + $0x30] sm:$0xff] %vm351_vm0, %v293_v54  ;;  %359 = vst.msk [vmem:[%s1229_s4 + $0x38] sm:$0xff] %vm351_vm0, %v294_v55  ;;  %v296_v5 = vadd.f32 %v232_v49, %v168_v56  ;;  %v34_v10 = vld [vmem:[%s1225_s0 + $0x88] sm:$0xff]  ;;  %v35_v11 = vld [vmem:[%s1225_s0 + $0x90] sm:$0xff] }
   0xe   :  { %v171_v6 = vadd.f32 %v458_v2, %v100_v58  ;;  %v102_v8 = vmul.f32 %v453_v1, %v31_v59  ;;  %v103_v9 = vmul.f32 %v453_v1, %v32_v60  ;;  %360 = vst.msk [vmem:[%s1229_s4 + $0x40] sm:$0xff] %vm351_vm0, %v295_v61  ;;  %v297_v12 = vadd.f32 %v233_v51, %v169_v62  ;;  %v237_v15 = vld [vmem:[%s1226_s1 + $0x70] sm:$0xff]  ;;  %v238_v16 = vld [vmem:[%s1226_s1 + $0x78] sm:$0xff]  ;;  %v239_v22 = vld [vmem:[%s1226_s1 + $0x80] sm:$0xff] }
   0xf   :  { %v298_v13 = vadd.f32 %v234_v57, %v170_v63  ;;  %v172_v14 = vadd.f32 %v458_v2, %v101_v3  ;;  %v104_v17 = vmul.f32 %v453_v1, %v33_v4  ;;  %v36_v18 = vld [vmem:[%s1225_s0 + $0x98] sm:$0xff]  ;;  %361 = vst.msk [vmem:[%s1229_s4 + $0x48] sm:$0xff] %vm351_vm0, %v296_v5  ;;  %v105_v23 = vmul.f32 %v453_v1, %v34_v10  ;;  %v37_v24 = vld [vmem:[%s1225_s0 + $0xa0] sm:$0xff]  ;;  %v38_v25 = vld [vmem:[%s1225_s0 + $0xa8] sm:$0xff] }
  0x10   :  { %v299_v19 = vadd.f32 %v235_v0, %v171_v6  ;;  %v173_v20 = vadd.f32 %v458_v2, %v102_v8  ;;  %v174_v21 = vadd.f32 %v458_v2, %v103_v9  ;;  %362 = vst.msk [vmem:[%s1229_s4 + $0x50] sm:$0xff] %vm351_vm0, %v297_v12  ;;  %v240_v28 = vld [vmem:[%s1226_s1 + $0x88] sm:$0xff]  ;;  %v106_v29 = vmul.f32 %v453_v1, %v35_v11  ;;  %v241_v30 = vld [vmem:[%s1226_s1 + $0x90] sm:$0xff]  ;;  %v242_v36 = vld [vmem:[%s1226_s1 + $0x98] sm:$0xff] }
  0x11   :  { %363 = vst.msk [vmem:[%s1229_s4 + $0x58] sm:$0xff] %vm351_vm0, %v298_v13  ;;  %v300_v26 = vadd.f32 %v236_v7, %v172_v14  ;;  %v175_v27 = vadd.f32 %v458_v2, %v104_v17  ;;  %v107_v31 = vmul.f32 %v453_v1, %v36_v18  ;;  %v39_v32 = vld [vmem:[%s1225_s0 + $0xb0] sm:$0xff]  ;;  %v176_v35 = vadd.f32 %v458_v2, %v105_v23  ;;  %v40_v38 = vld [vmem:[%s1225_s0 + $0xb8] sm:$0xff]  ;;  %v41_v39 = vld [vmem:[%s1225_s0 + $0xc0] sm:$0xff] }
  0x12   :  { %364 = vst.msk [vmem:[%s1229_s4 + $0x60] sm:$0xff] %vm351_vm0, %v299_v19  ;;  %v301_v33 = vadd.f32 %v237_v15, %v173_v20  ;;  %v302_v34 = vadd.f32 %v238_v16, %v174_v21  ;;  %v108_v37 = vmul.f32 %v453_v1, %v37_v24  ;;  %v177_v41 = vadd.f32 %v458_v2, %v106_v29  ;;  %v243_v43 = vld [vmem:[%s1226_s1 + $0xa0] sm:$0xff]  ;;  %v42_v45 = vld [vmem:[%s1225_s0 + $0xc8] sm:$0xff]  ;;  %v43_v51 = vld [vmem:[%s1225_s0 + $0xd0] sm:$0xff] }
  0x13   :  { %365 = vst.msk [vmem:[%s1229_s4 + $0x68] sm:$0xff] %vm351_vm0, %v300_v26  ;;  %v303_v40 = vadd.f32 %v239_v22, %v175_v27  ;;  %v178_v42 = vadd.f32 %v458_v2, %v107_v31  ;;  %v109_v44 = vmul.f32 %v453_v1, %v38_v25  ;;  %v304_v46 = vadd.f32 %v240_v28, %v176_v35  ;;  %v244_v48 = vld [vmem:[%s1226_s1 + $0xa8] sm:$0xff]  ;;  %v44_v52 = vld [vmem:[%s1225_s0 + $0xd8] sm:$0xff]  ;;  %v245_v56 = vld [vmem:[%s1226_s1 + $0xb0] sm:$0xff] }
  0x14   :  { %366 = vst.msk [vmem:[%s1229_s4 + $0x70] sm:$0xff] %vm351_vm0, %v301_v33  ;;  %367 = vst.msk [vmem:[%s1229_s4 + $0x78] sm:$0xff] %vm351_vm0, %v302_v34  ;;  %v179_v47 = vadd.f32 %v458_v2, %v108_v37  ;;  %v110_v49 = vmul.f32 %v453_v1, %v39_v32  ;;  %v111_v50 = vmul.f32 %v453_v1, %v40_v38  ;;  %v246_v57 = vld [vmem:[%s1226_s1 + $0xb8] sm:$0xff]  ;;  %v45_v59 = vld [vmem:[%s1225_s0 + $0xe0] sm:$0xff] }
  0x15   :  { %368 = vst.msk [vmem:[%s1229_s4 + $0x80] sm:$0xff] %vm351_vm0, %v303_v40  ;;  %v305_v53 = vadd.f32 %v241_v30, %v177_v41  ;;  %v306_v54 = vadd.f32 %v242_v36, %v178_v42  ;;  %v180_v55 = vadd.f32 %v458_v2, %v109_v44  ;;  %v112_v58 = vmul.f32 %v453_v1, %v41_v39  ;;  %v247_v63 = vld [vmem:[%s1226_s1 + $0xc0] sm:$0xff]  ;;  %v46_v3 = vld [vmem:[%s1225_s0 + $0xe8] sm:$0xff]  ;;  %v47_v9 = vld [vmem:[%s1225_s0 + $0xf0] sm:$0xff] }
  0x16   :  { %369 = vst.msk [vmem:[%s1229_s4 + $0x88] sm:$0xff] %vm351_vm0, %v304_v46  ;;  %v307_v60 = vadd.f32 %v243_v43, %v179_v47  ;;  %v181_v61 = vadd.f32 %v458_v2, %v110_v49  ;;  %v182_v62 = vadd.f32 %v458_v2, %v111_v50  ;;  %v113_v0 = vmul.f32 %v453_v1, %v42_v45  ;;  %v248_v6 = vld [vmem:[%s1226_s1 + $0xc8] sm:$0xff]  ;;  %v48_v10 = vld [vmem:[%s1225_s0 + $0xf8] sm:$0xff]  ;;  %v249_v14 = vld [vmem:[%s1226_s1 + $0xd0] sm:$0xff] }
  0x17   :  { %370 = vst.msk [vmem:[%s1229_s4 + $0x90] sm:$0xff] %vm351_vm0, %v305_v53  ;;  %371 = vst.msk [vmem:[%s1229_s4 + $0x98] sm:$0xff] %vm351_vm0, %v306_v54  ;;  %v308_v4 = vadd.f32 %v244_v48, %v180_v55  ;;  %v183_v5 = vadd.f32 %v458_v2, %v112_v58  ;;  %v114_v7 = vmul.f32 %v453_v1, %v43_v51  ;;  %v250_v15 = vld [vmem:[%s1226_s1 + $0xd8] sm:$0xff]  ;;  %v49_v17 = vld [vmem:[%s1225_s0 + $0x100] sm:$0xff] }
  0x18   :  { %v115_v8 = vmul.f32 %v453_v1, %v44_v52  ;;  %372 = vst.msk [vmem:[%s1229_s4 + $0xa0] sm:$0xff] %vm351_vm0, %v307_v60  ;;  %v309_v11 = vadd.f32 %v245_v56, %v181_v61  ;;  %v310_v12 = vadd.f32 %v246_v57, %v182_v62  ;;  %v184_v13 = vadd.f32 %v458_v2, %v113_v0  ;;  %v251_v21 = vld [vmem:[%s1226_s1 + $0xe0] sm:$0xff]  ;;  %v50_v23 = vld [vmem:[%s1225_s0 + $0x108] sm:$0xff]  ;;  %v51_v29 = vld [vmem:[%s1225_s0 + $0x110] sm:$0xff] }
  0x19   :  { %v116_v16 = vmul.f32 %v453_v1, %v45_v59  ;;  %373 = vst.msk [vmem:[%s1229_s4 + $0xa8] sm:$0xff] %vm351_vm0, %v308_v4  ;;  %v311_v18 = vadd.f32 %v247_v63, %v183_v5  ;;  %v185_v19 = vadd.f32 %v458_v2, %v114_v7  ;;  %v117_v22 = vmul.f32 %v453_v1, %v46_v3  ;;  %v252_v26 = vld [vmem:[%s1226_s1 + $0xe8] sm:$0xff]  ;;  %v52_v30 = vld [vmem:[%s1225_s0 + $0x118] sm:$0xff]  ;;  %v253_v34 = vld [vmem:[%s1226_s1 + $0xf0] sm:$0xff] }
  0x1a   :  { %v186_v20 = vadd.f32 %v458_v2, %v115_v8  ;;  %374 = vst.msk [vmem:[%s1229_s4 + $0xb0] sm:$0xff] %vm351_vm0, %v309_v11  ;;  %375 = vst.msk [vmem:[%s1229_s4 + $0xb8] sm:$0xff] %vm351_vm0, %v310_v12  ;;  %v312_v24 = vadd.f32 %v248_v6, %v184_v13  ;;  %v118_v27 = vmul.f32 %v453_v1, %v47_v9  ;;  %v254_v35 = vld [vmem:[%s1226_s1 + $0xf8] sm:$0xff]  ;;  %v53_v37 = vld [vmem:[%s1225_s0 + $0x120] sm:$0xff] }
  0x1b   :  { %v187_v25 = vadd.f32 %v458_v2, %v116_v16  ;;  %v119_v28 = vmul.f32 %v453_v1, %v48_v10  ;;  %376 = vst.msk [vmem:[%s1229_s4 + $0xc0] sm:$0xff] %vm351_vm0, %v311_v18  ;;  %v313_v31 = vadd.f32 %v249_v14, %v185_v19  ;;  %v188_v33 = vadd.f32 %v458_v2, %v117_v22  ;;  %v255_v41 = vld [vmem:[%s1226_s1 + $0x100] sm:$0xff]  ;;  %v54_v43 = vld [vmem:[%s1225_s0 + $0x128] sm:$0xff]  ;;  %v55_v49 = vld [vmem:[%s1225_s0 + $0x130] sm:$0xff] }
  0x1c   :  { %v314_v32 = vadd.f32 %v250_v15, %v186_v20  ;;  %v120_v36 = vmul.f32 %v453_v1, %v49_v17  ;;  %377 = vst.msk [vmem:[%s1229_s4 + $0xc8] sm:$0xff] %vm351_vm0, %v312_v24  ;;  %v189_v39 = vadd.f32 %v458_v2, %v118_v27  ;;  %v121_v42 = vmul.f32 %v453_v1, %v50_v23  ;;  %v256_v46 = vld [vmem:[%s1226_s1 + $0x108] sm:$0xff]  ;;  %v56_v50 = vld [vmem:[%s1225_s0 + $0x138] sm:$0xff]  ;;  %v257_v54 = vld [vmem:[%s1226_s1 + $0x110] sm:$0xff] }
  0x1d   :  { %v315_v38 = vadd.f32 %v251_v21, %v187_v25  ;;  %v190_v40 = vadd.f32 %v458_v2, %v119_v28  ;;  %378 = vst.msk [vmem:[%s1229_s4 + $0xd0] sm:$0xff] %vm351_vm0, %v313_v31  ;;  %v316_v44 = vadd.f32 %v252_v26, %v188_v33  ;;  %v122_v47 = vmul.f32 %v453_v1, %v51_v29  ;;  %v258_v55 = vld [vmem:[%s1226_s1 + $0x118] sm:$0xff]  ;;  %v57_v57 = vld [vmem:[%s1225_s0 + $0x140] sm:$0xff]  ;;  %v58_v63 = vld [vmem:[%s1225_s0 + $0x148] sm:$0xff] }
  0x1e   :  { %379 = vst.msk [vmem:[%s1229_s4 + $0xd8] sm:$0xff] %vm351_vm0, %v314_v32  ;;  %v191_v45 = vadd.f32 %v458_v2, %v120_v36  ;;  %v123_v48 = vmul.f32 %v453_v1, %v52_v30  ;;  %v317_v51 = vadd.f32 %v253_v34, %v189_v39  ;;  %v192_v53 = vadd.f32 %v458_v2, %v121_v42  ;;  %v259_v61 = vld [vmem:[%s1226_s1 + $0x120] sm:$0xff]  ;;  %v260_v4 = vld [vmem:[%s1226_s1 + $0x128] sm:$0xff]  ;;  %v59_v7 = vld [vmem:[%s1225_s0 + $0x150] sm:$0xff] }
  0x1f   :  { %380 = vst.msk [vmem:[%s1229_s4 + $0xe0] sm:$0xff] %vm351_vm0, %v315_v38  ;;  %v318_v52 = vadd.f32 %v254_v35, %v190_v40  ;;  %v124_v56 = vmul.f32 %v453_v1, %v53_v37  ;;  %381 = vst.msk [vmem:[%s1229_s4 + $0xe8] sm:$0xff] %vm351_vm0, %v316_v44  ;;  %v193_v59 = vadd.f32 %v458_v2, %v122_v47  ;;  %v60_v8 = vld [vmem:[%s1225_s0 + $0x158] sm:$0xff]  ;;  %v261_v12 = vld [vmem:[%s1226_s1 + $0x130] sm:$0xff] }
  0x20   :  { %v319_v58 = vadd.f32 %v255_v41, %v191_v45  ;;  %v194_v60 = vadd.f32 %v458_v2, %v123_v48  ;;  %v125_v62 = vmul.f32 %v453_v1, %v54_v43  ;;  %382 = vst.msk [vmem:[%s1229_s4 + $0xf0] sm:$0xff] %vm351_vm0, %v317_v51  ;;  %v320_v0 = vadd.f32 %v256_v46, %v192_v53  ;;  %v262_v13 = vld [vmem:[%s1226_s1 + $0x138] sm:$0xff]  ;;  %v61_v15 = vld [vmem:[%s1225_s0 + $0x160] sm:$0xff]  ;;  %v62_v21 = vld [vmem:[%s1225_s0 + $0x168] sm:$0xff] }
  0x21   :  { %383 = vst.msk [vmem:[%s1229_s4 + $0xf8] sm:$0xff] %vm351_vm0, %v318_v52  ;;  %v195_v3 = vadd.f32 %v458_v2, %v124_v56  ;;  %v126_v5 = vmul.f32 %v453_v1, %v55_v49  ;;  %v127_v6 = vmul.f32 %v453_v1, %v56_v50  ;;  %v321_v9 = vadd.f32 %v257_v54, %v193_v59  ;;  %v263_v19 = vld [vmem:[%s1226_s1 + $0x140] sm:$0xff]  ;;  %v264_v24 = vld [vmem:[%s1226_s1 + $0x148] sm:$0xff]  ;;  %v63_v27 = vld [vmem:[%s1225_s0 + $0x170] sm:$0xff] }
  0x22   :  { %384 = vst.msk [vmem:[%s1229_s4 + $0x100] sm:$0xff] %vm351_vm0, %v319_v58  ;;  %v322_v10 = vadd.f32 %v258_v55, %v194_v60  ;;  %v196_v11 = vadd.f32 %v458_v2, %v125_v62  ;;  %v128_v14 = vmul.f32 %v453_v1, %v57_v57  ;;  %385 = vst.msk [vmem:[%s1229_s4 + $0x108] sm:$0xff] %vm351_vm0, %v320_v0  ;;  %v64_v28 = vld [vmem:[%s1225_s0 + $0x178] sm:$0xff]  ;;  %v265_v32 = vld [vmem:[%s1226_s1 + $0x150] sm:$0xff] }
  0x23   :  { %v323_v16 = vadd.f32 %v259_v61, %v195_v3  ;;  %v197_v17 = vadd.f32 %v458_v2, %v126_v5  ;;  %v198_v18 = vadd.f32 %v458_v2, %v127_v6  ;;  %v129_v20 = vmul.f32 %v453_v1, %v58_v63  ;;  %386 = vst.msk [vmem:[%s1229_s4 + $0x110] sm:$0xff] %vm351_vm0, %v321_v9  ;;  %v266_v33 = vld [vmem:[%s1226_s1 + $0x158] sm:$0xff]  ;;  %v65_v35 = vld [vmem:[%s1225_s0 + $0x180] sm:$0xff]  ;;  %v66_v41 = vld [vmem:[%s1225_s0 + $0x188] sm:$0xff] }
  0x24   :  { %387 = vst.msk [vmem:[%s1229_s4 + $0x118] sm:$0xff] %vm351_vm0, %v322_v10  ;;  %v324_v22 = vadd.f32 %v260_v4, %v196_v11  ;;  %v199_v23 = vadd.f32 %v458_v2, %v128_v14  ;;  %v130_v25 = vmul.f32 %v453_v1, %v59_v7  ;;  %v131_v26 = vmul.f32 %v453_v1, %v60_v8  ;;  %v267_v39 = vld [vmem:[%s1226_s1 + $0x160] sm:$0xff]  ;;  %v268_v44 = vld [vmem:[%s1226_s1 + $0x168] sm:$0xff]  ;;  %v67_v47 = vld [vmem:[%s1225_s0 + $0x190] sm:$0xff] }
  0x25   :  { %388 = vst.msk [vmem:[%s1229_s4 + $0x120] sm:$0xff] %vm351_vm0, %v323_v16  ;;  %v325_v29 = vadd.f32 %v261_v12, %v197_v17  ;;  %v326_v30 = vadd.f32 %v262_v13, %v198_v18  ;;  %v200_v31 = vadd.f32 %v458_v2, %v129_v20  ;;  %v132_v34 = vmul.f32 %v453_v1, %v61_v15  ;;  %v68_v48 = vld [vmem:[%s1225_s0 + $0x198] sm:$0xff]  ;;  %v269_v52 = vld [vmem:[%s1226_s1 + $0x170] sm:$0xff]  ;;  %v69_v55 = vld [vmem:[%s1225_s0 + $0x1a0] sm:$0xff] }
  0x26   :  { %389 = vst.msk [vmem:[%s1229_s4 + $0x128] sm:$0xff] %vm351_vm0, %v324_v22  ;;  %v327_v36 = vadd.f32 %v263_v19, %v199_v23  ;;  %v201_v37 = vadd.f32 %v458_v2, %v130_v25  ;;  %v202_v38 = vadd.f32 %v458_v2, %v131_v26  ;;  %v133_v40 = vmul.f32 %v453_v1, %v62_v21  ;;  %v270_v53 = vld [vmem:[%s1226_s1 + $0x178] sm:$0xff]  ;;  %v271_v59 = vld [vmem:[%s1226_s1 + $0x180] sm:$0xff]  ;;  %v70_v61 = vld [vmem:[%s1225_s0 + $0x1a8] sm:$0xff] }
  0x27   :  { %390 = vst.msk [vmem:[%s1229_s4 + $0x130] sm:$0xff] %vm351_vm0, %v325_v29  ;;  %391 = vst.msk [vmem:[%s1229_s4 + $0x138] sm:$0xff] %vm351_vm0, %v326_v30  ;;  %v328_v42 = vadd.f32 %v264_v24, %v200_v31  ;;  %v203_v43 = vadd.f32 %v458_v2, %v132_v34  ;;  %v134_v45 = vmul.f32 %v453_v1, %v63_v27  ;;  %v272_v0 = vld [vmem:[%s1226_s1 + $0x188] sm:$0xff]  ;;  %v71_v5 = vld [vmem:[%s1225_s0 + $0x1b0] sm:$0xff] }
  0x28   :  { %v135_v46 = vmul.f32 %v453_v1, %v64_v28  ;;  %392 = vst.msk [vmem:[%s1229_s4 + $0x140] sm:$0xff] %vm351_vm0, %v327_v36  ;;  %v329_v49 = vadd.f32 %v265_v32, %v201_v37  ;;  %v330_v50 = vadd.f32 %v266_v33, %v202_v38  ;;  %v204_v51 = vadd.f32 %v458_v2, %v133_v40  ;;  %v72_v6 = vld [vmem:[%s1225_s0 + $0x1b8] sm:$0xff]  ;;  %v273_v10 = vld [vmem:[%s1226_s1 + $0x190] sm:$0xff]  ;;  %v73_v13 = vld [vmem:[%s1225_s0 + $0x1c0] sm:$0xff] }
  0x29   :  { %v136_v54 = vmul.f32 %v453_v1, %v65_v35  ;;  %393 = vst.msk [vmem:[%s1229_s4 + $0x148] sm:$0xff] %vm351_vm0, %v328_v42  ;;  %v331_v56 = vadd.f32 %v267_v39, %v203_v43  ;;  %v205_v57 = vadd.f32 %v458_v2, %v134_v45  ;;  %v137_v60 = vmul.f32 %v453_v1, %v66_v41  ;;  %v274_v11 = vld [vmem:[%s1226_s1 + $0x198] sm:$0xff]  ;;  %v275_v17 = vld [vmem:[%s1226_s1 + $0x1a0] sm:$0xff]  ;;  %v74_v19 = vld [vmem:[%s1225_s0 + $0x1c8] sm:$0xff] }
  0x2a   :  { %v206_v58 = vadd.f32 %v458_v2, %v135_v46  ;;  %394 = vst.msk [vmem:[%s1229_s4 + $0x150] sm:$0xff] %vm351_vm0, %v329_v49  ;;  %395 = vst.msk [vmem:[%s1229_s4 + $0x158] sm:$0xff] %vm351_vm0, %v330_v50  ;;  %v332_v62 = vadd.f32 %v268_v44, %v204_v51  ;;  %v138_v3 = vmul.f32 %v453_v1, %v67_v47  ;;  %v276_v22 = vld [vmem:[%s1226_s1 + $0x1a8] sm:$0xff]  ;;  %v75_v25 = vld [vmem:[%s1225_s0 + $0x1d0] sm:$0xff] }
  0x2b   :  { %v207_v63 = vadd.f32 %v458_v2, %v136_v54  ;;  %v139_v4 = vmul.f32 %v453_v1, %v68_v48  ;;  %396 = vst.msk [vmem:[%s1229_s4 + $0x160] sm:$0xff] %vm351_vm0, %v331_v56  ;;  %v333_v7 = vadd.f32 %v269_v52, %v205_v57  ;;  %v208_v9 = vadd.f32 %v458_v2, %v137_v60  ;;  %v76_v26 = vld [vmem:[%s1225_s0 + $0x1d8] sm:$0xff]  ;;  %v277_v30 = vld [vmem:[%s1226_s1 + $0x1b0] sm:$0xff]  ;;  %v77_v33 = vld [vmem:[%s1225_s0 + $0x1e0] sm:$0xff] }
  0x2c   :  { %v334_v8 = vadd.f32 %v270_v53, %v206_v58  ;;  %v140_v12 = vmul.f32 %v453_v1, %v69_v55  ;;  %397 = vst.msk [vmem:[%s1229_s4 + $0x168] sm:$0xff] %vm351_vm0, %v332_v62  ;;  %v209_v15 = vadd.f32 %v458_v2, %v138_v3  ;;  %v141_v18 = vmul.f32 %v453_v1, %v70_v61  ;;  %v278_v31 = vld [vmem:[%s1226_s1 + $0x1b8] sm:$0xff]  ;;  %v279_v37 = vld [vmem:[%s1226_s1 + $0x1c0] sm:$0xff]  ;;  %v78_v39 = vld [vmem:[%s1225_s0 + $0x1e8] sm:$0xff] }
  0x2d   :  { %v335_v14 = vadd.f32 %v271_v59, %v207_v63  ;;  %v210_v16 = vadd.f32 %v458_v2, %v139_v4  ;;  %398 = vst.msk [vmem:[%s1229_s4 + $0x170] sm:$0xff] %vm351_vm0, %v333_v7  ;;  %v336_v20 = vadd.f32 %v272_v0, %v208_v9  ;;  %v142_v23 = vmul.f32 %v453_v1, %v71_v5  ;;  %v280_v42 = vld [vmem:[%s1226_s1 + $0x1c8] sm:$0xff]  ;;  %v79_v45 = vld [vmem:[%s1225_s0 + $0x1f0] sm:$0xff]  ;;  %v80_v46 = vld [vmem:[%s1225_s0 + $0x1f8] sm:$0xff] }
  0x2e   :  { %399 = vst.msk [vmem:[%s1229_s4 + $0x178] sm:$0xff] %vm351_vm0, %v334_v8  ;;  %v211_v21 = vadd.f32 %v458_v2, %v140_v12  ;;  %v143_v24 = vmul.f32 %v453_v1, %v72_v6  ;;  %v337_v27 = vadd.f32 %v273_v10, %v209_v15  ;;  %v212_v29 = vadd.f32 %v458_v2, %v141_v18  ;;  %v281_v50 = vld [vmem:[%s1226_s1 + $0x1d0] sm:$0xff]  ;;  %v282_v51 = vld [vmem:[%s1226_s1 + $0x1d8] sm:$0xff]  ;;  %v283_v56 = vld [vmem:[%s1226_s1 + $0x1e0] sm:$0xff] }
  0x2f   :  { %400 = vst.msk [vmem:[%s1229_s4 + $0x180] sm:$0xff] %vm351_vm0, %v335_v14  ;;  %v338_v28 = vadd.f32 %v274_v11, %v210_v16  ;;  %v144_v32 = vmul.f32 %v453_v1, %v73_v13  ;;  %401 = vst.msk [vmem:[%s1229_s4 + $0x188] sm:$0xff] %vm351_vm0, %v336_v20  ;;  %v213_v35 = vadd.f32 %v458_v2, %v142_v23  ;;  %v284_v60 = vld [vmem:[%s1226_s1 + $0x1e8] sm:$0xff]  ;;  %v285_v4 = vld [vmem:[%s1226_s1 + $0x1f0] sm:$0xff] }
  0x30   :  { %v339_v34 = vadd.f32 %v275_v17, %v211_v21  ;;  %v214_v36 = vadd.f32 %v458_v2, %v143_v24  ;;  %v145_v38 = vmul.f32 %v453_v1, %v74_v19  ;;  %402 = vst.msk [vmem:[%s1229_s4 + $0x190] sm:$0xff] %vm351_vm0, %v337_v27  ;;  %v340_v40 = vadd.f32 %v276_v22, %v212_v29  ;;  %v286_v5 = vld [vmem:[%s1226_s1 + $0x1f8] sm:$0xff] }
  0x31   :  { %403 = vst.msk [vmem:[%s1229_s4 + $0x198] sm:$0xff] %vm351_vm0, %v338_v28  ;;  %v215_v41 = vadd.f32 %v458_v2, %v144_v32  ;;  %v146_v43 = vmul.f32 %v453_v1, %v75_v25  ;;  %v147_v44 = vmul.f32 %v453_v1, %v76_v26  ;;  %v341_v47 = vadd.f32 %v277_v30, %v213_v35 }
  0x32   :  { %404 = vst.msk [vmem:[%s1229_s4 + $0x1a0] sm:$0xff] %vm351_vm0, %v339_v34  ;;  %v342_v48 = vadd.f32 %v278_v31, %v214_v36  ;;  %v216_v49 = vadd.f32 %v458_v2, %v145_v38  ;;  %v148_v52 = vmul.f32 %v453_v1, %v77_v33  ;;  %405 = vst.msk [vmem:[%s1229_s4 + $0x1a8] sm:$0xff] %vm351_vm0, %v340_v40 }
  0x33   :  { %v343_v53 = vadd.f32 %v279_v37, %v215_v41  ;;  %v217_v54 = vadd.f32 %v458_v2, %v146_v43  ;;  %v218_v55 = vadd.f32 %v458_v2, %v147_v44  ;;  %v149_v57 = vmul.f32 %v453_v1, %v78_v39  ;;  %406 = vst.msk [vmem:[%s1229_s4 + $0x1b0] sm:$0xff] %vm351_vm0, %v341_v47 }
  0x34   :  { %407 = vst.msk [vmem:[%s1229_s4 + $0x1b8] sm:$0xff] %vm351_vm0, %v342_v48  ;;  %v344_v58 = vadd.f32 %v280_v42, %v216_v49  ;;  %v219_v59 = vadd.f32 %v458_v2, %v148_v52  ;;  %v150_v61 = vmul.f32 %v453_v1, %v79_v45  ;;  %v151_v62 = vmul.f32 %v453_v1, %v80_v46 }
  0x35   :  { %408 = vst.msk [vmem:[%s1229_s4 + $0x1c0] sm:$0xff] %vm351_vm0, %v343_v53  ;;  %v345_v63 = vadd.f32 %v281_v50, %v217_v54  ;;  %v346_v0 = vadd.f32 %v282_v51, %v218_v55  ;;  %v220_v3 = vadd.f32 %v458_v2, %v149_v57 }
  0x36   :  { %409 = vst.msk [vmem:[%s1229_s4 + $0x1c8] sm:$0xff] %vm351_vm0, %v344_v58  ;;  %v347_v1 = vadd.f32 %v283_v56, %v219_v59  ;;  %v221_v6 = vadd.f32 %v458_v2, %v150_v61  ;;  %v222_v7 = vadd.f32 %v458_v2, %v151_v62 }
  0x37   :  { %410 = vst.msk [vmem:[%s1229_s4 + $0x1d0] sm:$0xff] %vm351_vm0, %v345_v63  ;;  %411 = vst.msk [vmem:[%s1229_s4 + $0x1d8] sm:$0xff] %vm351_vm0, %v346_v0  ;;  %v348_v8 = vadd.f32 %v284_v60, %v220_v3 }
  0x38   :  { %412 = vst.msk [vmem:[%s1229_s4 + $0x1e0] sm:$0xff] %vm351_vm0, %v347_v1  ;;  %v349_v9 = vadd.f32 %v285_v4, %v221_v6  ;;  %v350_v10 = vadd.f32 %v286_v5, %v222_v7 }
  0x39   :  { %413 = vst.msk [vmem:[%s1229_s4 + $0x1e8] sm:$0xff] %vm351_vm0, %v348_v8 }
  0x3a   :  { %414 = vst.msk [vmem:[%s1229_s4 + $0x1f0] sm:$0xff] %vm351_vm0, %v349_v9  ;;  %415 = vst.msk [vmem:[%s1229_s4 + $0x1f8] sm:$0xff] %vm351_vm0, %v350_v10 }

// kernel: mbconv_forward.8
= control target key start
LH: loop header
LB: loop body
LE: loop exit
PB: predicated region body
PF: predicated region fallthrough
CT: control target
= control target key end

     0   :  { %s1621_s21 = smov 0   ;;  %s1623_s22 = smov 0   ;;  %s2106_s0 = inlined_call_operand.vmem [shape: f32[2,256,32], index: 0, kind: input, shape index: {}]   ;;  %s2107_s1 = inlined_call_operand.vmem [shape: f32[1,32], index: 1, kind: input, shape index: {}]   ;;  %s2108_s2 = inlined_call_operand.vmem [shape: f32[1,32], index: 2, kind: input, shape index: {}]   ;;  %s2109_s3 = inlined_call_operand.vmem [shape: f32[2,1,32], index: 3, kind: input, shape index: {}]   ;;  %s2110_s4 = inlined_call_operand.vmem [shape: bf16[32,16], index: 4, kind: input, shape index: {}]   ;;  %s2111_s5 = inlined_call_operand.vmem [shape: f32[2,256,16], index: 5, kind: output, shape index: {0}]   ;;  %s2112_s6 = inlined_call_operand.vmem [shape: f32[2,1,2,16], index: 6, kind: output, shape index: {1}]  }
   0x1   :  { %s1625_s23 = smov 0  }
   0x2 LB: > { %s29_s24 = sadd.s32 1, %s1580_s22  ;;  %p1287_p0 = scmp.ge.s32.totalorder %s1584_s23, 1  ;;  %s1584_s23 = sphi %s1625_s23, %s17_s23   ;;  %s1580_s22 = sphi %s1623_s22, %s2114_s22   ;;  %s1576_s21 = sphi %s1621_s21, %s2113_s21  }
   0x3   : > { %p31_p1 = scmp.ge.s32.totalorder %s29_s24, 2  ;;  %p246_p2 = scmp.lt.s32.totalorder %s1584_s23, 3 }
   0x5   : > { %s2116_s24 = smov (%p31_p1, %s29_s24), 0  ;;  %p247_p3 = pnand %p1287_p0, %p246_p2 }
   0x6   : > { %p295_p4 = scmp.lt.s32.totalorder (!%p247_p3), %s1576_s21, 1 }
   0x7   : > { %250 = sbr.rel (%p247_p3) target bundleno = 338 (0x152), region = 40 }
   0xc   : > { %v1432_v0 = vld [vmem:[%s2110_s4 + $0x8] sm:$0xff]   ;;  %v1433_v1 = vld [vmem:[%s2110_s4] sm:$0xff]   ;;  %s2118_s21 = smov (!%p295_p4, %s1576_s21), 1  ;;  %vm730_vm0 = vcmask 261120   ;;  %vm940_vm1 = vcmask 130048   ;;  %vm1042_vm2 = vcmask 122880  }
   0xd   : > { %1368 = vmatprep.subr.bf16.mxu0 %v1432_v0  ;;  %1404 = vmatprep.subr.bf16.mxu1 %v1432_v0  ;;  %s1348_s29 = sshll.u32 %s2118_s21, 8  ;;  %v1651_v2 = vld [vmem:[%s2107_s1] ss:$0 sm:$0xff]  ;;  %s306_s15 = scalar_lea.vmem %s2109_s3, %s2118_s21 }
   0xe   : > { %1369 = vmatpush3.bf16.msra.mxu0 %v1432_v0  ;;  %1406 = vmatpush3.bf16.msra.mxu1 %v1432_v0  ;;  %s1658_s10 = scalar_lea.vmem %s2106_s0, %s1348_s29  ;;  %v1663_v3 = vld [vmem:[%s2108_s2] ss:$0 sm:$0xff]  ;;  %s1963_s18 = scalar_lea.vmem %s2111_s5, %s1348_s29 }
   0xf   : > { %1370 = vmatprep.subr.bf16.mxu0 %v1433_v1  ;;  %1405 = vmatprep.subr.bf16.mxu1 %v1433_v1  ;;  %v325_v4 = vld [vmem:[%s1658_s10] sm:$0xff]  ;;  %v326_v5 = vld [vmem:[%s1658_s10 + $0x8] sm:$0xff]  ;;  %v327_v6 = vld [vmem:[%s1658_s10 + $0x10] sm:$0xff]  ;;  %s1292_s19 = sshll.u32 %s2118_s21, 1 }
  0x10   : > { %v364_v7 = vmul.f32 %v1651_v2, %v325_v4  ;;  %v365_v8 = vmul.f32 %v1651_v2, %v326_v5  ;;  %v328_v9 = vld [vmem:[%s1658_s10 + $0x18] sm:$0xff]  ;;  %v366_v10 = vmul.f32 %v1651_v2, %v327_v6  ;;  %v329_v11 = vld [vmem:[%s1658_s10 + $0x20] sm:$0xff]  ;;  %v330_v12 = vld [vmem:[%s1658_s10 + $0x28] sm:$0xff]  ;;  %s323_s26 = scalar_lea.vmem %s2112_s6, %s1292_s19 }
  0x11   : > { %v367_v13 = vmul.f32 %v1651_v2, %v328_v9  ;;  %v368_v14 = vmul.f32 %v1651_v2, %v329_v11  ;;  %v369_v15 = vmul.f32 %v1651_v2, %v330_v12  ;;  %v331_v16 = vld [vmem:[%s1658_s10 + $0x30] sm:$0xff]  ;;  %v332_v17 = vld [vmem:[%s1658_s10 + $0x38] sm:$0xff]  ;;  %v333_v22 = vld [vmem:[%s1658_s10 + $0x40] sm:$0xff] }
  0x12   : > { %1371 = vmatpush3.bf16.msra.mxu0 %v1433_v1  ;;  %1407 = vmatpush3.bf16.msra.mxu1 %v1433_v1  ;;  %v1680_v18 = vadd.f32 %v1663_v3, %v364_v7  ;;  %v1683_v19 = vadd.f32 %v1663_v3, %v365_v8  ;;  %v1686_v20 = vadd.f32 %v1663_v3, %v366_v10  ;;  %v334_v23 = vld [vmem:[%s1658_s10 + $0x48] sm:$0xff]  ;;  %v335_v28 = vld [vmem:[%s1658_s10 + $0x50] sm:$0xff]  ;;  %v336_v29 = vld [vmem:[%s1658_s10 + $0x58] sm:$0xff] }
  0x13   : > { %v370_v21 = vmul.f32 %v1651_v2, %v331_v16  ;;  %v1692_v24 = vadd.f32 %v1663_v3, %v367_v13  ;;  %v1695_v25 = vadd.f32 %v1663_v3, %v368_v14  ;;  %v1698_v26 = vadd.f32 %v1663_v3, %v369_v15  ;;  %v337_v30 = vld [vmem:[%s1658_s10 + $0x60] sm:$0xff]  ;;  %v338_v42 = vld [vmem:[%s1658_s10 + $0x68] sm:$0xff]  ;;  %v339_v52 = vld [vmem:[%s1658_s10 + $0x70] sm:$0xff] }
  0x14   : > { %v371_v27 = vmul.f32 %v1651_v2, %v332_v17  ;;  %v1295_v31 = vmul.f32 -1.442695, %v1680_v18  ;;  %v1296_v32 = vmul.f32 -1.442695, %v1683_v19  ;;  %v1297_v33 = vmul.f32 -1.442695, %v1686_v20 }
  0x15   : > { %v1708_v34 = vadd.f32 %v1663_v3, %v370_v21  ;;  %v1298_v35 = vmul.f32 -1.442695, %v1692_v24  ;;  %v1299_v36 = vmul.f32 -1.442695, %v1695_v25  ;;  %v1300_v37 = vmul.f32 -1.442695, %v1698_v26 }
  0x16   : > { %v1714_v38 = vadd.f32 %v1663_v3, %v371_v27  ;;  %1434 = vpow2.f32 %v1295_v31  ;;  %v372_v40 = vmul.f32 %v1651_v2, %v333_v22  ;;  %v373_v41 = vmul.f32 %v1651_v2, %v334_v23  ;;  %v340_v53 = vld [vmem:[%s1658_s10 + $0x78] sm:$0xff]  ;;  %v341_v58 = vld [vmem:[%s1658_s10 + $0x80] sm:$0xff]  ;;  %v342_v62 = vld [vmem:[%s1658_s10 + $0x88] sm:$0xff] }
  0x17   : > { %v1301_v39 = vmul.f32 -1.442695, %v1708_v34  ;;  %1436 = vpow2.f32 %v1296_v32  ;;  %v374_v44 = vmul.f32 %v1651_v2, %v335_v28  ;;  %v375_v45 = vmul.f32 %v1651_v2, %v336_v29  ;;  %v343_v1 = vld [vmem:[%s1658_s10 + $0x90] sm:$0xff]  ;;  %v344_v7 = vld [vmem:[%s1658_s10 + $0x98] sm:$0xff]  ;;  %v345_v23 = vld [vmem:[%s1658_s10 + $0xa0] sm:$0xff] }
  0x18   : > { %v1302_v43 = vmul.f32 -1.442695, %v1714_v38  ;;  %1438 = vpow2.f32 %v1297_v33  ;;  %v1724_v46 = vadd.f32 %v1663_v3, %v372_v40  ;;  %v1727_v47 = vadd.f32 %v1663_v3, %v373_v41  ;;  %v348_v41 = vld [vmem:[%s1658_s10 + $0xb8] sm:$0xff] }
  0x19   : > { %v376_v48 = vmul.f32 %v1651_v2, %v337_v30  ;;  %1440 = vpow2.f32 %v1298_v35  ;;  %v1731_v49 = vadd.f32 %v1663_v3, %v374_v44  ;;  %v1734_v50 = vadd.f32 %v1663_v3, %v375_v45  ;;  %v346_v30 = vld [vmem:[%s1658_s10 + $0xa8] sm:$0xff]  ;;  %v347_v35 = vld [vmem:[%s1658_s10 + $0xb0] sm:$0xff] }
  0x1a   : > { %v377_v51 = vmul.f32 %v1651_v2, %v338_v42  ;;  %1442 = vpow2.f32 %v1299_v36  ;;  %v1303_v54 = vmul.f32 -1.442695, %v1724_v46  ;;  %v1304_v56 = vmul.f32 -1.442695, %v1727_v47  ;;  %v349_v42 = vld [vmem:[%s1658_s10 + $0xc0] sm:$0xff] }
  0x1b   : > { %v1741_v55 = vadd.f32 %v1663_v3, %v376_v48  ;;  %1444 = vpow2.f32 %v1300_v37  ;;  %v1305_v59 = vmul.f32 -1.442695, %v1731_v49  ;;  %v378_v60 = vmul.f32 %v1651_v2, %v339_v52 }
  0x1c   : > { %v1745_v57 = vadd.f32 %v1663_v3, %v377_v51  ;;  %1446 = vpow2.f32 %v1301_v39  ;;  %v379_v61 = vmul.f32 %v1651_v2, %v340_v53  ;;  %v1306_v63 = vmul.f32 -1.442695, %v1734_v50  ;;  %v350_v51 = vld [vmem:[%s1658_s10 + $0xc8] sm:$0xff] }
  0x1d   : > { %1448 = vpow2.f32 %v1302_v43  ;;  %v1307_v0 = vmul.f32 -1.442695, %v1741_v55  ;;  %v1756_v4 = vadd.f32 %v1663_v3, %v378_v60  ;;  %v380_v6 = vmul.f32 %v1651_v2, %v341_v58  ;;  %v351_v58 = vld [vmem:[%s1658_s10 + $0xd0] sm:$0xff] }
  0x1e   : > { %1450 = vpow2.f32 %v1303_v54  ;;  %v1759_v5 = vadd.f32 %v1663_v3, %v379_v61  ;;  %v1308_v8 = vmul.f32 -1.442695, %v1745_v57  ;;  %v381_v9 = vmul.f32 %v1651_v2, %v342_v62 }
  0x1f   : > { %1452 = vpow2.f32 %v1304_v56  ;;  %v1309_v10 = vmul.f32 -1.442695, %v1756_v4  ;;  %v382_v11 = vmul.f32 %v1651_v2, %v343_v1  ;;  %v383_v13 = vmul.f32 %v1651_v2, %v344_v7 }
  0x20   : > { %1454 = vpow2.f32 %v1305_v59  ;;  %v1310_v12 = vmul.f32 -1.442695, %v1759_v5  ;;  %v1770_v14 = vadd.f32 %v1663_v3, %v380_v6  ;;  %v1773_v16 = vadd.f32 %v1663_v3, %v381_v9 }
  0x21   : > { %1456 = vpow2.f32 %v1306_v63  ;;  %v1776_v22 = vadd.f32 %v1663_v3, %v382_v11  ;;  %v1780_v29 = vadd.f32 %v1663_v3, %v383_v13  ;;  %v384_v40 = vmul.f32 %v1651_v2, %v345_v23  ;;  %v352_v63 = vld [vmem:[%s1658_s10 + $0xd8] sm:$0xff] }
  0x22   : > { %1458 = vpow2.f32 %v1307_v0  ;;  %v1784_v33 = vmul.f32 -1.442695, %v1770_v14  ;;  %v1788_v39 = vmul.f32 -1.442695, %v1773_v16  ;;  %v385_v48 = vmul.f32 %v1651_v2, %v346_v30 }
  0x23   : > { %v1435_v15 = vpop.eup %1434  ;;  %1460 = vpow2.f32 %v1308_v8  ;;  %v1794_v45 = vmul.f32 -1.442695, %v1776_v22  ;;  %v1799_v54 = vmul.f32 -1.442695, %v1780_v29  ;;  %v386_v56 = vmul.f32 %v1651_v2, %v347_v35 }
  0x24   : > { %v1437_v17 = vpop.eup %1436  ;;  %v531_v21 = vadd.f32 1.0, %v1435_v15  ;;  %1462 = vpow2.f32 %v1309_v10  ;;  %v387_v61 = vmul.f32 %v1651_v2, %v348_v41  ;;  %v388_v62 = vmul.f32 %v1651_v2, %v349_v42  ;;  %v353_v42 = vld [vmem:[%s1658_s10 + $0xe0] sm:$0xff] }
  0x25   : > { %v1439_v27 = vpop.eup %1438  ;;  %v532_v28 = vadd.f32 1.0, %v1437_v17  ;;  %1464 = vpow2.f32 %v1310_v12  ;;  %v1807_v6 = vadd.f32 %v1663_v3, %v384_v40  ;;  %v389_v7 = vmul.f32 %v1651_v2, %v350_v51 }
  0x26   : > { %v1441_v31 = vpop.eup %1440  ;;  %1466 = vrcp.f32 %v531_v21  ;;  %v533_v32 = vadd.f32 1.0, %v1439_v27  ;;  %v1811_v10 = vadd.f32 %v1663_v3, %v385_v48  ;;  %v390_v11 = vmul.f32 %v1651_v2, %v351_v58 }
  0x27   : > { %v1443_v36 = vpop.eup %1442  ;;  %1468 = vrcp.f32 %v532_v28  ;;  %v534_v37 = vadd.f32 1.0, %v1441_v31  ;;  %v1815_v15 = vadd.f32 %v1663_v3, %v386_v56  ;;  %v391_v17 = vmul.f32 %v1651_v2, %v352_v63 }
  0x28   : > { %v1445_v43 = vpop.eup %1444  ;;  %1470 = vrcp.f32 %v533_v32  ;;  %v535_v44 = vadd.f32 1.0, %v1443_v36  ;;  %v1819_v27 = vadd.f32 %v1663_v3, %v387_v61  ;;  %v1822_v28 = vadd.f32 %v1663_v3, %v388_v62  ;;  %v1847_v62 = vld [vmem:[%s306_s15] ss:$0 sm:$0xff] }
  0x29   : > { %v1447_v52 = vpop.eup %1446  ;;  %1472 = vrcp.f32 %v534_v37  ;;  %v536_v53 = vadd.f32 1.0, %v1445_v43  ;;  %v1315_v32 = vmul.f32 -1.442695, %v1807_v6  ;;  %v1826_v35 = vadd.f32 %v1663_v3, %v389_v7  ;;  %v356_v7 = vld [vmem:[%s1658_s10 + $0xf8] sm:$0xff] }
  0x2a   : > { %v1449_v59 = vpop.eup %1448  ;;  %1474 = vrcp.f32 %v535_v44  ;;  %v537_v60 = vadd.f32 1.0, %v1447_v52  ;;  %v1316_v40 = vmul.f32 -1.442695, %v1811_v10  ;;  %v1834_v41 = vadd.f32 %v1663_v3, %v390_v11  ;;  %v354_v52 = vld [vmem:[%s1658_s10 + $0xe8] sm:$0xff] }
  0x2b   : > { %v1451_v0 = vpop.eup %1450  ;;  %1476 = vrcp.f32 %v536_v53  ;;  %v538_v1 = vadd.f32 1.0, %v1449_v59  ;;  %v1317_v48 = vmul.f32 -1.442695, %v1815_v15  ;;  %v1839_v51 = vadd.f32 %v1663_v3, %v391_v17 }
  0x2c   : > { %v1453_v8 = vpop.eup %1452  ;;  %1478 = vrcp.f32 %v537_v60  ;;  %v539_v9 = vadd.f32 1.0, %v1451_v0  ;;  %v1318_v58 = vmul.f32 -1.442695, %v1819_v27  ;;  %v1844_v59 = vmul.f32 -1.442695, %v1822_v28  ;;  %v355_v60 = vld [vmem:[%s1658_s10 + $0xf0] sm:$0xff] }
  0x2d   : > { %v1455_v12 = vpop.eup %1454  ;;  %1480 = vrcp.f32 %v538_v1  ;;  %v540_v13 = vadd.f32 1.0, %v1453_v8  ;;  %v1320_v0 = vmul.f32 -1.442695, %v1826_v35  ;;  %v392_v1 = vmul.f32 %v1651_v2, %v353_v42 }
  0x2e   : > { %v1457_v21 = vpop.eup %1456  ;;  %1482 = vrcp.f32 %v539_v9  ;;  %v541_v23 = vadd.f32 1.0, %v1455_v12  ;;  %v1321_v11 = vmul.f32 -1.442695, %v1834_v41  ;;  %v393_v12 = vmul.f32 %v1651_v2, %v354_v52 }
  0x2f   : > { %v1459_v30 = vpop.eup %1458  ;;  %1484 = vrcp.f32 %v540_v13  ;;  %v542_v31 = vadd.f32 1.0, %v1457_v21  ;;  %v1322_v21 = vmul.f32 -1.442695, %v1839_v51 }
  0x30   : > { %v1461_v36 = vpop.eup %1460  ;;  %1486 = vrcp.f32 %v541_v23  ;;  %v543_v37 = vadd.f32 1.0, %v1459_v30  ;;  %v394_v23 = vmul.f32 %v1651_v2, %v355_v60 }
  0x31   : > { %v1463_v43 = vpop.eup %1462  ;;  %1488 = vrcp.f32 %v542_v31  ;;  %v544_v44 = vadd.f32 1.0, %v1461_v36 }
  0x32   : > { %v1465_v53 = vpop.eup %1464  ;;  %1490 = vrcp.f32 %v543_v37  ;;  %v545_v56 = vadd.f32 1.0, %v1463_v43 }
  0x33   : > { %v1467_v61 = vpop.eup %1466  ;;  %1492 = vrcp.f32 %v544_v44  ;;  %v546_v63 = vadd.f32 1.0, %v1465_v53 }
  0x34   : > { %v1469_v8 = vpop.eup %1468  ;;  %v627_v9 = vmul.f32 %v1467_v61, %v1680_v18  ;;  %1494 = vrcp.f32 %v545_v56  ;;  %v395_v18 = vmul.f32 %v1651_v2, %v356_v7 }
  0x35   : > { %v1471_v13 = vpop.eup %1470  ;;  %v628_v17 = vmul.f32 %v1469_v8, %v1683_v19  ;;  %1496 = vrcp.f32 %v546_v63  ;;  %v1866_v19 = vadd.f32 %v1663_v3, %v392_v1 }
  0x36   : > { %v1473_v30 = vpop.eup %1472  ;;  %v666_v31 = vmul.f32 %v1847_v62, %v627_v9  ;;  %v629_v36 = vmul.f32 %v1471_v13, %v1686_v20  ;;  %1498 = vpow2.f32 %v1784_v33  ;;  %v1872_v20 = vadd.f32 %v1663_v3, %v393_v12 }
  0x37   : > { %v1475_v37 = vpop.eup %1474  ;;  %v667_v42 = vmul.f32 %v1847_v62, %v628_v17  ;;  %v630_v43 = vmul.f32 %v1473_v30, %v1692_v24  ;;  %1500 = vpow2.f32 %v1788_v39 }
  0x38   : > { %v1477_v44 = vpop.eup %1476  ;;  %v668_v52 = vmul.f32 %v1847_v62, %v629_v36  ;;  %v631_v53 = vmul.f32 %v1475_v37, %v1695_v25  ;;  %1502 = vpow2.f32 %v1794_v45  ;;  %v1880_v25 = vadd.f32 %v1663_v3, %v394_v23 }
  0x39   : > { %v1479_v2 = vpop.eup %1478  ;;  %v698_v33 = vpack.c.bf16 %v667_v42, %v666_v31  ;;  %v669_v56 = vmul.f32 %v1847_v62, %v630_v43  ;;  %v632_v24 = vmul.f32 %v1477_v44, %v1698_v26  ;;  %1504 = vpow2.f32 %v1799_v54 }
  0x3a   : > { %v1481_v39 = vpop.eup %1480  ;;  %v670_v60 = vmul.f32 %v1847_v62, %v631_v53  ;;  %v633_v61 = vmul.f32 %v1479_v2, %v1708_v34  ;;  %1506 = vpow2.f32 %v1315_v32  ;;  %v1888_v34 = vadd.f32 %v1663_v3, %v395_v18 }
  0x3b   : > { %v1483_v45 = vpop.eup %1482  ;;  %1372 = vmatprep.mubr.msk.bf16.mxu0 %vm730_vm0, %v698_v33  ;;  %v699_v63 = vpack.c.bf16 %v669_v56, %v668_v52  ;;  %v671_v1 = vmul.f32 %v1847_v62, %v632_v24  ;;  %v634_v7 = vmul.f32 %v1481_v39, %v1714_v38  ;;  %1508 = vpow2.f32 %v1316_v40 }
  0x3c   : > { %v1485_v26 = vpop.eup %1484  ;;  %v672_v54 = vmul.f32 %v1847_v62, %v633_v61  ;;  %v635_v8 = vmul.f32 %v1483_v45, %v1724_v46  ;;  %1510 = vpow2.f32 %v1317_v48  ;;  %v1323_v46 = vmul.f32 -1.442695, %v1866_v19 }
  0x3d   : > { %v1487_v32 = vpop.eup %1486  ;;  %1373 = vmatmul.mubr.msk.bf16.vlgmr.msra.gmra.mxu0 %vm730_vm0, %v699_v63  ;;  %v700_v9 = vpack.c.bf16 %v671_v1, %v670_v60  ;;  %v673_v12 = vmul.f32 %v1847_v62, %v634_v7  ;;  %v636_v13 = vmul.f32 %v1485_v26, %v1727_v47  ;;  %1512 = vpow2.f32 %v1318_v58 }
  0x3e   : > { %v1489_v38 = vpop.eup %1488  ;;  %v674_v40 = vmul.f32 %v1847_v62, %v635_v8  ;;  %1514 = vpow2.f32 %v1844_v59  ;;  %v1324_v17 = vmul.f32 -1.442695, %v1872_v20  ;;  %v1325_v47 = vmul.f32 -1.442695, %v1880_v25 }
  0x3f   : > { %v1491_v48 = vpop.eup %1490  ;;  %1376 = vmatprep.mubr.msk.bf16.mxu0 %vm730_vm0, %v700_v9  ;;  %v675_v3 = vmul.f32 %v1847_v62, %v636_v13  ;;  %1516 = vpow2.f32 %v1320_v0  ;;  %v1326_v58 = vmul.f32 -1.442695, %v1888_v34  ;;  %v701_v31 = vpack.c.bf16 %v673_v12, %v672_v54 }
  0x40   : > { %v1493_v23 = vpop.eup %1492  ;;  %1518 = vpow2.f32 %v1321_v11  ;;  %v637_v59 = vmul.f32 %v1487_v32, %v1731_v49  ;;  %v638_v36 = vmul.f32 %v1489_v38, %v1734_v50  ;;  %v639_v42 = vmul.f32 %v1491_v48, %v1741_v55 }
  0x41   : > { %v1495_v30 = vpop.eup %1494  ;;  %1520 = vpow2.f32 %v1322_v21  ;;  %v702_v37 = vpack.c.bf16 %v675_v3, %v674_v40  ;;  %v640_v0 = vmul.f32 %v1493_v23, %v1745_v57 }
  0x42   : > { %v1497_v18 = vpop.eup %1496  ;;  %1522 = vpow2.f32 %v1323_v46  ;;  %v676_v49 = vmul.f32 %v1847_v62, %v637_v59  ;;  %v677_v50 = vmul.f32 %v1847_v62, %v638_v36  ;;  %v678_v55 = vmul.f32 %v1847_v62, %v639_v42 }
  0x43   : > { %v1499_v43 = vpop.eup %1498  ;;  %1524 = vpow2.f32 %v1324_v17  ;;  %v679_v57 = vmul.f32 %v1847_v62, %v640_v0  ;;  %v641_v39 = vmul.f32 %v1495_v30, %v1756_v4  ;;  %v642_v63 = vmul.f32 %v1497_v18, %v1759_v5 }
  0x44   : > { %v1501_v11 = vpop.eup %1500  ;;  %v547_v44 = vadd.f32 1.0, %v1499_v43  ;;  %1526 = vpow2.f32 %v1325_v47  ;;  %v703_v45 = vpack.c.bf16 %v677_v50, %v676_v49 }
  0x45   : > { %v1503_v52 = vpop.eup %1502  ;;  %1377 = vmatmul.mubr.msk.bf16.gmra.mxu0 %vm730_vm0, %v701_v31  ;;  %v548_v21 = vadd.f32 1.0, %v1501_v11  ;;  %1528 = vpow2.f32 %v1326_v58  ;;  %v704_v26 = vpack.c.bf16 %v679_v57, %v678_v55  ;;  %v680_v4 = vmul.f32 %v1847_v62, %v641_v39 }
  0x46   : > { %v1505_v53 = vpop.eup %1504  ;;  %1380 = vmatprep.mubr.msk.bf16.mxu0 %vm730_vm0, %v702_v37  ;;  %1530 = vrcp.f32 %v547_v44  ;;  %v549_v2 = vadd.f32 1.0, %v1503_v52  ;;  %v681_v38 = vmul.f32 %v1847_v62, %v642_v63 }
  0x47   : > { %v1507_v33 = vpop.eup %1506  ;;  %1532 = vrcp.f32 %v548_v21  ;;  %v550_v56 = vadd.f32 1.0, %v1505_v53 }
  0x48   : > { %v1509_v24 = vpop.eup %1508  ;;  %1534 = vrcp.f32 %v549_v2  ;;  %v551_v60 = vadd.f32 1.0, %v1507_v33  ;;  %v705_v58 = vpack.c.bf16 %v681_v38, %v680_v4 }
  0x49   : > { %v1511_v61 = vpop.eup %1510  ;;  %1536 = vrcp.f32 %v550_v56  ;;  %v552_v1 = vadd.f32 1.0, %v1509_v24 }
  0x4a   : > { %v1513_v7 = vpop.eup %1512  ;;  %1538 = vrcp.f32 %v551_v60  ;;  %v553_v54 = vadd.f32 1.0, %v1511_v61 }
  0x4b   : > { %v1515_v8 = vpop.eup %1514  ;;  %1540 = vrcp.f32 %v552_v1  ;;  %v554_v32 = vadd.f32 1.0, %v1513_v7 }
  0x4c   : > { %v1517_v9 = vpop.eup %1516  ;;  %1542 = vrcp.f32 %v553_v54  ;;  %v555_v12 = vadd.f32 1.0, %v1515_v8 }
  0x4d   : > { %v1519_v13 = vpop.eup %1518  ;;  %1381 = vmatmul.mubr.msk.bf16.gmra.mxu0 %vm730_vm0, %v703_v45  ;;  %1544 = vrcp.f32 %v554_v32  ;;  %v556_v5 = vadd.f32 1.0, %v1517_v9 }
  0x4e   : > { %v1521_v40 = vpop.eup %1520  ;;  %1384 = vmatprep.mubr.msk.bf16.mxu0 %vm730_vm0, %v704_v26  ;;  %1546 = vrcp.f32 %v555_v12  ;;  %v557_v46 = vadd.f32 1.0, %v1519_v13 }
  0x4f   : > { %v1523_v48 = vpop.eup %1522  ;;  %1548 = vrcp.f32 %v556_v5  ;;  %v558_v3 = vadd.f32 1.0, %v1521_v40 }
  0x50   : > { %v1525_v17 = vpop.eup %1524  ;;  %1550 = vrcp.f32 %v557_v46  ;;  %v559_v23 = vadd.f32 1.0, %v1523_v48 }
  0x51   : > { %v1527_v47 = vpop.eup %1526  ;;  %1552 = vrcp.f32 %v558_v3  ;;  %v560_v30 = vadd.f32 1.0, %v1525_v17 }
  0x52   : > { %v1529_v31 = vpop.eup %1528  ;;  %1554 = vrcp.f32 %v559_v23  ;;  %v561_v37 = vadd.f32 1.0, %v1527_v47 }
  0x53   : > { %v1531_v59 = vpop.eup %1530  ;;  %1556 = vrcp.f32 %v560_v30  ;;  %v562_v43 = vadd.f32 1.0, %v1529_v31 }
  0x54   : > { %v1533_v36 = vpop.eup %1532  ;;  %v643_v18 = vmul.f32 %v1531_v59, %v1770_v14  ;;  %1558 = vrcp.f32 %v561_v37 }
  0x55   : > { %v1535_v42 = vpop.eup %1534  ;;  %1385 = vmatmul.mubr.msk.bf16.gmra.mxu0 %vm730_vm0, %v705_v58  ;;  %v644_v0 = vmul.f32 %v1533_v36, %v1773_v16  ;;  %1560 = vrcp.f32 %v562_v43 }
  0x56   : > { %v1537_v11 = vpop.eup %1536  ;;  %v682_v44 = vmul.f32 %v1847_v62, %v643_v18  ;;  %v645_v52 = vmul.f32 %v1535_v42, %v1776_v22 }
  0x57   : > { %v1539_v49 = vpop.eup %1538  ;;  %v683_v50 = vmul.f32 %v1847_v62, %v644_v0  ;;  %v646_v21 = vmul.f32 %v1537_v11, %v1780_v29 }
  0x58   : > { %v1541_v53 = vpop.eup %1540  ;;  %v684_v14 = vmul.f32 %v1847_v62, %v645_v52  ;;  %v647_v55 = vmul.f32 %v1539_v49, %v1807_v6 }
  0x59   : > { %v1543_v57 = vpop.eup %1542  ;;  %v706_v2 = vpack.c.bf16 %v683_v50, %v682_v44  ;;  %v685_v16 = vmul.f32 %v1847_v62, %v646_v21  ;;  %v648_v33 = vmul.f32 %v1541_v53, %v1811_v10 }
  0x5a   : > { %v1545_v56 = vpop.eup %1544  ;;  %v686_v22 = vmul.f32 %v1847_v62, %v647_v55  ;;  %v649_v24 = vmul.f32 %v1543_v57, %v1815_v15 }
  0x5b   : > { %v1547_v39 = vpop.eup %1546  ;;  %1388 = vmatprep.mubr.msk.bf16.mxu1 %vm730_vm0, %v706_v2  ;;  %v707_v29 = vpack.c.bf16 %v685_v16, %v684_v14  ;;  %v687_v60 = vmul.f32 %v1847_v62, %v648_v33  ;;  %v650_v6 = vmul.f32 %v1545_v56, %v1819_v27 }
  0x5c   : > { %v1549_v61 = vpop.eup %1548  ;;  %v651_v45 = vmul.f32 %v1547_v39, %v1822_v28  ;;  %v688_v1 = vmul.f32 %v1847_v62, %v649_v24 }
  0x5d   : > { %v1551_v63 = vpop.eup %1550  ;;  %1389 = vmatmul.mubr.msk.bf16.vlgmr.msra.gmra.mxu1 %vm730_vm0, %v707_v29  ;;  %v708_v10 = vpack.c.bf16 %v687_v60, %v686_v22  ;;  %v689_v7 = vmul.f32 %v1847_v62, %v650_v6  ;;  %v652_v15 = vmul.f32 %v1549_v61, %v1826_v35 }
  0x5e   : > { %v1553_v26 = vpop.eup %1552  ;;  %v690_v54 = vmul.f32 %v1847_v62, %v651_v45  ;;  %v653_v9 = vmul.f32 %v1551_v63, %v1834_v41 }
  0x5f   : > { %v1555_v8 = vpop.eup %1554  ;;  %1392 = vmatprep.mubr.msk.bf16.mxu1 %vm730_vm0, %v708_v10  ;;  %v691_v27 = vmul.f32 %v1847_v62, %v652_v15  ;;  %v709_v28 = vpack.c.bf16 %v689_v7, %v688_v1  ;;  %v654_v12 = vmul.f32 %v1553_v26, %v1839_v51 }
  0x60   : > { %v1557_v32 = vpop.eup %1556  ;;  %v655_v4 = vmul.f32 %v1555_v8, %v1866_v19  ;;  %v692_v5 = vmul.f32 %v1847_v62, %v653_v9 }
  0x61   : > { %v710_v13 = vpack.c.bf16 %v691_v27, %v690_v54  ;;  %v656_v38 = vmul.f32 %v1557_v32, %v1872_v20  ;;  %v1559_v35 = vpop.eup %1558  ;;  %v693_v40 = vmul.f32 %v1847_v62, %v654_v12 }
  0x62   : > { %v1561_v46 = vpop.eup %1560  ;;  %v694_v41 = vmul.f32 %v1847_v62, %v655_v4  ;;  %v657_v19 = vmul.f32 %v1559_v35, %v1880_v25 }
  0x63   : > { %v695_v51 = vmul.f32 %v1847_v62, %v656_v38  ;;  %v711_v48 = vpack.c.bf16 %v693_v40, %v692_v5  ;;  %v658_v20 = vmul.f32 %v1561_v46, %v1888_v34 }
  0x64   : > { %v696_v17 = vmul.f32 %v1847_v62, %v657_v19 }
  0x65   : > { %1393 = vmatmul.mubr.msk.bf16.gmra.mxu1 %vm730_vm0, %v709_v28  ;;  %v712_v3 = vpack.c.bf16 %v695_v51, %v694_v41  ;;  %v697_v23 = vmul.f32 %v1847_v62, %v658_v20 }
  0x66   : > { %1396 = vmatprep.mubr.msk.bf16.mxu1 %vm730_vm0, %v710_v13 }
  0x67   : > { %v713_v47 = vpack.c.bf16 %v697_v23, %v696_v17 }
  0x6d   : > { %1397 = vmatmul.mubr.msk.bf16.gmra.mxu1 %vm730_vm0, %v711_v48 }
  0x6e   : > { %1400 = vmatprep.mubr.msk.bf16.mxu1 %vm730_vm0, %v712_v3 }
  0x75   : > { %1401 = vmatmul.mubr.msk.bf16.gmra.mxu1 %vm730_vm0, %v713_v47 }
  0xfd   : > { %v1374_v25 = vpop.f32.mrf.mxu0 }
  0xfe   : > { %943 = vst.msk [vmem:[%s1963_s18 + $0x10] sm:$0xff] %vm940_vm1, %v1374_v25  ;;  %v1046_v31 = vmul.f32 %v1374_v25, %v1374_v25  ;;  %v976_v0 = vsel %vm940_vm1, %v1374_v25, 0.0 }
  0xff   : > { %v813_v62 = vpop.f32.mrf.mxu0 }
 0x100   : > { %941 = vst.msk [vmem:[%s1963_s18] sm:$0xff] %vm940_vm1, %v813_v62  ;;  %v1044_v58 = vmul.f32 %v813_v62, %v813_v62  ;;  %v973_v59 = vsel %vm940_vm1, %v813_v62, 0.0  ;;  %v1079_v21 = vsel %vm940_vm1, %v1046_v31, 0.0 }
 0x101   : > { %v1375_v34 = vpop.f32.mrf.mxu0 }
 0x102   : > { %944 = vst.msk [vmem:[%s1963_s18 + $0x18] sm:$0xff] %vm940_vm1, %v1375_v34  ;;  %v1076_v43 = vsel %vm940_vm1, %v1044_v58, 0.0  ;;  %v1047_v11 = vmul.f32 %v1375_v34, %v1375_v34  ;;  %v978_v53 = vsel %vm940_vm1, %v1375_v34, 0.0 }
 0x103   : > { %v816_v30 = vpop.f32.mrf.mxu0 }
 0x104   : > { %942 = vst.msk [vmem:[%s1963_s18 + $0x8] sm:$0xff] %vm940_vm1, %v816_v30  ;;  %v974_v36 = vsel %vm940_vm1, %v816_v30, 0.0  ;;  %v1045_v18 = vmul.f32 %v816_v30, %v816_v30  ;;  %v1081_v16 = vsel %vm940_vm1, %v1047_v11, 0.0 }
 0x105   : > { %v975_v37 = vadd.f32 %v974_v36, %v973_v59  ;;  %v1378_v42 = vpop.f32.mrf.mxu0 }
 0x106   : > { %v1077_v44 = vsel %vm940_vm1, %v1045_v18, 0.0  ;;  %947 = vst.msk [vmem:[%s1963_s18 + $0x30] sm:$0xff] %vm940_vm1, %v1378_v42  ;;  %v1050_v39 = vmul.f32 %v1378_v42, %v1378_v42  ;;  %v984_v10 = vsel %vm940_vm1, %v1378_v42, 0.0 }
 0x107   : > { %v977_v52 = vadd.f32 %v976_v0, %v975_v37  ;;  %v1078_v49 = vadd.f32 %v1077_v44, %v1076_v43  ;;  %v829_v50 = vpop.f32.mrf.mxu0 }
 0x108   : > { %945 = vst.msk [vmem:[%s1963_s18 + $0x20] sm:$0xff] %vm940_vm1, %v829_v50  ;;  %v1048_v14 = vmul.f32 %v829_v50, %v829_v50  ;;  %v980_v33 = vsel %vm940_vm1, %v829_v50, 0.0  ;;  %v1087_v8 = vsel %vm940_vm1, %v1050_v39, 0.0 }
 0x109   : > { %v1080_v55 = vadd.f32 %v1079_v21, %v1078_v49  ;;  %v979_v57 = vadd.f32 %v978_v53, %v977_v52  ;;  %v1379_v2 = vpop.f32.mrf.mxu0 }
 0x10a   : > { %948 = vst.msk [vmem:[%s1963_s18 + $0x38] sm:$0xff] %vm940_vm1, %v1379_v2  ;;  %v1083_v29 = vsel %vm940_vm1, %v1048_v14, 0.0  ;;  %v1051_v1 = vmul.f32 %v1379_v2, %v1379_v2  ;;  %v986_v27 = vsel %vm940_vm1, %v1379_v2, 0.0 }
 0x10b   : > { %v981_v56 = vadd.f32 %v980_v33, %v979_v57  ;;  %v1082_v22 = vadd.f32 %v1081_v16, %v1080_v55  ;;  %v832_v24 = vpop.f32.mrf.mxu0 }
 0x10c   : > { %946 = vst.msk [vmem:[%s1963_s18 + $0x28] sm:$0xff] %vm940_vm1, %v832_v24  ;;  %v982_v60 = vsel %vm940_vm1, %v832_v24, 0.0  ;;  %v1049_v6 = vmul.f32 %v832_v24, %v832_v24  ;;  %v1089_v13 = vsel %vm940_vm1, %v1051_v1, 0.0 }
 0x10d   : > { %v1084_v61 = vadd.f32 %v1083_v29, %v1082_v22  ;;  %v983_v45 = vadd.f32 %v982_v60, %v981_v56  ;;  %v1382_v63 = vpop.f32.mrf.mxu0 }
 0x10e   : > { %v1085_v7 = vsel %vm940_vm1, %v1049_v6, 0.0  ;;  %951 = vst.msk [vmem:[%s1963_s18 + $0x50] sm:$0xff] %vm940_vm1, %v1382_v63  ;;  %v1054_v40 = vmul.f32 %v1382_v63, %v1382_v63  ;;  %v992_v3 = vsel %vm940_vm1, %v1382_v63, 0.0 }
 0x10f   : > { %v985_v15 = vadd.f32 %v984_v10, %v983_v45  ;;  %v1086_v26 = vadd.f32 %v1085_v7, %v1084_v61  ;;  %v845_v54 = vpop.f32.mrf.mxu0 }
 0x110   : > { %949 = vst.msk [vmem:[%s1963_s18 + $0x40] sm:$0xff] %vm940_vm1, %v845_v54  ;;  %v1052_v32 = vmul.f32 %v845_v54, %v845_v54  ;;  %v988_v4 = vsel %vm940_vm1, %v845_v54, 0.0  ;;  %v1095_v34 = vsel %vm940_vm1, %v1054_v40, 0.0 }
 0x111   : > { %v1088_v28 = vadd.f32 %v1087_v8, %v1086_v26  ;;  %v987_v9 = vadd.f32 %v986_v27, %v985_v15  ;;  %v1383_v12 = vpop.f32.mrf.mxu0 }
 0x112   : > { %952 = vst.msk [vmem:[%s1963_s18 + $0x58] sm:$0xff] %vm940_vm1, %v1383_v12  ;;  %v1091_v46 = vsel %vm940_vm1, %v1052_v32, 0.0  ;;  %v1055_v17 = vmul.f32 %v1383_v12, %v1383_v12  ;;  %v994_v58 = vsel %vm940_vm1, %v1383_v12, 0.0 }
 0x113   : > { %v989_v38 = vadd.f32 %v988_v4, %v987_v9  ;;  %v1090_v35 = vadd.f32 %v1089_v13, %v1088_v28  ;;  %v848_v5 = vpop.f32.mrf.mxu0 }
 0x114   : > { %950 = vst.msk [vmem:[%s1963_s18 + $0x48] sm:$0xff] %vm940_vm1, %v848_v5  ;;  %v990_v41 = vsel %vm940_vm1, %v848_v5, 0.0  ;;  %v1053_v51 = vmul.f32 %v848_v5, %v848_v5  ;;  %v1097_v18 = vsel %vm940_vm1, %v1055_v17, 0.0 }
 0x115   : > { %v1092_v48 = vadd.f32 %v1091_v46, %v1090_v35  ;;  %v991_v19 = vadd.f32 %v990_v41, %v989_v38  ;;  %v1386_v20 = vpop.f32.mrf.mxu0 }
 0x116   : > { %v1093_v23 = vsel %vm940_vm1, %v1053_v51, 0.0  ;;  %955 = vst.msk [vmem:[%s1963_s18 + $0x70] sm:$0xff] %vm940_vm1, %v1386_v20  ;;  %v1058_v11 = vmul.f32 %v1386_v20, %v1386_v20  ;;  %v1000_v14 = vsel %vm940_vm1, %v1386_v20, 0.0 }
 0x117   : > { %v993_v47 = vadd.f32 %v992_v3, %v991_v19  ;;  %v1094_v25 = vadd.f32 %v1093_v23, %v1092_v48  ;;  %v861_v62 = vpop.f32.mrf.mxu0 }
 0x118   : > { %953 = vst.msk [vmem:[%s1963_s18 + $0x60] sm:$0xff] %vm940_vm1, %v861_v62  ;;  %v1056_v30 = vmul.f32 %v861_v62, %v861_v62  ;;  %v996_v37 = vsel %vm940_vm1, %v861_v62, 0.0  ;;  %v1103_v56 = vsel %vm940_vm1, %v1058_v11, 0.0 }
 0x119   : > { %v1096_v31 = vadd.f32 %v1095_v34, %v1094_v25  ;;  %v995_v59 = vadd.f32 %v994_v58, %v993_v47  ;;  %v1387_v36 = vpop.f32.mrf.mxu0 }
 0x11a   : > { %956 = vst.msk [vmem:[%s1963_s18 + $0x78] sm:$0xff] %vm940_vm1, %v1387_v36  ;;  %v1099_v44 = vsel %vm940_vm1, %v1056_v30, 0.0  ;;  %v1059_v55 = vmul.f32 %v1387_v36, %v1387_v36  ;;  %v1002_v22 = vsel %vm940_vm1, %v1387_v36, 0.0 }
 0x11b   : > { %v997_v42 = vadd.f32 %v996_v37, %v995_v59  ;;  %v1098_v0 = vadd.f32 %v1097_v18, %v1096_v31  ;;  %v864_v43 = vpop.f32.mrf.mxu0 }
 0x11c   : > { %954 = vst.msk [vmem:[%s1963_s18 + $0x68] sm:$0xff] %vm940_vm1, %v864_v43  ;;  %v998_v52 = vsel %vm940_vm1, %v864_v43, 0.0  ;;  %v1057_v49 = vmul.f32 %v864_v43, %v864_v43  ;;  %v1105_v6 = vsel %vm940_vm1, %v1059_v55, 0.0 }
 0x11d   : > { %v1100_v50 = vadd.f32 %v1099_v44, %v1098_v0  ;;  %v1390_v21 = vpop.f32.mrf.mxu1  ;;  %v999_v53 = vadd.f32 %v998_v52, %v997_v42 }
 0x11e   : > { %959 = vst.msk [vmem:[%s1963_s18 + $0x90] sm:$0xff] %vm940_vm1, %v1390_v21  ;;  %v1101_v57 = vsel %vm940_vm1, %v1057_v49, 0.0  ;;  %v1062_v1 = vmul.f32 %v1390_v21, %v1390_v21  ;;  %v1008_v32 = vsel %vm940_vm1, %v1390_v21, 0.0 }
 0x11f   : > { %v877_v2 = vpop.f32.mrf.mxu1  ;;  %v1001_v16 = vadd.f32 %v1000_v14, %v999_v53  ;;  %v1102_v33 = vadd.f32 %v1101_v57, %v1100_v50 }
 0x120   : > { %957 = vst.msk [vmem:[%s1963_s18 + $0x80] sm:$0xff] %vm940_vm1, %v877_v2  ;;  %v1060_v24 = vmul.f32 %v877_v2, %v877_v2  ;;  %v1004_v61 = vsel %vm940_vm1, %v877_v2, 0.0  ;;  %v1111_v38 = vsel %vm940_vm1, %v1062_v1, 0.0 }
 0x121   : > { %v1003_v39 = vadd.f32 %v1002_v22, %v1001_v16  ;;  %v1104_v29 = vadd.f32 %v1103_v56, %v1102_v33  ;;  %v1391_v60 = vpop.f32.mrf.mxu1 }
 0x122   : > { %960 = vst.msk [vmem:[%s1963_s18 + $0x98] sm:$0xff] %vm940_vm1, %v1391_v60  ;;  %v1107_v7 = vsel %vm940_vm1, %v1060_v24, 0.0  ;;  %v1063_v28 = vmul.f32 %v1391_v60, %v1391_v60  ;;  %v1010_v35 = vsel %vm940_vm1, %v1391_v60, 0.0 }
 0x123   : > { %v1106_v45 = vadd.f32 %v1105_v6, %v1104_v29  ;;  %v880_v63 = vpop.f32.mrf.mxu1  ;;  %v1005_v10 = vadd.f32 %v1004_v61, %v1003_v39 }
 0x124   : > { %958 = vst.msk [vmem:[%s1963_s18 + $0x88] sm:$0xff] %vm940_vm1, %v880_v63  ;;  %v1006_v15 = vsel %vm940_vm1, %v880_v63, 0.0  ;;  %v1061_v26 = vmul.f32 %v880_v63, %v880_v63  ;;  %v1113_v51 = vsel %vm940_vm1, %v1063_v28, 0.0 }
 0x125   : > { %v1007_v54 = vadd.f32 %v1006_v15, %v1005_v10  ;;  %v1108_v8 = vadd.f32 %v1107_v7, %v1106_v45  ;;  %v1394_v27 = vpop.f32.mrf.mxu1 }
 0x126   : > { %v1109_v9 = vsel %vm940_vm1, %v1061_v26, 0.0  ;;  %963 = vst.msk [vmem:[%s1963_s18 + $0xb0] sm:$0xff] %vm940_vm1, %v1394_v27  ;;  %v1066_v17 = vmul.f32 %v1394_v27, %v1394_v27  ;;  %v1016_v30 = vsel %vm940_vm1, %v1394_v27, 0.0 }
 0x127   : > { %v1009_v12 = vadd.f32 %v1008_v32, %v1007_v54  ;;  %v1110_v13 = vadd.f32 %v1109_v9, %v1108_v8  ;;  %v893_v4 = vpop.f32.mrf.mxu1 }
 0x128   : > { %961 = vst.msk [vmem:[%s1963_s18 + $0xa0] sm:$0xff] %vm940_vm1, %v893_v4  ;;  %v1064_v5 = vmul.f32 %v893_v4, %v893_v4  ;;  %v1012_v48 = vsel %vm940_vm1, %v893_v4, 0.0  ;;  %v1119_v42 = vsel %vm940_vm1, %v1066_v17, 0.0 }
 0x129   : > { %v1112_v40 = vadd.f32 %v1111_v38, %v1110_v13  ;;  %v1011_v46 = vadd.f32 %v1010_v35, %v1009_v12  ;;  %v1395_v41 = vpop.f32.mrf.mxu1 }
 0x12a   : > { %964 = vst.msk [vmem:[%s1963_s18 + $0xb8] sm:$0xff] %vm940_vm1, %v1395_v41  ;;  %v1115_v23 = vsel %vm940_vm1, %v1064_v5, 0.0  ;;  %v1067_v31 = vmul.f32 %v1395_v41, %v1395_v41  ;;  %v1018_v0 = vsel %vm940_vm1, %v1395_v41, 0.0 }
 0x12b   : > { %v1013_v19 = vadd.f32 %v1012_v48, %v1011_v46  ;;  %v1114_v20 = vadd.f32 %v1113_v51, %v1112_v40  ;;  %v896_v3 = vpop.f32.mrf.mxu1 }
 0x12c   : > { %962 = vst.msk [vmem:[%s1963_s18 + $0xa8] sm:$0xff] %vm940_vm1, %v896_v3  ;;  %v1014_v47 = vsel %vm940_vm1, %v896_v3, 0.0  ;;  %v1065_v25 = vmul.f32 %v896_v3, %v896_v3  ;;  %v1121_v49 = vsel %vm940_vm1, %v1067_v31, 0.0 }
 0x12d   : > { %v1116_v62 = vadd.f32 %v1115_v23, %v1114_v20  ;;  %v1015_v34 = vadd.f32 %v1014_v47, %v1013_v19  ;;  %v1398_v58 = vpop.f32.mrf.mxu1 }
 0x12e   : > { %v1117_v59 = vsel %vm940_vm1, %v1065_v25, 0.0  ;;  %967 = vst.msk [vmem:[%s1963_s18 + $0xd0] sm:$0xff] %vm940_vm1, %v1398_v58  ;;  %v1070_v55 = vmul.f32 %v1398_v58, %v1398_v58  ;;  %v1024_v24 = vsel %vm940_vm1, %v1398_v58, 0.0 }
 0x12f   : > { %v1017_v36 = vadd.f32 %v1016_v30, %v1015_v34  ;;  %v1118_v18 = vadd.f32 %v1117_v59, %v1116_v62  ;;  %v909_v37 = vpop.f32.mrf.mxu1 }
 0x130   : > { %965 = vst.msk [vmem:[%s1963_s18 + $0xc0] sm:$0xff] %vm940_vm1, %v909_v37  ;;  %v1068_v43 = vmul.f32 %v909_v37, %v909_v37  ;;  %v1020_v50 = vsel %vm940_vm1, %v909_v37, 0.0  ;;  %v1127_v45 = vsel %vm940_vm1, %v1070_v55, 0.0 }
 0x131   : > { %v1120_v11 = vadd.f32 %v1119_v42, %v1118_v18  ;;  %v1019_v44 = vadd.f32 %v1018_v0, %v1017_v36  ;;  %v1399_v52 = vpop.f32.mrf.mxu1 }
 0x132   : > { %968 = vst.msk [vmem:[%s1963_s18 + $0xd8] sm:$0xff] %vm940_vm1, %v1399_v52  ;;  %v1123_v57 = vsel %vm940_vm1, %v1068_v43, 0.0  ;;  %v1071_v39 = vmul.f32 %v1399_v52, %v1399_v52  ;;  %v1026_v63 = vsel %vm940_vm1, %v1399_v52, 0.0 }
 0x133   : > { %v1021_v21 = vadd.f32 %v1020_v50, %v1019_v44  ;;  %v1122_v53 = vadd.f32 %v1121_v49, %v1120_v11  ;;  %v912_v14 = vpop.f32.mrf.mxu1 }
 0x134   : > { %966 = vst.msk [vmem:[%s1963_s18 + $0xc8] sm:$0xff] %vm940_vm1, %v912_v14  ;;  %v1022_v2 = vsel %vm940_vm1, %v912_v14, 0.0  ;;  %v1069_v16 = vmul.f32 %v912_v14, %v912_v14  ;;  %v1129_v26 = vsel %vm940_vm1, %v1071_v39, 0.0 }
 0x135   : > { %v1124_v33 = vadd.f32 %v1123_v57, %v1122_v53  ;;  %v1023_v56 = vadd.f32 %v1022_v2, %v1021_v21  ;;  %v1402_v22 = vpop.f32.mrf.mxu1 }
 0x136   : > { %v1125_v29 = vsel %vm940_vm1, %v1069_v16, 0.0  ;;  %971 = vst.msk [vmem:[%s1963_s18 + $0xf0] sm:$0xff] %vm940_vm1, %v1402_v22  ;;  %v1074_v28 = vmul.f32 %v1402_v22, %v1402_v22  ;;  %v1032_v35 = vsel %vm940_vm1, %v1402_v22, 0.0 }
 0x137   : > { %v1025_v60 = vadd.f32 %v1024_v24, %v1023_v56  ;;  %v1126_v6 = vadd.f32 %v1125_v29, %v1124_v33  ;;  %v925_v61 = vpop.f32.mrf.mxu1 }
 0x138   : > { %969 = vst.msk [vmem:[%s1963_s18 + $0xe0] sm:$0xff] %vm940_vm1, %v925_v61  ;;  %v1072_v10 = vmul.f32 %v925_v61, %v925_v61  ;;  %v1028_v54 = vsel %vm940_vm1, %v925_v61, 0.0  ;;  %v1135_v51 = vsel %vm940_vm1, %v1074_v28, 0.0 }
 0x139   : > { %v1128_v1 = vadd.f32 %v1127_v45, %v1126_v6  ;;  %v1027_v7 = vadd.f32 %v1026_v63, %v1025_v60  ;;  %v1403_v15 = vpop.f32.mrf.mxu1 }
 0x13a   : > { %972 = vst.msk [vmem:[%s1963_s18 + $0xf8] sm:$0xff] %vm940_vm1, %v1403_v15  ;;  %v1131_v9 = vsel %vm940_vm1, %v1072_v10, 0.0  ;;  %v1075_v5 = vmul.f32 %v1403_v15, %v1403_v15  ;;  %v1034_v48 = vsel %vm940_vm1, %v1403_v15, 0.0 }
 0x13b   : > { %v1029_v8 = vadd.f32 %v1028_v54, %v1027_v7  ;;  %v1130_v27 = vadd.f32 %v1129_v26, %v1128_v1  ;;  %v928_v32 = vpop.f32.mrf.mxu1 }
 0x13c   : > { %970 = vst.msk [vmem:[%s1963_s18 + $0xe8] sm:$0xff] %vm940_vm1, %v928_v32  ;;  %v1030_v12 = vsel %vm940_vm1, %v928_v32, 0.0  ;;  %v1073_v13 = vmul.f32 %v928_v32, %v928_v32  ;;  %v1137_v3 = vsel %vm940_vm1, %v1075_v5, 0.0 }
 0x13d   : > { %v1132_v4 = vadd.f32 %v1131_v9, %v1130_v27  ;;  %v1031_v38 = vadd.f32 %v1030_v12, %v1029_v8 }
 0x13e   : > { %v1133_v40 = vsel %vm940_vm1, %v1073_v13, 0.0 }
 0x13f   : > { %v1033_v46 = vadd.f32 %v1032_v35, %v1031_v38  ;;  %v1134_v41 = vadd.f32 %v1133_v40, %v1132_v4 }
 0x141   : > { %v1035_v19 = vadd.f32 %v1034_v48, %v1033_v46  ;;  %v1136_v20 = vadd.f32 %v1135_v51, %v1134_v41 }
 0x143   : > { %v1036_v17 = vrot.slane %v1035_v19, 4  ;;  %v1138_v23 = vadd.f32 %v1137_v3, %v1136_v20 }
 0x145   : > { %v1037_v47 = vadd.f32 %v1036_v17, %v1035_v19  ;;  %v1139_v25 = vrot.slane %v1138_v23, 4 }
 0x147   : > { %v1038_v62 = vrot.slane %v1037_v47, 2  ;;  %v1140_v34 = vadd.f32 %v1139_v25, %v1138_v23 }
 0x149   : > { %v1039_v58 = vadd.f32 %v1038_v62, %v1037_v47  ;;  %v1141_v30 = vrot.slane %v1140_v34, 2 }
 0x14b   : > { %v1040_v31 = vrot.slane %v1039_v58, 1  ;;  %v1142_v59 = vadd.f32 %v1141_v30, %v1140_v34 }
 0x14d   : > { %v1041_v36 = vadd.f32 %v1040_v31, %v1039_v58  ;;  %v1143_v18 = vrot.slane %v1142_v59, 1 }
 0x14f   : > { %1043 = vst.msk [vmem:[%s323_s26] sm:$0x1] %vm1042_vm2, %v1041_v36  ;;  %v1144_v37 = vadd.f32 %v1143_v18, %v1142_v59 }
 0x151   : > { %1145 = vst.msk [vmem:[%s323_s26 + $0x1] sm:$0x1] %vm1042_vm2, %v1144_v37 }
 0x152 PF: > { %s17_s23 = sadd.s32 1, %s1584_s23   ;;  %s2113_s21 = smov %s1580_s22 }
 0x153   : > { %p14_p5 = scmp.ge.s32.totalorder %s17_s23, 4   ;;  %s2114_s22 = smov %s2116_s24 }
 0x155   :  { %16 = sbr.rel (!%p14_p5) target bundleno = 2 (0x2), region = 85 }

// kernel: mbconv_forward.6
= control target key start
LH: loop header
LB: loop body
LE: loop exit
PB: predicated region body
PF: predicated region fallthrough
CT: control target
= control target key end

     0   :  { %s5090_s21 = smov 0   ;;  %s9242_s0 = inlined_call_operand.vmem [shape: f32[2,16,16,32], index: 0, kind: input, shape index: {}]   ;;  %s9243_s1 = inlined_call_operand.vmem [shape: f32[1,32], index: 1, kind: input, shape index: {}]   ;;  %s9244_s2 = inlined_call_operand.vmem [shape: f32[1,32], index: 2, kind: input, shape index: {}]   ;;  %s9245_s3 = inlined_call_operand.vmem [shape: f32[9,32], index: 3, kind: input, shape index: {}]   ;;  %s9246_s4 = inlined_call_operand.vmem [shape: f32[9,32], index: 4, kind: input, shape index: {}]   ;;  %s9247_s5 = inlined_call_operand.vmem [shape: f32[2,16,16,32], index: 5, kind: output, shape index: {0}]   ;;  %s9248_s6 = inlined_call_operand.vmem [shape: f32[2,2,32], index: 6, kind: output, shape index: {1}]  }
   0x1 LB: > { %s4806_s22 = sadd.s32 4294967295, %s5050_s21   ;;  %p4810_p0 = scmp.ge.s32.totalorder %s5050_s21, 1  ;;  %s5050_s21 = sphi %s5090_s21, %s17_s21  }
   0x2   : > { %p215_p1 = scmp.lt.s32.totalorder %s5050_s21, 3 }
   0x4   : > { %p216_p2 = pnand %p4810_p0, %p215_p1 }
   0x6   : > { %219 = sbr.rel (%p216_p2) target bundleno = 793 (0x319), region = 40 }
   0xb   : > { %vm597_vm0 = vcmask 261120   ;;  %v1177_v0 = vlaneseq  ;;  %vm600_vm1 = vcmask 254976   ;;  %v5052_v1 = vmov 0.0   ;;  %p249_p3 = scmp.lt.s32.totalorder %s4806_s22, 1  ;;  %v5163_v3 = vld [vmem:[%s9245_s3] sm:$0xff]  ;;  %s5053_s9 = smov 112  }
   0xc   : > { %598 = vst.msk [vmem:[#allocation2] sm:$0xff] %vm597_vm0, %v5052_v1  ;;  %599 = vst.msk [vmem:[#allocation2 + $0x8] sm:$0xff] %vm597_vm0, %v5052_v1  ;;  %v5171_v6 = vld [vmem:[%s9243_s1] ss:$0 sm:$0xff]  ;;  %s5054_s10 = smov 16   ;;  %vm1413_vm2 = vcmask 1046528  }
   0xd   : > { %602 = vst.msk [vmem:[#allocation2 + $0x18] sm:$0xff] %vm597_vm0, %v5052_v1  ;;  %603 = vst.msk [vmem:[#allocation2 + $0x20] sm:$0xff] %vm597_vm0, %v5052_v1  ;;  %v5154_v2 = vshrl.u32 %v1177_v0, 7  ;;  %s9653_s22 = smov (!%p249_p3, %s4806_s22), 1  ;;  %v5183_v7 = vld [vmem:[%s9244_s2] ss:$0 sm:$0xff] }
   0xe   : > { %605 = vst.msk [vmem:[#allocation2 + $0x30] sm:$0xff] %vm597_vm0, %v5052_v1  ;;  %606 = vst.msk [vmem:[#allocation2 + $0x38] sm:$0xff] %vm597_vm0, %v5052_v1  ;;  %s4854_s25 = sshll.u32 %s9653_s22, 8  ;;  %vm1902_vm3 = vcmask 1045504   ;;  %vm1118_vm4 = vcmask 130048   ;;  %s4815_s20 = sshll.u32 %s9653_s22, 1 }
   0xf   : > { %608 = vst.msk [vmem:[#allocation2 + $0x48] sm:$0xff] %vm597_vm0, %v5052_v1  ;;  %609 = vst.msk [vmem:[#allocation2 + $0x50] sm:$0xff] %vm597_vm0, %v5052_v1  ;;  %v9253_v4 = vsub.s32 1, %v5154_v2  ;;  %v9252_v5 = vsub.s32 2, %v5154_v2  ;;  %s5178_s30 = scalar_lea.vmem %s9242_s0, %s4854_s25  ;;  %s6631_s28 = scalar_lea.vmem %s9247_s5, %s4854_s25  ;;  %vm4616_vm5 = vcmask 253952  }
  0x10   : > { %611 = vst.msk [vmem:[#allocation2 + $0x60] sm:$0xff] %vm597_vm0, %v5052_v1  ;;  %612 = vst.msk [vmem:[#allocation2 + $0x68] sm:$0xff] %vm597_vm0, %v5052_v1  ;;  %v263_v10 = vld [vmem:[%s5178_s30] sm:$0xff]  ;;  %v264_v11 = vld [vmem:[%s5178_s30 + $0x8] sm:$0xff]  ;;  %s262_s26 = scalar_lea.vmem %s9248_s6, %s4815_s20 }
  0x11   : > { %614 = vst.msk [vmem:[#allocation2 + $0x78] sm:$0xff] %vm597_vm0, %v5052_v1  ;;  %615 = vst.msk [vmem:[#allocation2 + $0x80] sm:$0xff] %vm597_vm0, %v5052_v1  ;;  %v5188_v8 = vrot.slane %v5163_v3, %v9253_v4  ;;  %v5193_v9 = vrot.slane %v5163_v3, %v9252_v5  ;;  %v265_v12 = vld [vmem:[%s5178_s30 + $0x10] sm:$0xff]  ;;  %v302_v15 = vmul.f32 %v5171_v6, %v263_v10  ;;  %v266_v21 = vld [vmem:[%s5178_s30 + $0x18] sm:$0xff] }
  0x12   : > { %617 = vst.msk [vmem:[#allocation2 + $0x90] sm:$0xff] %vm597_vm0, %v5052_v1  ;;  %618 = vst.msk [vmem:[#allocation2 + $0x98] sm:$0xff] %vm597_vm0, %v5052_v1  ;;  %v303_v16 = vmul.f32 %v5171_v6, %v264_v11  ;;  %v304_v18 = vmul.f32 %v5171_v6, %v265_v12  ;;  %v267_v22 = vld [vmem:[%s5178_s30 + $0x20] sm:$0xff]  ;;  %v268_v23 = vld [vmem:[%s5178_s30 + $0x28] sm:$0xff]  ;;  %v305_v36 = vmul.f32 %v5171_v6, %v266_v21 }
  0x13   : > { %620 = vst.msk [vmem:[#allocation2 + $0xa8] sm:$0xff] %vm597_vm0, %v5052_v1  ;;  %621 = vst.msk [vmem:[#allocation2 + $0xb0] sm:$0xff] %vm597_vm0, %v5052_v1  ;;  %v5198_v13 = vld [vmem:[#allocation2] sm:$0xff]  ;;  %v5206_v17 = vld [vmem:[#allocation2 + $0x8] sm:$0xff]  ;;  %v5212_v19 = vadd.f32 %v5183_v7, %v302_v15  ;;  %v306_v37 = vmul.f32 %v5171_v6, %v267_v22  ;;  %v307_v38 = vmul.f32 %v5171_v6, %v268_v23 }
  0x14   : > { %623 = vst.msk [vmem:[#allocation2 + $0xc0] sm:$0xff] %vm597_vm0, %v5052_v1  ;;  %624 = vst.msk [vmem:[#allocation2 + $0xc8] sm:$0xff] %vm597_vm0, %v5052_v1  ;;  %794 = vrot.lane.b32.xlu0 %v5198_v13, %s5053_s9  ;;  %v5215_v20 = vadd.f32 %v5183_v7, %v303_v16  ;;  %v5222_v24 = vmul.f32 %v5188_v8, %v5198_v13  ;;  %v5226_v25 = vmul.f32 %v5193_v9, %v5198_v13  ;;  %v269_v28 = vld [vmem:[%s5178_s30 + $0x30] sm:$0xff]  ;;  %v270_v29 = vld [vmem:[%s5178_s30 + $0x38] sm:$0xff] }
  0x15   : > { %626 = vst.msk [vmem:[#allocation2 + $0xd8] sm:$0xff] %vm597_vm0, %v5052_v1  ;;  %627 = vst.msk [vmem:[#allocation2 + $0xe0] sm:$0xff] %vm597_vm0, %v5052_v1  ;;  %v5230_v26 = vmul.f32 %v5188_v8, %v5206_v17  ;;  %v5234_v27 = vmul.f32 %v5193_v9, %v5206_v17  ;;  %v271_v30 = vld [vmem:[%s5178_s30 + $0x40] sm:$0xff]  ;;  %v4818_v33 = vmul.f32 -1.442695, %v5212_v19  ;;  %v5252_v35 = vadd.f32 %v5183_v7, %v304_v18  ;;  %v272_v39 = vld [vmem:[%s5178_s30 + $0x48] sm:$0xff] }
  0x16   : > { %629 = vst.msk [vmem:[#allocation2 + $0xf0] sm:$0xff] %vm597_vm0, %v5052_v1  ;;  %630 = vst.msk [vmem:[#allocation2 + $0xf8] sm:$0xff] %vm597_vm0, %v5052_v1  ;;  %v4819_v34 = vmul.f32 -1.442695, %v5215_v20  ;;  %v308_v40 = vmul.f32 %v5171_v6, %v269_v28  ;;  %v309_v41 = vmul.f32 %v5171_v6, %v270_v29  ;;  %v310_v42 = vmul.f32 %v5171_v6, %v271_v30  ;;  %v273_v50 = vld [vmem:[%s5178_s30 + $0x50] sm:$0xff]  ;;  %v274_v51 = vld [vmem:[%s5178_s30 + $0x58] sm:$0xff] }
  0x17   : > { %632 = vst.msk [vmem:[#allocation2 + $0x108] sm:$0xff] %vm597_vm0, %v5052_v1  ;;  %633 = vst.msk [vmem:[#allocation2 + $0x110] sm:$0xff] %vm597_vm0, %v5052_v1  ;;  %4867 = vpow2.f32 %v4818_v33  ;;  %v4820_v43 = vmul.f32 -1.442695, %v5252_v35  ;;  %v5265_v44 = vadd.f32 %v5183_v7, %v305_v36  ;;  %v5268_v45 = vadd.f32 %v5183_v7, %v306_v37  ;;  %v275_v52 = vld [vmem:[%s5178_s30 + $0x60] sm:$0xff]  ;;  %v276_v56 = vld [vmem:[%s5178_s30 + $0x68] sm:$0xff] }
  0x18   : > { %635 = vst.msk [vmem:[#allocation2 + $0x120] sm:$0xff] %vm597_vm0, %v5052_v1  ;;  %636 = vst.msk [vmem:[#allocation2 + $0x128] sm:$0xff] %vm597_vm0, %v5052_v1  ;;  %796 = vrot.lane.b32.xlu0 %v5206_v17, %s5053_s9  ;;  %4869 = vpow2.f32 %v4819_v34  ;;  %v5271_v46 = vadd.f32 %v5183_v7, %v307_v38  ;;  %v5274_v47 = vadd.f32 %v5183_v7, %v308_v40  ;;  %v277_v57 = vld [vmem:[%s5178_s30 + $0x70] sm:$0xff]  ;;  %v1415_v30 = vrot.slane %v5230_v26, 1 }
  0x19   : > { %638 = vst.msk [vmem:[#allocation2 + $0x138] sm:$0xff] %vm597_vm0, %v5052_v1  ;;  %639 = vst.msk [vmem:[#allocation2 + $0x140] sm:$0xff] %vm597_vm0, %v5052_v1  ;;  %v5277_v48 = vadd.f32 %v5183_v7, %v309_v41  ;;  %v311_v49 = vmul.f32 %v5171_v6, %v272_v39  ;;  %4871 = vpow2.f32 %v4820_v43  ;;  %v4821_v53 = vmul.f32 -1.442695, %v5265_v44 }
  0x1a   : > { %641 = vst.msk [vmem:[#allocation2 + $0x150] sm:$0xff] %vm597_vm0, %v5052_v1  ;;  %642 = vst.msk [vmem:[#allocation2 + $0x158] sm:$0xff] %vm597_vm0, %v5052_v1  ;;  %v4822_v54 = vmul.f32 -1.442695, %v5268_v45  ;;  %v5288_v55 = vadd.f32 %v5183_v7, %v310_v42  ;;  %v4823_v58 = vmul.f32 -1.442695, %v5271_v46  ;;  %v312_v63 = vmul.f32 %v5171_v6, %v273_v50 }
  0x1b   : > { %644 = vst.msk [vmem:[#allocation2 + $0x168] sm:$0xff] %vm597_vm0, %v5052_v1  ;;  %645 = vst.msk [vmem:[#allocation2 + $0x170] sm:$0xff] %vm597_vm0, %v5052_v1  ;;  %v4824_v59 = vmul.f32 -1.442695, %v5274_v47  ;;  %v4825_v60 = vmul.f32 -1.442695, %v5277_v48  ;;  %v5296_v61 = vadd.f32 %v5183_v7, %v311_v49  ;;  %4873 = vpow2.f32 %v4821_v53 }
  0x1c   : > { %647 = vst.msk [vmem:[#allocation2 + $0x180] sm:$0xff] %vm597_vm0, %v5052_v1  ;;  %648 = vst.msk [vmem:[#allocation2 + $0x188] sm:$0xff] %vm597_vm0, %v5052_v1  ;;  %956 = vrot.lane.b32.xlu0 %v5198_v13, %s5054_s10  ;;  %v4826_v62 = vmul.f32 -1.442695, %v5288_v55  ;;  %v313_v0 = vmul.f32 %v5171_v6, %v274_v51  ;;  %4875 = vpow2.f32 %v4822_v54  ;;  %v314_v11 = vmul.f32 %v5171_v6, %v275_v52 }
  0x1d   : > { %650 = vst.msk [vmem:[#allocation2 + $0x198] sm:$0xff] %vm597_vm0, %v5052_v1  ;;  %651 = vst.msk [vmem:[#allocation2 + $0x1a0] sm:$0xff] %vm597_vm0, %v5052_v1  ;;  %v4827_v10 = vmul.f32 -1.442695, %v5296_v61  ;;  %v315_v12 = vmul.f32 %v5171_v6, %v276_v56  ;;  %4877 = vpow2.f32 %v4823_v58  ;;  %v5308_v15 = vadd.f32 %v5183_v7, %v312_v63  ;;  %v280_v56 = vld [vmem:[%s5178_s30 + $0x88] sm:$0xff]  ;;  %v281_v63 = vld [vmem:[%s5178_s30 + $0x90] sm:$0xff] }
  0x1e   : > { %601 = vst.msk [vmem:[#allocation2 + $0x10] sm:$0x3] %vm600_vm1, %v5052_v1  ;;  %604 = vst.msk [vmem:[#allocation2 + $0x28] sm:$0x3] %vm600_vm1, %v5052_v1  ;;  %v5311_v16 = vadd.f32 %v5183_v7, %v313_v0  ;;  %v316_v18 = vmul.f32 %v5171_v6, %v277_v57  ;;  %4879 = vpow2.f32 %v4824_v59  ;;  %v5315_v21 = vadd.f32 %v5183_v7, %v314_v11 }
  0x1f   : > { %607 = vst.msk [vmem:[#allocation2 + $0x40] sm:$0x3] %vm600_vm1, %v5052_v1  ;;  %610 = vst.msk [vmem:[#allocation2 + $0x58] sm:$0x3] %vm600_vm1, %v5052_v1  ;;  %v5318_v22 = vadd.f32 %v5183_v7, %v315_v12  ;;  %4881 = vpow2.f32 %v4825_v60  ;;  %v4828_v28 = vmul.f32 -1.442695, %v5308_v15 }
  0x20   : > { %613 = vst.msk [vmem:[#allocation2 + $0x70] sm:$0x3] %vm600_vm1, %v5052_v1  ;;  %616 = vst.msk [vmem:[#allocation2 + $0x88] sm:$0x3] %vm600_vm1, %v5052_v1  ;;  %v4829_v29 = vmul.f32 -1.442695, %v5311_v16  ;;  %4883 = vpow2.f32 %v4826_v62  ;;  %v5327_v34 = vadd.f32 %v5183_v7, %v316_v18 }
  0x21   : > { %619 = vst.msk [vmem:[#allocation2 + $0xa0] sm:$0x3] %vm600_vm1, %v5052_v1  ;;  %622 = vst.msk [vmem:[#allocation2 + $0xb8] sm:$0x3] %vm600_vm1, %v5052_v1  ;;  %v4830_v33 = vmul.f32 -1.442695, %v5315_v21  ;;  %4885 = vpow2.f32 %v4827_v10  ;;  %v319_v10 = vmul.f32 %v5171_v6, %v280_v56 }
  0x22   : > { %625 = vst.msk [vmem:[#allocation2 + $0xd0] sm:$0x3] %vm600_vm1, %v5052_v1  ;;  %628 = vst.msk [vmem:[#allocation2 + $0xe8] sm:$0x3] %vm600_vm1, %v5052_v1  ;;  %v4831_v36 = vmul.f32 -1.442695, %v5318_v22  ;;  %4887 = vpow2.f32 %v4828_v28  ;;  %v320_v28 = vmul.f32 %v5171_v6, %v281_v63 }
  0x23   : > { %631 = vst.msk [vmem:[#allocation2 + $0x100] sm:$0x3] %vm600_vm1, %v5052_v1  ;;  %634 = vst.msk [vmem:[#allocation2 + $0x118] sm:$0x3] %vm600_vm1, %v5052_v1  ;;  %v1903_v37 = vrot.slane %v5226_v25, 2  ;;  %v1904_v39 = vrot.slane %v5234_v27, 2  ;;  %4889 = vpow2.f32 %v4829_v29 }
  0x24   : > { %637 = vst.msk [vmem:[#allocation2 + $0x130] sm:$0x3] %vm600_vm1, %v5052_v1  ;;  %640 = vst.msk [vmem:[#allocation2 + $0x148] sm:$0x3] %vm600_vm1, %v5052_v1  ;;  %v4868_v38 = vpop.eup %4867  ;;  %4891 = vpow2.f32 %v4830_v33  ;;  %v4832_v43 = vmul.f32 -1.442695, %v5327_v34 }
  0x25   : > { %643 = vst.msk [vmem:[#allocation2 + $0x160] sm:$0x3] %vm600_vm1, %v5052_v1  ;;  %646 = vst.msk [vmem:[#allocation2 + $0x178] sm:$0x3] %vm600_vm1, %v5052_v1  ;;  %v5200_v14 = vld [vmem:[#allocation2 + $0x10] sm:$0x3]  ;;  %v4870_v41 = vpop.eup %4869  ;;  %4893 = vpow2.f32 %v4831_v36  ;;  %v5347_v52 = vsel %vm1902_vm3, %v1903_v37, %v1904_v39 }
  0x26   : > { %649 = vst.msk [vmem:[#allocation2 + $0x190] sm:$0x3] %vm600_vm1, %v5052_v1  ;;  %652 = vst.msk [vmem:[#allocation2 + $0x1a8] sm:$0x3] %vm600_vm1, %v5052_v1  ;;  %798 = vrot.lane.b32.xlu1 %v5200_v14, %s5053_s9  ;;  %v5241_v31 = vmul.f32 %v5188_v8, %v5200_v14  ;;  %v5245_v32 = vmul.f32 %v5193_v9, %v5200_v14  ;;  %v278_v1 = vld [vmem:[%s5178_s30 + $0x78] sm:$0xff]  ;;  %960 = vrot.lane.b32.xlu0 %v5200_v14, %s5054_s10  ;;  %v1414_v14 = vrot.slane %v5222_v24, 1  ;;  %v4872_v50 = vpop.eup %4871 }
  0x27   : > { %9315 = vst [vmem:[#allocation3_spill] sm:$0xff] %v5188_v8  ;;  %9316 = vst [vmem:[#allocation4_spill] sm:$0xff] %v5193_v9  ;;  %v317_v23 = vmul.f32 %v5171_v6, %v278_v1  ;;  %v469_v42 = vadd.f32 1.0, %v4868_v38  ;;  %v470_v49 = vadd.f32 1.0, %v4870_v41  ;;  %v282_v18 = vld [vmem:[%s5178_s30 + $0x98] sm:$0xff]  ;;  %v283_v29 = vld [vmem:[%s5178_s30 + $0xa0] sm:$0xff] }
  0x28   : > { %v1417_v26 = vrot.slane %v5241_v31, 1  ;;  %v1906_v40 = vrot.slane %v5245_v32, 2  ;;  %v5339_v25 = vsel %vm1413_vm2, %v1414_v14, %v1415_v30  ;;  %v471_v31 = vadd.f32 1.0, %v4872_v50  ;;  %v279_v32 = vld [vmem:[%s5178_s30 + $0x80] sm:$0xff]  ;;  %v4874_v53 = vpop.eup %4873  ;;  %v284_v37 = vld [vmem:[%s5178_s30 + $0xa8] sm:$0xff]  ;;  %v285_v41 = vld [vmem:[%s5178_s30 + $0xb0] sm:$0xff] }
  0x29   : > { %v5332_v24 = vadd.f32 %v5183_v7, %v317_v23  ;;  %4895 = vrcp.f32 %v469_v42  ;;  %v4876_v57 = vpop.eup %4875  ;;  %v472_v58 = vadd.f32 1.0, %v4874_v53  ;;  %v318_v62 = vmul.f32 %v5171_v6, %v279_v32  ;;  %v286_v53 = vld [vmem:[%s5178_s30 + $0xb8] sm:$0xff] }
  0x2a   : > { %958 = vrot.lane.b32.xlu1 %v5206_v17, %s5054_s10  ;;  %4897 = vrcp.f32 %v470_v49  ;;  %v5344_v51 = vsel %vm1413_vm2, %v1415_v30, %v1417_v26  ;;  %v5350_v54 = vsel %vm1902_vm3, %v1904_v39, %v1906_v40  ;;  %v4878_v59 = vpop.eup %4877  ;;  %v473_v60 = vadd.f32 1.0, %v4876_v57 }
  0x2b   : > { %v4833_v27 = vmul.f32 -1.442695, %v5332_v24  ;;  %4899 = vpow2.f32 %v4832_v43  ;;  %v4880_v0 = vpop.eup %4879  ;;  %v474_v1 = vadd.f32 1.0, %v4878_v59  ;;  %v5360_v36 = vadd.f32 %v5183_v7, %v318_v62 }
  0x2c   : > { %4901 = vrcp.f32 %v471_v31  ;;  %v4882_v11 = vpop.eup %4881  ;;  %v475_v12 = vadd.f32 1.0, %v4880_v0  ;;  %v5364_v26 = vadd.f32 %v5183_v7, %v319_v10  ;;  %v321_v40 = vmul.f32 %v5171_v6, %v282_v18 }
  0x2d   : > { %4903 = vpow2.f32 %v4833_v27  ;;  %v4884_v23 = vpop.eup %4883  ;;  %v476_v14 = vadd.f32 1.0, %v4882_v11  ;;  %v322_v49 = vmul.f32 %v5171_v6, %v283_v29  ;;  %v5370_v31 = vadd.f32 %v5183_v7, %v320_v28 }
  0x2e   : > { %4905 = vrcp.f32 %v472_v58  ;;  %v4886_v30 = vpop.eup %4885  ;;  %v477_v33 = vadd.f32 1.0, %v4884_v23  ;;  %v323_v32 = vmul.f32 %v5171_v6, %v284_v37  ;;  %v4834_v58 = vmul.f32 -1.442695, %v5360_v36 }
  0x2f   : > { %4907 = vrcp.f32 %v473_v60  ;;  %v4888_v38 = vpop.eup %4887  ;;  %v478_v39 = vadd.f32 1.0, %v4886_v30  ;;  %v324_v59 = vmul.f32 %v5171_v6, %v285_v41  ;;  %v4835_v63 = vmul.f32 -1.442695, %v5364_v26 }
  0x30   : > { %4909 = vrcp.f32 %v474_v1  ;;  %v4890_v42 = vpop.eup %4889  ;;  %v479_v43 = vadd.f32 1.0, %v4888_v38  ;;  %v5378_v0 = vadd.f32 %v5183_v7, %v321_v40  ;;  %v287_v1 = vld [vmem:[%s5178_s30 + $0xc0] sm:$0xff]  ;;  %v325_v18 = vmul.f32 %v5171_v6, %v286_v53  ;;  %v288_v38 = vld [vmem:[%s5178_s30 + $0xc8] sm:$0xff] }
  0x31   : > { %4911 = vrcp.f32 %v475_v12  ;;  %v4892_v50 = vpop.eup %4891  ;;  %v480_v27 = vadd.f32 1.0, %v4890_v42  ;;  %v5383_v12 = vadd.f32 %v5183_v7, %v322_v49  ;;  %v4836_v28 = vmul.f32 -1.442695, %v5370_v31 }
  0x32   : > { %4913 = vrcp.f32 %v476_v14  ;;  %v4894_v56 = vpop.eup %4893  ;;  %v481_v57 = vadd.f32 1.0, %v4892_v50  ;;  %v5389_v29 = vadd.f32 %v5183_v7, %v323_v32  ;;  %v326_v37 = vmul.f32 %v5171_v6, %v287_v1 }
  0x33   : > { %4915 = vrcp.f32 %v477_v33  ;;  %v482_v62 = vadd.f32 1.0, %v4894_v56  ;;  %v4837_v40 = vmul.f32 -1.442695, %v5378_v0  ;;  %v5402_v49 = vadd.f32 %v5183_v7, %v325_v18 }
  0x34   : > { %4917 = vrcp.f32 %v478_v39  ;;  %v4839_v32 = vmul.f32 -1.442695, %v5389_v29 }
  0x35   : > { %4919 = vrcp.f32 %v479_v43  ;;  %v4838_v43 = vmul.f32 -1.442695, %v5383_v12 }
  0x36   : > { %v4896_v60 = vpop.eup %4895  ;;  %4921 = vrcp.f32 %v480_v27 }
  0x37   : > { %v4898_v10 = vpop.eup %4897  ;;  %v565_v11 = vmul.f32 %v4896_v60, %v5212_v19  ;;  %4923 = vrcp.f32 %v481_v57  ;;  %v5393_v19 = vadd.f32 %v5183_v7, %v324_v59 }
  0x38   : > { %v4900_v23 = vpop.eup %4899  ;;  %v566_v14 = vmul.f32 %v4898_v10, %v5215_v20  ;;  %4925 = vrcp.f32 %v482_v62 }
  0x39   : > { %v4902_v30 = vpop.eup %4901  ;;  %654 = vst.msk [vmem:[#allocation2 + $0x19] sm:$0xff] %vm597_vm0, %v565_v11  ;;  %v483_v33 = vadd.f32 1.0, %v4900_v23  ;;  %4927 = vpow2.f32 %v4834_v58  ;;  %v4840_v57 = vmul.f32 -1.442695, %v5393_v19  ;;  %v5411_v58 = vadd.f32 %v5183_v7, %v326_v37 }
  0x3a   : > { %v4904_v39 = vpop.eup %4903  ;;  %655 = vst.msk [vmem:[#allocation2 + $0x21] sm:$0xff] %vm597_vm0, %v566_v14  ;;  %v567_v20 = vmul.f32 %v4902_v30, %v5252_v35  ;;  %4929 = vpow2.f32 %v4835_v63  ;;  %v327_v35 = vmul.f32 %v5171_v6, %v288_v38  ;;  %v289_v63 = vld [vmem:[%s5178_s30 + $0xd0] sm:$0xff] }
  0x3b   : > { %v4906_v41 = vpop.eup %4905  ;;  %4931 = vrcp.f32 %v483_v33  ;;  %v484_v42 = vadd.f32 1.0, %v4904_v39  ;;  %v4842_v14 = vmul.f32 -1.442695, %v5411_v58 }
  0x3c   : > { %v4908_v50 = vpop.eup %4907  ;;  %656 = vst.msk [vmem:[#allocation2 + $0x31] sm:$0xff] %vm597_vm0, %v567_v20  ;;  %v568_v27 = vmul.f32 %v4906_v41, %v5265_v44  ;;  %4933 = vpow2.f32 %v4836_v28  ;;  %v328_v28 = vmul.f32 %v5171_v6, %v289_v63 }
  0x3d   : > { %v4910_v53 = vpop.eup %4909  ;;  %v569_v56 = vmul.f32 %v4908_v50, %v5268_v45  ;;  %4935 = vrcp.f32 %v484_v42  ;;  %v4841_v45 = vmul.f32 -1.442695, %v5402_v49 }
  0x3e   : > { %v4912_v59 = vpop.eup %4911  ;;  %657 = vst.msk [vmem:[#allocation2 + $0x39] sm:$0xff] %vm597_vm0, %v568_v27  ;;  %v570_v44 = vmul.f32 %v4910_v53, %v5271_v46  ;;  %4937 = vpow2.f32 %v4837_v40  ;;  %v5424_v46 = vadd.f32 %v5183_v7, %v327_v35  ;;  %v5452_v42 = vadd.f32 %v5183_v7, %v328_v28 }
  0x3f   : > { %v4914_v60 = vpop.eup %4913  ;;  %658 = vst.msk [vmem:[#allocation2 + $0x49] sm:$0xff] %vm597_vm0, %v569_v56  ;;  %v571_v62 = vmul.f32 %v4912_v59, %v5274_v47  ;;  %4939 = vpow2.f32 %v4838_v43 }
  0x40   : > { %v4916_v1 = vpop.eup %4915  ;;  %v5419_v10 = vld [vmem:[#allocation2 + $0x18] sm:$0xff]  ;;  %659 = vst.msk [vmem:[#allocation2 + $0x51] sm:$0xff] %vm597_vm0, %v570_v44  ;;  %v572_v11 = vmul.f32 %v4914_v60, %v5277_v48  ;;  %4941 = vpow2.f32 %v4839_v32  ;;  %v4843_v20 = vmul.f32 -1.442695, %v5424_v46 }
  0x41   : > { %v4918_v18 = vpop.eup %4917  ;;  %v5426_v23 = vld [vmem:[#allocation2 + $0x20] sm:$0xff]  ;;  %800 = vrot.lane.b32.xlu1 %v5419_v10, %s5053_s9  ;;  %660 = vst.msk [vmem:[#allocation2 + $0x61] sm:$0xff] %vm597_vm0, %v571_v62  ;;  %v573_v47 = vmul.f32 %v4916_v1, %v5288_v55  ;;  %4943 = vpow2.f32 %v4840_v57  ;;  %v5436_v30 = vld [vmem:[#allocation2 + $0x28] sm:$0x3]  ;;  %v4844_v57 = vmul.f32 -1.442695, %v5452_v42 }
  0x42   : > { %v4920_v48 = vpop.eup %4919  ;;  %802 = vrot.lane.b32.xlu0 %v5426_v23, %s5053_s9  ;;  %661 = vst.msk [vmem:[#allocation2 + $0x69] sm:$0xff] %vm597_vm0, %v572_v11  ;;  %v574_v38 = vmul.f32 %v4918_v18, %v5296_v61  ;;  %4945 = vpow2.f32 %v4841_v45  ;;  %v290_v44 = vld [vmem:[%s5178_s30 + $0xd8] sm:$0xff] }
  0x43   : > { %v4922_v33 = vpop.eup %4921  ;;  %v5439_v37 = vld [vmem:[#allocation2 + $0x30] sm:$0xff]  ;;  %662 = vst.msk [vmem:[#allocation2 + $0x79] sm:$0xff] %vm597_vm0, %v573_v47  ;;  %v575_v55 = vmul.f32 %v4920_v48, %v5308_v15  ;;  %4947 = vpow2.f32 %v4842_v14  ;;  %v329_v18 = vmul.f32 %v5171_v6, %v290_v44 }
  0x44   : > { %v4924_v39 = vpop.eup %4923  ;;  %663 = vst.msk [vmem:[#allocation2 + $0x81] sm:$0xff] %vm597_vm0, %v574_v38  ;;  %v576_v41 = vmul.f32 %v4922_v33, %v5311_v16  ;;  %4949 = vpow2.f32 %v4843_v20 }
  0x45   : > { %v4926_v40 = vpop.eup %4925  ;;  %804 = vrot.lane.b32.xlu1 %v5436_v30, %s5053_s9  ;;  %664 = vst.msk [vmem:[#allocation2 + $0x91] sm:$0xff] %vm597_vm0, %v575_v55  ;;  %v577_v61 = vmul.f32 %v4924_v39, %v5315_v21  ;;  %v5456_v43 = vld [vmem:[#allocation2 + $0x38] sm:$0xff]  ;;  %v5458_v27 = vld [vmem:[#allocation2 + $0x40] sm:$0x3]  ;;  %v5490_v39 = vadd.f32 %v5183_v7, %v329_v18  ;;  %v1323_v18 = vmul.f32 %v5188_v8, %v5439_v37 }
  0x46   : > { %v4928_v15 = vpop.eup %4927  ;;  %806 = vrot.lane.b32.xlu0 %v5439_v37, %s5053_s9  ;;  %665 = vst.msk [vmem:[#allocation2 + $0x99] sm:$0xff] %vm597_vm0, %v576_v41  ;;  %v578_v16 = vmul.f32 %v4926_v40, %v5318_v22  ;;  %v5470_v22 = vld [vmem:[#allocation2 + $0x48] sm:$0xff] }
  0x47   : > { %v4930_v50 = vpop.eup %4929  ;;  %666 = vst.msk [vmem:[#allocation2 + $0xa9] sm:$0xff] %vm597_vm0, %v577_v61  ;;  %v485_v21 = vadd.f32 1.0, %v4928_v15  ;;  %v5473_v62 = vld [vmem:[#allocation2 + $0x50] sm:$0xff]  ;;  %v5483_v14 = vld [vmem:[#allocation2 + $0x58] sm:$0x3] }
  0x48   : > { %v4932_v32 = vpop.eup %4931  ;;  %v486_v35 = vadd.f32 1.0, %v4930_v50  ;;  %667 = vst.msk [vmem:[#allocation2 + $0xb1] sm:$0xff] %vm597_vm0, %v578_v16  ;;  %v5485_v28 = vld [vmem:[#allocation2 + $0x60] sm:$0xff]  ;;  %v9251_v50 = vsub.s32 4, %v5154_v2  ;;  %v4845_v16 = vmul.f32 -1.442695, %v5490_v39 }
  0x49   : > { %v4934_v53 = vpop.eup %4933  ;;  %808 = vrot.lane.b32.xlu1 %v5456_v43, %s5053_s9  ;;  %v579_v56 = vmul.f32 %v4932_v32, %v5327_v34  ;;  %4951 = vrcp.f32 %v485_v21  ;;  %v5494_v40 = vld [vmem:[#allocation2 + $0x68] sm:$0xff]  ;;  %v5496_v41 = vld [vmem:[#allocation2 + $0x70] sm:$0x3] }
  0x4a   : > { %v4936_v59 = vpop.eup %4935  ;;  %810 = vrot.lane.b32.xlu0 %v5458_v27, %s5053_s9  ;;  %4953 = vrcp.f32 %v486_v35  ;;  %v487_v1 = vadd.f32 1.0, %v4934_v53  ;;  %v5504_v32 = vld [vmem:[#allocation2 + $0x78] sm:$0xff]  ;;  %v5512_v44 = vrot.slane %v5163_v3, %v9251_v50 }
  0x4b   : > { %v4938_v60 = vpop.eup %4937  ;;  %668 = vst.msk [vmem:[#allocation2 + $0xc1] sm:$0xff] %vm597_vm0, %v579_v56  ;;  %v580_v45 = vmul.f32 %v4936_v59, %v5332_v24  ;;  %4955 = vpow2.f32 %v4844_v57  ;;  %v5506_v53 = vld [vmem:[#allocation2 + $0x80] sm:$0xff] }
  0x4c   : > { %v4940_v63 = vpop.eup %4939  ;;  %v488_v11 = vadd.f32 1.0, %v4938_v60  ;;  %4957 = vrcp.f32 %v487_v1  ;;  %9317 = vst [vmem:[#allocation5_spill] sm:$0xff] %v5512_v44  ;;  %v2431_v5 = vmul.f32 %v5512_v44, %v5419_v10 }
  0x4d   : > { %v4942_v34 = vpop.eup %4941  ;;  %812 = vrot.lane.b32.xlu1 %v5470_v22, %s5053_s9  ;;  %669 = vst.msk [vmem:[#allocation2 + $0xc9] sm:$0xff] %vm597_vm0, %v580_v45  ;;  %v489_v24 = vadd.f32 1.0, %v4940_v63  ;;  %v5522_v63 = vld [vmem:[#allocation2 + $0x90] sm:$0xff] }
  0x4e   : > { %v4944_v47 = vpop.eup %4943  ;;  %814 = vrot.lane.b32.xlu0 %v5473_v62, %s5053_s9  ;;  %v490_v48 = vadd.f32 1.0, %v4942_v34  ;;  %4959 = vrcp.f32 %v488_v11  ;;  %v9250_v34 = vsub.s32 5, %v5154_v2  ;;  %v5528_v11 = vmul.f32 %v5188_v8, %v5436_v30 }
  0x4f   : > { %v4946_v33 = vpop.eup %4945  ;;  %v491_v38 = vadd.f32 1.0, %v4944_v47  ;;  %4961 = vrcp.f32 %v489_v24  ;;  %v5540_v47 = vmul.f32 %v5188_v8, %v5456_v43  ;;  %v2527_v4 = vrot.slane %v2431_v5, 1 }
  0x50   : > { %v492_v55 = vadd.f32 1.0, %v4946_v33  ;;  %v4948_v20 = vpop.eup %4947  ;;  %4963 = vrcp.f32 %v490_v48  ;;  %v5545_v48 = vrot.slane %v5163_v3, %v9250_v34  ;;  %v9249_v33 = vsub.s32 7, %v5154_v2 }
  0x51   : > { %816 = vrot.lane.b32.xlu1 %v5483_v14, %s5053_s9  ;;  %v493_v61 = vadd.f32 1.0, %v4948_v20  ;;  %4965 = vrcp.f32 %v491_v38  ;;  %v4950_v15 = vpop.eup %4949  ;;  %v5550_v38 = vld [vmem:[#allocation2 + $0x98] sm:$0xff] }
  0x52   : > { %818 = vrot.lane.b32.xlu0 %v5485_v28, %s5053_s9  ;;  %4967 = vrcp.f32 %v492_v55  ;;  %v494_v35 = vadd.f32 1.0, %v4950_v15  ;;  %9318 = vst [vmem:[#allocation6_spill] sm:$0xff] %v5545_v48 }
  0x53   : > { %4969 = vrcp.f32 %v493_v61  ;;  %v5553_v61 = vld [vmem:[#allocation2 + $0xa0] sm:$0x3] }
  0x54   : > { %4971 = vrcp.f32 %v494_v35  ;;  %v1321_v35 = vmul.f32 %v5188_v8, %v5426_v23 }
  0x55   : > { %820 = vrot.lane.b32.xlu1 %v5494_v40, %s5053_s9  ;;  %4973 = vpow2.f32 %v4845_v16  ;;  %v1424_v16 = vrot.slane %v1323_v18, 1 }
  0x56   : > { %v4952_v21 = vpop.eup %4951  ;;  %822 = vrot.lane.b32.xlu0 %v5496_v41, %s5053_s9 }
  0x57   : > { %v581_v56 = vmul.f32 %v4952_v21, %v5360_v36  ;;  %v4954_v57 = vpop.eup %4953  ;;  %v5520_v36 = vld [vmem:[#allocation2 + $0x88] sm:$0x3]  ;;  %v1425_v21 = vrot.slane %v5540_v47, 1 }
  0x58   : > { %v4956_v59 = vpop.eup %4955  ;;  %v582_v60 = vmul.f32 %v4954_v57, %v5364_v26  ;;  %v5532_v26 = vmul.f32 %v5512_v44, %v5436_v30  ;;  %v5561_v57 = vmul.f32 %v5193_v9, %v5436_v30 }
  0x59   : > { %824 = vrot.lane.b32.xlu1 %v5504_v32, %s5053_s9  ;;  %670 = vst.msk [vmem:[#allocation2 + $0xd9] sm:$0xff] %vm597_vm0, %v581_v56  ;;  %v495_v45 = vadd.f32 1.0, %v4956_v59  ;;  %v4958_v1 = vpop.eup %4957  ;;  %v5572_v59 = vmul.f32 %v5512_v44, %v5426_v23 }
  0x5a   : > { %826 = vrot.lane.b32.xlu0 %v5506_v53, %s5053_s9  ;;  %671 = vst.msk [vmem:[#allocation2 + $0xe1] sm:$0xff] %vm597_vm0, %v582_v60  ;;  %v583_v55 = vmul.f32 %v4958_v1, %v5370_v31  ;;  %v5566_v31 = vrot.slane %v5163_v3, %v9249_v33  ;;  %v2530_v1 = vrot.slane %v5532_v26, 1  ;;  %v1810_v26 = vmul.f32 %v5193_v9, %v5426_v23 }
  0x5b   : > { %4975 = vrcp.f32 %v495_v45  ;;  %v4960_v24 = vpop.eup %4959  ;;  %v1422_v45 = vrot.slane %v5528_v11, 1  ;;  %v2528_v33 = vrot.slane %v5572_v59, 1 }
  0x5c   : > { %v4962_v20 = vpop.eup %4961  ;;  %v584_v15 = vmul.f32 %v4960_v24, %v5378_v0  ;;  %9319 = vst [vmem:[#allocation7_spill] sm:$0xff] %v5566_v31  ;;  %672 = vst.msk [vmem:[#allocation2 + $0xf1] sm:$0xff] %vm597_vm0, %v583_v55  ;;  %v5587_v55 = vld [vmem:[#allocation2 + $0xa8] sm:$0xff] }
  0x5d   : > { %828 = vrot.lane.b32.xlu1 %v5520_v36, %s5053_s9  ;;  %v4964_v56 = vpop.eup %4963  ;;  %v585_v0 = vmul.f32 %v4962_v20, %v5383_v12  ;;  %v5583_v12 = vsel %vm1413_vm2, %v1424_v16, %v1425_v21  ;;  %v1320_v20 = vmul.f32 %v5188_v8, %v5419_v10 }
  0x5e   : > { %830 = vrot.lane.b32.xlu0 %v5522_v63, %s5053_s9  ;;  %v4966_v60 = vpop.eup %4965  ;;  %673 = vst.msk [vmem:[#allocation2 + $0xf9] sm:$0xff] %vm597_vm0, %v584_v15  ;;  %v586_v18 = vmul.f32 %v4964_v56, %v5389_v29  ;;  %v2434_v29 = vmul.f32 %v5512_v44, %v5439_v37  ;;  %v1420_v56 = vrot.slane %v1321_v35, 1 }
  0x5f   : > { %v4968_v24 = vpop.eup %4967  ;;  %674 = vst.msk [vmem:[#allocation2 + $0x109] sm:$0xff] %vm597_vm0, %v585_v0  ;;  %v587_v11 = vmul.f32 %v4966_v60, %v5393_v19  ;;  %v5601_v0 = vmul.f32 %v5512_v44, %v5456_v43  ;;  %v2920_v19 = vmul.f32 %v5545_v48, %v5426_v23 }
  0x60   : > { %v4970_v15 = vpop.eup %4969  ;;  %675 = vst.msk [vmem:[#allocation2 + $0x111] sm:$0xff] %vm597_vm0, %v586_v18  ;;  %v588_v16 = vmul.f32 %v4968_v24, %v5402_v49  ;;  %v2532_v34 = vrot.slane %v2434_v29, 1  ;;  %v3543_v18 = vmul.f32 %v5566_v31, %v5439_v37  ;;  %v1909_v49 = vrot.slane %v1810_v26, 2 }
  0x61   : > { %832 = vrot.lane.b32.xlu1 %v5550_v38, %s5053_s9  ;;  %676 = vst.msk [vmem:[#allocation2 + $0x121] sm:$0xff] %vm597_vm0, %v587_v11  ;;  %v589_v60 = vmul.f32 %v4970_v15, %v5411_v58  ;;  %v4972_v50 = vpop.eup %4971  ;;  %v9254_v35 = vrot.slane %v5601_v0, 1  ;;  %v3016_v24 = vrot.slane %v2920_v19, 2  ;;  %v5616_v11 = vmul.f32 %v5566_v31, %v5456_v43 }
  0x62   : > { %834 = vrot.lane.b32.xlu0 %v5553_v61, %s5053_s9  ;;  %677 = vst.msk [vmem:[#allocation2 + $0x129] sm:$0xff] %vm597_vm0, %v588_v16  ;;  %v4974_v58 = vpop.eup %4973  ;;  %v590_v59 = vmul.f32 %v4972_v50, %v5424_v46  ;;  %v3639_v29 = vrot.slane %v3543_v18, 1  ;;  %v1419_v15 = vrot.slane %v1320_v20, 1  ;;  %v1809_v26 = vmul.f32 %v5193_v9, %v5419_v10 }
  0x63   : > { %678 = vst.msk [vmem:[#allocation2 + $0x139] sm:$0xff] %vm597_vm0, %v589_v60  ;;  %v5627_v16 = vsel %vm1413_vm2, %v2532_v34, %v9254_v35  ;;  %v3640_v19 = vrot.slane %v5616_v11, 1  ;;  %v2919_v60 = vmul.f32 %v5545_v48, %v5419_v10  ;;  %v5639_v20 = vsel %vm1413_vm2, %v1420_v56, %v1422_v45 }
  0x64   : > { %9320 = vst [vmem:[#allocation8_spill] sm:$0xff] %v5627_v16  ;;  %679 = vst.msk [vmem:[#allocation2 + $0x141] sm:$0xff] %vm597_vm0, %v590_v59  ;;  %v5636_v46 = vsel %vm1413_vm2, %v1419_v15, %v1420_v56  ;;  %v1908_v50 = vrot.slane %v1809_v26, 2  ;;  %v5642_v34 = vsel %vm1413_vm2, %v2528_v33, %v2530_v1  ;;  %v496_v35 = vadd.f32 1.0, %v4974_v58  ;;  %v291_v58 = vld [vmem:[%s5178_s30 + $0xe0] sm:$0xff] }
  0x65   : > { %836 = vrot.lane.b32.xlu1 %v5587_v55, %s5053_s9  ;;  %9321 = vst [vmem:[#allocation9_spill] sm:$0xff] %v5636_v46  ;;  %9322 = vst [vmem:[#allocation10_spill] sm:$0xff] %v5639_v20  ;;  %v5647_v11 = vsel %vm1413_vm2, %v3639_v29, %v3640_v19  ;;  %v3015_v59 = vrot.slane %v2919_v60, 2  ;;  %v2921_v15 = vmul.f32 %v5545_v48, %v5436_v30  ;;  %v1911_v56 = vrot.slane %v5561_v57, 2 }
  0x66   : > { %964 = vrot.lane.b32.xlu0 %v5426_v23, %s5054_s10  ;;  %9323 = vst [vmem:[#allocation11_spill] sm:$0xff] %v5642_v34  ;;  %9324 = vst [vmem:[#allocation12_spill] sm:$0xff] %v5647_v11  ;;  %v5654_v45 = vsel %vm1902_vm3, %v1908_v50, %v1909_v49  ;;  %v5659_v26 = vsel %vm1413_vm2, %v2527_v4, %v2528_v33  ;;  %4977 = vrcp.f32 %v496_v35  ;;  %v5682_v35 = vld [vmem:[%s9245_s3 + $0x8] ss:$0 sm:$0xff]  ;;  %v9331_v47 = vrot.slane %v5601_v0, 1  ;;  %v710_v11 = vld [vmem:[#allocation2 + $0xc0] sm:$0xff] }
  0x67   : > { %9325 = vst [vmem:[#allocation13_spill] sm:$0xff] %v5654_v45  ;;  %9326 = vst [vmem:[#allocation14_spill] sm:$0xff] %v5659_v26  ;;  %v5662_v5 = vsel %vm1902_vm3, %v3015_v59, %v3016_v24  ;;  %v330_v29 = vmul.f32 %v5171_v6, %v291_v58  ;;  %v1325_v4 = vmul.f32 %v5188_v8, %v5458_v27  ;;  %v292_v0 = vld [vmem:[%s5178_s30 + $0xe8] sm:$0xff] }
  0x68   : > { %v4976_v18 = vpop.eup %4975  ;;  %9327 = vst [vmem:[#allocation15_spill] sm:$0xff] %v5662_v5  ;;  %v5674_v33 = vsel %vm1902_vm3, %v1909_v49, %v1911_v56  ;;  %v2436_v60 = vmul.f32 %v5512_v44, %v5458_v27  ;;  %v4033_v49 = vmul.f32 %v5682_v35, %v5458_v27  ;;  %v3545_v50 = vmul.f32 %v5566_v31, %v5458_v27 }
  0x69   : > { %962 = vrot.lane.b32.xlu1 %v5419_v10, %s5054_s10  ;;  %v591_v1 = vmul.f32 %v4976_v18, %v5452_v42  ;;  %v3018_v42 = vrot.slane %v2921_v15, 2  ;;  %9328 = vst [vmem:[#allocation16_spill] sm:$0xff] %v5674_v33  ;;  %v5677_v57 = vadd.f32 %v5183_v7, %v330_v29  ;;  %v1427_v59 = vrot.slane %v1325_v4, 1 }
  0x6a   : > { %968 = vrot.lane.b32.xlu0 %v5439_v37, %s5054_s10  ;;  %v2535_v56 = vrot.slane %v2436_v60, 1  ;;  %v3642_v58 = vrot.slane %v3545_v50, 1  ;;  %v4032_v29 = vmul.f32 %v5682_v35, %v5456_v43 }
  0x6b   : > { %680 = vst.msk [vmem:[#allocation2 + $0x151] sm:$0xff] %vm597_vm0, %v591_v1  ;;  %v5696_v18 = vsel %vm1902_vm3, %v3016_v24, %v3018_v42  ;;  %v5703_v15 = vsel %vm1413_vm2, %v1425_v21, %v1427_v59  ;;  %v4130_v1 = vrot.slane %v4033_v49, 2  ;;  %v4031_v24 = vmul.f32 %v5682_v35, %v5439_v37 }
  0x6c   : > { %9329 = vst [vmem:[#allocation17_spill] sm:$0xff] %v5696_v18  ;;  %9330 = vst [vmem:[#allocation18_spill] sm:$0xff] %v5703_v15  ;;  %v5716_v21 = vsel %vm1413_vm2, %v9331_v47, %v2535_v56  ;;  %v5719_v4 = vsel %vm1413_vm2, %v3640_v19, %v3642_v58  ;;  %v4128_v60 = vrot.slane %v4032_v29, 2  ;;  %v1812_v56 = vmul.f32 %v5193_v9, %v5439_v37 }
  0x6d   : > { %966 = vrot.lane.b32.xlu1 %v5436_v30, %s5054_s10  ;;  %v4846_v30 = vmul.f32 -1.442695, %v5677_v57  ;;  %9332 = vst [vmem:[#allocation19_spill] sm:$0xff] %v5716_v21  ;;  %9333 = vst [vmem:[#allocation20_spill] sm:$0xff] %v5719_v4  ;;  %v1179_v29 = vsub.s32 0, %v5154_v2 }
  0x6e   : > { %972 = vrot.lane.b32.xlu0 %v5458_v27, %s5054_s10  ;;  %v5728_v59 = vsel %vm1902_vm3, %v4128_v60, %v4130_v1  ;;  %v331_v1 = vmul.f32 %v5171_v6, %v292_v0  ;;  %v1913_v58 = vrot.slane %v1812_v56, 2  ;;  %v5765_v0 = vld [vmem:[%s9246_s4] sm:$0xff] }
  0x6f   : > { %4979 = vpow2.f32 %v4846_v30  ;;  %v4127_v30 = vrot.slane %v4031_v24, 2  ;;  %9335 = vst [vmem:[#allocation22_spill] sm:$0xff] %v5728_v59  ;;  %v5769_v59 = vrot.slane %v5163_v3, %v1179_v29 }
  0x70   : > { %v5758_v6 = vadd.f32 %v5183_v7, %v331_v1  ;;  %v5779_v1 = vrot.slane %v5765_v0, %v1179_v29 }
  0x71   : > { %970 = vrot.lane.b32.xlu1 %v5456_v43, %s5054_s10  ;;  %v5725_v50 = vsel %vm1902_vm3, %v4127_v30, %v4128_v60  ;;  %v2922_v30 = vmul.f32 %v5545_v48, %v5439_v37  ;;  %v5753_v60 = vmul.f32 %v5545_v48, %v5456_v43  ;;  %9337 = vst [vmem:[#allocation24_spill] sm:$0xff] %v5769_v59 }
  0x72   : > { %976 = vrot.lane.b32.xlu0 %v5473_v62, %s5054_s10  ;;  %9334 = vst [vmem:[#allocation21_spill] sm:$0xff] %v5725_v50  ;;  %9339 = vst [vmem:[#allocation26_spill] sm:$0xff] %v5779_v1  ;;  %v4847_v3 = vmul.f32 -1.442695, %v5758_v6  ;;  %v1182_v4 = vmul.f32 %v5769_v59, %v5206_v17 }
  0x73   : > { %v4978_v42 = vpop.eup %4977  ;;  %v9255_v56 = vrot.slane %v5753_v60, 2 }
  0x74   : > { %v592_v49 = vmul.f32 %v4978_v42, %v5490_v39  ;;  %v1813_v39 = vmul.f32 %v5193_v9, %v5456_v43 }
  0x75   : > { %974 = vrot.lane.b32.xlu1 %v5470_v22, %s5054_s10 }
  0x76   : > { %980 = vrot.lane.b32.xlu0 %v5485_v28, %s5054_s10  ;;  %681 = vst.msk [vmem:[#allocation2 + $0x159] sm:$0xff] %vm597_vm0, %v592_v49  ;;  %v1914_v24 = vrot.slane %v1813_v39, 2  ;;  %v708_v39 = vld [vmem:[#allocation2 + $0xb0] sm:$0xff] }
  0x78   : > { %v5747_v47 = vsel %vm1902_vm3, %v1913_v58, %v1914_v24 }
  0x79   : > { %978 = vrot.lane.b32.xlu1 %v5483_v14, %s5054_s10  ;;  %9336 = vst [vmem:[#allocation23_spill] sm:$0xff] %v5747_v47 }
  0x7a   : > { %984 = vrot.lane.b32.xlu0 %v5496_v41, %s5054_s10 }
  0x7c   : > { %v4980_v19 = vpop.eup %4979 }
  0x7d   : > { %982 = vrot.lane.b32.xlu1 %v5494_v40, %s5054_s10  ;;  %v497_v42 = vadd.f32 1.0, %v4980_v19  ;;  %v3020_v19 = vrot.slane %v2922_v30, 2  ;;  %v9340_v30 = vsub.s32 1, %v5154_v2 }
  0x7e   : > { %988 = vrot.lane.b32.xlu0 %v5506_v53, %s5054_s10 }
  0x7f   : > { %4981 = vrcp.f32 %v497_v42  ;;  %v5774_v7 = vsel %vm1902_vm3, %v3020_v19, %v9255_v56  ;;  %v5784_v50 = vrot.slane %v5765_v0, %v9340_v30  ;;  %v1814_v42 = vmul.f32 %v5193_v9, %v5458_v27  ;;  %v709_v56 = vld [vmem:[#allocation2 + $0xb8] sm:$0x3] }
  0x80   : > { %9338 = vst [vmem:[#allocation25_spill] sm:$0xff] %v5774_v7  ;;  %v9341_v7 = vsub.s32 2, %v5154_v2  ;;  %4983 = vpow2.f32 %v4847_v3 }
  0x81   : > { %986 = vrot.lane.b32.xlu1 %v5504_v32, %s5054_s10  ;;  %v1916_v18 = vrot.slane %v1814_v42, 2 }
  0x82   : > { %992 = vrot.lane.b32.xlu0 %v5522_v63, %s5054_s10  ;;  %v5793_v47 = vrot.slane %v5765_v0, %v9341_v7  ;;  %v1181_v7 = vmul.f32 %v5769_v59, %v5198_v13 }
  0x85   : > { %990 = vrot.lane.b32.xlu1 %v5520_v36, %s5054_s10 }
  0x86   : > { %996 = vrot.lane.b32.xlu0 %v5553_v61, %s5054_s10  ;;  %v795_v49 = vpop.permute.xlu0 %794 }
  0x89   : > { %994 = vrot.lane.b32.xlu1 %v5550_v38, %s5054_s10 }
  0x8a   : > { %838 = vrot.lane.b32.xlu0 %v708_v39, %s5053_s9  ;;  %v797_v19 = vpop.permute.xlu0 %796 }
  0x8d   : > { %998 = vrot.lane.b32.xlu1 %v5587_v55, %s5054_s10 }
  0x8e   : > { %840 = vrot.lane.b32.xlu0 %v709_v56, %s5053_s9  ;;  %v957_v33 = vpop.permute.xlu0 %956 }
  0x8f   : > { %v1119_v17 = vsel %vm1118_vm4, %v795_v49, %v957_v33 }
  0x90   : > { %v1249_v16 = vmul.f32 %v5779_v1, %v1119_v17  ;;  %v1562_v5 = vmul.f32 %v5784_v50, %v1119_v17  ;;  %v2051_v3 = vmul.f32 %v5793_v47, %v1119_v17  ;;  %v4982_v17 = vpop.eup %4981 }
  0x91   : > { %1000 = vrot.lane.b32.xlu1 %v708_v39, %s5054_s10 }
  0x92   : > { %842 = vrot.lane.b32.xlu0 %v710_v11, %s5053_s9  ;;  %v1281_v13 = vadd.f32 %v1249_v16, %v1181_v7  ;;  %v1658_v33 = vrot.slane %v1562_v5, 1  ;;  %v9343_v16 = vsub.s32 3, %v5154_v2 }
  0x94   : > { %v1526_v39 = vadd.f32 %v5339_v25, %v1281_v13  ;;  %v593_v13 = vmul.f32 %v4982_v17, %v5677_v57  ;;  %v713_v57 = vld [vmem:[#allocation2 + $0xd8] sm:$0xff] }
  0x95   : > { %1002 = vrot.lane.b32.xlu1 %v709_v56, %s5054_s10 }
  0x96   : > { %682 = vst.msk [vmem:[#allocation2 + $0x169] sm:$0xff] %vm597_vm0, %v593_v13  ;;  %v5890_v13 = vmul.f32 %v5682_v35, %v5496_v41 }
  0x98   : > { %v799_v58 = vpop.permute.xlu1 %798  ;;  %v961_v49 = vpop.permute.xlu0 %960 }
  0x99   : > { %1004 = vrot.lane.b32.xlu1 %v710_v11, %s5054_s10 }
  0x9c   : > { %v959_v29 = vpop.permute.xlu1 %958 }
  0x9d   : > { %v1120_v30 = vsel %vm1118_vm4, %v797_v19, %v959_v29  ;;  %v2147_v19 = vrot.slane %v2051_v3, 2 }
  0x9e   : > { %v1250_v21 = vmul.f32 %v5779_v1, %v1120_v30  ;;  %v1563_v15 = vmul.f32 %v5784_v50, %v1120_v30  ;;  %v2052_v55 = vmul.f32 %v5793_v47, %v1120_v30  ;;  %v711_v30 = vld [vmem:[#allocation2 + $0xc8] sm:$0xff] }
  0x9f   : > { %844 = vrot.lane.b32.xlu0 %v711_v30, %s5053_s9  ;;  %1006 = vrot.lane.b32.xlu1 %v711_v30, %s5054_s10  ;;  %v715_v30 = vld [vmem:[#allocation2 + $0xe8] sm:$0x3] }
  0xa0   : > { %v1282_v29 = vadd.f32 %v1250_v21, %v1182_v4  ;;  %v1659_v42 = vrot.slane %v1563_v15, 1  ;;  %v5815_v21 = vsel %vm1902_vm3, %v1914_v24, %v1916_v18  ;;  %v2924_v4 = vmul.f32 %v5545_v48, %v5458_v27 }
  0xa1   : > { %9342 = vst [vmem:[#allocation27_spill] sm:$0xff] %v5815_v21  ;;  %v2148_v45 = vrot.slane %v2052_v55, 2  ;;  %v1121_v15 = vsel %vm1118_vm4, %v799_v58, %v961_v49 }
  0xa2   : > { %v1527_v34 = vadd.f32 %v5344_v51, %v1282_v29  ;;  %v5824_v51 = vld [vmem:[%s9245_s3] sm:$0xff]  ;;  %v1660_v27 = vsel %vm1413_vm2, %v1658_v33, %v1659_v42  ;;  %v1564_v18 = vmul.f32 %v5784_v50, %v1121_v15  ;;  %v2053_v24 = vmul.f32 %v5793_v47, %v1121_v15  ;;  %v712_v29 = vld [vmem:[#allocation2 + $0xd0] sm:$0x3] }
  0xa3   : > { %v5829_v5 = vrot.slane %v5824_v51, %v9343_v16  ;;  %v1770_v25 = vadd.f32 %v1660_v27, %v1526_v39  ;;  %v3023_v7 = vrot.slane %v2924_v4, 2  ;;  %v2149_v55 = vsel %vm1902_vm3, %v2147_v19, %v2148_v45  ;;  %v4984_v4 = vpop.eup %4983  ;;  %846 = vrot.lane.b32.xlu0 %v712_v29, %s5053_s9  ;;  %1008 = vrot.lane.b32.xlu1 %v712_v29, %s5054_s10 }
  0xa4   : > { %v1661_v58 = vrot.slane %v1564_v18, 1  ;;  %v2150_v3 = vrot.slane %v2053_v24, 2  ;;  %v498_v27 = vadd.f32 1.0, %v4984_v4  ;;  %v714_v18 = vld [vmem:[#allocation2 + $0xe0] sm:$0xff]  ;;  %v5882_v29 = vmul.f32 %v5193_v9, %v5496_v41 }
  0xa5   : > { %9344 = vst [vmem:[#allocation28_spill] sm:$0xff] %v5829_v5  ;;  %v2015_v49 = vadd.f32 %v5347_v52, %v1770_v25  ;;  %v2295_v33 = vmul.f32 %v5829_v5, %v5419_v10  ;;  %v2296_v17 = vmul.f32 %v5829_v5, %v5426_v23  ;;  %v5872_v25 = vld [vmem:[%s9244_s2] ss:$0 sm:$0xff] }
  0xa6   : > { %v1662_v56 = vsel %vm1413_vm2, %v1659_v42, %v1661_v58  ;;  %v2151_v39 = vsel %vm1902_vm3, %v2148_v45, %v2150_v3  ;;  %v9345_v42 = vrot.slane %v5753_v60, 2  ;;  %4985 = vrcp.f32 %v498_v27  ;;  %v5865_v60 = vld [vmem:[%s9243_s1] ss:$0 sm:$0xff]  ;;  %v716_v3 = vld [vmem:[#allocation2 + $0xf0] sm:$0xff] }
  0xa7   : > { %v1771_v15 = vadd.f32 %v1662_v56, %v1527_v34  ;;  %v2259_v19 = vadd.f32 %v2149_v55, %v2015_v49  ;;  %848 = vrot.lane.b32.xlu0 %v713_v57, %s5053_s9  ;;  %1010 = vrot.lane.b32.xlu1 %v713_v57, %s5054_s10  ;;  %v5886_v55 = vmul.f32 %v5545_v48, %v5496_v41  ;;  %v717_v57 = vld [vmem:[#allocation2 + $0xf8] sm:$0xff] }
  0xa8   : > { %v5852_v11 = vsel %vm1902_vm3, %v9345_v42, %v3023_v7  ;;  %v5894_v49 = vmul.f32 %v5193_v9, %v5553_v61  ;;  %v5903_v56 = vmul.f32 %v5188_v8, %v5496_v41  ;;  %v5920_v42 = vmul.f32 %v5188_v8, %v5553_v61 }
  0xa9   : > { %v2016_v52 = vadd.f32 %v5350_v54, %v1771_v15  ;;  %9346 = vst [vmem:[#allocation29_spill] sm:$0xff] %v5852_v11  ;;  %v5854_v34 = vadd.f32 %v2295_v33, %v2259_v19  ;;  %v293_v54 = vld [vmem:[%s5178_s30 + $0xf0] sm:$0xff]  ;;  %v5898_v33 = vmul.f32 %v5682_v35, %v5553_v61  ;;  %v5907_v15 = vmul.f32 %v5512_v44, %v5496_v41 }
  0xaa   : > { %v332_v24 = vmul.f32 %v5865_v60, %v293_v54  ;;  %9349 = vst [vmem:[#allocation32_spill] sm:$0xff] %v5894_v49  ;;  %v5928_v27 = vmul.f32 %v5545_v48, %v5553_v61  ;;  %v9355_v19 = vsub.s32 3, %v5154_v2  ;;  %v1329_v54 = vmul.f32 %v5188_v8, %v5485_v28 }
  0xab   : > { %9347 = vst [vmem:[#allocation30_spill] sm:$0xff] %v5854_v34  ;;  %v2260_v16 = vadd.f32 %v2151_v39, %v2016_v52  ;;  %850 = vrot.lane.b32.xlu0 %v714_v18, %s5053_s9  ;;  %9350 = vst [vmem:[#allocation33_spill] sm:$0xff] %v5898_v33  ;;  %1012 = vrot.lane.b32.xlu1 %v714_v18, %s5054_s10  ;;  %v5914_v39 = vmul.f32 %v5566_v31, %v5496_v41  ;;  %v3405_v52 = vsub.s32 6, %v5154_v2 }
  0xac   : > { %v5875_v58 = vadd.f32 %v5872_v25, %v332_v24  ;;  %9352 = vst [vmem:[#allocation35_spill] sm:$0xff] %v5928_v27  ;;  %v5933_v18 = vmul.f32 %v5566_v31, %v5553_v61  ;;  %v5944_v4 = vrot.slane %v5765_v0, %v9355_v19  ;;  %v9356_v41 = vsub.s32 4, %v5154_v2 }
  0xad   : > { %v5858_v45 = vadd.f32 %v2296_v17, %v2260_v16  ;;  %v5924_v16 = vmul.f32 %v5512_v44, %v5553_v61  ;;  %v5938_v24 = vrot.slane %v5824_v51, %v3405_v52  ;;  %v5955_v51 = vmul.f32 %v5188_v8, %v5494_v40 }
  0xae   : > { %v4848_v7 = vmul.f32 -1.442695, %v5875_v58  ;;  %9353 = vst [vmem:[#allocation36_spill] sm:$0xff] %v5933_v18  ;;  %v5949_v61 = vrot.slane %v5765_v0, %v9356_v41  ;;  %v9357_v17 = vsub.s32 5, %v5154_v2  ;;  %v5964_v19 = vmul.f32 %v5769_v59, %v5426_v23 }
  0xaf   : > { %9348 = vst [vmem:[#allocation31_spill] sm:$0xff] %v5858_v45  ;;  %852 = vrot.lane.b32.xlu0 %v715_v30, %s5053_s9  ;;  %9351 = vst [vmem:[#allocation34_spill] sm:$0xff] %v5924_v16  ;;  %1014 = vrot.lane.b32.xlu1 %v715_v30, %s5054_s10  ;;  %v718_v30 = vld [vmem:[#allocation2 + $0x100] sm:$0x3]  ;;  %v5968_v41 = vmul.f32 %v5769_v59, %v5439_v37  ;;  %v5972_v33 = vrot.slane %v5765_v0, %v3405_v52  ;;  %v9359_v18 = vsub.s32 7, %v5154_v2 }
  0xb0   : > { %4987 = vpow2.f32 %v4848_v7  ;;  %9354 = vst [vmem:[#allocation37_spill] sm:$0xff] %v5938_v24  ;;  %v5960_v49 = vrot.slane %v5765_v0, %v9357_v17  ;;  %v1327_v17 = vmul.f32 %v5188_v8, %v5473_v62  ;;  %v1328_v23 = vmul.f32 %v5188_v8, %v5483_v14 }
  0xb1   : > { %9358 = vst [vmem:[#allocation38_spill] sm:$0xff] %v5972_v33  ;;  %v5977_v11 = vrot.slane %v5765_v0, %v9359_v18  ;;  %v5990_v52 = vmul.f32 %v5938_v24, %v5439_v37  ;;  %v5994_v2 = vmul.f32 %v5769_v59, %v5419_v10  ;;  %v1326_v0 = vmul.f32 %v5188_v8, %v5470_v22  ;;  %v294_v10 = vld [vmem:[%s5178_s30 + $0xf8] sm:$0xff] }
  0xb2   : > { %v6006_v18 = vmul.f32 %v5769_v59, %v5456_v43  ;;  %v1432_v26 = vrot.slane %v1328_v23, 1  ;;  %v2437_v34 = vmul.f32 %v5512_v44, %v5470_v22  ;;  %v6049_v23 = vmul.f32 %v5769_v59, %v5473_v62 }
  0xb3   : > { %854 = vrot.lane.b32.xlu0 %v716_v3, %s5053_s9  ;;  %v4986_v7 = vpop.eup %4985  ;;  %9360 = vst [vmem:[#allocation39_spill] sm:$0xff] %v5977_v11  ;;  %1016 = vrot.lane.b32.xlu1 %v716_v3, %s5054_s10  ;;  %9362 = vst [vmem:[#allocation41_spill] sm:$0xff] %v5990_v52  ;;  %v6002_v3 = vmul.f32 %v5829_v5, %v5456_v43  ;;  %v6010_v21 = vpop.permute.xlu1 %800  ;;  %v719_v52 = vld [vmem:[#allocation2 + $0x108] sm:$0xff]  ;;  %v333_v11 = vmul.f32 %v5865_v60, %v294_v10  ;;  %v1429_v45 = vrot.slane %v1326_v0, 1  ;;  %v720_v0 = vld [vmem:[#allocation2 + $0x110] sm:$0xff] }
  0xb4   : > { %v594_v27 = vmul.f32 %v4986_v7, %v5758_v6  ;;  %v5986_v6 = vmul.f32 %v5829_v5, %v5439_v37  ;;  %9363 = vst [vmem:[#allocation42_spill] sm:$0xff] %v5994_v2  ;;  %9365 = vst [vmem:[#allocation44_spill] sm:$0xff] %v6006_v18  ;;  %v1434_v37 = vrot.slane %v1329_v54, 1  ;;  %v6019_v33 = vpop.permute.xlu0 %802  ;;  %v6023_v54 = vmul.f32 %v5938_v24, %v5456_v43 }
  0xb5   : > { %9364 = vst [vmem:[#allocation43_spill] sm:$0xff] %v6002_v3  ;;  %v1817_v3 = vmul.f32 %v5193_v9, %v5483_v14  ;;  %v6027_v7 = vmul.f32 %v5769_v59, %v5485_v28  ;;  %v1430_v18 = vrot.slane %v1327_v17, 1  ;;  %v2438_v60 = vmul.f32 %v5512_v44, %v5473_v62  ;;  %9371 = vst [vmem:[#allocation49_spill] sm:$0xff] %v6049_v23 }
  0xb6   : > { %9361 = vst [vmem:[#allocation40_spill] sm:$0xff] %v5986_v6  ;;  %683 = vst.msk [vmem:[#allocation2 + $0x171] sm:$0xff] %vm597_vm0, %v594_v27  ;;  %v1815_v27 = vmul.f32 %v5193_v9, %v5470_v22  ;;  %v1816_v6 = vmul.f32 %v5193_v9, %v5473_v62  ;;  %v6035_v10 = vadd.f32 %v5872_v25, %v333_v11 }
  0xb7   : > { %856 = vrot.lane.b32.xlu0 %v717_v57, %s5053_s9  ;;  %9366 = vst [vmem:[#allocation45_spill] sm:$0xff] %v6023_v54  ;;  %9367 = vst [vmem:[#allocation46_spill] sm:$0xff] %v6027_v7  ;;  %1018 = vrot.lane.b32.xlu1 %v717_v57, %s5054_s10  ;;  %v9368_v54 = vrot.slane %v5955_v51, 1  ;;  %v6045_v57 = vmul.f32 %v5769_v59, %v5470_v22  ;;  %v2439_v11 = vmul.f32 %v5512_v44, %v5483_v14  ;;  %v6053_v25 = vpop.permute.xlu1 %804 }
  0xb8   : > { %9372 = vst [vmem:[#allocation50_spill] sm:$0xff] %v6053_v25  ;;  %v1918_v7 = vrot.slane %v1815_v27, 2  ;;  %v1919_v46 = vrot.slane %v1816_v6, 2  ;;  %v1921_v20 = vrot.slane %v1817_v3, 2  ;;  %v6066_v23 = vsel %vm1413_vm2, %v1430_v18, %v1432_v26 }
  0xb9   : > { %v6041_v17 = vsel %vm1413_vm2, %v1434_v37, %v9368_v54  ;;  %9370 = vst [vmem:[#allocation48_spill] sm:$0xff] %v6045_v57  ;;  %v6055_v37 = vpop.permute.xlu0 %806  ;;  %v6059_v54 = vmul.f32 %v5829_v5, %v5470_v22  ;;  %9375 = vst [vmem:[#allocation53_spill] sm:$0xff] %v6066_v23  ;;  %v4849_v57 = vmul.f32 -1.442695, %v6035_v10  ;;  %v6071_v6 = vsel %vm1413_vm2, %v1429_v45, %v1430_v18 }
  0xba   : > { %9369 = vst [vmem:[#allocation47_spill] sm:$0xff] %v6041_v17  ;;  %v6063_v17 = vmul.f32 %v5938_v24, %v5470_v22  ;;  %9376 = vst [vmem:[#allocation54_spill] sm:$0xff] %v6071_v6  ;;  %v2537_v3 = vrot.slane %v2437_v34, 1  ;;  %v2538_v27 = vrot.slane %v2438_v60, 1  ;;  %v2926_v26 = vmul.f32 %v5545_v48, %v5473_v62 }
  0xbb   : > { %858 = vrot.lane.b32.xlu0 %v718_v30, %s5053_s9  ;;  %9373 = vst [vmem:[#allocation51_spill] sm:$0xff] %v6059_v54  ;;  %1020 = vrot.lane.b32.xlu1 %v718_v30, %s5054_s10  ;;  %v2925_v54 = vmul.f32 %v5545_v48, %v5470_v22  ;;  %v6078_v23 = vpop.permute.xlu1 %808  ;;  %v6081_v30 = vsel %vm1902_vm3, %v1918_v7, %v1919_v46  ;;  %v2545_v25 = vrot.slane %v5907_v15, 1 }
  0xbc   : > { %9374 = vst [vmem:[#allocation52_spill] sm:$0xff] %v6063_v17  ;;  %9377 = vst [vmem:[#allocation55_spill] sm:$0xff] %v6078_v23  ;;  %v721_v17 = vld [vmem:[#allocation2 + $0x118] sm:$0x3]  ;;  %v6084_v34 = vsel %vm1902_vm3, %v1919_v46, %v1921_v20  ;;  %v6088_v45 = vmul.f32 %v5829_v5, %v5473_v62  ;;  %v6096_v60 = vmul.f32 %v5829_v5, %v5485_v28 }
  0xbd   : > { %v4988_v43 = vpop.eup %4987  ;;  %9378 = vst [vmem:[#allocation56_spill] sm:$0xff] %v6081_v30  ;;  %9379 = vst [vmem:[#allocation57_spill] sm:$0xff] %v6084_v34  ;;  %v6092_v18 = vpop.permute.xlu0 %810  ;;  %v3546_v7 = vmul.f32 %v5566_v31, %v5470_v22  ;;  %v3547_v46 = vmul.f32 %v5566_v31, %v5473_v62  ;;  %v3548_v20 = vmul.f32 %v5566_v31, %v5483_v14 }
  0xbe   : > { %v499_v2 = vadd.f32 1.0, %v4988_v43  ;;  %v2540_v43 = vrot.slane %v2439_v11, 1  ;;  %9380 = vst [vmem:[#allocation58_spill] sm:$0xff] %v6088_v45  ;;  %9381 = vst [vmem:[#allocation59_spill] sm:$0xff] %v6092_v18  ;;  %v6110_v11 = vsel %vm1413_vm2, %v2537_v3, %v2538_v27  ;;  %v4034_v34 = vmul.f32 %v5682_v35, %v5470_v22  ;;  %v722_v3 = vld [vmem:[#allocation2 + $0x120] sm:$0xff] }
  0xbf   : > { %860 = vrot.lane.b32.xlu0 %v719_v52, %s5053_s9  ;;  %9382 = vst [vmem:[#allocation60_spill] sm:$0xff] %v6096_v60  ;;  %1022 = vrot.lane.b32.xlu1 %v719_v52, %s5054_s10  ;;  %9384 = vst [vmem:[#allocation62_spill] sm:$0xff] %v6110_v11  ;;  %v4035_v60 = vmul.f32 %v5682_v35, %v5473_v62  ;;  %v3025_v45 = vrot.slane %v2925_v54, 2  ;;  %v3026_v52 = vrot.slane %v2926_v26, 2  ;;  %v3645_v26 = vrot.slane %v3547_v46, 1 }
  0xc0   : > { %4989 = vrcp.f32 %v499_v2  ;;  %v2927_v2 = vmul.f32 %v5545_v48, %v5483_v14  ;;  %v6118_v30 = vsel %vm1413_vm2, %v2538_v27, %v2540_v43  ;;  %v4036_v6 = vmul.f32 %v5682_v35, %v5483_v14 }
  0xc1   : > { %4991 = vpow2.f32 %v4849_v57  ;;  %v6107_v57 = vmul.f32 %v5829_v5, %v5494_v40  ;;  %9385 = vst [vmem:[#allocation63_spill] sm:$0xff] %v6118_v30  ;;  %v6126_v22 = vmul.f32 %v5938_v24, %v5473_v62  ;;  %v2440_v23 = vmul.f32 %v5512_v44, %v5485_v28  ;;  %v6132_v43 = vpop.permute.xlu0 %814 }
  0xc2   : > { %v3028_v11 = vrot.slane %v2927_v2, 2  ;;  %v2441_v27 = vmul.f32 %v5512_v44, %v5494_v40  ;;  %9388 = vst [vmem:[#allocation66_spill] sm:$0xff] %v6132_v43  ;;  %v6136_v54 = vmul.f32 %v5938_v24, %v5485_v28  ;;  %v3644_v14 = vrot.slane %v3546_v7, 1 }
  0xc3   : > { %862 = vrot.lane.b32.xlu0 %v720_v0, %s5053_s9  ;;  %9383 = vst [vmem:[#allocation61_spill] sm:$0xff] %v6107_v57  ;;  %v6122_v57 = vpop.permute.xlu1 %812  ;;  %9387 = vst [vmem:[#allocation65_spill] sm:$0xff] %v6126_v22  ;;  %v3647_v30 = vrot.slane %v3548_v20, 1  ;;  %1024 = vrot.lane.b32.xlu1 %v720_v0, %s5054_s10  ;;  %v4132_v2 = vrot.slane %v4034_v34, 2  ;;  %v4133_v62 = vrot.slane %v4035_v60, 2  ;;  %v3549_v22 = vmul.f32 %v5566_v31, %v5485_v28  ;;  %v723_v60 = vld [vmem:[#allocation2 + $0x128] sm:$0xff] }
  0xc4   : > { %9386 = vst [vmem:[#allocation64_spill] sm:$0xff] %v6122_v57  ;;  %9389 = vst [vmem:[#allocation67_spill] sm:$0xff] %v6136_v54  ;;  %v3550_v57 = vmul.f32 %v5566_v31, %v5494_v40  ;;  %v6145_v43 = vsel %vm1902_vm3, %v3025_v45, %v3026_v52  ;;  %v4135_v18 = vrot.slane %v4036_v6, 2  ;;  %v4037_v7 = vmul.f32 %v5682_v35, %v5485_v28 }
  0xc5   : > { %9390 = vst [vmem:[#allocation68_spill] sm:$0xff] %v6145_v43  ;;  %v4038_v0 = vmul.f32 %v5682_v35, %v5494_v40  ;;  %v1437_v46 = vrot.slane %v5903_v56, 1  ;;  %v2542_v20 = vrot.slane %v2440_v23, 1  ;;  %v2543_v54 = vrot.slane %v2441_v27, 1  ;;  %v6155_v16 = vpop.permute.xlu0 %818 }
  0xc6   : > { %v6158_v45 = vsel %vm1902_vm3, %v3026_v52, %v3028_v11  ;;  %v6162_v6 = vmul.f32 %v5938_v24, %v5494_v40  ;;  %v6165_v43 = vsel %vm1413_vm2, %v3644_v14, %v3645_v26  ;;  %v6172_v56 = vsel %vm1902_vm3, %v4132_v2, %v4133_v62  ;;  %v724_v2 = vld [vmem:[#allocation2 + $0x130] sm:$0x3] }
  0xc7   : > { %864 = vrot.lane.b32.xlu0 %v721_v17, %s5053_s9  ;;  %v6151_v34 = vpop.permute.xlu1 %816  ;;  %9392 = vst [vmem:[#allocation70_spill] sm:$0xff] %v6158_v45  ;;  %1026 = vrot.lane.b32.xlu1 %v721_v17, %s5054_s10  ;;  %v6176_v15 = vmul.f32 %v5769_v59, %v5494_v40  ;;  %v3649_v23 = vrot.slane %v3549_v22, 1  ;;  %v3650_v11 = vrot.slane %v3550_v57, 1  ;;  %v6180_v27 = vsel %vm1902_vm3, %v4133_v62, %v4135_v18 }
  0xc8   : > { %9391 = vst [vmem:[#allocation69_spill] sm:$0xff] %v6151_v34  ;;  %9393 = vst [vmem:[#allocation71_spill] sm:$0xff] %v6162_v6  ;;  %v6168_v34 = vsel %vm1413_vm2, %v3645_v26, %v3647_v30  ;;  %v3652_v30 = vrot.slane %v5914_v39, 1  ;;  %v4137_v14 = vrot.slane %v4037_v7, 2  ;;  %v4138_v26 = vrot.slane %v4038_v0, 2 }
  0xc9   : > { %9394 = vst [vmem:[#allocation72_spill] sm:$0xff] %v6176_v15  ;;  %v9395_v45 = vrot.slane %v5955_v51, 1  ;;  %v6191_v57 = vsel %vm1413_vm2, %v2542_v20, %v2543_v54  ;;  %v6194_v22 = vsel %vm1413_vm2, %v2543_v54, %v2545_v25  ;;  %v6197_v39 = vpop.permute.xlu0 %822  ;;  %v1335_v62 = vmul.f32 %v5188_v8, %v5522_v63 }
  0xca   : > { %9396 = vst [vmem:[#allocation73_spill] sm:$0xff] %v6194_v22  ;;  %v6203_v7 = vmul.f32 %v5188_v8, %v5550_v38  ;;  %v1818_v51 = vmul.f32 %v5193_v9, %v5485_v28  ;;  %v1819_v0 = vmul.f32 %v5193_v9, %v5494_v40  ;;  %v6211_v25 = vsel %vm1413_vm2, %v3649_v23, %v3650_v11 }
  0xcb   : > { %866 = vrot.lane.b32.xlu0 %v722_v3, %s5053_s9  ;;  %v6183_v6 = vpop.permute.xlu1 %820  ;;  %v6188_v15 = vsel %vm1413_vm2, %v9395_v45, %v1437_v46  ;;  %1028 = vrot.lane.b32.xlu1 %v722_v3, %s5054_s10  ;;  %9397 = vst [vmem:[#allocation74_spill] sm:$0xff] %v6211_v25  ;;  %v6217_v54 = vmul.f32 %v5545_v48, %v5494_v40  ;;  %v725_v40 = vld [vmem:[#allocation2 + $0x138] sm:$0xff] }
  0xcc   : > { %v6222_v20 = vsel %vm1413_vm2, %v3650_v11, %v3652_v30  ;;  %v6225_v3 = vsel %vm1902_vm3, %v4137_v14, %v4138_v26  ;;  %v1333_v45 = vmul.f32 %v5188_v8, %v5506_v53  ;;  %v1822_v11 = vmul.f32 %v5193_v9, %v5506_v53 }
  0xcd   : > { %v4990_v52 = vpop.eup %4989  ;;  %9398 = vst [vmem:[#allocation75_spill] sm:$0xff] %v6222_v20  ;;  %9399 = vst [vmem:[#allocation76_spill] sm:$0xff] %v6225_v3  ;;  %v6239_v30 = vpop.permute.xlu0 %826  ;;  %v1444_v14 = vrot.slane %v1335_v62, 1  ;;  %v1923_v3 = vrot.slane %v1818_v51, 2  ;;  %v1924_v20 = vrot.slane %v1819_v0, 2  ;;  %v3031_v25 = vrot.slane %v6217_v54, 2 }
  0xce   : > { %v4992_v17 = vpop.eup %4991  ;;  %v595_v18 = vmul.f32 %v4990_v52, %v5875_v58  ;;  %v2928_v58 = vmul.f32 %v5545_v48, %v5485_v28  ;;  %v1334_v28 = vmul.f32 %v5188_v8, %v5520_v36  ;;  %v1332_v52 = vmul.f32 %v5188_v8, %v5504_v32  ;;  %9401 = vst [vmem:[#allocation78_spill] sm:$0xff] %v6239_v30 }
  0xcf   : > { %868 = vrot.lane.b32.xlu0 %v723_v60, %s5053_s9  ;;  %v500_v46 = vadd.f32 1.0, %v4992_v17  ;;  %v6231_v23 = vpop.permute.xlu1 %824  ;;  %v1821_v17 = vmul.f32 %v5193_v9, %v5504_v32  ;;  %1030 = vrot.lane.b32.xlu1 %v723_v60, %s5054_s10  ;;  %v1440_v62 = vrot.slane %v1333_v45, 1  ;;  %v2443_v51 = vmul.f32 %v5512_v44, %v5504_v32 }
  0xd0   : > { %684 = vst.msk [vmem:[#allocation2 + $0x181] sm:$0xff] %vm597_vm0, %v595_v18  ;;  %9400 = vst [vmem:[#allocation77_spill] sm:$0xff] %v6231_v23  ;;  %v9402_v23 = vrot.slane %v5890_v13, 2  ;;  %v3030_v22 = vrot.slane %v2928_v58, 2  ;;  %v1442_v30 = vrot.slane %v1334_v28, 1  ;;  %v6256_v60 = vmul.f32 %v5512_v44, %v5506_v53 }
  0xd1   : > { %4993 = vrcp.f32 %v500_v46  ;;  %v1823_v46 = vmul.f32 %v5193_v9, %v5520_v36  ;;  %v6262_v0 = vmul.f32 %v5769_v59, %v5522_v63  ;;  %v1439_v58 = vrot.slane %v1332_v52, 1  ;;  %v6264_v18 = vpop.permute.xlu0 %830 }
  0xd2   : > { %v6246_v8 = vsel %vm1902_vm3, %v4138_v26, %v9402_v23  ;;  %v726_v26 = vld [vmem:[#allocation2 + $0x140] sm:$0xff]  ;;  %v1928_v54 = vrot.slane %v1821_v17, 2  ;;  %v1929_v23 = vrot.slane %v1822_v11, 2  ;;  %v9406_v45 = vrot.slane %v6203_v7, 1 }
  0xd3   : > { %870 = vrot.lane.b32.xlu0 %v724_v2, %s5053_s9  ;;  %9403 = vst [vmem:[#allocation79_spill] sm:$0xff] %v6246_v8  ;;  %v6258_v13 = vpop.permute.xlu1 %828  ;;  %9405 = vst [vmem:[#allocation81_spill] sm:$0xff] %v6262_v0  ;;  %v6273_v9 = vmul.f32 %v5769_v59, %v5504_v32  ;;  %v6280_v0 = vmul.f32 %v5829_v5, %v5504_v32  ;;  %1032 = vrot.lane.b32.xlu1 %v724_v2, %s5054_s10 }
  0xd4   : > { %9404 = vst [vmem:[#allocation80_spill] sm:$0xff] %v6258_v13  ;;  %v6269_v28 = vsel %vm1413_vm2, %v1444_v14, %v9406_v45  ;;  %v6276_v13 = vsel %vm1902_vm3, %v1923_v3, %v1924_v20  ;;  %v6284_v52 = vsel %vm1902_vm3, %v3030_v22, %v3031_v25  ;;  %v6288_v17 = vmul.f32 %v5938_v24, %v5504_v32 }
  0xd5   : > { %9407 = vst [vmem:[#allocation82_spill] sm:$0xff] %v6269_v28  ;;  %9408 = vst [vmem:[#allocation83_spill] sm:$0xff] %v6273_v9  ;;  %v6292_v11 = vmul.f32 %v5769_v59, %v5506_v53  ;;  %v1931_v14 = vrot.slane %v1823_v46, 2  ;;  %v6296_v3 = vsel %vm1413_vm2, %v1440_v62, %v1442_v30  ;;  %v2445_v2 = vmul.f32 %v5512_v44, %v5520_v36  ;;  %v9491_v28 = vld [vmem:[#allocation49_spill] sm:$0xff] }
  0xd6   : > { %9409 = vst [vmem:[#allocation84_spill] sm:$0xff] %v6276_v13  ;;  %9410 = vst [vmem:[#allocation85_spill] sm:$0xff] %v6280_v0  ;;  %v2547_v45 = vrot.slane %v2443_v51, 1  ;;  %v2548_v22 = vrot.slane %v6256_v60, 1  ;;  %v727_v0 = vld [vmem:[#allocation2 + $0x148] sm:$0x3]  ;;  %v6312_v30 = vsel %vm1902_vm3, %v1928_v54, %v1929_v23  ;;  %v6316_v51 = vpop.permute.xlu0 %834  ;;  %v2932_v60 = vmul.f32 %v5545_v48, %v5506_v53 }
  0xd7   : > { %872 = vrot.lane.b32.xlu0 %v725_v40, %s5053_s9  ;;  %9411 = vst [vmem:[#allocation86_spill] sm:$0xff] %v6284_v52  ;;  %9412 = vst [vmem:[#allocation87_spill] sm:$0xff] %v6288_v17  ;;  %v6301_v9 = vpop.permute.xlu1 %832  ;;  %v6304_v17 = vsel %vm1413_vm2, %v1439_v58, %v1440_v62  ;;  %v2933_v62 = vmul.f32 %v5545_v48, %v5520_v36  ;;  %1034 = vrot.lane.b32.xlu1 %v725_v40, %s5054_s10  ;;  %v2550_v40 = vrot.slane %v2445_v2, 1 }
  0xd8   : > { %9413 = vst [vmem:[#allocation88_spill] sm:$0xff] %v6292_v11  ;;  %9414 = vst [vmem:[#allocation89_spill] sm:$0xff] %v6296_v3  ;;  %v9417_v11 = vrot.slane %v5882_v29, 2  ;;  %v2931_v3 = vmul.f32 %v5545_v48, %v5504_v32  ;;  %v3552_v29 = vmul.f32 %v5566_v31, %v5504_v32  ;;  %v6328_v58 = vsel %vm1902_vm3, %v1929_v23, %v1931_v14 }
  0xd9   : > { %9415 = vst [vmem:[#allocation90_spill] sm:$0xff] %v6301_v9  ;;  %9416 = vst [vmem:[#allocation91_spill] sm:$0xff] %v6304_v17  ;;  %v6332_v54 = vmul.f32 %v5829_v5, %v5506_v53  ;;  %v6340_v48 = vmul.f32 %v5829_v5, %v5550_v38  ;;  %v6344_v9 = vsel %vm1413_vm2, %v2547_v45, %v2548_v22  ;;  %v9426_v23 = vrot.slane %v5886_v55, 2 }
  0xda   : > { %v6309_v46 = vsel %vm1902_vm3, %v1924_v20, %v9417_v11  ;;  %9419 = vst [vmem:[#allocation93_spill] sm:$0xff] %v6312_v30  ;;  %9420 = vst [vmem:[#allocation94_spill] sm:$0xff] %v6316_v51  ;;  %v3553_v20 = vmul.f32 %v5566_v31, %v5506_v53  ;;  %v6336_v11 = vmul.f32 %v5829_v5, %v5522_v63 }
  0xdb   : > { %874 = vrot.lane.b32.xlu0 %v726_v26, %s5053_s9  ;;  %9418 = vst [vmem:[#allocation92_spill] sm:$0xff] %v6309_v46  ;;  %9421 = vst [vmem:[#allocation95_spill] sm:$0xff] %v6328_v58  ;;  %v6349_v14 = vsel %vm1902_vm3, %v3031_v25, %v9426_v23  ;;  %v3554_v58 = vmul.f32 %v5566_v31, %v5520_v36  ;;  %v6353_v30 = vpop.permute.xlu1 %836  ;;  %v4040_v5 = vmul.f32 %v5682_v35, %v5504_v32  ;;  %v9455_v31 = vld [vmem:[#allocation11_spill] sm:$0xff] }
  0xdc   : > { %9422 = vst [vmem:[#allocation96_spill] sm:$0xff] %v6332_v54  ;;  %9423 = vst [vmem:[#allocation97_spill] sm:$0xff] %v6336_v11  ;;  %v728_v11 = vld [vmem:[#allocation2 + $0x150] sm:$0xff]  ;;  %v3035_v54 = vrot.slane %v2931_v3, 2  ;;  %v4041_v45 = vmul.f32 %v5682_v35, %v5506_v53  ;;  %v4042_v2 = vmul.f32 %v5682_v35, %v5520_v36  ;;  %v3036_v25 = vrot.slane %v2932_v60, 2  ;;  %1036 = vrot.lane.b32.xlu1 %v726_v26, %s5054_s10  ;;  %v4998_v3 = vld [vmem:[#allocation2 + $0x80] sm:$0xff] }
  0xdd   : > { %9424 = vst [vmem:[#allocation98_spill] sm:$0xff] %v6340_v48  ;;  %9425 = vst [vmem:[#allocation99_spill] sm:$0xff] %v6344_v9  ;;  %v965_v48 = vpop.permute.xlu0 %964  ;;  %v3038_v23 = vrot.slane %v2933_v62, 2  ;;  %v3654_v9 = vrot.slane %v3552_v29, 1  ;;  %v2446_v32 = vmul.f32 %v5512_v44, %v5522_v63  ;;  %v6368_v53 = vmul.f32 %v5512_v44, %v5550_v38  ;;  %v729_v62 = vld [vmem:[#allocation2 + $0x158] sm:$0xff] }
  0xde   : > { %9427 = vst [vmem:[#allocation100_spill] sm:$0xff] %v6349_v14  ;;  %9428 = vst [vmem:[#allocation101_spill] sm:$0xff] %v6353_v30  ;;  %v4994_v55 = vpop.eup %4993  ;;  %v3655_v14 = vrot.slane %v3553_v20, 1  ;;  %v1123_v30 = vsel %vm1118_vm4, %v6019_v33, %v965_v48  ;;  %v6373_v35 = vsel %vm1413_vm2, %v2548_v22, %v2550_v40  ;;  %v6376_v60 = vmul.f32 %v4998_v3, %v5938_v24 }
  0xdf   : > { %876 = vrot.lane.b32.xlu0 %v727_v0, %s5053_s9  ;;  %9429 = vst [vmem:[#allocation102_spill] sm:$0xff] %v6368_v53  ;;  %v596_v36 = vmul.f32 %v4994_v55, %v6035_v10  ;;  %9430 = vst [vmem:[#allocation103_spill] sm:$0xff] %v6373_v35  ;;  %v6380_v48 = vmul.f32 %v5938_v24, %v5522_v63  ;;  %v3657_v33 = vrot.slane %v3554_v58, 1  ;;  %v963_v26 = vpop.permute.xlu1 %962  ;;  %v4142_v29 = vrot.slane %v4040_v5, 2 }
  0xe0   : > { %9431 = vst [vmem:[#allocation104_spill] sm:$0xff] %v6376_v60  ;;  %v4143_v20 = vrot.slane %v4041_v45, 2  ;;  %v4145_v44 = vrot.slane %v4042_v2, 2  ;;  %v1447_v10 = vrot.slane %v5920_v42, 1  ;;  %v1252_v22 = vmul.f32 %v5779_v1, %v1123_v30  ;;  %1038 = vrot.lane.b32.xlu1 %v727_v0, %s5054_s10 }
  0xe1   : > { %9432 = vst [vmem:[#allocation105_spill] sm:$0xff] %v6380_v48  ;;  %685 = vst.msk [vmem:[#allocation2 + $0x189] sm:$0xff] %vm597_vm0, %v596_v36  ;;  %v969_v40 = vpop.permute.xlu0 %968  ;;  %v6386_v55 = vsel %vm1902_vm3, %v3035_v54, %v3036_v25  ;;  %v6389_v3 = vsel %vm1902_vm3, %v3036_v25, %v3038_v23  ;;  %v6393_v63 = vmul.f32 %v5938_v24, %v5550_v38  ;;  %v2552_v58 = vrot.slane %v2446_v32, 1  ;;  %v730_v25 = vld [vmem:[#allocation2 + $0x160] sm:$0x3] }
  0xe2   : > { %9433 = vst [vmem:[#allocation106_spill] sm:$0xff] %v6386_v55  ;;  %9434 = vst [vmem:[#allocation107_spill] sm:$0xff] %v6389_v3  ;;  %v6397_v5 = vsel %vm1118_vm4, %v6055_v37, %v969_v40  ;;  %v6401_v42 = vsel %vm1413_vm2, %v3654_v9, %v3655_v14  ;;  %v9272_v54 = vrot.slane %v6368_v53, 1  ;;  %v1122_v2 = vsel %vm1118_vm4, %v6010_v21, %v963_v26  ;;  %v4999_v37 = vld [vmem:[#allocation2 + $0x98] sm:$0xff]  ;;  %v9456_v3 = vld [vmem:[#allocation50_spill] sm:$0xff] }
  0xe3   : > { %878 = vrot.lane.b32.xlu0 %v728_v11, %s5053_s9  ;;  %9435 = vst [vmem:[#allocation108_spill] sm:$0xff] %v6393_v63  ;;  %9436 = vst [vmem:[#allocation109_spill] sm:$0xff] %v6401_v42  ;;  %v1253_v45 = vmul.f32 %v5779_v1, %v6397_v5  ;;  %v6410_v38 = vsel %vm1413_vm2, %v3655_v14, %v3657_v33  ;;  %v6413_v0 = vmul.f32 %v4999_v37, %v5769_v59  ;;  %v9446_v59 = vld [vmem:[#allocation10_spill] sm:$0xff]  ;;  %v9461_v42 = vld [vmem:[#allocation41_spill] sm:$0xff] }
  0xe4   : > { %9437 = vst [vmem:[#allocation110_spill] sm:$0xff] %v6410_v38  ;;  %v6416_v9 = vmul.f32 %v5784_v50, %v1123_v30  ;;  %v6419_v23 = vsel %vm1902_vm3, %v4142_v29, %v4143_v20  ;;  %v6422_v32 = vsel %vm1902_vm3, %v4143_v20, %v4145_v44  ;;  %v9441_v21 = vrot.slane %v6203_v7, 1  ;;  %1040 = vrot.lane.b32.xlu1 %v728_v11, %s5054_s10 }
  0xe5   : > { %9438 = vst [vmem:[#allocation111_spill] sm:$0xff] %v6413_v0  ;;  %9439 = vst [vmem:[#allocation112_spill] sm:$0xff] %v6419_v23  ;;  %v1284_v14 = vadd.f32 %v1252_v22, %v5964_v19  ;;  %v6431_v33 = vmul.f32 %v5793_v47, %v1123_v30  ;;  %v2364_v26 = vmul.f32 %v5944_v4, %v1123_v30  ;;  %v9447_v22 = vld [vmem:[#allocation9_spill] sm:$0xff]  ;;  %v9449_v0 = vld [vmem:[#allocation31_spill] sm:$0xff] }
  0xe6   : > { %9440 = vst [vmem:[#allocation113_spill] sm:$0xff] %v6422_v32  ;;  %v6427_v36 = vsel %vm1413_vm2, %v9441_v21, %v1447_v10  ;;  %v1285_v40 = vadd.f32 %v1253_v45, %v5968_v41  ;;  %v6436_v29 = vmul.f32 %v5949_v61, %v1123_v30  ;;  %v6439_v44 = vmul.f32 %v5960_v49, %v1123_v30  ;;  %v9445_v45 = vld [vmem:[#allocation42_spill] sm:$0xff] }
  0xe7   : > { %880 = vrot.lane.b32.xlu0 %v729_v62, %s5053_s9  ;;  %9442 = vst [vmem:[#allocation114_spill] sm:$0xff] %v6427_v36  ;;  %v1251_v7 = vmul.f32 %v5779_v1, %v1122_v2  ;;  %v6446_v19 = vsel %vm1413_vm2, %v2552_v58, %v9272_v54  ;;  %v1565_v41 = vmul.f32 %v5784_v50, %v1122_v2  ;;  %v731_v54 = vld [vmem:[#allocation2 + $0x168] sm:$0xff]  ;;  %v9454_v63 = vrot.slane %v6431_v33, 2 }
  0xe8   : > { %9443 = vst [vmem:[#allocation115_spill] sm:$0xff] %v6446_v19  ;;  %v6449_v20 = vadd.f32 %v5583_v12, %v1285_v40  ;;  %v2054_v10 = vmul.f32 %v5793_v47, %v1122_v2  ;;  %v2363_v11 = vmul.f32 %v5944_v4, %v1122_v2  ;;  %v2675_v21 = vmul.f32 %v5949_v61, %v1122_v2 }
  0xe9   : > { %v1283_v37 = vadd.f32 %v1251_v7, %v9445_v45  ;;  %v3163_v58 = vmul.f32 %v5960_v49, %v1122_v2  ;;  %v1664_v12 = vrot.slane %v6416_v9, 1  ;;  %v1663_v24 = vrot.slane %v1565_v41, 1  ;;  %v9448_v7 = vld [vmem:[#allocation30_spill] sm:$0xff]  ;;  %1042 = vrot.lane.b32.xlu1 %v729_v62, %s5054_s10  ;;  %v967_v41 = vpop.permute.xlu1 %966 }
  0xea   : > { %v6462_v36 = vadd.f32 %v9446_v59, %v1284_v14  ;;  %v2772_v19 = vrot.slane %v6436_v29, 1  ;;  %v2395_v45 = vadd.f32 %v2363_v11, %v9448_v7  ;;  %v2771_v30 = vrot.slane %v2675_v21, 1  ;;  %v9450_v14 = vld [vmem:[#allocation14_spill] sm:$0xff]  ;;  %v732_v11 = vld [vmem:[#allocation2 + $0x170] sm:$0xff] }
  0xeb   : > { %882 = vrot.lane.b32.xlu0 %v730_v25, %s5053_s9  ;;  %v1528_v53 = vadd.f32 %v9447_v22, %v1283_v37  ;;  %v2396_v2 = vadd.f32 %v2364_v26, %v9449_v0  ;;  %v1665_v9 = vsel %vm1413_vm2, %v1663_v24, %v1664_v12  ;;  %v2152_v40 = vrot.slane %v2054_v10, 2  ;;  %v973_v26 = vpop.permute.xlu0 %972 }
  0xec   : > { %v2639_v29 = vadd.f32 %v9450_v14, %v2395_v45  ;;  %v2773_v22 = vsel %vm1413_vm2, %v2771_v30, %v2772_v19  ;;  %v3259_v37 = vrot.slane %v3163_v58, 2  ;;  %v6476_v62 = vmul.f32 %v5784_v50, %v6397_v5  ;;  %v9451_v30 = vld [vmem:[#allocation38_spill] sm:$0xff]  ;;  %v9452_v58 = vld [vmem:[#allocation13_spill] sm:$0xff] }
  0xed   : > { %v1772_v59 = vadd.f32 %v1665_v9, %v1528_v53  ;;  %v6480_v0 = vmul.f32 %v5793_v47, %v6397_v5  ;;  %v2365_v24 = vmul.f32 %v5944_v4, %v6397_v5  ;;  %v6486_v53 = vmul.f32 %v5949_v61, %v6397_v5  ;;  %1044 = vrot.lane.b32.xlu1 %v730_v25, %s5054_s10  ;;  %v9453_v9 = vld [vmem:[#allocation39_spill] sm:$0xff] }
  0xee   : > { %v6490_v10 = vmul.f32 %v5960_v49, %v6397_v5  ;;  %v3475_v21 = vmul.f32 %v9451_v30, %v6397_v5  ;;  %v2883_v45 = vadd.f32 %v2773_v22, %v2639_v29  ;;  %v6498_v14 = vmul.f32 %v9453_v9, %v6397_v5  ;;  %v9457_v29 = vld [vmem:[#allocation15_spill] sm:$0xff] }
  0xef   : > { %884 = vrot.lane.b32.xlu0 %v731_v54, %s5053_s9  ;;  %v2017_v7 = vadd.f32 %v9452_v58, %v1772_v59  ;;  %v2154_v48 = vsel %vm1902_vm3, %v2152_v40, %v9454_v63  ;;  %v2640_v32 = vadd.f32 %v9455_v31, %v2396_v2  ;;  %v1124_v38 = vsel %vm1118_vm4, %v9456_v3, %v967_v41  ;;  %v6510_v59 = vld [vmem:[%s9246_s4 + $0x8] ss:$0 sm:$0xff]  ;;  %v9459_v63 = vld [vmem:[#allocation59_spill] sm:$0xff]  ;;  %v733_v40 = vld [vmem:[#allocation2 + $0x178] sm:$0x3] }
  0xf0   : > { %v3127_v22 = vadd.f32 %v9457_v29, %v2883_v45  ;;  %v9458_v58 = vrot.slane %v6439_v44, 2  ;;  %v6518_v31 = vsel %vm1118_vm4, %v9459_v63, %v973_v26  ;;  %v1567_v3 = vmul.f32 %v5784_v50, %v1124_v38  ;;  %v9460_v29 = vld [vmem:[#allocation40_spill] sm:$0xff] }
  0xf1   : > { %v2261_v25 = vadd.f32 %v2154_v48, %v2017_v7  ;;  %v2056_v2 = vmul.f32 %v5793_v47, %v1124_v38  ;;  %v2677_v41 = vmul.f32 %v5949_v61, %v1124_v38  ;;  %v3165_v23 = vmul.f32 %v5960_v49, %v1124_v38  ;;  %v971_v48 = vpop.permute.xlu1 %970  ;;  %1046 = vrot.lane.b32.xlu1 %v731_v54, %s5054_s10 }
  0xf2   : > { %v3261_v35 = vsel %vm1902_vm3, %v3259_v37, %v9458_v58  ;;  %v1668_v7 = vrot.slane %v6476_v62, 1  ;;  %v6531_v63 = vmul.f32 %v6510_v59, %v6397_v5  ;;  %v1666_v55 = vrot.slane %v1567_v3, 1 }
  0xf3   : > { %886 = vrot.lane.b32.xlu0 %v732_v11, %s5053_s9  ;;  %v2329_v37 = vadd.f32 %v9460_v29, %v2261_v25  ;;  %v3371_v58 = vadd.f32 %v3261_v35, %v3127_v22  ;;  %v2774_v60 = vrot.slane %v2677_v41, 1  ;;  %v6537_v45 = vmul.f32 %v5784_v50, %v6518_v31  ;;  %v9462_v35 = vld [vmem:[#allocation55_spill] sm:$0xff]  ;;  %v734_v25 = vld [vmem:[#allocation2 + $0x180] sm:$0xff]  ;;  %v9463_v41 = vld [vmem:[#allocation8_spill] sm:$0xff] }
  0xf4   : > { %v1126_v54 = vsel %vm1118_vm4, %v9462_v35, %v971_v48  ;;  %v1667_v22 = vsel %vm1413_vm2, %v1664_v12, %v1666_v55  ;;  %v2155_v29 = vrot.slane %v2056_v2, 2  ;;  %v3262_v3 = vrot.slane %v3165_v23, 2  ;;  %v9464_v23 = vld [vmem:[#allocation12_spill] sm:$0xff] }
  0xf5   : > { %v2397_v38 = vadd.f32 %v2365_v24, %v2329_v37  ;;  %v3439_v62 = vadd.f32 %v9461_v42, %v3371_v58  ;;  %v2775_v5 = vsel %vm1413_vm2, %v2772_v19, %v2774_v60  ;;  %v1773_v42 = vadd.f32 %v1667_v22, %v6462_v36  ;;  %1048 = vrot.lane.b32.xlu1 %v732_v11, %s5054_s10  ;;  %v9465_v12 = vld [vmem:[#allocation16_spill] sm:$0xff]  ;;  %v735_v11 = vld [vmem:[#allocation2 + $0x188] sm:$0xff] }
  0xf6   : > { %v2884_v37 = vadd.f32 %v2775_v5, %v2640_v32  ;;  %v3883_v48 = vrot.slane %v6498_v14, 1  ;;  %v1254_v35 = vmul.f32 %v5779_v1, %v1126_v54  ;;  %v6552_v55 = vmul.f32 %v5784_v50, %v1126_v54  ;;  %v9466_v32 = vld [vmem:[#allocation17_spill] sm:$0xff]  ;;  %v9469_v22 = vld [vmem:[#allocation44_spill] sm:$0xff] }
  0xf7   : > { %888 = vrot.lane.b32.xlu0 %v733_v40, %s5053_s9  ;;  %v6544_v26 = vadd.f32 %v9463_v41, %v2397_v38  ;;  %v3507_v24 = vadd.f32 %v3475_v21, %v3439_v62  ;;  %v2018_v36 = vadd.f32 %v9465_v12, %v1773_v42  ;;  %v9467_v2 = vrot.slane %v6431_v33, 2 }
  0xf8   : > { %v3128_v21 = vadd.f32 %v9466_v32, %v2884_v37  ;;  %v9468_v38 = vrot.slane %v6439_v44, 2  ;;  %v1286_v5 = vadd.f32 %v1254_v35, %v9469_v22  ;;  %v1669_v41 = vrot.slane %v6552_v55, 1  ;;  %v9470_v44 = vld [vmem:[#allocation18_spill] sm:$0xff] }
  0xf9   : > { %v3751_v19 = vadd.f32 %v9464_v23, %v3507_v24  ;;  %v2156_v14 = vsel %vm1902_vm3, %v9467_v2, %v2155_v29  ;;  %v1671_v58 = vrot.slane %v6537_v45, 1  ;;  %v6570_v24 = vmul.f32 %v5793_v47, %v6518_v31  ;;  %1050 = vrot.lane.b32.xlu1 %v733_v40, %s5054_s10  ;;  %v9471_v45 = vld [vmem:[#allocation43_spill] sm:$0xff]  ;;  %v9472_v23 = vld [vmem:[#allocation45_spill] sm:$0xff] }
  0xfa   : > { %v3263_v62 = vsel %vm1902_vm3, %v9468_v38, %v3262_v3  ;;  %v2262_v42 = vadd.f32 %v2156_v14, %v2018_v36  ;;  %v3789_v33 = vmul.f32 %v9453_v9, %v6518_v31  ;;  %v6576_v29 = vadd.f32 %v9470_v44, %v1286_v5  ;;  %v977_v36 = vpop.permute.xlu0 %976  ;;  %v9473_v44 = vld [vmem:[#allocation66_spill] sm:$0xff] }
  0xfb   : > { %890 = vrot.lane.b32.xlu0 %v734_v25, %s5053_s9  ;;  %v3372_v37 = vadd.f32 %v3263_v62, %v3128_v21  ;;  %v1670_v3 = vsel %vm1413_vm2, %v1668_v7, %v1669_v41  ;;  %v2366_v35 = vmul.f32 %v5944_v4, %v1126_v54  ;;  %v3476_v40 = vmul.f32 %v9451_v30, %v1126_v54  ;;  %v736_v21 = vld [vmem:[#allocation2 + $0x190] sm:$0x3] }
  0xfc   : > { %v2330_v55 = vadd.f32 %v9471_v45, %v2262_v42  ;;  %v1774_v32 = vadd.f32 %v1670_v3, %v6449_v20  ;;  %v2680_v2 = vmul.f32 %v5949_v61, %v6518_v31  ;;  %v2679_v14 = vmul.f32 %v5949_v61, %v1126_v54 }
  0xfd   : > { %v3440_v12 = vadd.f32 %v9472_v23, %v3372_v37  ;;  %v3788_v7 = vmul.f32 %v9453_v9, %v1126_v54  ;;  %v4276_v38 = vmul.f32 %v6510_v59, %v1126_v54  ;;  %v6592_v62 = vmul.f32 %v5960_v49, %v6518_v31  ;;  %1052 = vrot.lane.b32.xlu1 %v734_v25, %s5054_s10  ;;  %v9474_v23 = vld [vmem:[#allocation19_spill] sm:$0xff] }
  0xfe   : > { %v6595_v22 = vmul.f32 %v5793_v47, %v1126_v54  ;;  %v2398_v20 = vadd.f32 %v2366_v35, %v2330_v55  ;;  %v3886_v42 = vrot.slane %v3789_v33, 1  ;;  %v4277_v37 = vmul.f32 %v6510_v59, %v6518_v31  ;;  %v9475_v35 = vld [vmem:[#allocation20_spill] sm:$0xff] }
  0xff   : > { %892 = vrot.lane.b32.xlu0 %v735_v11, %s5053_s9  ;;  %v3508_v5 = vadd.f32 %v3476_v40, %v3440_v12  ;;  %v6602_v3 = vsel %vm1118_vm4, %v9473_v44, %v977_v36  ;;  %v3884_v45 = vrot.slane %v3788_v7, 1  ;;  %v6607_v17 = vmul.f32 %v5960_v49, %v1126_v54  ;;  %v9476_v12 = vld [vmem:[#allocation23_spill] sm:$0xff]  ;;  %v737_v33 = vld [vmem:[#allocation2 + $0x198] sm:$0xff]  ;;  %v981_v54 = vpop.permute.xlu0 %980 }
 0x100   : > { %v2642_v60 = vadd.f32 %v9474_v23, %v2398_v20  ;;  %v2019_v25 = vadd.f32 %v9476_v12, %v1774_v32  ;;  %v2777_v40 = vrot.slane %v2679_v14, 1  ;;  %v4372_v36 = vrot.slane %v4276_v38, 2 }
 0x101   : > { %v3752_v55 = vadd.f32 %v9475_v35, %v3508_v5  ;;  %v3885_v31 = vsel %vm1413_vm2, %v3883_v48, %v3884_v45  ;;  %v3887_v46 = vsel %vm1413_vm2, %v3884_v45, %v3886_v42  ;;  %v9281_v44 = vrot.slane %v6595_v22, 2  ;;  %1054 = vrot.lane.b32.xlu1 %v735_v11, %s5054_s10  ;;  %v9477_v42 = vld [vmem:[#allocation21_spill] sm:$0xff] }
 0x102   : > { %v3995_v20 = vadd.f32 %v3885_v31, %v3751_v19  ;;  %v2779_v5 = vrot.slane %v2680_v2, 1  ;;  %v4374_v35 = vrot.slane %v4277_v37, 2  ;;  %v6619_v48 = vmul.f32 %v5779_v1, %v6602_v3 }
 0x103   : > { %894 = vrot.lane.b32.xlu0 %v736_v21, %s5053_s9  ;;  %v3996_v23 = vadd.f32 %v3887_v46, %v3752_v55  ;;  %v1672_v14 = vsel %vm1413_vm2, %v1669_v41, %v1671_v58  ;;  %v9280_v38 = vrot.slane %v6607_v17, 2  ;;  %v9478_v46 = vld [vmem:[#allocation22_spill] sm:$0xff]  ;;  %v975_v55 = vpop.permute.xlu1 %974  ;;  %v9479_v11 = vrot.slane %v6486_v53, 1 }
 0x104   : > { %v4239_v19 = vadd.f32 %v9477_v42, %v3995_v20  ;;  %v9480_v37 = vrot.slane %v6531_v63, 2  ;;  %v4375_v41 = vsel %vm1902_vm3, %v4372_v36, %v4374_v35  ;;  %v6642_v12 = vsel %vm1118_vm4, %v6155_v16, %v981_v54 }
 0x105   : > { %v4240_v45 = vadd.f32 %v9478_v46, %v3996_v23  ;;  %v2778_v2 = vsel %vm1413_vm2, %v9479_v11, %v2777_v40  ;;  %v9481_v31 = vrot.slane %v6480_v0, 2  ;;  %1056 = vrot.lane.b32.xlu1 %v736_v21, %s5054_s10  ;;  %v6661_v16 = vmul.f32 %v9451_v30, %v6602_v3  ;;  %v9482_v0 = vld [vmem:[#allocation64_spill] sm:$0xff]  ;;  %v9485_v11 = vld [vmem:[#allocation25_spill] sm:$0xff] }
 0x106   : > { %v4373_v58 = vsel %vm1902_vm3, %v9480_v37, %v4372_v36  ;;  %v2885_v20 = vadd.f32 %v2778_v2, %v6544_v26  ;;  %v6657_v36 = vmul.f32 %v5944_v4, %v6602_v3  ;;  %v1128_v35 = vsel %vm1118_vm4, %v9482_v0, %v975_v55  ;;  %v985_v2 = vpop.permute.xlu0 %984 }
 0x107   : > { %896 = vrot.lane.b32.xlu0 %v737_v33, %s5053_s9  ;;  %v2159_v53 = vsel %vm1902_vm3, %v9481_v31, %v9281_v44  ;;  %v6650_v23 = vadd.f32 %v4373_v58, %v4239_v19  ;;  %v6652_v63 = vadd.f32 %v4375_v41, %v4240_v45  ;;  %v1775_v26 = vadd.f32 %v1672_v14, %v6576_v29 }
 0x108   : > { %v2263_v54 = vadd.f32 %v2159_v53, %v2019_v25  ;;  %v2780_v42 = vsel %vm1413_vm2, %v2777_v40, %v2779_v5  ;;  %v9483_v21 = vrot.slane %v6490_v10, 2  ;;  %v1257_v25 = vmul.f32 %v5779_v1, %v6642_v12  ;;  %v9484_v40 = vld [vmem:[#allocation51_spill] sm:$0xff]  ;;  %v9486_v53 = vld [vmem:[#allocation46_spill] sm:$0xff] }
 0x109   : > { %4515 = vst.msk [vmem:[%s6631_s28] sm:$0xff] %vm597_vm0, %v6650_v23  ;;  %4516 = vst.msk [vmem:[%s6631_s28 + $0x8] sm:$0xff] %vm597_vm0, %v6652_v63  ;;  %v2886_v46 = vadd.f32 %v2780_v42, %v2642_v60  ;;  %v6682_v29 = vmul.f32 %v5784_v50, %v6642_v12  ;;  %v2367_v10 = vmul.f32 %v5944_v4, %v1128_v35  ;;  %1058 = vrot.lane.b32.xlu1 %v737_v33, %s5054_s10 }
 0x10a   : > { %v3266_v19 = vsel %vm1902_vm3, %v9483_v21, %v9280_v38  ;;  %v2331_v5 = vadd.f32 %v9484_v40, %v2263_v54  ;;  %v6688_v14 = vmul.f32 %v5793_v47, %v6642_v12  ;;  %v6692_v45 = vmul.f32 %v5944_v4, %v6642_v12 }
 0x10b   : > { %v1255_v55 = vmul.f32 %v5779_v1, %v1128_v35  ;;  %v3129_v60 = vadd.f32 %v9485_v11, %v2885_v20  ;;  %v6699_v37 = vmul.f32 %v5949_v61, %v6642_v12  ;;  %v1571_v58 = vmul.f32 %v5784_v50, %v1128_v35 }
 0x10c   : > { %v2060_v41 = vmul.f32 %v5793_v47, %v1128_v35  ;;  %v2399_v31 = vadd.f32 %v2367_v10, %v2331_v5  ;;  %v6704_v54 = vadd.f32 %v1257_v25, %v9486_v53  ;;  %v2681_v0 = vmul.f32 %v5949_v61, %v1128_v35  ;;  %v9488_v5 = vld [vmem:[#allocation48_spill] sm:$0xff] }
 0x10d   : > { %v3169_v42 = vmul.f32 %v5960_v49, %v1128_v35  ;;  %v3373_v20 = vadd.f32 %v3266_v19, %v3129_v60  ;;  %v6710_v33 = vmul.f32 %v5960_v49, %v6642_v12  ;;  %v3790_v21 = vmul.f32 %v9453_v9, %v1128_v35  ;;  %v9489_v53 = vld [vmem:[#allocation52_spill] sm:$0xff] }
 0x10e   : > { %v4278_v40 = vmul.f32 %v6510_v59, %v1128_v35  ;;  %v6716_v11 = vsel %vm1118_vm4, %v6197_v39, %v985_v2  ;;  %v1287_v10 = vadd.f32 %v1255_v55, %v9488_v5  ;;  %v3477_v19 = vmul.f32 %v9451_v30, %v1128_v35 }
 0x10f   : > { %9487 = vst [vmem:[#allocation42_spill] sm:$0xff] %v6710_v33  ;;  %v3441_v38 = vadd.f32 %v9489_v53, %v3373_v20  ;;  %v6724_v60 = vmul.f32 %v9451_v30, %v6642_v12  ;;  %v6728_v32 = vmul.f32 %v9453_v9, %v6642_v12  ;;  %v1673_v44 = vrot.slane %v1571_v58, 1  ;;  %v9490_v53 = vld [vmem:[#allocation27_spill] sm:$0xff]  ;;  %v9492_v58 = vld [vmem:[#allocation54_spill] sm:$0xff] }
 0x110   : > { %v2162_v7 = vrot.slane %v2060_v41, 2  ;;  %v2781_v39 = vrot.slane %v2681_v0, 1  ;;  %v3269_v2 = vrot.slane %v3169_v42, 2  ;;  %v6732_v55 = vmul.f32 %v5784_v50, %v6716_v11 }
 0x111   : > { %v3509_v51 = vadd.f32 %v3477_v19, %v3441_v38  ;;  %v3888_v20 = vrot.slane %v3790_v21, 1  ;;  %v4376_v5 = vrot.slane %v4278_v40, 2  ;;  %v6736_v35 = vmul.f32 %v5784_v50, %v6602_v3  ;;  %v738_v40 = vld [vmem:[#allocation2 + $0x1a0] sm:$0xff] }
 0x112   : > { %v2020_v25 = vadd.f32 %v9490_v53, %v1775_v26  ;;  %v1288_v52 = vadd.f32 %v6619_v48, %v9491_v28  ;;  %v1532_v41 = vadd.f32 %v9492_v58, %v1287_v10  ;;  %v6744_v38 = vmul.f32 %v5793_v47, %v6602_v3  ;;  %v9495_v26 = vld [vmem:[#allocation62_spill] sm:$0xff]  ;;  %898 = vrot.lane.b32.xlu0 %v738_v40, %s5053_s9 }
 0x113   : > { %v9493_v0 = vrot.slane %v6570_v24, 2  ;;  %v9494_v42 = vrot.slane %v6595_v22, 2  ;;  %v1674_v19 = vrot.slane %v6736_v35, 1  ;;  %v2643_v53 = vadd.f32 %v9495_v26, %v2399_v31  ;;  %1060 = vrot.lane.b32.xlu1 %v738_v40, %s5054_s10  ;;  %v9496_v24 = vld [vmem:[#allocation29_spill] sm:$0xff] }
 0x114   : > { %v2682_v28 = vmul.f32 %v5949_v61, %v6602_v3  ;;  %v2163_v48 = vrot.slane %v6744_v38, 2  ;;  %v3130_v10 = vadd.f32 %v9496_v24, %v2886_v46  ;;  %v6761_v22 = vmul.f32 %v5960_v49, %v6602_v3 }
 0x115   : > { %v2161_v21 = vsel %vm1902_vm3, %v9494_v42, %v9493_v0  ;;  %v9497_v35 = vrot.slane %v6592_v62, 2  ;;  %v1675_v58 = vsel %vm1413_vm2, %v1673_v44, %v1674_v19  ;;  %v9499_v0 = vld [vmem:[#allocation58_spill] sm:$0xff]  ;;  %v3791_v38 = vmul.f32 %v9453_v9, %v6602_v3 }
 0x116   : > { %v2264_v13 = vadd.f32 %v2161_v21, %v2020_v25  ;;  %v9498_v25 = vrot.slane %v6607_v17, 2  ;;  %v2782_v21 = vrot.slane %v2682_v28, 1  ;;  %v1776_v40 = vadd.f32 %v1675_v58, %v1532_v41  ;;  %v979_v58 = vpop.permute.xlu1 %978 }
 0x117   : > { %v2164_v46 = vsel %vm1902_vm3, %v2162_v7, %v2163_v48  ;;  %v3270_v26 = vrot.slane %v6761_v22, 2  ;;  %v3889_v8 = vrot.slane %v3791_v38, 1  ;;  %v4279_v44 = vmul.f32 %v6510_v59, %v6602_v3  ;;  %v9502_v7 = vld [vmem:[#allocation53_spill] sm:$0xff]  ;;  %v9503_v22 = vld [vmem:[#allocation63_spill] sm:$0xff] }
 0x118   : > { %v3268_v31 = vsel %vm1902_vm3, %v9498_v25, %v9497_v35  ;;  %v2332_v42 = vadd.f32 %v9499_v0, %v2264_v13  ;;  %v2783_v17 = vsel %vm1413_vm2, %v2781_v39, %v2782_v21  ;;  %v9500_v35 = vld [vmem:[#allocation56_spill] sm:$0xff]  ;;  %v9501_v0 = vld [vmem:[#allocation65_spill] sm:$0xff]  ;;  %v1533_v33 = vadd.f32 %v9502_v7, %v1288_v52 }
 0x119   : > { %v3374_v24 = vadd.f32 %v3268_v31, %v3130_v10  ;;  %v2021_v13 = vadd.f32 %v9500_v35, %v1776_v40  ;;  %v2887_v28 = vadd.f32 %v2783_v17, %v2643_v53  ;;  %v3271_v25 = vsel %vm1902_vm3, %v3269_v2, %v3270_v26 }
 0x11a   : > { %v2400_v62 = vadd.f32 %v6657_v36, %v2332_v42  ;;  %v3890_v36 = vsel %vm1413_vm2, %v3888_v20, %v3889_v8  ;;  %v4377_v31 = vrot.slane %v4279_v44, 2  ;;  %v9504_v42 = vld [vmem:[#allocation68_spill] sm:$0xff]  ;;  %v4548_v53 = vsel %vm597_vm0, %v6652_v63, 0.0 }
 0x11b   : > { %v3442_v41 = vadd.f32 %v9501_v0, %v3374_v24  ;;  %v2265_v39 = vadd.f32 %v2164_v46, %v2021_v13  ;;  %v3131_v38 = vadd.f32 %v9504_v42, %v2887_v28  ;;  %v4619_v40 = vmul.f32 %v6652_v63, %v6652_v63  ;;  %v9505_v24 = vld [vmem:[#allocation69_spill] sm:$0xff]  ;;  %v9506_v20 = vld [vmem:[#allocation60_spill] sm:$0xff] }
 0x11c   : > { %v2644_v10 = vadd.f32 %v9503_v22, %v2400_v62  ;;  %v4378_v2 = vsel %vm1902_vm3, %v4376_v5, %v4377_v31  ;;  %v1130_v52 = vsel %vm1118_vm4, %v9505_v24, %v979_v58  ;;  %v3753_v62 = vadd.f32 %v6165_v43, %v3509_v51  ;;  %v9507_v43 = vld [vmem:[#allocation67_spill] sm:$0xff] }
 0x11d   : > { %v3510_v3 = vadd.f32 %v6661_v16, %v3442_v41  ;;  %v2333_v17 = vadd.f32 %v9506_v20, %v2265_v39  ;;  %v3375_v46 = vadd.f32 %v3271_v25, %v3131_v38  ;;  %v4547_v16 = vsel %vm597_vm0, %v6650_v23, 0.0 }
 0x11e   : > { %v1573_v35 = vmul.f32 %v5784_v50, %v1130_v52  ;;  %v2062_v5 = vmul.f32 %v5793_v47, %v1130_v52  ;;  %v2683_v13 = vmul.f32 %v5949_v61, %v1130_v52  ;;  %v3171_v63 = vmul.f32 %v5960_v49, %v1130_v52 }
 0x11f   : > { %v3754_v44 = vadd.f32 %v6168_v34, %v3510_v3  ;;  %v6803_v28 = vadd.f32 %v6692_v45, %v2333_v17  ;;  %v3443_v51 = vadd.f32 %v9507_v43, %v3375_v46  ;;  %v3792_v25 = vmul.f32 %v9453_v9, %v1130_v52  ;;  %v739_v46 = vld [vmem:[#allocation2 + $0x1a8] sm:$0x3] }
 0x120   : > { %v3997_v0 = vadd.f32 %v3890_v36, %v3753_v62  ;;  %v1676_v34 = vrot.slane %v1573_v35, 1  ;;  %v2165_v41 = vrot.slane %v2062_v5, 2  ;;  %v2784_v58 = vrot.slane %v2683_v13, 1  ;;  %900 = vrot.lane.b32.xlu0 %v739_v46, %s5053_s9  ;;  %1062 = vrot.lane.b32.xlu1 %v739_v46, %s5054_s10 }
 0x121   : > { %v3272_v7 = vrot.slane %v3171_v63, 2  ;;  %v6808_v22 = vadd.f32 %v6724_v60, %v3443_v51  ;;  %v3891_v39 = vrot.slane %v3792_v25, 1  ;;  %v4280_v38 = vmul.f32 %v6510_v59, %v1130_v52  ;;  %v983_v51 = vpop.permute.xlu1 %982  ;;  %v9510_v25 = vld [vmem:[#allocation47_spill] sm:$0xff] }
 0x122   : > { %v4241_v42 = vadd.f32 %v6172_v56, %v3997_v0  ;;  %v4651_v45 = vsel %vm597_vm0, %v4619_v40, 0.0  ;;  %v1677_v3 = vsel %vm1413_vm2, %v1674_v19, %v1676_v34  ;;  %v2166_v24 = vsel %vm1902_vm3, %v2163_v48, %v2165_v41  ;;  %v9508_v19 = vld [vmem:[#allocation57_spill] sm:$0xff]  ;;  %v9509_v48 = vld [vmem:[#allocation70_spill] sm:$0xff] }
 0x123   : > { %v2785_v36 = vsel %vm1413_vm2, %v2782_v21, %v2784_v58  ;;  %v1777_v62 = vadd.f32 %v1677_v3, %v1533_v33  ;;  %v3892_v17 = vsel %vm1413_vm2, %v3889_v8, %v3891_v39  ;;  %v4379_v60 = vrot.slane %v4280_v38, 2 }
 0x124   : > { %v2888_v20 = vadd.f32 %v2785_v36, %v2644_v10  ;;  %v3998_v35 = vadd.f32 %v3892_v17, %v3754_v44  ;;  %v4485_v5 = vadd.f32 %v4378_v2, %v4241_v42  ;;  %v4549_v56 = vadd.f32 %v4548_v53, %v4547_v16 }
 0x125   : > { %v4618_v52 = vmul.f32 %v6650_v23, %v6650_v23  ;;  %v2022_v40 = vadd.f32 %v9508_v19, %v1777_v62  ;;  %v3273_v33 = vsel %vm1902_vm3, %v3270_v26, %v3272_v7  ;;  %v4380_v21 = vsel %vm1902_vm3, %v4377_v31, %v4379_v60 }
 0x126   : > { %v3132_v13 = vadd.f32 %v9509_v48, %v2888_v20  ;;  %v4242_v8 = vadd.f32 %v6180_v27, %v3998_v35  ;;  %4517 = vst.msk [vmem:[%s6631_s28 + $0x10] sm:$0xff] %vm597_vm0, %v4485_v5  ;;  %v4550_v10 = vsel %vm597_vm0, %v4485_v5, 0.0  ;;  %v4620_v53 = vmul.f32 %v4485_v5, %v4485_v5  ;;  %v9512_v35 = vld [vmem:[#allocation71_spill] sm:$0xff] }
 0x127   : > { %v4650_v23 = vsel %vm597_vm0, %v4618_v52, 0.0  ;;  %v2266_v2 = vadd.f32 %v2166_v24, %v2022_v40  ;;  %v4551_v16 = vadd.f32 %v4550_v10, %v4549_v56  ;;  %v2167_v26 = vrot.slane %v6688_v14, 2  ;;  %v989_v24 = vpop.permute.xlu0 %988  ;;  %v9513_v56 = vld [vmem:[#allocation72_spill] sm:$0xff] }
 0x128   : > { %v3376_v44 = vadd.f32 %v3273_v33, %v3132_v13  ;;  %v4652_v63 = vadd.f32 %v4651_v45, %v4650_v23  ;;  %v2686_v31 = vmul.f32 %v5949_v61, %v6716_v11  ;;  %v4486_v43 = vadd.f32 %v4380_v21, %v4242_v8  ;;  %v9514_v23 = vld [vmem:[#allocation74_spill] sm:$0xff] }
 0x129   : > { %v4653_v27 = vsel %vm597_vm0, %v4620_v53, 0.0  ;;  %v1534_v0 = vadd.f32 %v9510_v25, %v6704_v54  ;;  %v2786_v34 = vrot.slane %v6699_v37, 1  ;;  %v6839_v41 = vmul.f32 %v6510_v59, %v6642_v12  ;;  %v9511_v54 = vld [vmem:[#allocation61_spill] sm:$0xff] }
 0x12a   : > { %v4654_v58 = vadd.f32 %v4653_v27, %v4652_v63  ;;  %v3893_v7 = vrot.slane %v6728_v32, 1  ;;  %v1681_v39 = vrot.slane %v6732_v55, 1  ;;  %4518 = vst.msk [vmem:[%s6631_s28 + $0x18] sm:$0xff] %vm597_vm0, %v4486_v43  ;;  %v4552_v42 = vsel %vm597_vm0, %v4486_v43, 0.0 }
 0x12b   : > { %v4621_v38 = vmul.f32 %v4486_v43, %v4486_v43  ;;  %v3795_v45 = vmul.f32 %v9453_v9, %v6716_v11  ;;  %v2334_v3 = vadd.f32 %v9511_v54, %v2266_v2  ;;  %v6849_v37 = vadd.f32 %v4552_v42, %v4551_v16  ;;  %v9517_v42 = vld [vmem:[#allocation75_spill] sm:$0xff] }
 0x12c   : > { %v1132_v12 = vsel %vm1118_vm4, %v6183_v6, %v983_v51  ;;  %v2789_v36 = vrot.slane %v2686_v31, 1  ;;  %v4283_v20 = vmul.f32 %v6510_v59, %v6716_v11  ;;  %v3444_v5 = vadd.f32 %v9512_v35, %v3376_v44  ;;  %v9516_v44 = vld [vmem:[#allocation73_spill] sm:$0xff]  ;;  %v993_v31 = vpop.permute.xlu0 %992 }
 0x12d   : > { %v4655_v32 = vsel %vm597_vm0, %v4621_v38, 0.0  ;;  %v1258_v55 = vmul.f32 %v5779_v1, %v1132_v12  ;;  %v1575_v62 = vmul.f32 %v5784_v50, %v1132_v12  ;;  %v2370_v60 = vmul.f32 %v5944_v4, %v1132_v12 }
 0x12e   : > { %v6858_v17 = vadd.f32 %v4655_v32, %v4654_v58  ;;  %v2685_v46 = vmul.f32 %v5949_v61, %v1132_v12  ;;  %v2645_v6 = vadd.f32 %v6191_v57, %v6803_v28  ;;  %v3896_v40 = vrot.slane %v3795_v45, 1 }
 0x12f   : > { %v1290_v52 = vadd.f32 %v1258_v55, %v9513_v56  ;;  %v1679_v19 = vrot.slane %v1575_v62, 1  ;;  %v2402_v48 = vadd.f32 %v2370_v60, %v2334_v3  ;;  %v3794_v33 = vmul.f32 %v9453_v9, %v1132_v12  ;;  %v9518_v55 = vld [vmem:[#allocation42_spill] sm:$0xff] }
 0x130   : > { %v2787_v13 = vrot.slane %v2685_v46, 1  ;;  %v6870_v10 = vmul.f32 %v5793_v47, %v1132_v12  ;;  %v3480_v53 = vmul.f32 %v9451_v30, %v1132_v12  ;;  %v3755_v57 = vadd.f32 %v9514_v23, %v6808_v22  ;;  %v9523_v23 = vld [vmem:[#allocation86_spill] sm:$0xff] }
 0x131   : > { %v1535_v21 = vadd.f32 %v6188_v15, %v1290_v52  ;;  %v1682_v8 = vsel %vm1413_vm2, %v1679_v19, %v1681_v39  ;;  %v9515_v28 = vrot.slane %v6682_v29, 1  ;;  %v2646_v16 = vadd.f32 %v9516_v44, %v2402_v48  ;;  %v9520_v52 = vld [vmem:[#allocation76_spill] sm:$0xff]  ;;  %v987_v48 = vpop.permute.xlu1 %986  ;;  %v9525_v44 = vld [vmem:[#allocation77_spill] sm:$0xff] }
 0x132   : > { %v2788_v63 = vsel %vm1413_vm2, %v2786_v34, %v2787_v13  ;;  %v2790_v43 = vsel %vm1413_vm2, %v2787_v13, %v2789_v36  ;;  %v3512_v51 = vadd.f32 %v3480_v53, %v3444_v5  ;;  %v6886_v58 = vmul.f32 %v5960_v49, %v1132_v12 }
 0x133   : > { %v1680_v2 = vsel %vm1413_vm2, %v9515_v28, %v1679_v19  ;;  %v6880_v15 = vadd.f32 %v1682_v8, %v1535_v21  ;;  %v2889_v27 = vadd.f32 %v2788_v63, %v2645_v6  ;;  %v6883_v25 = vadd.f32 %v2790_v43, %v2646_v16 }
 0x134   : > { %v3894_v22 = vrot.slane %v3794_v33, 1  ;;  %v4282_v29 = vmul.f32 %v6510_v59, %v1132_v12  ;;  %v6891_v39 = vmul.f32 %v5793_v47, %v6716_v11  ;;  %v2168_v34 = vrot.slane %v6870_v10, 2  ;;  %v9522_v33 = vld [vmem:[#allocation84_spill] sm:$0xff] }
 0x135   : > { %v3756_v38 = vadd.f32 %v9517_v42, %v3512_v51  ;;  %v1137_v45 = vsel %vm1118_vm4, %v6264_v18, %v993_v31  ;;  %v1778_v54 = vadd.f32 %v1680_v2, %v1534_v0  ;;  %v3274_v62 = vrot.slane %v9518_v55, 2  ;;  %v9527_v55 = vld [vmem:[#allocation85_spill] sm:$0xff] }
 0x136   : > { %v3895_v3 = vsel %vm1413_vm2, %v3893_v7, %v3894_v22  ;;  %v3897_v36 = vsel %vm1413_vm2, %v3894_v22, %v3896_v40  ;;  %v4382_v32 = vrot.slane %v4282_v29, 2  ;;  %v4381_v12 = vrot.slane %v6839_v41, 2  ;;  %v9519_v7 = vld [vmem:[#allocation78_spill] sm:$0xff]  ;;  %v9521_v41 = vld [vmem:[#allocation79_spill] sm:$0xff] }
 0x137   : > { %v3999_v60 = vadd.f32 %v3895_v3, %v3755_v57  ;;  %v4000_v46 = vadd.f32 %v3897_v36, %v3756_v38  ;;  %v6903_v35 = vmul.f32 %v5960_v49, %v6716_v11  ;;  %v4384_v5 = vrot.slane %v4283_v20, 2  ;;  %v9526_v36 = vld [vmem:[#allocation82_spill] sm:$0xff] }
 0x138   : > { %v3275_v6 = vrot.slane %v6886_v58, 2  ;;  %v1261_v18 = vmul.f32 %v5779_v1, %v1137_v45  ;;  %v2170_v0 = vrot.slane %v6891_v39, 2  ;;  %v6910_v56 = vsel %vm1118_vm4, %v9519_v7, %v989_v24 }
 0x139   : > { %v4243_v19 = vadd.f32 %v9520_v52, %v3999_v60  ;;  %v4244_v40 = vadd.f32 %v9521_v41, %v4000_v46  ;;  %v2169_v11 = vsel %vm1902_vm3, %v2167_v26, %v2168_v34  ;;  %v4383_v20 = vsel %vm1902_vm3, %v4381_v12, %v4382_v32  ;;  %v9524_v26 = vld [vmem:[#allocation81_spill] sm:$0xff]  ;;  %v9528_v52 = vld [vmem:[#allocation87_spill] sm:$0xff] }
 0x13a   : > { %v4385_v13 = vsel %vm1902_vm3, %v4382_v32, %v4384_v5  ;;  %v2023_v24 = vadd.f32 %v9522_v33, %v1778_v54  ;;  %v6927_v53 = vmul.f32 %v5784_v50, %v1137_v45  ;;  %v3133_v57 = vadd.f32 %v9523_v23, %v2889_v27 }
 0x13b   : > { %v6922_v21 = vadd.f32 %v4383_v20, %v4243_v19  ;;  %v6924_v8 = vadd.f32 %v4385_v13, %v4244_v40  ;;  %v3276_v14 = vsel %vm1902_vm3, %v3274_v62, %v3275_v6  ;;  %v1293_v28 = vadd.f32 %v1261_v18, %v9524_v26  ;;  %v9529_v13 = vld [vmem:[#allocation83_spill] sm:$0xff] }
 0x13c   : > { %v2267_v2 = vadd.f32 %v2169_v11, %v2023_v24  ;;  %v1134_v16 = vsel %vm1118_vm4, %v9525_v44, %v987_v48  ;;  %v3277_v63 = vrot.slane %v6903_v35, 2  ;;  %v6939_v31 = vmul.f32 %v5779_v1, %v6910_v56  ;;  %v997_v48 = vpop.permute.xlu0 %996  ;;  %v9530_v44 = vld [vmem:[#allocation94_spill] sm:$0xff] }
 0x13d   : > { %v6943_v43 = vmul.f32 %v5944_v4, %v6910_v56  ;;  %4519 = vst.msk [vmem:[%s6631_s28 + $0x20] sm:$0xff] %vm597_vm0, %v6922_v21  ;;  %4520 = vst.msk [vmem:[%s6631_s28 + $0x28] sm:$0xff] %vm597_vm0, %v6924_v8  ;;  %v3377_v27 = vadd.f32 %v3276_v14, %v3133_v57  ;;  %v6953_v51 = vmul.f32 %v9451_v30, %v6910_v56  ;;  %v1688_v42 = vrot.slane %v6927_v53, 1 }
 0x13e   : > { %v6956_v22 = vmul.f32 %v5793_v47, %v1137_v45  ;;  %v6959_v29 = vmul.f32 %v5944_v4, %v1137_v45  ;;  %v6962_v39 = vmul.f32 %v5949_v61, %v1137_v45  ;;  %v6966_v38 = vmul.f32 %v9453_v9, %v1137_v45 }
 0x13f   : > { %v6969_v54 = vmul.f32 %v6510_v59, %v1137_v45  ;;  %v1259_v3 = vmul.f32 %v5779_v1, %v1134_v16  ;;  %v6973_v32 = vadd.f32 %v9526_v36, %v1293_v28  ;;  %v2335_v62 = vadd.f32 %v9527_v55, %v2267_v2 }
 0x140   : > { %v1577_v12 = vmul.f32 %v5784_v50, %v1134_v16  ;;  %v6978_v60 = vmul.f32 %v5793_v47, %v1134_v16  ;;  %v6981_v46 = vmul.f32 %v5960_v49, %v1137_v45  ;;  %v6984_v35 = vmul.f32 %v9451_v30, %v1137_v45 }
 0x141   : > { %v2687_v5 = vmul.f32 %v5949_v61, %v1134_v16  ;;  %v6988_v18 = vmul.f32 %v5960_v49, %v1134_v16  ;;  %v3445_v19 = vadd.f32 %v9528_v52, %v3377_v27  ;;  %v2371_v41 = vmul.f32 %v5944_v4, %v1134_v16 }
 0x142   : > { %v3796_v40 = vmul.f32 %v9453_v9, %v1134_v16  ;;  %v6996_v11 = vmul.f32 %v6922_v21, %v6922_v21  ;;  %v1291_v33 = vadd.f32 %v1259_v3, %v9529_v13  ;;  %v1683_v24 = vrot.slane %v1577_v12, 1  ;;  %v9531_v12 = vld [vmem:[#allocation92_spill] sm:$0xff] }
 0x143   : > { %v2172_v23 = vrot.slane %v6978_v60, 2  ;;  %v2403_v57 = vadd.f32 %v2371_v41, %v2335_v62  ;;  %v3481_v14 = vmul.f32 %v9451_v30, %v1134_v16  ;;  %v2791_v26 = vrot.slane %v2687_v5, 1  ;;  %v9532_v60 = vld [vmem:[#allocation91_spill] sm:$0xff] }
 0x144   : > { %v3279_v28 = vrot.slane %v6988_v18, 2  ;;  %v4284_v2 = vmul.f32 %v6510_v59, %v1134_v16  ;;  %v7007_v27 = vsel %vm1118_vm4, %v9530_v44, %v997_v48  ;;  %v3898_v55 = vrot.slane %v3796_v40, 1  ;;  %v9533_v18 = vld [vmem:[#allocation100_spill] sm:$0xff]  ;;  %v9534_v48 = vld [vmem:[#allocation99_spill] sm:$0xff] }
 0x145   : > { %v3513_v36 = vadd.f32 %v3481_v14, %v3445_v19  ;;  %v7011_v3 = vmul.f32 %v5784_v50, %v6910_v56  ;;  %v2024_v62 = vadd.f32 %v9531_v12, %v6880_v15  ;;  %v1536_v52 = vadd.f32 %v9532_v60, %v1291_v33  ;;  %v9535_v14 = vld [vmem:[#allocation96_spill] sm:$0xff] }
 0x146   : > { %v2171_v5 = vsel %vm1902_vm3, %v2168_v34, %v2170_v0  ;;  %v7021_v16 = vmul.f32 %v5949_v61, %v6910_v56  ;;  %v3134_v19 = vadd.f32 %v9533_v18, %v6883_v25  ;;  %v7027_v41 = vmul.f32 %v5784_v50, %v7007_v27 }
 0x147   : > { %v1684_v40 = vrot.slane %v7011_v3, 1  ;;  %v2268_v15 = vadd.f32 %v2171_v5, %v2024_v62  ;;  %v2647_v13 = vadd.f32 %v9534_v48, %v2403_v57  ;;  %v7033_v10 = vmul.f32 %v5793_v47, %v6910_v56  ;;  %v9536_v3 = vld [vmem:[#allocation109_spill] sm:$0xff]  ;;  %v9537_v48 = vld [vmem:[#allocation88_spill] sm:$0xff] }
 0x148   : > { %v2792_v34 = vrot.slane %v7021_v16, 1  ;;  %v7038_v0 = vmul.f32 %v5960_v49, %v6910_v56  ;;  %v3797_v25 = vmul.f32 %v9453_v9, %v6910_v56  ;;  %v3278_v57 = vsel %vm1902_vm3, %v3275_v6, %v3277_v63  ;;  %v9538_v63 = vld [vmem:[#allocation104_spill] sm:$0xff] }
 0x149   : > { %v1685_v33 = vsel %vm1413_vm2, %v1683_v24, %v1684_v40  ;;  %v2336_v44 = vadd.f32 %v9535_v14, %v2268_v15  ;;  %v3757_v12 = vadd.f32 %v9536_v3, %v3513_v36  ;;  %v3378_v5 = vadd.f32 %v3278_v57, %v3134_v19  ;;  %v991_v19 = vpop.permute.xlu1 %990  ;;  %v9540_v57 = vld [vmem:[#allocation89_spill] sm:$0xff] }
 0x14a   : > { %v1780_v62 = vadd.f32 %v1685_v33, %v1536_v52  ;;  %v2793_v60 = vsel %vm1413_vm2, %v2791_v26, %v2792_v34  ;;  %v3899_v16 = vrot.slane %v3797_v25, 1  ;;  %v4386_v18 = vrot.slane %v4284_v2, 2 }
 0x14b   : > { %v1292_v20 = vadd.f32 %v6939_v31, %v9537_v48  ;;  %v2891_v7 = vadd.f32 %v2793_v60, %v2647_v13  ;;  %v7053_v24 = vmul.f32 %v6510_v59, %v6910_v56  ;;  %v7057_v58 = vmul.f32 %v5949_v61, %v7007_v27  ;;  %v9539_v13 = vld [vmem:[#allocation93_spill] sm:$0xff]  ;;  %v9541_v60 = vld [vmem:[#allocation106_spill] sm:$0xff] }
 0x14c   : > { %v7061_v6 = vmul.f32 %v9453_v9, %v7007_v27  ;;  %v3446_v26 = vadd.f32 %v9538_v63, %v3378_v5  ;;  %v3900_v2 = vsel %vm1413_vm2, %v3898_v55, %v3899_v16  ;;  %v1691_v36 = vrot.slane %v7027_v41, 1  ;;  %v9544_v63 = vld [vmem:[#allocation103_spill] sm:$0xff] }
 0x14d   : > { %v2173_v31 = vrot.slane %v7033_v10, 2  ;;  %v2404_v52 = vadd.f32 %v6943_v43, %v2336_v44  ;;  %v4001_v56 = vadd.f32 %v3900_v2, %v3757_v12  ;;  %v7070_v15 = vmul.f32 %v6510_v59, %v7007_v27  ;;  %v9542_v44 = vld [vmem:[#allocation112_spill] sm:$0xff] }
 0x14e   : > { %v2025_v25 = vadd.f32 %v9539_v13, %v1780_v62  ;;  %v3280_v33 = vrot.slane %v7038_v0, 2  ;;  %v4387_v14 = vrot.slane %v7053_v24, 2  ;;  %v1537_v55 = vadd.f32 %v9540_v57, %v1292_v20  ;;  %v9543_v0 = vld [vmem:[#allocation80_spill] sm:$0xff] }
 0x14f   : > { %v2174_v3 = vsel %vm1902_vm3, %v2172_v23, %v2173_v31  ;;  %v3135_v43 = vadd.f32 %v9541_v60, %v2891_v7  ;;  %v4245_v12 = vadd.f32 %v9542_v44, %v4001_v56  ;;  %v3514_v48 = vadd.f32 %v6953_v51, %v3446_v26 }
 0x150   : > { %v3281_v5 = vsel %vm1902_vm3, %v3279_v28, %v3280_v33  ;;  %v4388_v62 = vsel %vm1902_vm3, %v4386_v18, %v4387_v14  ;;  %v1136_v24 = vsel %vm1118_vm4, %v9543_v0, %v991_v19  ;;  %v2648_v20 = vadd.f32 %v9544_v63, %v2404_v52  ;;  %v9545_v19 = vld [vmem:[#allocation110_spill] sm:$0xff] }
 0x151   : > { %v4489_v2 = vadd.f32 %v4388_v62, %v4245_v12  ;;  %v4554_v23 = vsel %vm597_vm0, %v6922_v21, 0.0  ;;  %v1579_v13 = vmul.f32 %v5784_v50, %v1136_v24  ;;  %v2269_v7 = vadd.f32 %v2174_v3, %v2025_v25 }
 0x152   : > { %v4623_v56 = vmul.f32 %v6924_v8, %v6924_v8  ;;  %v2689_v28 = vmul.f32 %v5949_v61, %v1136_v24  ;;  %v3798_v51 = vmul.f32 %v9453_v9, %v1136_v24  ;;  %v3379_v18 = vadd.f32 %v3281_v5, %v3135_v43 }
 0x153   : > { %4521 = vst.msk [vmem:[%s6631_s28 + $0x30] sm:$0xff] %vm597_vm0, %v4489_v2  ;;  %v4556_v26 = vsel %vm597_vm0, %v6924_v8, 0.0  ;;  %v4657_v52 = vsel %vm597_vm0, %v6996_v11, 0.0  ;;  %v1686_v21 = vrot.slane %v1579_v13, 1  ;;  %v3758_v57 = vadd.f32 %v9545_v19, %v3514_v48 }
 0x154   : > { %v2794_v25 = vrot.slane %v2689_v28, 1  ;;  %v3177_v3 = vmul.f32 %v5960_v49, %v1136_v24  ;;  %v3901_v60 = vrot.slane %v3798_v51, 1  ;;  %v4624_v44 = vmul.f32 %v4489_v2, %v4489_v2 }
 0x155   : > { %v1687_v12 = vsel %vm1413_vm2, %v1684_v40, %v1686_v21  ;;  %v4286_v43 = vmul.f32 %v6510_v59, %v1136_v24  ;;  %v4555_v5 = vadd.f32 %v4554_v23, %v6849_v37  ;;  %v4558_v62 = vsel %vm597_vm0, %v4489_v2, 0.0  ;;  %v9546_v23 = vld [vmem:[#allocation107_spill] sm:$0xff] }
 0x156   : > { %v4659_v8 = vsel %vm597_vm0, %v4623_v56, 0.0  ;;  %v2068_v11 = vmul.f32 %v5793_v47, %v1136_v24  ;;  %v2795_v0 = vsel %vm1413_vm2, %v2792_v34, %v2794_v25  ;;  %v3902_v63 = vsel %vm1413_vm2, %v3899_v16, %v3901_v60  ;;  %v9547_v24 = vld [vmem:[#allocation97_spill] sm:$0xff]  ;;  %v7116_v16 = vld [vmem:[#allocation2 + $0x90] sm:$0xff]  ;;  %v7122_v60 = vld [vmem:[#allocation2 + $0x98] sm:$0xff] }
 0x157   : > { %v2892_v48 = vadd.f32 %v2795_v0, %v2648_v20  ;;  %v4389_v13 = vrot.slane %v4286_v43, 2  ;;  %v4557_v28 = vadd.f32 %v4556_v26, %v4555_v5  ;;  %v1781_v51 = vadd.f32 %v1687_v12, %v1537_v55  ;;  %v9548_v34 = vld [vmem:[#allocation113_spill] sm:$0xff]  ;;  %v9549_v26 = vld [vmem:[#allocation7_spill] sm:$0xff] }
 0x158   : > { %v3282_v19 = vrot.slane %v3177_v3, 2  ;;  %v4002_v40 = vadd.f32 %v3902_v63, %v3758_v57  ;;  %v4658_v59 = vadd.f32 %v4657_v52, %v6858_v17  ;;  %v3906_v37 = vrot.slane %v7061_v6, 1  ;;  %v9550_v57 = vld [vmem:[#allocation105_spill] sm:$0xff]  ;;  %v9551_v12 = vld [vmem:[#allocation95_spill] sm:$0xff] }
 0x159   : > { %v4661_v2 = vsel %vm597_vm0, %v4624_v44, 0.0  ;;  %v3136_v56 = vadd.f32 %v9546_v23, %v2892_v48  ;;  %v4559_v21 = vadd.f32 %v4558_v62, %v4557_v28  ;;  %v2337_v45 = vadd.f32 %v9547_v24, %v2269_v7  ;;  %v995_v7 = vpop.permute.xlu1 %994  ;;  %v9552_v28 = vld [vmem:[#allocation90_spill] sm:$0xff] }
 0x15a   : > { %v4246_v20 = vadd.f32 %v9548_v34, %v4002_v40  ;;  %v4660_v25 = vadd.f32 %v4659_v8, %v4658_v59  ;;  %v3555_v55 = vmul.f32 %v7116_v16, %v9549_v26  ;;  %v3447_v17 = vadd.f32 %v9550_v57, %v3379_v18  ;;  %v7131_v18 = vld [vmem:[%s9245_s3 + $0x8] ss:$0 sm:$0xff] }
 0x15b   : > { %v2175_v52 = vrot.slane %v2068_v11, 2  ;;  %v4390_v3 = vsel %vm1902_vm3, %v4387_v14, %v4389_v13  ;;  %v3556_v44 = vmul.f32 %v7122_v60, %v9549_v26  ;;  %v2026_v43 = vadd.f32 %v9551_v12, %v1781_v51 }
 0x15c   : > { %v3283_v5 = vsel %vm1902_vm3, %v3280_v33, %v3282_v19  ;;  %v4490_v62 = vadd.f32 %v4390_v3, %v4246_v20  ;;  %v4662_v8 = vadd.f32 %v4661_v2, %v4660_v25  ;;  %v3659_v48 = vrot.slane %v3555_v55, 1  ;;  %v9553_v25 = vld [vmem:[#allocation36_spill] sm:$0xff]  ;;  %v9556_v3 = vld [vmem:[#allocation34_spill] sm:$0xff] }
 0x15d   : > { %v3380_v0 = vadd.f32 %v3283_v5, %v3136_v56  ;;  %v4043_v14 = vmul.f32 %v7131_v18, %v7116_v16  ;;  %v4044_v11 = vmul.f32 %v7131_v18, %v7122_v60  ;;  %v3660_v13 = vrot.slane %v3556_v44, 1 }
 0x15e   : > { %4522 = vst.msk [vmem:[%s6631_s28 + $0x38] sm:$0xff] %vm597_vm0, %v4490_v62  ;;  %v4560_v63 = vsel %vm597_vm0, %v4490_v62, 0.0  ;;  %v4625_v33 = vmul.f32 %v4490_v62, %v4490_v62  ;;  %v1138_v51 = vsel %vm1118_vm4, %v9552_v28, %v995_v7  ;;  %v2405_v19 = vadd.f32 %v6959_v29, %v2337_v45  ;;  %v9558_v7 = vld [vmem:[#allocation102_spill] sm:$0xff] }
 0x15f   : > { %v3515_v40 = vadd.f32 %v6984_v35, %v3447_v17  ;;  %v2176_v59 = vsel %vm1902_vm3, %v2173_v31, %v2175_v52  ;;  %v7147_v2 = vadd.f32 %v4560_v63, %v4559_v21  ;;  %v1262_v24 = vmul.f32 %v5779_v1, %v1138_v51  ;;  %v9554_v35 = vld [vmem:[#allocation108_spill] sm:$0xff]  ;;  %v9555_v31 = vld [vmem:[#allocation111_spill] sm:$0xff]  ;;  %v9562_v63 = vld [vmem:[#allocation98_spill] sm:$0xff] }
 0x160   : > { %v2270_v23 = vadd.f32 %v2176_v59, %v2026_v43  ;;  %v4663_v56 = vsel %vm597_vm0, %v4625_v33, 0.0  ;;  %v1581_v34 = vmul.f32 %v5784_v50, %v1138_v51  ;;  %v3662_v55 = vrot.slane %v9553_v25, 1 }
 0x161   : > { %v7152_v20 = vadd.f32 %v4663_v56, %v4662_v8  ;;  %v4147_v29 = vrot.slane %v4043_v14, 2  ;;  %v4148_v45 = vrot.slane %v4044_v11, 2  ;;  %v3448_v57 = vadd.f32 %v9554_v35, %v3380_v0  ;;  %v9560_v8 = vld [vmem:[#allocation115_spill] sm:$0xff]  ;;  %v9561_v14 = vld [vmem:[#allocation114_spill] sm:$0xff] }
 0x162   : > { %v3661_v10 = vsel %vm1413_vm2, %v3659_v48, %v3660_v13  ;;  %v1294_v21 = vadd.f32 %v1262_v24, %v9555_v31  ;;  %v1689_v17 = vrot.slane %v1581_v34, 1  ;;  %v4394_v52 = vrot.slane %v7070_v15, 2  ;;  %v9563_v24 = vld [vmem:[#allocation33_spill] sm:$0xff] }
 0x163   : > { %v9557_v44 = vrot.slane %v9556_v3, 1  ;;  %v9559_v12 = vrot.slane %v9558_v7, 1  ;;  %v7165_v5 = vmul.f32 %v5949_v61, %v1138_v51  ;;  %v3800_v62 = vmul.f32 %v9453_v9, %v1138_v51 }
 0x164   : > { %v2649_v0 = vadd.f32 %v9560_v8, %v2405_v19  ;;  %v1539_v48 = vadd.f32 %v9561_v14, %v1294_v21  ;;  %v1692_v11 = vsel %vm1413_vm2, %v1689_v17, %v1691_v36  ;;  %v3484_v15 = vmul.f32 %v9451_v30, %v1138_v51 }
 0x165   : > { %v2556_v43 = vsel %vm1413_vm2, %v9559_v12, %v9557_v44  ;;  %v2338_v33 = vadd.f32 %v9562_v63, %v2270_v23  ;;  %v3663_v28 = vsel %vm1413_vm2, %v3660_v13, %v3662_v55  ;;  %v3759_v59 = vadd.f32 %v3661_v10, %v3515_v40  ;;  %v7192_v40 = vld [vmem:[%s9246_s4 + $0x8] ss:$0 sm:$0xff] }
 0x166   : > { %v4149_v56 = vsel %vm1902_vm3, %v4147_v29, %v4148_v45  ;;  %v9564_v34 = vrot.slane %v9563_v24, 2  ;;  %v7180_v19 = vadd.f32 %v1692_v11, %v1539_v48  ;;  %v3516_v35 = vadd.f32 %v3484_v15, %v3448_v57  ;;  %v9567_v12 = vld [vmem:[#allocation6_spill] sm:$0xff] }
 0x167   : > { %v3904_v31 = vrot.slane %v3800_v62, 1  ;;  %v1690_v41 = vsel %vm1413_vm2, %v1688_v42, %v1689_v17  ;;  %v7186_v36 = vmul.f32 %v5793_v47, %v1138_v51  ;;  %v2797_v13 = vrot.slane %v7165_v5, 1  ;;  %v9566_v17 = vld [vmem:[#allocation4_spill] sm:$0xff] }
 0x168   : > { %v4151_v25 = vsel %vm1902_vm3, %v4148_v45, %v9564_v34  ;;  %v4288_v23 = vmul.f32 %v7192_v40, %v1138_v51  ;;  %v2374_v55 = vmul.f32 %v5944_v4, %v1138_v51  ;;  %v7197_v29 = vmul.f32 %v5960_v49, %v1138_v51  ;;  %v9570_v34 = vld [vmem:[#allocation35_spill] sm:$0xff] }
 0x169   : > { %v3760_v53 = vadd.f32 %v3663_v28, %v3516_v35  ;;  %v9565_v42 = vrot.slane %v6966_v38, 1  ;;  %v3907_v57 = vsel %vm1413_vm2, %v3904_v31, %v3906_v37  ;;  %v1824_v3 = vmul.f32 %v7116_v16, %v9566_v17 }
 0x16a   : > { %v4392_v21 = vrot.slane %v4288_v23, 2  ;;  %v1782_v44 = vadd.f32 %v1690_v41, %v6973_v32  ;;  %v7210_v51 = vmul.f32 %v7122_v60, %v9566_v17  ;;  %v2934_v38 = vmul.f32 %v7116_v16, %v9567_v12  ;;  %v999_v16 = vpop.permute.xlu1 %998 }
 0x16b   : > { %v3905_v45 = vsel %vm1413_vm2, %v9565_v42, %v3904_v31  ;;  %v4004_v7 = vadd.f32 %v3907_v57, %v3760_v53  ;;  %v9568_v5 = vrot.slane %v6962_v39, 1  ;;  %v9569_v62 = vrot.slane %v6969_v54, 2  ;;  %v7262_v57 = vld [vmem:[#allocation2 + $0xa8] sm:$0xff] }
 0x16c   : > { %v4003_v10 = vadd.f32 %v3905_v45, %v3759_v59  ;;  %v1933_v14 = vrot.slane %v1824_v3, 2  ;;  %v1934_v32 = vrot.slane %v7210_v51, 2  ;;  %v7223_v11 = vmul.f32 %v7122_v60, %v9567_v12 }
 0x16d   : > { %v2798_v6 = vsel %vm1413_vm2, %v9568_v5, %v2797_v13  ;;  %v4393_v8 = vsel %vm1902_vm3, %v9569_v62, %v4392_v21  ;;  %v4248_v48 = vadd.f32 %v4151_v25, %v4004_v7  ;;  %v3040_v15 = vrot.slane %v2934_v38, 2  ;;  %v839_v38 = vpop.permute.xlu0 %838  ;;  %v9576_v25 = vld [vmem:[#allocation32_spill] sm:$0xff] }
 0x16e   : > { %v4247_v37 = vadd.f32 %v4149_v56, %v4003_v10  ;;  %v2406_v39 = vadd.f32 %v2374_v55, %v2338_v33  ;;  %v2893_v63 = vadd.f32 %v2798_v6, %v2649_v0  ;;  %v4395_v28 = vsel %vm1902_vm3, %v4392_v21, %v4394_v52  ;;  %v9571_v52 = vld [vmem:[#allocation101_spill] sm:$0xff]  ;;  %v9572_v10 = vld [vmem:[#allocation24_spill] sm:$0xff]  ;;  %v1001_v5 = vpop.permute.xlu1 %1000 }
 0x16f   : > { %v9284_v54 = vrot.slane %v7186_v36, 2  ;;  %v7229_v56 = vadd.f32 %v4395_v28, %v4248_v48  ;;  %v1935_v24 = vsel %vm1902_vm3, %v1933_v14, %v1934_v32  ;;  %v9283_v60 = vrot.slane %v7223_v11, 2  ;;  %v9574_v14 = vld [vmem:[#allocation37_spill] sm:$0xff] }
 0x170   : > { %v7226_v59 = vadd.f32 %v4393_v8, %v4247_v37  ;;  %v2177_v35 = vrot.slane %v6956_v22, 2  ;;  %v9282_v0 = vrot.slane %v7197_v29, 2  ;;  %v1140_v33 = vsel %vm1118_vm4, %v9571_v52, %v999_v16  ;;  %v9573_v37 = vld [vmem:[#allocation28_spill] sm:$0xff] }
 0x171   : > { %v3284_v31 = vrot.slane %v6981_v46, 2  ;;  %v7246_v41 = vmul.f32 %v5793_v47, %v7007_v27  ;;  %4524 = vst.msk [vmem:[%s6631_s28 + $0x48] sm:$0xff] %vm597_vm0, %v7229_v56  ;;  %v2027_v23 = vadd.f32 %v1935_v24, %v1782_v44  ;;  %v3042_v22 = vsel %vm1902_vm3, %v3040_v15, %v9283_v60 }
 0x172   : > { %4523 = vst.msk [vmem:[%s6631_s28 + $0x40] sm:$0xff] %vm597_vm0, %v7226_v59  ;;  %v2799_v55 = vrot.slane %v7057_v58, 1  ;;  %v7257_v53 = vmul.f32 %v5960_v49, %v7007_v27  ;;  %v2650_v42 = vadd.f32 %v2556_v43, %v2406_v39  ;;  %v3137_v46 = vadd.f32 %v3042_v22, %v2893_v63 }
 0x173   : > { %v2179_v45 = vsel %vm1902_vm3, %v2177_v35, %v9284_v54  ;;  %v1195_v21 = vmul.f32 %v7262_v57, %v9572_v10  ;;  %v1263_v3 = vmul.f32 %v5779_v1, %v1140_v33  ;;  %v1583_v44 = vmul.f32 %v5784_v50, %v1140_v33 }
 0x174   : > { %v2800_v58 = vsel %vm1413_vm2, %v2797_v13, %v2799_v55  ;;  %v3286_v27 = vsel %vm1902_vm3, %v3284_v31, %v9282_v0  ;;  %v7273_v43 = vmul.f32 %v5793_v47, %v1140_v33  ;;  %v7276_v7 = vmul.f32 %v5949_v61, %v1140_v33 }
 0x175   : > { %v2271_v6 = vadd.f32 %v2179_v45, %v2027_v23  ;;  %v2307_v62 = vmul.f32 %v7262_v57, %v9573_v37  ;;  %v3381_v8 = vadd.f32 %v3286_v27, %v3137_v46  ;;  %v3417_v13 = vmul.f32 %v7262_v57, %v9574_v14  ;;  %v9575_v45 = vld [vmem:[#allocation3_spill] sm:$0xff] }
 0x176   : > { %v2180_v48 = vrot.slane %v7246_v41, 2  ;;  %v7284_v16 = vadd.f32 %v2800_v58, %v2650_v42  ;;  %v7288_v39 = vmul.f32 %v7226_v59, %v7226_v59  ;;  %v1295_v63 = vadd.f32 %v1263_v3, %v1195_v21  ;;  %v7308_v3 = vld [vmem:[#allocation2 + $0xb0] sm:$0xff]  ;;  %v7312_v58 = vld [vmem:[#allocation2 + $0xb8] sm:$0x3] }
 0x177   : > { %v1693_v28 = vrot.slane %v1583_v44, 1  ;;  %v2375_v24 = vmul.f32 %v5944_v4, %v1140_v33  ;;  %v7292_v35 = vsel %vm1118_vm4, %v839_v38, %v1001_v5  ;;  %v7297_v41 = vmul.f32 %v5960_v49, %v1140_v33 }
 0x178   : > { %v3485_v23 = vmul.f32 %v9451_v30, %v1140_v33  ;;  %v2339_v22 = vadd.f32 %v2307_v62, %v2271_v6  ;;  %v3449_v55 = vadd.f32 %v3417_v13, %v3381_v8  ;;  %v7301_v42 = vmul.f32 %v9453_v9, %v1140_v33 }
 0x179   : > { %v7304_v46 = vmul.f32 %v7192_v40, %v1140_v33  ;;  %v1338_v21 = vmul.f32 %v7262_v57, %v9575_v45  ;;  %v1339_v44 = vmul.f32 %v7308_v3, %v9575_v45  ;;  %v1340_v27 = vmul.f32 %v7312_v58, %v9575_v45 }
 0x17a   : > { %v7318_v38 = vmul.f32 %v5784_v50, %v7292_v35  ;;  %v1264_v33 = vmul.f32 %v5779_v1, %v7292_v35  ;;  %v1196_v5 = vmul.f32 %v7308_v3, %v9572_v10  ;;  %v1827_v6 = vmul.f32 %v7262_v57, %v9566_v17 }
 0x17b   : > { %v1828_v62 = vmul.f32 %v7308_v3, %v9566_v17  ;;  %v1449_v13 = vrot.slane %v1338_v21, 1  ;;  %v1450_v0 = vrot.slane %v1339_v44, 1  ;;  %v2407_v31 = vadd.f32 %v2375_v24, %v2339_v22 }
 0x17c   : > { %v9289_v15 = vrot.slane %v7318_v38, 1  ;;  %v9577_v54 = vrot.slane %v9576_v25, 2  ;;  %v1452_v10 = vrot.slane %v1340_v27, 1  ;;  %v1829_v21 = vmul.f32 %v7312_v58, %v9566_v17 }
 0x17d   : > { %v1451_v1 = vsel %vm1413_vm2, %v1449_v13, %v1450_v0  ;;  %v7341_v8 = vadd.f32 %v3485_v23, %v3449_v55  ;;  %v1296_v24 = vadd.f32 %v1264_v33, %v1196_v5  ;;  %v1938_v22 = vrot.slane %v1827_v6, 2 }
 0x17e   : > { %v1937_v45 = vsel %vm1902_vm3, %v1934_v32, %v9577_v54  ;;  %v1939_v52 = vrot.slane %v1828_v62, 2  ;;  %v1695_v25 = vsel %vm1413_vm2, %v1693_v28, %v9289_v15  ;;  %v7348_v51 = vmul.f32 %v5793_v47, %v7292_v35 }
 0x17f   : > { %v2028_v44 = vadd.f32 %v1937_v45, %v7180_v19  ;;  %v9578_v32 = vrot.slane %v7186_v36, 2  ;;  %v2308_v19 = vmul.f32 %v7308_v3, %v9573_v37  ;;  %v1540_v23 = vadd.f32 %v1451_v1, %v1295_v63  ;;  %v9579_v45 = vld [vmem:[#allocation5_spill] sm:$0xff] }
 0x180   : > { %v2449_v27 = vmul.f32 %v7262_v57, %v9579_v45  ;;  %v2450_v33 = vmul.f32 %v7308_v3, %v9579_v45  ;;  %v1453_v28 = vsel %vm1413_vm2, %v1450_v0, %v1452_v10  ;;  %v1941_v5 = vrot.slane %v1829_v21, 2 }
 0x181   : > { %v2181_v54 = vsel %vm1902_vm3, %v9578_v32, %v2180_v48  ;;  %v2451_v6 = vmul.f32 %v7312_v58, %v9579_v45  ;;  %v7364_v36 = vmul.f32 %v5949_v61, %v7292_v35  ;;  %v1784_v48 = vadd.f32 %v1695_v25, %v1540_v23 }
 0x182   : > { %v2272_v55 = vadd.f32 %v2181_v54, %v2028_v44  ;;  %v9290_v1 = vrot.slane %v7348_v51, 2  ;;  %v2557_v63 = vrot.slane %v2449_v27, 1  ;;  %v2558_v62 = vrot.slane %v2450_v33, 1 }
 0x183   : > { %v1940_v13 = vsel %vm1902_vm3, %v1938_v22, %v1939_v52  ;;  %v2560_v32 = vrot.slane %v2451_v6, 1  ;;  %v2802_v54 = vrot.slane %v7364_v36, 1  ;;  %v2376_v0 = vmul.f32 %v5944_v4, %v7292_v35 }
 0x184   : > { %v2340_v44 = vadd.f32 %v2308_v19, %v2272_v55  ;;  %v2559_v10 = vsel %vm1413_vm2, %v2557_v63, %v2558_v62  ;;  %v2937_v21 = vmul.f32 %v7262_v57, %v9567_v12  ;;  %v2938_v25 = vmul.f32 %v7308_v3, %v9567_v12 }
 0x185   : > { %v3486_v23 = vmul.f32 %v9451_v30, %v7292_v35  ;;  %v2651_v27 = vadd.f32 %v2559_v10, %v2407_v31  ;;  %v2939_v22 = vmul.f32 %v7312_v58, %v9567_v12  ;;  %v9580_v19 = vrot.slane %v9570_v34, 2 }
 0x186   : > { %v9581_v55 = vrot.slane %v7223_v11, 2  ;;  %v7385_v6 = vadd.f32 %v1453_v28, %v1296_v24  ;;  %v7388_v63 = vsel %vm1902_vm3, %v1939_v52, %v1941_v5  ;;  %v7390_v15 = vadd.f32 %v1940_v13, %v1784_v48 }
 0x187   : > { %v9582_v31 = vrot.slane %v7273_v43, 2  ;;  %v2408_v60 = vadd.f32 %v2376_v0, %v2340_v44  ;;  %v2561_v34 = vsel %vm1413_vm2, %v2558_v62, %v2560_v32  ;;  %v9583_v11 = vrot.slane %v7276_v7, 1 }
 0x188   : > { %v3044_v33 = vsel %vm1902_vm3, %v9581_v55, %v9580_v19  ;;  %v3045_v28 = vrot.slane %v2937_v21, 2  ;;  %v3046_v5 = vrot.slane %v2938_v25, 2  ;;  %v9584_v48 = vrot.slane %v7257_v53, 2 }
 0x189   : > { %v7397_v10 = vsel %vm1902_vm3, %v9582_v31, %v9290_v1  ;;  %v2803_v24 = vsel %vm1413_vm2, %v9583_v11, %v2802_v54  ;;  %v3138_v52 = vadd.f32 %v3044_v33, %v7284_v16  ;;  %v9585_v43 = vrot.slane %v7197_v29, 2 }
 0x18a   : > { %v3418_v44 = vmul.f32 %v7308_v3, %v9574_v14  ;;  %v2895_v62 = vadd.f32 %v2803_v24, %v2651_v27  ;;  %v3048_v32 = vrot.slane %v2939_v22, 2  ;;  %v3558_v7 = vmul.f32 %v7262_v57, %v9549_v26 }
 0x18b   : > { %v3288_v13 = vsel %vm1902_vm3, %v9585_v43, %v9584_v48  ;;  %v3559_v16 = vmul.f32 %v7308_v3, %v9549_v26  ;;  %v3560_v21 = vmul.f32 %v7312_v58, %v9549_v26  ;;  %v3803_v29 = vmul.f32 %v9453_v9, %v7292_v35  ;;  %v841_v43 = vpop.permute.xlu0 %840 }
 0x18c   : > { %v3382_v0 = vadd.f32 %v3288_v13, %v3138_v52  ;;  %v4046_v53 = vmul.f32 %v7262_v57, %v7131_v18  ;;  %v7425_v25 = vmul.f32 %v5960_v49, %v7292_v35  ;;  %v3664_v22 = vrot.slane %v3558_v7, 1 }
 0x18d   : > { %v4047_v19 = vmul.f32 %v7308_v3, %v7131_v18  ;;  %v3047_v55 = vsel %vm1902_vm3, %v3045_v28, %v3046_v5  ;;  %v3665_v33 = vrot.slane %v3559_v16, 1  ;;  %v3667_v31 = vrot.slane %v3560_v21, 1 }
 0x18e   : > { %v3450_v27 = vadd.f32 %v3418_v44, %v3382_v0  ;;  %v3909_v11 = vrot.slane %v3803_v29, 1  ;;  %v4048_v52 = vmul.f32 %v7312_v58, %v7131_v18  ;;  %v4152_v48 = vrot.slane %v4046_v53, 2  ;;  %v1003_v0 = vpop.permute.xlu1 %1002 }
 0x18f   : > { %v4153_v57 = vrot.slane %v4047_v19, 2  ;;  %v2652_v13 = vadd.f32 %v2561_v34, %v2408_v60  ;;  %v3666_v1 = vsel %vm1413_vm2, %v3664_v22, %v3665_v33  ;;  %v3668_v44 = vsel %vm1413_vm2, %v3665_v33, %v3667_v31 }
 0x190   : > { %v3518_v24 = vadd.f32 %v3486_v23, %v3450_v27  ;;  %v4291_v3 = vmul.f32 %v7192_v40, %v7292_v35  ;;  %v3049_v28 = vsel %vm1902_vm3, %v3046_v5, %v3048_v32  ;;  %v3139_v7 = vadd.f32 %v3047_v55, %v2895_v62 }
 0x191   : > { %v3761_v23 = vadd.f32 %v3666_v1, %v7341_v8  ;;  %v4155_v16 = vrot.slane %v4048_v52, 2  ;;  %v3290_v58 = vrot.slane %v7425_v25, 2  ;;  %v9586_v21 = vrot.slane %v7301_v42, 1 }
 0x192   : > { %v4154_v34 = vsel %vm1902_vm3, %v4152_v48, %v4153_v57  ;;  %v4397_v29 = vrot.slane %v4291_v3, 2  ;;  %v3762_v53 = vadd.f32 %v3668_v44, %v3518_v24  ;;  %v4562_v35 = vsel %vm597_vm0, %v7226_v59, 0.0 }
 0x193   : > { %v3910_v60 = vsel %vm1413_vm2, %v9586_v21, %v3909_v11  ;;  %v1142_v5 = vsel %vm1118_vm4, %v841_v43, %v1003_v0  ;;  %v4156_v62 = vsel %vm1902_vm3, %v4153_v57, %v4155_v16  ;;  %v4564_v8 = vsel %vm597_vm0, %v7229_v56, 0.0 }
 0x194   : > { %v4005_v27 = vadd.f32 %v3910_v60, %v3761_v23  ;;  %v4627_v42 = vmul.f32 %v7229_v56, %v7229_v56  ;;  %v1585_v1 = vmul.f32 %v5784_v50, %v1142_v5  ;;  %v9587_v25 = vrot.slane %v7304_v46, 2 }
 0x195   : > { %v2695_v59 = vmul.f32 %v5949_v61, %v1142_v5  ;;  %v3804_v19 = vmul.f32 %v9453_v9, %v1142_v5  ;;  %v2074_v33 = vmul.f32 %v5793_v47, %v1142_v5  ;;  %v4292_v31 = vmul.f32 %v7192_v40, %v1142_v5 }
 0x196   : > { %v4249_v32 = vadd.f32 %v4154_v34, %v4005_v27  ;;  %v4398_v22 = vsel %vm1902_vm3, %v9587_v25, %v4397_v29  ;;  %v1696_v55 = vrot.slane %v1585_v1, 1  ;;  %v4563_v24 = vadd.f32 %v4562_v35, %v7147_v2  ;;  %v7478_v1 = vld [vmem:[#allocation2 + $0xc8] sm:$0xff]  ;;  %v843_v25 = vpop.permute.xlu0 %842 }
 0x197   : > { %v2804_v52 = vrot.slane %v2695_v59, 1  ;;  %v3183_v48 = vmul.f32 %v5960_v49, %v1142_v5  ;;  %v3911_v57 = vrot.slane %v3804_v19, 1  ;;  %v4665_v46 = vsel %vm597_vm0, %v7288_v39, 0.0 }
 0x198   : > { %v4493_v56 = vadd.f32 %v4398_v22, %v4249_v32  ;;  %v4667_v43 = vsel %vm597_vm0, %v4627_v42, 0.0  ;;  %v9588_v44 = vrot.slane %v7318_v38, 1  ;;  %v4565_v0 = vadd.f32 %v4564_v8, %v4563_v24  ;;  %v9591_v24 = vld [vmem:[#allocation24_spill] sm:$0xff] }
 0x199   : > { %v2805_v21 = vsel %vm1413_vm2, %v2802_v54, %v2804_v52  ;;  %v2185_v60 = vrot.slane %v2074_v33, 2  ;;  %v3912_v34 = vsel %vm1413_vm2, %v3909_v11, %v3911_v57  ;;  %v4399_v27 = vrot.slane %v4292_v31, 2 }
 0x19a   : > { %v1697_v3 = vsel %vm1413_vm2, %v9588_v44, %v1696_v55  ;;  %4525 = vst.msk [vmem:[%s6631_s28 + $0x50] sm:$0xff] %vm597_vm0, %v4493_v56  ;;  %v4566_v23 = vsel %vm597_vm0, %v4493_v56, 0.0  ;;  %v4628_v2 = vmul.f32 %v4493_v56, %v4493_v56  ;;  %v2896_v39 = vadd.f32 %v2805_v21, %v2652_v13  ;;  %v7493_v55 = vld [vmem:[#allocation2 + $0xc0] sm:$0xff] }
 0x19b   : > { %v1785_v16 = vadd.f32 %v1697_v3, %v7385_v6  ;;  %v3292_v35 = vrot.slane %v3183_v48, 2  ;;  %v4006_v5 = vadd.f32 %v3912_v34, %v3762_v53  ;;  %v4567_v8 = vadd.f32 %v4566_v23, %v4565_v0 }
 0x19c   : > { %v2273_v42 = vadd.f32 %v7397_v10, %v7390_v15  ;;  %v2310_v36 = vmul.f32 %v7478_v1, %v9573_v37  ;;  %v3420_v54 = vmul.f32 %v7478_v1, %v9574_v14  ;;  %v4666_v6 = vadd.f32 %v4665_v46, %v7152_v20  ;;  %v1005_v15 = vpop.permute.xlu1 %1004 }
 0x19d   : > { %v2030_v38 = vadd.f32 %v7388_v63, %v1785_v16  ;;  %v9589_v11 = vrot.slane %v7297_v41, 2  ;;  %v4669_v13 = vsel %vm597_vm0, %v4628_v2, 0.0  ;;  %v3140_v53 = vadd.f32 %v3049_v28, %v2896_v39  ;;  %v845_v16 = vpop.permute.xlu0 %844 }
 0x19e   : > { %v4250_v32 = vadd.f32 %v4156_v62, %v4006_v5  ;;  %v9590_v10 = vrot.slane %v7348_v51, 2  ;;  %v4400_v59 = vsel %vm1902_vm3, %v4397_v29, %v4399_v27  ;;  %v4668_v19 = vadd.f32 %v4667_v43, %v4666_v6 }
 0x19f   : > { %v3291_v63 = vsel %vm1902_vm3, %v9589_v11, %v3290_v58  ;;  %v2309_v20 = vmul.f32 %v7493_v55, %v9573_v37  ;;  %v3293_v28 = vsel %vm1902_vm3, %v3290_v58, %v3292_v35  ;;  %v1197_v56 = vmul.f32 %v7493_v55, %v9591_v24 }
 0x1a0   : > { %v2186_v22 = vsel %vm1902_vm3, %v9590_v10, %v2185_v60  ;;  %v3383_v41 = vadd.f32 %v3291_v63, %v3139_v7  ;;  %v4494_v62 = vadd.f32 %v4400_v59, %v4250_v32  ;;  %v4670_v31 = vadd.f32 %v4669_v13, %v4668_v19  ;;  %v9592_v7 = vld [vmem:[#allocation26_spill] sm:$0xff]  ;;  %v1007_v21 = vpop.permute.xlu1 %1006 }
 0x1a1   : > { %v2274_v33 = vadd.f32 %v2186_v22, %v2030_v38  ;;  %v3419_v51 = vmul.f32 %v7493_v55, %v9574_v14  ;;  %v1143_v29 = vsel %vm1118_vm4, %v843_v25, %v1005_v15  ;;  %v3384_v52 = vadd.f32 %v3293_v28, %v3140_v53  ;;  %v9593_v22 = vld [vmem:[#allocation3_spill] sm:$0xff] }
 0x1a2   : > { %4526 = vst.msk [vmem:[%s6631_s28 + $0x58] sm:$0xff] %vm597_vm0, %v4494_v62  ;;  %v4568_v48 = vsel %vm597_vm0, %v4494_v62, 0.0  ;;  %v4629_v57 = vmul.f32 %v4494_v62, %v4494_v62  ;;  %v1265_v46 = vmul.f32 %v9592_v7, %v1143_v29  ;;  %v2341_v58 = vadd.f32 %v2309_v20, %v2273_v42  ;;  %v7551_v20 = vld [vmem:[#allocation2 + $0xd0] sm:$0x3] }
 0x1a3   : > { %v7507_v43 = vadd.f32 %v4568_v48, %v4567_v8  ;;  %v1586_v44 = vmul.f32 %v5784_v50, %v1143_v29  ;;  %v7511_v3 = vmul.f32 %v5793_v47, %v1143_v29  ;;  %v7515_v23 = vmul.f32 %v5949_v61, %v1143_v29 }
 0x1a4   : > { %v4671_v0 = vsel %vm597_vm0, %v4629_v57, 0.0  ;;  %v7518_v2 = vmul.f32 %v5960_v49, %v1143_v29  ;;  %v2342_v60 = vadd.f32 %v2310_v36, %v2274_v33  ;;  %v3451_v34 = vadd.f32 %v3419_v51, %v3383_v41 }
 0x1a5   : > { %v7520_v39 = vadd.f32 %v4671_v0, %v4670_v31  ;;  %v2377_v27 = vmul.f32 %v5944_v4, %v1143_v29  ;;  %v7523_v38 = vadd.f32 %v3420_v54, %v3384_v52  ;;  %v1297_v35 = vadd.f32 %v1265_v46, %v1197_v56 }
 0x1a6   : > { %v1698_v5 = vrot.slane %v1586_v44, 1  ;;  %v7526_v8 = vmul.f32 %v9453_v9, %v1143_v29  ;;  %v2187_v42 = vrot.slane %v7511_v3, 2  ;;  %v3487_v11 = vmul.f32 %v9451_v30, %v1143_v29 }
 0x1a7   : > { %v2409_v6 = vadd.f32 %v2377_v27, %v2341_v58  ;;  %v7531_v63 = vsel %vm1118_vm4, %v845_v16, %v1007_v21  ;;  %v2806_v36 = vrot.slane %v7515_v23, 1  ;;  %v3294_v13 = vrot.slane %v7518_v2, 2 }
 0x1a8   : > { %v7536_v54 = vmul.f32 %v7192_v40, %v1143_v29  ;;  %v1266_v53 = vmul.f32 %v9592_v7, %v7531_v63  ;;  %v7540_v32 = vadd.f32 %v3487_v11, %v3451_v34  ;;  %v3913_v25 = vrot.slane %v7526_v8, 1  ;;  %v7580_v11 = vld [vmem:[#allocation2 + $0xe0] sm:$0xff] }
 0x1a9   : > { %v2378_v15 = vmul.f32 %v5944_v4, %v7531_v63  ;;  %v1198_v10 = vmul.f32 %v7478_v1, %v9591_v24  ;;  %v1341_v59 = vmul.f32 %v7493_v55, %v9593_v22  ;;  %v1342_v19 = vmul.f32 %v7478_v1, %v9593_v22 }
 0x1aa   : > { %v1343_v41 = vmul.f32 %v7551_v20, %v9593_v22  ;;  %v7557_v33 = vmul.f32 %v5784_v50, %v7531_v63  ;;  %v1830_v62 = vmul.f32 %v7493_v55, %v9566_v17  ;;  %v1831_v31 = vmul.f32 %v7478_v1, %v9566_v17 }
 0x1ab   : > { %v1298_v28 = vadd.f32 %v1266_v53, %v1198_v10  ;;  %v1832_v56 = vmul.f32 %v7551_v20, %v9566_v17  ;;  %v1454_v51 = vrot.slane %v1341_v59, 1  ;;  %v1455_v29 = vrot.slane %v1342_v19, 1 }
 0x1ac   : > { %v1457_v52 = vrot.slane %v1343_v41, 1  ;;  %v9291_v48 = vrot.slane %v7557_v33, 1  ;;  %v1943_v46 = vrot.slane %v1830_v62, 2  ;;  %v1944_v58 = vrot.slane %v1831_v31, 2 }
 0x1ad   : > { %v7569_v44 = vmul.f32 %v5793_v47, %v7531_v63  ;;  %v3488_v3 = vmul.f32 %v9451_v30, %v7531_v63  ;;  %v1456_v0 = vsel %vm1413_vm2, %v1454_v51, %v1455_v29  ;;  %v1946_v27 = vrot.slane %v1832_v56, 2 }
 0x1ae   : > { %v1458_v23 = vsel %vm1413_vm2, %v1455_v29, %v1457_v52  ;;  %v1700_v16 = vsel %vm1413_vm2, %v1698_v5, %v9291_v48  ;;  %v1542_v21 = vadd.f32 %v1456_v0, %v1297_v35  ;;  %v7584_v53 = vmul.f32 %v7580_v11, %v9573_v37 }
 0x1af   : > { %v7578_v34 = vadd.f32 %v1458_v23, %v1298_v28  ;;  %v1945_v10 = vsel %vm1902_vm3, %v1943_v46, %v1944_v58  ;;  %v2188_v59 = vrot.slane %v7569_v44, 2  ;;  %v2452_v19 = vmul.f32 %v7493_v55, %v9579_v45 }
 0x1b0   : > { %v2453_v5 = vmul.f32 %v7478_v1, %v9579_v45  ;;  %v1786_v35 = vadd.f32 %v1700_v16, %v1542_v21  ;;  %v2454_v41 = vmul.f32 %v7551_v20, %v9579_v45  ;;  %v7596_v28 = vmul.f32 %v5949_v61, %v7531_v63 }
 0x1b1   : > { %v2940_v62 = vmul.f32 %v7493_v55, %v9567_v12  ;;  %v2410_v31 = vadd.f32 %v2378_v15, %v2342_v60  ;;  %v2562_v56 = vrot.slane %v2452_v19, 1  ;;  %v2941_v29 = vmul.f32 %v7478_v1, %v9567_v12 }
 0x1b2   : > { %v2563_v51 = vrot.slane %v2453_v5, 1  ;;  %v2031_v52 = vadd.f32 %v1945_v10, %v1786_v35  ;;  %v2565_v46 = vrot.slane %v2454_v41, 1  ;;  %v2807_v0 = vrot.slane %v7596_v28, 1 }
 0x1b3   : > { %v2942_v23 = vmul.f32 %v7551_v20, %v9567_v12  ;;  %v3050_v21 = vrot.slane %v2940_v62, 2  ;;  %v3051_v48 = vrot.slane %v2941_v29, 2  ;;  %v7608_v57 = vmul.f32 %v5960_v49, %v7531_v63 }
 0x1b4   : > { %v2564_v16 = vsel %vm1413_vm2, %v2562_v56, %v2563_v51  ;;  %v2189_v60 = vsel %vm1902_vm3, %v2187_v42, %v2188_v59  ;;  %v2566_v15 = vsel %vm1413_vm2, %v2563_v51, %v2565_v46  ;;  %v2808_v19 = vsel %vm1413_vm2, %v2806_v36, %v2807_v0 }
 0x1b5   : > { %v2653_v10 = vadd.f32 %v2564_v16, %v2409_v6  ;;  %v7618_v5 = vsel %vm1902_vm3, %v1944_v58, %v1946_v27  ;;  %v7620_v35 = vadd.f32 %v2189_v60, %v2031_v52  ;;  %v7622_v41 = vadd.f32 %v2566_v15, %v2410_v31 }
 0x1b6   : > { %v3052_v62 = vsel %vm1902_vm3, %v3050_v21, %v3051_v48  ;;  %v3053_v29 = vrot.slane %v2942_v23, 2  ;;  %v3295_v42 = vrot.slane %v7608_v57, 2  ;;  %v3561_v6 = vmul.f32 %v7493_v55, %v9549_v26 }
 0x1b7   : > { %v2897_v56 = vadd.f32 %v2808_v19, %v2653_v10  ;;  %v7630_v51 = vmul.f32 %v7580_v11, %v9574_v14  ;;  %v3520_v36 = vadd.f32 %v3488_v3, %v7523_v38  ;;  %v3562_v58 = vmul.f32 %v7478_v1, %v9549_v26  ;;  %v847_v3 = vpop.permute.xlu0 %846 }
 0x1b8   : > { %v3563_v27 = vmul.f32 %v7551_v20, %v9549_v26  ;;  %v3669_v52 = vrot.slane %v3561_v6, 1  ;;  %v3806_v46 = vmul.f32 %v9453_v9, %v7531_v63  ;;  %v4049_v23 = vmul.f32 %v7493_v55, %v7131_v18 }
 0x1b9   : > { %v3141_v31 = vadd.f32 %v3052_v62, %v2897_v56  ;;  %v3670_v16 = vrot.slane %v3562_v58, 1  ;;  %v4050_v60 = vmul.f32 %v7478_v1, %v7131_v18  ;;  %v4051_v38 = vmul.f32 %v7551_v20, %v7131_v18  ;;  %v1009_v62 = vpop.permute.xlu1 %1008 }
 0x1ba   : > { %v3672_v21 = vrot.slane %v3563_v27, 1  ;;  %v3296_v15 = vsel %vm1902_vm3, %v3294_v13, %v3295_v42  ;;  %v3914_v10 = vrot.slane %v3806_v46, 1  ;;  %v4157_v19 = vrot.slane %v4049_v23, 2 }
 0x1bb   : > { %v4294_v55 = vmul.f32 %v7192_v40, %v7531_v63  ;;  %v3671_v56 = vsel %vm1413_vm2, %v3669_v52, %v3670_v16  ;;  %v4158_v6 = vrot.slane %v4050_v60, 2  ;;  %v4160_v58 = vrot.slane %v4051_v38, 2  ;;  %v7668_v38 = vld [vmem:[#allocation2 + $0xd8] sm:$0xff] }
 0x1bc   : > { %v3673_v1 = vsel %vm1413_vm2, %v3670_v16, %v3672_v21  ;;  %v3054_v18 = vsel %vm1902_vm3, %v3051_v48, %v3053_v29  ;;  %v3385_v20 = vadd.f32 %v3296_v15, %v3141_v31  ;;  %v3763_v27 = vadd.f32 %v3671_v56, %v7540_v32 }
 0x1bd   : > { %v3764_v2 = vadd.f32 %v3673_v1, %v3520_v36  ;;  %v3915_v13 = vsel %vm1413_vm2, %v3913_v25, %v3914_v10  ;;  %v4159_v46 = vsel %vm1902_vm3, %v4157_v19, %v4158_v6  ;;  %v4402_v63 = vrot.slane %v4294_v55, 2 }
 0x1be   : > { %v1145_v23 = vsel %vm1118_vm4, %v847_v3, %v1009_v62  ;;  %v4007_v52 = vadd.f32 %v3915_v13, %v3763_v27  ;;  %v4161_v16 = vsel %vm1902_vm3, %v4158_v6, %v4160_v58  ;;  %v1199_v3 = vmul.f32 %v7668_v38, %v9591_v24 }
 0x1bf   : > { %v1588_v21 = vmul.f32 %v5784_v50, %v1145_v23  ;;  %v2077_v48 = vmul.f32 %v5793_v47, %v1145_v23  ;;  %v2698_v29 = vmul.f32 %v5949_v61, %v1145_v23  ;;  %v3186_v32 = vmul.f32 %v5960_v49, %v1145_v23 }
 0x1c0   : > { %v3807_v8 = vmul.f32 %v9453_v9, %v1145_v23  ;;  %v4295_v25 = vmul.f32 %v7192_v40, %v1145_v23  ;;  %v4251_v36 = vadd.f32 %v4159_v46, %v4007_v52  ;;  %v9594_v15 = vrot.slane %v7536_v54, 2 }
 0x1c1   : > { %v1701_v31 = vrot.slane %v1588_v21, 1  ;;  %v2190_v60 = vrot.slane %v2077_v48, 2  ;;  %v2809_v55 = vrot.slane %v2698_v29, 1  ;;  %v3297_v62 = vrot.slane %v3186_v32, 2  ;;  %v849_v21 = vpop.permute.xlu0 %848 }
 0x1c2   : > { %v4403_v19 = vsel %vm1902_vm3, %v9594_v15, %v4402_v63  ;;  %v3916_v56 = vrot.slane %v3807_v8, 1  ;;  %v9595_v6 = vrot.slane %v7557_v33, 1  ;;  %v4404_v27 = vrot.slane %v4295_v25, 2  ;;  %v1011_v33 = vpop.permute.xlu1 %1010 }
 0x1c3   : > { %v4495_v1 = vadd.f32 %v4403_v19, %v4251_v36  ;;  %v2311_v13 = vmul.f32 %v7668_v38, %v9573_v37  ;;  %v2191_v54 = vsel %vm1902_vm3, %v2188_v59, %v2190_v60  ;;  %v2810_v23 = vsel %vm1413_vm2, %v2807_v0, %v2809_v55 }
 0x1c4   : > { %v1702_v58 = vsel %vm1413_vm2, %v9595_v6, %v1701_v31  ;;  %v3917_v52 = vsel %vm1413_vm2, %v3914_v10, %v3916_v56  ;;  %v2898_v32 = vadd.f32 %v2810_v23, %v7622_v41  ;;  %v3298_v59 = vsel %vm1902_vm3, %v3295_v42, %v3297_v62 }
 0x1c5   : > { %v1787_v46 = vadd.f32 %v1702_v58, %v7578_v34  ;;  %4527 = vst.msk [vmem:[%s6631_s28 + $0x60] sm:$0xff] %vm597_vm0, %v4495_v1  ;;  %v4570_v48 = vsel %vm597_vm0, %v4495_v1, 0.0  ;;  %v4630_v29 = vmul.f32 %v4495_v1, %v4495_v1  ;;  %v4008_v34 = vadd.f32 %v3917_v52, %v3764_v2  ;;  %v851_v62 = vpop.permute.xlu0 %850 }
 0x1c6   : > { %v4571_v28 = vadd.f32 %v4570_v48, %v7507_v43  ;;  %v3421_v0 = vmul.f32 %v7668_v38, %v9574_v14  ;;  %v3142_v8 = vadd.f32 %v3054_v18, %v2898_v32  ;;  %v1146_v36 = vsel %vm1118_vm4, %v849_v21, %v1011_v33  ;;  %v1013_v56 = vpop.permute.xlu1 %1012 }
 0x1c7   : > { %v2032_v44 = vadd.f32 %v7618_v5, %v1787_v46  ;;  %v4673_v10 = vsel %vm597_vm0, %v4630_v29, 0.0  ;;  %v4252_v25 = vadd.f32 %v4161_v16, %v4008_v34  ;;  %v4405_v2 = vsel %vm1902_vm3, %v4402_v63, %v4404_v27 }
 0x1c8   : > { %v4674_v5 = vadd.f32 %v4673_v10, %v7520_v39  ;;  %v1267_v57 = vmul.f32 %v9592_v7, %v1146_v36  ;;  %v3386_v42 = vadd.f32 %v3298_v59, %v3142_v8  ;;  %v1589_v43 = vmul.f32 %v5784_v50, %v1146_v36 }
 0x1c9   : > { %v2276_v41 = vadd.f32 %v2191_v54, %v2032_v44  ;;  %v4496_v31 = vadd.f32 %v4405_v2, %v4252_v25  ;;  %v7706_v60 = vmul.f32 %v5793_v47, %v1146_v36  ;;  %v2343_v18 = vadd.f32 %v2311_v13, %v7620_v35 }
 0x1ca   : > { %v3453_v16 = vadd.f32 %v3421_v0, %v3385_v20  ;;  %v1299_v39 = vadd.f32 %v1267_v57, %v1199_v3  ;;  %v7714_v55 = vmul.f32 %v5949_v61, %v1146_v36  ;;  %v7717_v1 = vadd.f32 %v7630_v51, %v3386_v42 }
 0x1cb   : > { %v2344_v15 = vadd.f32 %v7584_v53, %v2276_v41  ;;  %4528 = vst.msk [vmem:[%s6631_s28 + $0x68] sm:$0xff] %vm597_vm0, %v4496_v31  ;;  %v4572_v63 = vsel %vm597_vm0, %v4496_v31, 0.0  ;;  %v4631_v19 = vmul.f32 %v4496_v31, %v4496_v31  ;;  %v1703_v53 = vrot.slane %v1589_v43, 1 }
 0x1cc   : > { %v7719_v6 = vadd.f32 %v4572_v63, %v4571_v28  ;;  %v2379_v35 = vmul.f32 %v5944_v4, %v1146_v36  ;;  %v2192_v58 = vrot.slane %v7706_v60, 2  ;;  %v7725_v27 = vmul.f32 %v5960_v49, %v1146_v36  ;;  %v7753_v28 = vld [vmem:[#allocation2 + $0xe8] sm:$0x3] }
 0x1cd   : > { %v4675_v20 = vsel %vm597_vm0, %v4631_v19, 0.0  ;;  %v7728_v3 = vmul.f32 %v9453_v9, %v1146_v36  ;;  %v3489_v51 = vmul.f32 %v9451_v30, %v1146_v36  ;;  %v7734_v46 = vmul.f32 %v7192_v40, %v1146_v36 }
 0x1ce   : > { %v7730_v13 = vadd.f32 %v4675_v20, %v4674_v5  ;;  %v7737_v54 = vsel %vm1118_vm4, %v851_v62, %v1013_v56  ;;  %v2411_v23 = vadd.f32 %v2379_v35, %v2343_v18  ;;  %v2811_v52 = vrot.slane %v7714_v55, 1  ;;  %v7782_v20 = vld [vmem:[#allocation2 + $0xf8] sm:$0xff] }
 0x1cf   : > { %v3299_v21 = vrot.slane %v7725_v27, 2  ;;  %v1200_v33 = vmul.f32 %v7580_v11, %v9591_v24  ;;  %v7743_v48 = vadd.f32 %v3489_v51, %v3453_v16  ;;  %v3918_v29 = vrot.slane %v7728_v3, 1 }
 0x1d0   : > { %v1268_v32 = vmul.f32 %v9592_v7, %v7737_v54  ;;  %v1344_v34 = vmul.f32 %v7668_v38, %v9593_v22  ;;  %v4406_v44 = vrot.slane %v7734_v46, 2  ;;  %v1345_v59 = vmul.f32 %v7580_v11, %v9593_v22 }
 0x1d1   : > { %v1346_v0 = vmul.f32 %v7753_v28, %v9593_v22  ;;  %v7759_v10 = vmul.f32 %v5784_v50, %v7737_v54  ;;  %v1833_v25 = vmul.f32 %v7668_v38, %v9566_v17  ;;  %v1834_v36 = vmul.f32 %v7580_v11, %v9566_v17 }
 0x1d2   : > { %v1459_v8 = vrot.slane %v1344_v34, 1  ;;  %v1835_v41 = vmul.f32 %v7753_v28, %v9566_v17  ;;  %v1460_v2 = vrot.slane %v1345_v59, 1  ;;  %v7770_v42 = vmul.f32 %v5793_v47, %v7737_v54 }
 0x1d3   : > { %v1462_v5 = vrot.slane %v1346_v0, 1  ;;  %v9292_v57 = vrot.slane %v7759_v10, 1  ;;  %v2380_v31 = vmul.f32 %v5944_v4, %v7737_v54  ;;  %v3490_v43 = vmul.f32 %v9451_v30, %v7737_v54 }
 0x1d4   : > { %v1948_v60 = vrot.slane %v1833_v25, 2  ;;  %v1949_v18 = vrot.slane %v1834_v36, 2  ;;  %v1300_v16 = vadd.f32 %v1268_v32, %v1200_v33  ;;  %v1461_v63 = vsel %vm1413_vm2, %v1459_v8, %v1460_v2 }
 0x1d5   : > { %v1705_v19 = vsel %vm1413_vm2, %v1703_v53, %v9292_v57  ;;  %v1951_v55 = vrot.slane %v1835_v41, 2  ;;  %v1463_v62 = vsel %vm1413_vm2, %v1460_v2, %v1462_v5  ;;  %v1544_v56 = vadd.f32 %v1461_v63, %v1299_v39 }
 0x1d6   : > { %v2193_v35 = vrot.slane %v7770_v42, 2  ;;  %v7786_v51 = vmul.f32 %v7782_v20, %v9573_v37  ;;  %v1950_v33 = vsel %vm1902_vm3, %v1948_v60, %v1949_v18  ;;  %v2412_v32 = vadd.f32 %v2380_v31, %v2344_v15 }
 0x1d7   : > { %v2455_v34 = vmul.f32 %v7668_v38, %v9579_v45  ;;  %v2456_v53 = vmul.f32 %v7580_v11, %v9579_v45  ;;  %v1788_v59 = vadd.f32 %v1705_v19, %v1544_v56  ;;  %v2457_v39 = vmul.f32 %v7753_v28, %v9579_v45 }
 0x1d8   : > { %v7797_v0 = vmul.f32 %v5949_v61, %v7737_v54  ;;  %v2943_v8 = vmul.f32 %v7668_v38, %v9567_v12  ;;  %v2944_v15 = vmul.f32 %v7580_v11, %v9567_v12  ;;  %v2945_v41 = vmul.f32 %v7753_v28, %v9567_v12 }
 0x1d9   : > { %v2567_v25 = vrot.slane %v2455_v34, 1  ;;  %v2568_v36 = vrot.slane %v2456_v53, 1  ;;  %v2033_v2 = vadd.f32 %v1950_v33, %v1788_v59  ;;  %v2570_v5 = vrot.slane %v2457_v39, 1 }
 0x1da   : > { %v2812_v31 = vrot.slane %v7797_v0, 1  ;;  %v3055_v60 = vrot.slane %v2943_v8, 2  ;;  %v7806_v63 = vadd.f32 %v1463_v62, %v1300_v16  ;;  %v3056_v56 = vrot.slane %v2944_v15, 2 }
 0x1db   : > { %v2569_v19 = vsel %vm1413_vm2, %v2567_v25, %v2568_v36  ;;  %v7811_v34 = vmul.f32 %v5960_v49, %v7737_v54  ;;  %v2194_v53 = vsel %vm1902_vm3, %v2192_v58, %v2193_v35  ;;  %v2571_v57 = vsel %vm1413_vm2, %v2568_v36, %v2570_v5 }
 0x1dc   : > { %v2655_v33 = vadd.f32 %v2569_v19, %v2411_v23  ;;  %v2813_v59 = vsel %vm1413_vm2, %v2811_v52, %v2812_v31  ;;  %v7821_v16 = vsel %vm1902_vm3, %v1949_v18, %v1951_v55  ;;  %v7823_v62 = vadd.f32 %v2194_v53, %v2033_v2  ;;  %v853_v53 = vpop.permute.xlu0 %852 }
 0x1dd   : > { %v3057_v39 = vsel %vm1902_vm3, %v3055_v60, %v3056_v56  ;;  %v3058_v8 = vrot.slane %v2945_v41, 2  ;;  %v7826_v25 = vadd.f32 %v2571_v57, %v2412_v32  ;;  %v3300_v58 = vrot.slane %v7811_v34, 2  ;;  %v7841_v32 = vld [vmem:[%s9245_s3 + $0x8] ss:$0 sm:$0xff] }
 0x1de   : > { %v2899_v15 = vadd.f32 %v2813_v59, %v2655_v33  ;;  %v3564_v23 = vmul.f32 %v7668_v38, %v9549_v26  ;;  %v3522_v36 = vadd.f32 %v3490_v43, %v7717_v1  ;;  %v3565_v52 = vmul.f32 %v7580_v11, %v9549_v26 }
 0x1df   : > { %v3566_v18 = vmul.f32 %v7753_v28, %v9549_v26  ;;  %v3809_v55 = vmul.f32 %v9453_v9, %v7737_v54  ;;  %v4052_v2 = vmul.f32 %v7841_v32, %v7668_v38  ;;  %v4053_v1 = vmul.f32 %v7841_v32, %v7580_v11 }
 0x1e0   : > { %v3143_v41 = vadd.f32 %v3057_v39, %v2899_v15  ;;  %v3674_v57 = vrot.slane %v3564_v23, 1  ;;  %v3675_v43 = vrot.slane %v3565_v52, 1  ;;  %v4054_v19 = vmul.f32 %v7841_v32, %v7753_v28  ;;  %v1015_v15 = vpop.permute.xlu1 %1014 }
 0x1e1   : > { %v3677_v5 = vrot.slane %v3566_v18, 1  ;;  %v3919_v60 = vrot.slane %v3809_v55, 1  ;;  %v3301_v33 = vsel %vm1902_vm3, %v3299_v21, %v3300_v58  ;;  %v4162_v59 = vrot.slane %v4052_v2, 2 }
 0x1e2   : > { %v4163_v39 = vrot.slane %v4053_v1, 2  ;;  %v4297_v38 = vmul.f32 %v7192_v40, %v7737_v54  ;;  %v3676_v11 = vsel %vm1413_vm2, %v3674_v57, %v3675_v43  ;;  %v4165_v52 = vrot.slane %v4054_v19, 2 }
 0x1e3   : > { %v3678_v23 = vsel %vm1413_vm2, %v3675_v43, %v3677_v5  ;;  %v3920_v28 = vsel %vm1413_vm2, %v3918_v29, %v3919_v60  ;;  %v3059_v18 = vsel %vm1902_vm3, %v3056_v56, %v3058_v8  ;;  %v3387_v27 = vadd.f32 %v3301_v33, %v3143_v41  ;;  %v7868_v29 = vld [vmem:[#allocation2 + $0xf0] sm:$0xff]  ;;  %v7878_v41 = vld [vmem:[%s9246_s4 + $0x8] ss:$0 sm:$0xff] }
 0x1e4   : > { %v3765_v21 = vadd.f32 %v3676_v11, %v7743_v48  ;;  %v4407_v55 = vrot.slane %v4297_v38, 2  ;;  %v3766_v2 = vadd.f32 %v3678_v23, %v3522_v36  ;;  %v4164_v1 = vsel %vm1902_vm3, %v4162_v59, %v4163_v39 }
 0x1e5   : > { %v4166_v40 = vsel %vm1902_vm3, %v4163_v39, %v4165_v52  ;;  %v1148_v54 = vsel %vm1118_vm4, %v853_v53, %v1015_v15  ;;  %v1201_v56 = vmul.f32 %v7868_v29, %v9591_v24  ;;  %v2313_v46 = vmul.f32 %v7868_v29, %v9573_v37 }
 0x1e6   : > { %v4009_v57 = vadd.f32 %v3920_v28, %v3765_v21  ;;  %v1591_v43 = vmul.f32 %v5784_v50, %v1148_v54  ;;  %v2080_v3 = vmul.f32 %v5793_v47, %v1148_v54  ;;  %v2701_v48 = vmul.f32 %v5949_v61, %v1148_v54 }
 0x1e7   : > { %v3189_v8 = vmul.f32 %v5960_v49, %v1148_v54  ;;  %v3810_v36 = vmul.f32 %v9453_v9, %v1148_v54  ;;  %v4298_v5 = vmul.f32 %v7878_v41, %v1148_v54  ;;  %v4408_v53 = vsel %vm1902_vm3, %v4406_v44, %v4407_v55 }
 0x1e8   : > { %v4253_v19 = vadd.f32 %v4164_v1, %v4009_v57  ;;  %v1706_v33 = vrot.slane %v1591_v43, 1  ;;  %v2195_v59 = vrot.slane %v2080_v3, 2  ;;  %v2814_v39 = vrot.slane %v2701_v48, 1  ;;  %v855_v57 = vpop.permute.xlu0 %854  ;;  %v1017_v43 = vpop.permute.xlu1 %1016 }
 0x1e9   : > { %v3302_v38 = vrot.slane %v3189_v8, 2  ;;  %v3921_v15 = vrot.slane %v3810_v36, 1  ;;  %v4409_v11 = vrot.slane %v4298_v5, 2  ;;  %v9596_v28 = vrot.slane %v7759_v10, 1 }
 0x1ea   : > { %v4497_v23 = vadd.f32 %v4408_v53, %v4253_v19  ;;  %v2196_v21 = vsel %vm1902_vm3, %v2193_v35, %v2195_v59  ;;  %v2815_v1 = vsel %vm1413_vm2, %v2812_v31, %v2814_v39  ;;  %v3423_v10 = vmul.f32 %v7868_v29, %v9574_v14 }
 0x1eb   : > { %v1707_v52 = vsel %vm1413_vm2, %v9596_v28, %v1706_v33  ;;  %v3922_v54 = vsel %vm1413_vm2, %v3919_v60, %v3921_v15  ;;  %v2900_v3 = vadd.f32 %v2815_v1, %v7826_v25  ;;  %v3303_v0 = vsel %vm1902_vm3, %v3300_v58, %v3302_v38 }
 0x1ec   : > { %v1789_v44 = vadd.f32 %v1707_v52, %v7806_v63  ;;  %4529 = vst.msk [vmem:[%s6631_s28 + $0x70] sm:$0xff] %vm597_vm0, %v4497_v23  ;;  %v4574_v42 = vsel %vm597_vm0, %v4497_v23, 0.0  ;;  %v4632_v35 = vmul.f32 %v4497_v23, %v4497_v23  ;;  %v4010_v48 = vadd.f32 %v3922_v54, %v3766_v2  ;;  %v857_v23 = vpop.permute.xlu0 %856  ;;  %v1019_v28 = vpop.permute.xlu1 %1018 }
 0x1ed   : > { %v4410_v31 = vsel %vm1902_vm3, %v4407_v55, %v4409_v11  ;;  %v4575_v60 = vadd.f32 %v4574_v42, %v7719_v6  ;;  %v3144_v36 = vadd.f32 %v3059_v18, %v2900_v3  ;;  %v1149_v19 = vsel %vm1118_vm4, %v855_v57, %v1017_v43  ;;  %v7919_v18 = vld [vmem:[#allocation2 + $0x190] sm:$0x3] }
 0x1ee   : > { %v2034_v63 = vadd.f32 %v7821_v16, %v1789_v44  ;;  %v4677_v8 = vsel %vm597_vm0, %v4632_v35, 0.0  ;;  %v4254_v5 = vadd.f32 %v4166_v40, %v4010_v48  ;;  %v1269_v16 = vmul.f32 %v9592_v7, %v1149_v19 }
 0x1ef   : > { %v4678_v25 = vadd.f32 %v4677_v8, %v7730_v13  ;;  %v1592_v34 = vmul.f32 %v5784_v50, %v1149_v19  ;;  %v3424_v58 = vmul.f32 %v7782_v20, %v9574_v14  ;;  %v3388_v55 = vadd.f32 %v3303_v0, %v3144_v36  ;;  %v7968_v8 = vld [vmem:[#allocation2 + $0x100] sm:$0x3] }
 0x1f0   : > { %v2278_v53 = vadd.f32 %v2196_v21, %v2034_v63  ;;  %v4498_v2 = vadd.f32 %v4410_v31, %v4254_v5  ;;  %v7917_v6 = vmul.f32 %v5793_v47, %v1149_v19  ;;  %v7923_v40 = vmul.f32 %v7919_v18, %v9579_v45 }
 0x1f1   : > { %v2345_v13 = vadd.f32 %v2313_v46, %v7823_v62  ;;  %v3455_v33 = vadd.f32 %v3423_v10, %v3387_v27  ;;  %v2381_v59 = vmul.f32 %v5944_v4, %v1149_v19  ;;  %v7932_v11 = vmul.f32 %v5949_v61, %v1149_v19 }
 0x1f2   : > { %9597 = vst [vmem:[#allocation10_spill] sm:$0xff] %v7923_v40  ;;  %v2346_v39 = vadd.f32 %v7786_v51, %v2278_v53  ;;  %4530 = vst.msk [vmem:[%s6631_s28 + $0x78] sm:$0xff] %vm597_vm0, %v4498_v2  ;;  %v4576_v38 = vsel %vm597_vm0, %v4498_v2, 0.0  ;;  %v4633_v15 = vmul.f32 %v4498_v2, %v4498_v2  ;;  %v1301_v21 = vadd.f32 %v1269_v16, %v1201_v56 }
 0x1f3   : > { %v7934_v52 = vadd.f32 %v4576_v38, %v4575_v60  ;;  %v1708_v44 = vrot.slane %v1592_v34, 1  ;;  %v7937_v62 = vmul.f32 %v5960_v49, %v1149_v19  ;;  %v7939_v27 = vadd.f32 %v3424_v58, %v3388_v55 }
 0x1f4   : > { %v4679_v51 = vsel %vm597_vm0, %v4633_v15, 0.0  ;;  %v2197_v46 = vrot.slane %v7917_v6, 2  ;;  %v7944_v1 = vmul.f32 %v9453_v9, %v1149_v19  ;;  %v2413_v57 = vadd.f32 %v2381_v59, %v2345_v13 }
 0x1f5   : > { %v7946_v54 = vadd.f32 %v4679_v51, %v4678_v25  ;;  %v3491_v10 = vmul.f32 %v9451_v30, %v1149_v19  ;;  %v7950_v56 = vsel %vm1118_vm4, %v857_v23, %v1019_v28  ;;  %v2816_v43 = vrot.slane %v7932_v11, 1 }
 0x1f6   : > { %v7955_v35 = vmul.f32 %v7878_v41, %v1149_v19  ;;  %v1202_v3 = vmul.f32 %v7782_v20, %v9591_v24  ;;  %v1347_v0 = vmul.f32 %v7868_v29, %v9593_v22  ;;  %v1348_v31 = vmul.f32 %v7782_v20, %v9593_v22 }
 0x1f7   : > { %v7959_v48 = vadd.f32 %v3491_v10, %v3455_v33  ;;  %v1270_v60 = vmul.f32 %v9592_v7, %v7950_v56  ;;  %v1349_v36 = vmul.f32 %v7968_v8, %v9593_v22  ;;  %v7974_v5 = vmul.f32 %v5784_v50, %v7950_v56 }
 0x1f8   : > { %v1836_v19 = vmul.f32 %v7868_v29, %v9566_v17  ;;  %v1464_v53 = vrot.slane %v1347_v0, 1  ;;  %v1465_v25 = vrot.slane %v1348_v31, 1  ;;  %v1837_v16 = vmul.f32 %v7782_v20, %v9566_v17 }
 0x1f9   : > { %v1838_v34 = vmul.f32 %v7968_v8, %v9566_v17  ;;  %v1467_v58 = vrot.slane %v1349_v36, 1  ;;  %v9293_v55 = vrot.slane %v7974_v5, 1  ;;  %v7985_v6 = vmul.f32 %v5793_v47, %v7950_v56 }
 0x1fa   : > { %v1953_v2 = vrot.slane %v1836_v19, 2  ;;  %v2382_v33 = vmul.f32 %v5944_v4, %v7950_v56  ;;  %v1466_v59 = vsel %vm1413_vm2, %v1464_v53, %v1465_v25  ;;  %v1954_v38 = vrot.slane %v1837_v16, 2 }
 0x1fb   : > { %v3492_v15 = vmul.f32 %v9451_v30, %v7950_v56  ;;  %v1302_v11 = vadd.f32 %v1270_v60, %v1202_v3  ;;  %v1546_v23 = vadd.f32 %v1466_v59, %v1301_v21  ;;  %v1710_v28 = vsel %vm1413_vm2, %v1708_v44, %v9293_v55  ;;  %v8019_v55 = vld [vmem:[#allocation2 + $0x110] sm:$0xff] }
 0x1fc   : > { %v1468_v51 = vsel %vm1413_vm2, %v1465_v25, %v1467_v58  ;;  %v1955_v10 = vsel %vm1902_vm3, %v1953_v2, %v1954_v38  ;;  %v1956_v0 = vrot.slane %v1838_v34, 2  ;;  %v9294_v31 = vrot.slane %v7985_v6, 2 }
 0x1fd   : > { %v1790_v36 = vadd.f32 %v1710_v28, %v1546_v23  ;;  %v2414_v19 = vadd.f32 %v2382_v33, %v2346_v39  ;;  %v2458_v53 = vmul.f32 %v7868_v29, %v9579_v45  ;;  %v2459_v3 = vmul.f32 %v7782_v20, %v9579_v45 }
 0x1fe   : > { %v2460_v21 = vmul.f32 %v7968_v8, %v9579_v45  ;;  %v8007_v44 = vmul.f32 %v5949_v61, %v7950_v56  ;;  %v2946_v60 = vmul.f32 %v7868_v29, %v9567_v12  ;;  %v2947_v25 = vmul.f32 %v7782_v20, %v9567_v12 }
 0x1ff   : > { %v2035_v39 = vadd.f32 %v1955_v10, %v1790_v36  ;;  %v2572_v16 = vrot.slane %v2458_v53, 1  ;;  %v2573_v34 = vrot.slane %v2459_v3, 1  ;;  %v2948_v58 = vmul.f32 %v7968_v8, %v9567_v12 }
 0x200   : > { %v2575_v2 = vrot.slane %v2460_v21, 1  ;;  %v9296_v33 = vrot.slane %v8007_v44, 1  ;;  %v3060_v59 = vrot.slane %v2946_v60, 2  ;;  %v3061_v23 = vrot.slane %v2947_v25, 2 }
 0x201   : > { %v2199_v28 = vsel %vm1902_vm3, %v2197_v46, %v9294_v31  ;;  %v8023_v13 = vmul.f32 %v8019_v55, %v9573_v37  ;;  %v2574_v10 = vsel %vm1413_vm2, %v2572_v16, %v2573_v34  ;;  %v8028_v36 = vmul.f32 %v5960_v49, %v7950_v56 }
 0x202   : > { %v2576_v53 = vsel %vm1413_vm2, %v2573_v34, %v2575_v2  ;;  %v2657_v3 = vadd.f32 %v2574_v10, %v2413_v57  ;;  %v2818_v21 = vsel %vm1413_vm2, %v2816_v43, %v9296_v33  ;;  %v3063_v46 = vrot.slane %v2948_v58, 2  ;;  %v859_v58 = vpop.permute.xlu0 %858 }
 0x203   : > { %v1547_v60 = vadd.f32 %v1468_v51, %v1302_v11  ;;  %v8035_v25 = vsel %vm1902_vm3, %v1954_v38, %v1956_v0  ;;  %v8037_v31 = vadd.f32 %v2199_v28, %v2035_v39  ;;  %v3062_v16 = vsel %vm1902_vm3, %v3060_v59, %v3061_v23 }
 0x204   : > { %v2658_v63 = vadd.f32 %v2576_v53, %v2414_v19  ;;  %v2901_v42 = vadd.f32 %v2818_v21, %v2657_v3  ;;  %v3567_v12 = vmul.f32 %v7868_v29, %v9549_v26  ;;  %v3568_v57 = vmul.f32 %v7782_v20, %v9549_v26  ;;  %v1021_v53 = vpop.permute.xlu1 %1020 }
 0x205   : > { %v3305_v34 = vrot.slane %v8028_v36, 2  ;;  %v3569_v43 = vmul.f32 %v7968_v8, %v9549_v26  ;;  %v3812_v38 = vmul.f32 %v9453_v9, %v7950_v56  ;;  %v4055_v11 = vmul.f32 %v7868_v29, %v7841_v32 }
 0x206   : > { %v3064_v51 = vsel %vm1902_vm3, %v3061_v23, %v3063_v46  ;;  %v3679_v0 = vrot.slane %v3567_v12, 1  ;;  %v3680_v19 = vrot.slane %v3568_v57, 1  ;;  %v4056_v39 = vmul.f32 %v7841_v32, %v7782_v20 }
 0x207   : > { %v3682_v2 = vrot.slane %v3569_v43, 1  ;;  %v3924_v59 = vrot.slane %v3812_v38, 1  ;;  %v4057_v28 = vmul.f32 %v7968_v8, %v7841_v32  ;;  %v4167_v10 = vrot.slane %v4055_v11, 2 }
 0x208   : > { %v3145_v3 = vadd.f32 %v3062_v16, %v2901_v42  ;;  %v3681_v21 = vsel %vm1413_vm2, %v3679_v0, %v3680_v19  ;;  %v4168_v33 = vrot.slane %v4056_v39, 2  ;;  %v4300_v29 = vmul.f32 %v7878_v41, %v7950_v56 }
 0x209   : > { %v9598_v12 = vrot.slane %v7937_v62, 2  ;;  %v3524_v23 = vadd.f32 %v3492_v15, %v7939_v27  ;;  %v3767_v46 = vadd.f32 %v3681_v21, %v7959_v48  ;;  %v9599_v8 = vrot.slane %v7944_v1, 1 }
 0x20a   : > { %v3683_v16 = vsel %vm1413_vm2, %v3680_v19, %v3682_v2  ;;  %v4169_v57 = vsel %vm1902_vm3, %v4167_v10, %v4168_v33  ;;  %v4412_v43 = vrot.slane %v4300_v29, 2  ;;  %v1151_v56 = vsel %vm1118_vm4, %v859_v58, %v1021_v53 }
 0x20b   : > { %v3306_v20 = vsel %vm1902_vm3, %v9598_v12, %v3305_v34  ;;  %v3925_v42 = vsel %vm1413_vm2, %v9599_v8, %v3924_v59  ;;  %v4170_v11 = vrot.slane %v4057_v28, 2  ;;  %v1594_v62 = vmul.f32 %v5784_v50, %v1151_v56 }
 0x20c   : > { %v4011_v38 = vadd.f32 %v3925_v42, %v3767_v46  ;;  %v2083_v0 = vmul.f32 %v5793_v47, %v1151_v56  ;;  %v3389_v27 = vadd.f32 %v3306_v20, %v3145_v3  ;;  %v2704_v48 = vmul.f32 %v5949_v61, %v1151_v56 }
 0x20d   : > { %v3192_v1 = vmul.f32 %v5960_v49, %v1151_v56  ;;  %v3813_v15 = vmul.f32 %v9453_v9, %v1151_v56  ;;  %v3768_v39 = vadd.f32 %v3683_v16, %v3524_v23  ;;  %v1711_v2 = vrot.slane %v1594_v62, 1  ;;  %v861_v62 = vpop.permute.xlu0 %860 }
 0x20e   : > { %v4255_v19 = vadd.f32 %v4169_v57, %v4011_v38  ;;  %v4301_v10 = vmul.f32 %v7878_v41, %v1151_v56  ;;  %v9600_v58 = vrot.slane %v7955_v35, 2  ;;  %v2200_v53 = vrot.slane %v2083_v0, 2 }
 0x20f   : > { %v2819_v21 = vrot.slane %v2704_v48, 1  ;;  %v3926_v29 = vrot.slane %v3813_v15, 1  ;;  %v4171_v3 = vsel %vm1902_vm3, %v4168_v33, %v4170_v11  ;;  %v9601_v20 = vrot.slane %v7974_v5, 1  ;;  %v1023_v5 = vpop.permute.xlu1 %1022 }
 0x210   : > { %v4413_v28 = vsel %vm1902_vm3, %v9600_v58, %v4412_v43  ;;  %v4414_v23 = vrot.slane %v4301_v10, 2  ;;  %v9602_v42 = vrot.slane %v8007_v44, 1  ;;  %v3307_v57 = vrot.slane %v3192_v1, 2  ;;  %v8097_v1 = vld [vmem:[#allocation2 + $0x108] sm:$0xff] }
 0x211   : > { %v4499_v12 = vadd.f32 %v4413_v28, %v4255_v19  ;;  %v1712_v46 = vsel %vm1413_vm2, %v9601_v20, %v1711_v2  ;;  %v3927_v35 = vsel %vm1413_vm2, %v3924_v59, %v3926_v29  ;;  %v2315_v59 = vmul.f32 %v8097_v1, %v9573_v37 }
 0x212   : > { %v1791_v8 = vadd.f32 %v1712_v46, %v1547_v60  ;;  %v2820_v16 = vsel %vm1413_vm2, %v9602_v42, %v2819_v21  ;;  %v4012_v11 = vadd.f32 %v3927_v35, %v3768_v39  ;;  %v9603_v60 = vrot.slane %v7985_v6, 2 }
 0x213   : > { %4531 = vst.msk [vmem:[%s6631_s28 + $0x80] sm:$0xff] %vm597_vm0, %v4499_v12  ;;  %v4578_v56 = vsel %vm597_vm0, %v4499_v12, 0.0  ;;  %v4634_v38 = vmul.f32 %v4499_v12, %v4499_v12  ;;  %v2902_v33 = vadd.f32 %v2820_v16, %v2658_v63  ;;  %v4415_v19 = vsel %vm1902_vm3, %v4412_v43, %v4414_v23  ;;  %v1025_v20 = vpop.permute.xlu1 %1024 }
 0x214   : > { %v2036_v0 = vadd.f32 %v8035_v25, %v1791_v8  ;;  %v2201_v44 = vsel %vm1902_vm3, %v9603_v60, %v2200_v53  ;;  %v4579_v48 = vadd.f32 %v4578_v56, %v7934_v52  ;;  %v4256_v39 = vadd.f32 %v4171_v3, %v4012_v11 }
 0x215   : > { %v4681_v15 = vsel %vm597_vm0, %v4634_v38, 0.0  ;;  %v3146_v63 = vadd.f32 %v3064_v51, %v2902_v33  ;;  %v3425_v6 = vmul.f32 %v8097_v1, %v9574_v14  ;;  %v1152_v52 = vsel %vm1118_vm4, %v861_v62, %v1023_v5 }
 0x216   : > { %v2280_v2 = vadd.f32 %v2201_v44, %v2036_v0  ;;  %v4682_v25 = vadd.f32 %v4681_v15, %v7946_v54  ;;  %v3426_v58 = vmul.f32 %v8019_v55, %v9574_v14  ;;  %v3308_v51 = vsel %vm1902_vm3, %v3305_v34, %v3307_v57  ;;  %v863_v34 = vpop.permute.xlu0 %862 }
 0x217   : > { %v4500_v28 = vadd.f32 %v4415_v19, %v4256_v39  ;;  %v3390_v53 = vadd.f32 %v3308_v51, %v3146_v63  ;;  %v1203_v43 = vmul.f32 %v8097_v1, %v9591_v24  ;;  %v2347_v54 = vadd.f32 %v2315_v59, %v8037_v31  ;;  %v8162_v39 = vld [vmem:[#allocation2 + $0x118] sm:$0x3] }
 0x218   : > { %v1271_v21 = vmul.f32 %v9592_v7, %v1152_v52  ;;  %v1595_v12 = vmul.f32 %v5784_v50, %v1152_v52  ;;  %v8122_v36 = vmul.f32 %v5793_v47, %v1152_v52  ;;  %v8126_v46 = vmul.f32 %v7919_v18, %v9549_v26 }
 0x219   : > { %4532 = vst.msk [vmem:[%s6631_s28 + $0x88] sm:$0xff] %vm597_vm0, %v4500_v28  ;;  %v4580_v29 = vsel %vm597_vm0, %v4500_v28, 0.0  ;;  %v4635_v3 = vmul.f32 %v4500_v28, %v4500_v28  ;;  %v2348_v31 = vadd.f32 %v8023_v13, %v2280_v2  ;;  %v3457_v8 = vadd.f32 %v3425_v6, %v3389_v27 }
 0x21a   : > { %9604 = vst [vmem:[#allocation9_spill] sm:$0xff] %v8126_v46  ;;  %v8129_v23 = vadd.f32 %v4580_v29, %v4579_v48  ;;  %v2383_v16 = vmul.f32 %v5944_v4, %v1152_v52  ;;  %v8134_v57 = vmul.f32 %v5949_v61, %v1152_v52  ;;  %v8137_v35 = vmul.f32 %v5960_v49, %v1152_v52 }
 0x21b   : > { %v4683_v42 = vsel %vm597_vm0, %v4635_v3, 0.0  ;;  %v8139_v56 = vadd.f32 %v3426_v58, %v3390_v53  ;;  %v1303_v33 = vadd.f32 %v1271_v21, %v1203_v43  ;;  %v8144_v13 = vsel %vm1118_vm4, %v863_v34, %v1025_v20 }
 0x21c   : > { %v8141_v38 = vadd.f32 %v4683_v42, %v4682_v25  ;;  %v1713_v11 = vrot.slane %v1595_v12, 1  ;;  %v2202_v27 = vrot.slane %v8122_v36, 2  ;;  %v2415_v62 = vadd.f32 %v2383_v16, %v2347_v54 }
 0x21d   : > { %v3493_v5 = vmul.f32 %v9451_v30, %v1152_v52  ;;  %v2821_v0 = vrot.slane %v8134_v57, 1  ;;  %v8151_v44 = vmul.f32 %v9453_v9, %v1152_v52  ;;  %v8154_v48 = vmul.f32 %v7878_v41, %v1152_v52 }
 0x21e   : > { %v1272_v59 = vmul.f32 %v9592_v7, %v8144_v13  ;;  %v1350_v15 = vmul.f32 %v8097_v1, %v9593_v22  ;;  %v1351_v63 = vmul.f32 %v8019_v55, %v9593_v22  ;;  %v1352_v19 = vmul.f32 %v8162_v39, %v9593_v22 }
 0x21f   : > { %v1204_v2 = vmul.f32 %v8019_v55, %v9591_v24  ;;  %v8170_v25 = vmul.f32 %v5784_v50, %v8144_v13  ;;  %v1839_v6 = vmul.f32 %v8097_v1, %v9566_v17  ;;  %v1840_v52 = vmul.f32 %v8019_v55, %v9566_v17 }
 0x220   : > { %v1469_v58 = vrot.slane %v1350_v15, 1  ;;  %v1470_v51 = vrot.slane %v1351_v63, 1  ;;  %v1472_v28 = vrot.slane %v1352_v19, 1  ;;  %v1841_v53 = vmul.f32 %v8162_v39, %v9566_v17 }
 0x221   : > { %v8178_v43 = vadd.f32 %v3493_v5, %v3457_v8  ;;  %v9297_v54 = vrot.slane %v8170_v25, 1  ;;  %v1958_v21 = vrot.slane %v1839_v6, 2  ;;  %v1959_v29 = vrot.slane %v1840_v52, 2  ;;  %v9605_v52 = vld [vmem:[#allocation6_spill] sm:$0xff] }
 0x222   : > { %v1471_v36 = vsel %vm1413_vm2, %v1469_v58, %v1470_v51  ;;  %v8186_v34 = vmul.f32 %v5793_v47, %v8144_v13  ;;  %v2384_v20 = vmul.f32 %v5944_v4, %v8144_v13  ;;  %v1304_v42 = vadd.f32 %v1272_v59, %v1204_v2 }
 0x223   : > { %v1548_v8 = vadd.f32 %v1471_v36, %v1303_v33  ;;  %v1715_v16 = vsel %vm1413_vm2, %v1713_v11, %v9297_v54  ;;  %v1473_v57 = vsel %vm1413_vm2, %v1470_v51, %v1472_v28  ;;  %v1960_v5 = vsel %vm1902_vm3, %v1958_v21, %v1959_v29  ;;  %v8213_v54 = vld [vmem:[#allocation2 + $0x128] sm:$0xff] }
 0x224   : > { %v1961_v15 = vrot.slane %v1841_v53, 2  ;;  %v2461_v63 = vmul.f32 %v8097_v1, %v9579_v45  ;;  %v2462_v6 = vmul.f32 %v8019_v55, %v9579_v45  ;;  %v2463_v59 = vmul.f32 %v8162_v39, %v9579_v45 }
 0x225   : > { %v1792_v19 = vadd.f32 %v1715_v16, %v1548_v8  ;;  %v8203_v33 = vmul.f32 %v5949_v61, %v8144_v13  ;;  %v9298_v11 = vrot.slane %v8186_v34, 2  ;;  %v2949_v58 = vmul.f32 %v8097_v1, %v9605_v52 }
 0x226   : > { %v2577_v2 = vrot.slane %v2461_v63, 1  ;;  %v2950_v51 = vmul.f32 %v8019_v55, %v9605_v52  ;;  %v2578_v53 = vrot.slane %v2462_v6, 1  ;;  %v2580_v21 = vrot.slane %v2463_v59, 1 }
 0x227   : > { %v2037_v28 = vadd.f32 %v1960_v5, %v1792_v19  ;;  %v9299_v36 = vrot.slane %v8203_v33, 1  ;;  %v3494_v8 = vmul.f32 %v9451_v30, %v8144_v13  ;;  %v2416_v16 = vadd.f32 %v2384_v20, %v2348_v31 }
 0x228   : > { %v3065_v10 = vrot.slane %v2949_v58, 2  ;;  %v3066_v60 = vrot.slane %v2950_v51, 2  ;;  %v8217_v63 = vmul.f32 %v8213_v54, %v9573_v37  ;;  %v2579_v12 = vsel %vm1413_vm2, %v2577_v2, %v2578_v53 }
 0x229   : > { %v2581_v5 = vsel %vm1413_vm2, %v2578_v53, %v2580_v21  ;;  %v2951_v19 = vmul.f32 %v8162_v39, %v9605_v52  ;;  %v1549_v6 = vadd.f32 %v1473_v57, %v1304_v42  ;;  %v8224_v59 = vsel %vm1902_vm3, %v1959_v29, %v1961_v15 }
 0x22a   : > { %v2204_v31 = vsel %vm1902_vm3, %v2202_v27, %v9298_v11  ;;  %v8231_v20 = vmul.f32 %v5960_v49, %v8144_v13  ;;  %v2659_v2 = vadd.f32 %v2579_v12, %v2415_v62  ;;  %v2823_v51 = vsel %vm1413_vm2, %v2821_v0, %v9299_v36  ;;  %v1027_v36 = vpop.permute.xlu1 %1026 }
 0x22b   : > { %v8233_v58 = vadd.f32 %v2204_v31, %v2037_v28  ;;  %v3570_v42 = vmul.f32 %v8097_v1, %v9549_v26  ;;  %v2660_v29 = vadd.f32 %v2581_v5, %v2416_v16  ;;  %v3067_v57 = vsel %vm1902_vm3, %v3065_v10, %v3066_v60  ;;  %v865_v5 = vpop.permute.xlu0 %864 }
 0x22c   : > { %v3571_v27 = vmul.f32 %v8019_v55, %v9549_v26  ;;  %v3572_v15 = vmul.f32 %v8162_v39, %v9549_v26  ;;  %v3068_v53 = vrot.slane %v2951_v19, 2  ;;  %v3815_v62 = vmul.f32 %v9453_v9, %v8144_v13 }
 0x22d   : > { %v3684_v28 = vrot.slane %v3570_v42, 1  ;;  %v4058_v0 = vmul.f32 %v8097_v1, %v7841_v32  ;;  %v4059_v10 = vmul.f32 %v8019_v55, %v7841_v32  ;;  %v4060_v11 = vmul.f32 %v8162_v39, %v7841_v32 }
 0x22e   : > { %v3685_v21 = vrot.slane %v3571_v27, 1  ;;  %v3687_v16 = vrot.slane %v3572_v15, 1  ;;  %v3929_v31 = vrot.slane %v3815_v62, 1  ;;  %v4303_v42 = vmul.f32 %v7878_v41, %v8144_v13 }
 0x22f   : > { %v4172_v19 = vrot.slane %v4058_v0, 2  ;;  %v2903_v3 = vadd.f32 %v2823_v51, %v2659_v2  ;;  %v8258_v1 = vmul.f32 %v8213_v54, %v9574_v14  ;;  %v4173_v15 = vrot.slane %v4059_v10, 2 }
 0x230   : > { %v3686_v27 = vsel %vm1413_vm2, %v3684_v28, %v3685_v21  ;;  %v3526_v55 = vadd.f32 %v3494_v8, %v8139_v56  ;;  %v3688_v62 = vsel %vm1413_vm2, %v3685_v21, %v3687_v16  ;;  %v9606_v39 = vrot.slane %v8151_v44, 1 }
 0x231   : > { %v3769_v12 = vadd.f32 %v3686_v27, %v8178_v43  ;;  %v4174_v13 = vsel %vm1902_vm3, %v4172_v19, %v4173_v15  ;;  %v4175_v2 = vrot.slane %v4060_v11, 2  ;;  %v4417_v51 = vrot.slane %v4303_v42, 2 }
 0x232   : > { %v3930_v0 = vsel %vm1413_vm2, %v9606_v39, %v3929_v31  ;;  %v1154_v40 = vsel %vm1118_vm4, %v865_v5, %v1027_v36  ;;  %v3069_v26 = vsel %vm1902_vm3, %v3066_v60, %v3068_v53  ;;  %v3147_v8 = vadd.f32 %v3067_v57, %v2903_v3 }
 0x233   : > { %v4013_v28 = vadd.f32 %v3930_v0, %v3769_v12  ;;  %v1597_v10 = vmul.f32 %v5784_v50, %v1154_v40  ;;  %v2086_v56 = vmul.f32 %v5793_v47, %v1154_v40  ;;  %v2707_v43 = vmul.f32 %v5949_v61, %v1154_v40 }
 0x234   : > { %v3195_v44 = vmul.f32 %v5960_v49, %v1154_v40  ;;  %v3816_v21 = vmul.f32 %v9453_v9, %v1154_v40  ;;  %v3770_v16 = vadd.f32 %v3688_v62, %v3526_v55  ;;  %v4304_v36 = vmul.f32 %v7878_v41, %v1154_v40 }
 0x235   : > { %v4257_v19 = vadd.f32 %v4174_v13, %v4013_v28  ;;  %v1716_v11 = vrot.slane %v1597_v10, 1  ;;  %v4176_v60 = vsel %vm1902_vm3, %v4173_v15, %v4175_v2  ;;  %v9607_v53 = vrot.slane %v8154_v48, 2  ;;  %v867_v48 = vpop.permute.xlu0 %866  ;;  %v1029_v2 = vpop.permute.xlu1 %1028 }
 0x236   : > { %v2824_v5 = vrot.slane %v2707_v43, 1  ;;  %v3931_v3 = vrot.slane %v3816_v21, 1  ;;  %v9608_v42 = vrot.slane %v8170_v25, 1  ;;  %v2205_v39 = vrot.slane %v2086_v56, 2  ;;  %v8297_v21 = vld [vmem:[#allocation2 + $0x120] sm:$0xff] }
 0x237   : > { %v4418_v12 = vsel %vm1902_vm3, %v9607_v53, %v4417_v51  ;;  %v3312_v55 = vrot.slane %v3195_v44, 2  ;;  %v9609_v0 = vrot.slane %v8203_v33, 1  ;;  %v4419_v13 = vrot.slane %v4304_v36, 2 }
 0x238   : > { %v4501_v57 = vadd.f32 %v4418_v12, %v4257_v19  ;;  %v1717_v27 = vsel %vm1413_vm2, %v9608_v42, %v1716_v11  ;;  %v3932_v15 = vsel %vm1413_vm2, %v3929_v31, %v3931_v3  ;;  %v9610_v56 = vrot.slane %v8231_v20, 2 }
 0x239   : > { %v1793_v62 = vadd.f32 %v1717_v27, %v1549_v6  ;;  %v2825_v40 = vsel %vm1413_vm2, %v9609_v0, %v2824_v5  ;;  %v4014_v43 = vadd.f32 %v3932_v15, %v3770_v16  ;;  %v9611_v6 = vrot.slane %v8137_v35, 2  ;;  %v869_v27 = vpop.permute.xlu0 %868 }
 0x23a   : > { %4533 = vst.msk [vmem:[%s6631_s28 + $0x90] sm:$0xff] %vm597_vm0, %v4501_v57  ;;  %v4582_v28 = vsel %vm597_vm0, %v4501_v57, 0.0  ;;  %v4636_v10 = vmul.f32 %v4501_v57, %v4501_v57  ;;  %v2904_v25 = vadd.f32 %v2825_v40, %v2660_v29  ;;  %v2317_v19 = vmul.f32 %v8297_v21, %v9573_v37 }
 0x23b   : > { %v3311_v33 = vsel %vm1902_vm3, %v9611_v6, %v9610_v56  ;;  %v2038_v44 = vadd.f32 %v8224_v59, %v1793_v62  ;;  %v4583_v31 = vadd.f32 %v4582_v28, %v8129_v23  ;;  %v4258_v16 = vadd.f32 %v4176_v60, %v4014_v43  ;;  %v1031_v62 = vpop.permute.xlu1 %1030 }
 0x23c   : > { %v3391_v11 = vadd.f32 %v3311_v33, %v3147_v8  ;;  %v4685_v36 = vsel %vm597_vm0, %v4636_v10, 0.0  ;;  %v3148_v29 = vadd.f32 %v3069_v26, %v2904_v25  ;;  %v4420_v53 = vsel %vm1902_vm3, %v4417_v51, %v4419_v13 }
 0x23d   : > { %v4686_v35 = vadd.f32 %v4685_v36, %v8141_v38  ;;  %v1205_v59 = vmul.f32 %v8297_v21, %v9591_v24  ;;  %v1155_v23 = vsel %vm1118_vm4, %v867_v48, %v1029_v2  ;;  %v9612_v12 = vrot.slane %v8186_v34, 2 }
 0x23e   : > { %v9613_v8 = vmov %v9610_v56  ;;  %v4502_v26 = vadd.f32 %v4420_v53, %v4258_v16  ;;  %v3427_v60 = vmul.f32 %v8297_v21, %v9574_v14  ;;  %v2349_v38 = vadd.f32 %v2317_v19, %v8233_v58 }
 0x23f   : > { %v2206_v5 = vsel %vm1902_vm3, %v9612_v12, %v2205_v39  ;;  %v3313_v3 = vsel %vm1902_vm3, %v9613_v8, %v3312_v55  ;;  %v1273_v42 = vmul.f32 %v9592_v7, %v1155_v23  ;;  %v1598_v20 = vmul.f32 %v5784_v50, %v1155_v23 }
 0x240   : > { %v2282_v51 = vadd.f32 %v2206_v5, %v2038_v44  ;;  %v3392_v57 = vadd.f32 %v3313_v3, %v3148_v29  ;;  %4534 = vst.msk [vmem:[%s6631_s28 + $0x98] sm:$0xff] %vm597_vm0, %v4502_v26  ;;  %v4584_v34 = vsel %vm597_vm0, %v4502_v26, 0.0  ;;  %v4637_v39 = vmul.f32 %v4502_v26, %v4502_v26  ;;  %v8365_v29 = vld [vmem:[#allocation2 + $0x130] sm:$0x3] }
 0x241   : > { %v8322_v55 = vmul.f32 %v5793_v47, %v1155_v23  ;;  %v8326_v0 = vmul.f32 %v7919_v18, %v9605_v52  ;;  %v8331_v40 = vmul.f32 %v7919_v18, %v7841_v32  ;;  %v8333_v15 = vadd.f32 %v4584_v34, %v4583_v31 }
 0x242   : > { %v4687_v13 = vsel %vm597_vm0, %v4637_v39, 0.0  ;;  %v3459_v48 = vadd.f32 %v3427_v60, %v3391_v11  ;;  %v2385_v2 = vmul.f32 %v5944_v4, %v1155_v23  ;;  %v8338_v28 = vsel %vm1118_vm4, %v869_v27, %v1031_v62 }
 0x243   : > { %9614 = vst [vmem:[#allocation30_spill] sm:$0xff] %v8326_v0  ;;  %9615 = vst [vmem:[#allocation31_spill] sm:$0xff] %v8331_v40  ;;  %v2350_v10 = vadd.f32 %v8217_v63, %v2282_v51  ;;  %v8342_v25 = vadd.f32 %v8258_v1, %v3392_v57  ;;  %v8344_v43 = vadd.f32 %v4687_v13, %v4686_v35  ;;  %v1718_v18 = vrot.slane %v1598_v20, 1 }
 0x244   : > { %v1305_v56 = vadd.f32 %v1273_v42, %v1205_v59  ;;  %v2207_v6 = vrot.slane %v8322_v55, 2  ;;  %v8347_v33 = vadd.f32 %v2385_v2, %v2349_v38  ;;  %v8350_v44 = vmul.f32 %v5949_v61, %v1155_v23 }
 0x245   : > { %v8353_v31 = vmul.f32 %v5960_v49, %v1155_v23  ;;  %v3495_v19 = vmul.f32 %v9451_v30, %v1155_v23  ;;  %v8357_v63 = vmul.f32 %v9453_v9, %v1155_v23  ;;  %v1274_v1 = vmul.f32 %v9592_v7, %v8338_v28 }
 0x246   : > { %v1353_v11 = vmul.f32 %v8297_v21, %v9593_v22  ;;  %v1354_v36 = vmul.f32 %v8213_v54, %v9593_v22  ;;  %v1355_v16 = vmul.f32 %v8365_v29, %v9593_v22  ;;  %v8371_v53 = vmul.f32 %v5784_v50, %v8338_v28 }
 0x247   : > { %v1206_v35 = vmul.f32 %v8213_v54, %v9591_v24  ;;  %v1842_v59 = vmul.f32 %v8297_v21, %v9566_v17  ;;  %v1843_v12 = vmul.f32 %v8213_v54, %v9566_v17  ;;  %v1844_v5 = vmul.f32 %v8365_v29, %v9566_v17 }
 0x248   : > { %v1474_v8 = vrot.slane %v1353_v11, 1  ;;  %v1475_v3 = vrot.slane %v1354_v36, 1  ;;  %v1477_v26 = vrot.slane %v1355_v16, 1  ;;  %v9302_v60 = vrot.slane %v8371_v53, 1 }
 0x249   : > { %v8383_v51 = vmul.f32 %v7878_v41, %v1155_v23  ;;  %v1963_v57 = vrot.slane %v1842_v59, 2  ;;  %v1964_v38 = vrot.slane %v1843_v12, 2  ;;  %v8387_v42 = vmul.f32 %v5793_v47, %v8338_v28 }
 0x24a   : > { %v2826_v27 = vrot.slane %v8350_v44, 1  ;;  %v1476_v34 = vsel %vm1413_vm2, %v1474_v8, %v1475_v3  ;;  %v1720_v39 = vsel %vm1413_vm2, %v1718_v18, %v9302_v60  ;;  %v3527_v20 = vadd.f32 %v3495_v19, %v3459_v48 }
 0x24b   : > { %v1306_v55 = vadd.f32 %v1274_v1, %v1206_v35  ;;  %v1550_v23 = vadd.f32 %v1476_v34, %v1305_v56  ;;  %v1966_v13 = vrot.slane %v1844_v5, 2  ;;  %v1478_v2 = vsel %vm1413_vm2, %v1475_v3, %v1477_v26  ;;  %v8418_v34 = vld [vmem:[#allocation2 + $0x140] sm:$0xff] }
 0x24c   : > { %v1965_v11 = vsel %vm1902_vm3, %v1963_v57, %v1964_v38  ;;  %v2464_v36 = vmul.f32 %v8297_v21, %v9579_v45  ;;  %v2465_v44 = vmul.f32 %v8213_v54, %v9579_v45  ;;  %v9303_v59 = vrot.slane %v8387_v42, 2 }
 0x24d   : > { %v1794_v16 = vadd.f32 %v1720_v39, %v1550_v23  ;;  %v2466_v18 = vmul.f32 %v8365_v29, %v9579_v45  ;;  %v8406_v48 = vmul.f32 %v5949_v61, %v8338_v28  ;;  %v2952_v1 = vmul.f32 %v8297_v21, %v9605_v52 }
 0x24e   : > { %v2582_v56 = vrot.slane %v2464_v36, 1  ;;  %v2583_v19 = vrot.slane %v2465_v44, 1  ;;  %v2953_v35 = vmul.f32 %v8213_v54, %v9605_v52  ;;  %v3933_v12 = vrot.slane %v8357_v63, 1 }
 0x24f   : > { %v2386_v5 = vmul.f32 %v5944_v4, %v8338_v28  ;;  %v2039_v8 = vadd.f32 %v1965_v11, %v1794_v16  ;;  %v2585_v3 = vrot.slane %v2466_v18, 1  ;;  %v4421_v26 = vrot.slane %v8383_v51, 2 }
 0x250   : > { %v3496_v57 = vmul.f32 %v9451_v30, %v8338_v28  ;;  %v8422_v39 = vmul.f32 %v8418_v34, %v9573_v37  ;;  %v9304_v23 = vrot.slane %v8406_v48, 1  ;;  %v1551_v36 = vadd.f32 %v1478_v2, %v1306_v55 }
 0x251   : > { %v8426_v63 = vsel %vm1902_vm3, %v1964_v38, %v1966_v13  ;;  %v2418_v44 = vadd.f32 %v2386_v5, %v2350_v10  ;;  %v2584_v11 = vsel %vm1413_vm2, %v2582_v56, %v2583_v19  ;;  %v2209_v51 = vsel %vm1902_vm3, %v2207_v6, %v9303_v59  ;;  %v9616_v10 = vld [vmem:[#allocation7_spill] sm:$0xff] }
 0x252   : > { %v2586_v16 = vsel %vm1413_vm2, %v2583_v19, %v2585_v3  ;;  %v3070_v18 = vrot.slane %v2952_v1, 2  ;;  %v3071_v58 = vrot.slane %v2953_v35, 2  ;;  %v8433_v62 = vadd.f32 %v2209_v51, %v2039_v8 }
 0x253   : > { %v2954_v60 = vmul.f32 %v8365_v29, %v9605_v52  ;;  %v8439_v38 = vmul.f32 %v5960_v49, %v8338_v28  ;;  %v3573_v55 = vmul.f32 %v8297_v21, %v9616_v10  ;;  %v2661_v13 = vadd.f32 %v2584_v11, %v8347_v33  ;;  %v871_v11 = vpop.permute.xlu0 %870 }
 0x254   : > { %v2828_v6 = vsel %vm1413_vm2, %v2826_v27, %v9304_v23  ;;  %v3574_v2 = vmul.f32 %v8213_v54, %v9616_v10  ;;  %v3575_v56 = vmul.f32 %v8365_v29, %v9616_v10  ;;  %v2662_v19 = vadd.f32 %v2586_v16, %v2418_v44 }
 0x255   : > { %v3689_v1 = vrot.slane %v3573_v55, 1  ;;  %v3818_v35 = vmul.f32 %v9453_v9, %v8338_v28  ;;  %v4061_v5 = vmul.f32 %v8297_v21, %v7841_v32  ;;  %v3072_v33 = vsel %vm1902_vm3, %v3070_v18, %v3071_v58  ;;  %v1033_v55 = vpop.permute.xlu1 %1032 }
 0x256   : > { %v3690_v8 = vrot.slane %v3574_v2, 1  ;;  %v3692_v3 = vrot.slane %v3575_v56, 1  ;;  %v4062_v27 = vmul.f32 %v8213_v54, %v7841_v32  ;;  %v4063_v59 = vmul.f32 %v8365_v29, %v7841_v32 }
 0x257   : > { %v3934_v51 = vrot.slane %v3818_v35, 1  ;;  %v4177_v44 = vrot.slane %v4061_v5, 2  ;;  %v4306_v16 = vmul.f32 %v7878_v41, %v8338_v28  ;;  %v3073_v23 = vrot.slane %v2954_v60, 2 }
 0x258   : > { %v3315_v21 = vrot.slane %v8439_v38, 2  ;;  %v3691_v18 = vsel %vm1413_vm2, %v3689_v1, %v3690_v8  ;;  %v4178_v2 = vrot.slane %v4062_v27, 2  ;;  %v2905_v56 = vadd.f32 %v2828_v6, %v2661_v13 }
 0x259   : > { %v3528_v0 = vadd.f32 %v3496_v57, %v8342_v25  ;;  %v3771_v54 = vadd.f32 %v3691_v18, %v3527_v20  ;;  %v3935_v35 = vsel %vm1413_vm2, %v3933_v12, %v3934_v51  ;;  %v3693_v46 = vsel %vm1413_vm2, %v3690_v8, %v3692_v3 }
 0x25a   : > { %v4179_v32 = vsel %vm1902_vm3, %v4177_v44, %v4178_v2  ;;  %v4422_v29 = vrot.slane %v4306_v16, 2  ;;  %v1157_v28 = vsel %vm1118_vm4, %v871_v11, %v1033_v55  ;;  %v4180_v60 = vrot.slane %v4063_v59, 2 }
 0x25b   : > { %v4015_v5 = vadd.f32 %v3935_v35, %v3771_v54  ;;  %v1600_v38 = vmul.f32 %v5784_v50, %v1157_v28  ;;  %v2089_v1 = vmul.f32 %v5793_v47, %v1157_v28  ;;  %v3074_v13 = vsel %vm1902_vm3, %v3071_v58, %v3073_v23  ;;  %v1035_v54 = vpop.permute.xlu1 %1034 }
 0x25c   : > { %v2710_v25 = vmul.f32 %v5949_v61, %v1157_v28  ;;  %v3819_v20 = vmul.f32 %v9453_v9, %v1157_v28  ;;  %v4307_v12 = vmul.f32 %v7878_v41, %v1157_v28  ;;  %v3149_v57 = vadd.f32 %v3072_v33, %v2905_v56  ;;  %v873_v56 = vpop.permute.xlu0 %872 }
 0x25d   : > { %v3772_v6 = vadd.f32 %v3693_v46, %v3528_v0  ;;  %v4259_v8 = vadd.f32 %v4179_v32, %v4015_v5  ;;  %v1721_v3 = vrot.slane %v1600_v38, 1  ;;  %v4423_v27 = vsel %vm1902_vm3, %v4421_v26, %v4422_v29 }
 0x25e   : > { %v2829_v59 = vrot.slane %v2710_v25, 1  ;;  %v3198_v11 = vmul.f32 %v5960_v49, %v1157_v28  ;;  %v3936_v44 = vrot.slane %v3819_v20, 1  ;;  %v4181_v16 = vsel %vm1902_vm3, %v4178_v2, %v4180_v60 }
 0x25f   : > { %v4503_v58 = vadd.f32 %v4423_v27, %v4259_v8  ;;  %v9617_v23 = vrot.slane %v8371_v53, 1  ;;  %v2210_v18 = vrot.slane %v2089_v1, 2  ;;  %v9618_v46 = vrot.slane %v8406_v48, 1 }
 0x260   : > { %v3937_v33 = vsel %vm1413_vm2, %v3934_v51, %v3936_v44  ;;  %v4424_v26 = vrot.slane %v4307_v12, 2  ;;  %v3430_v28 = vmul.f32 %v8418_v34, %v9574_v14  ;;  %v3317_v48 = vrot.slane %v3198_v11, 2 }
 0x261   : > { %v1722_v55 = vsel %vm1413_vm2, %v9617_v23, %v1721_v3  ;;  %v2830_v0 = vsel %vm1413_vm2, %v9618_v46, %v2829_v59  ;;  %4535 = vst.msk [vmem:[%s6631_s28 + $0xa0] sm:$0xff] %vm597_vm0, %v4503_v58  ;;  %v4586_v2 = vsel %vm597_vm0, %v4503_v58, 0.0  ;;  %v4638_v35 = vmul.f32 %v4503_v58, %v4503_v58  ;;  %v1037_v58 = vpop.permute.xlu1 %1036  ;;  %v5027_v23 = vld [vmem:[#allocation2 + $0x198] sm:$0xff] }
 0x262   : > { %v1795_v41 = vadd.f32 %v1722_v55, %v1551_v36  ;;  %v2906_v32 = vadd.f32 %v2830_v0, %v2662_v19  ;;  %v4016_v53 = vadd.f32 %v3937_v33, %v3772_v6  ;;  %v4587_v5 = vadd.f32 %v4586_v2, %v8333_v15  ;;  %v8499_v6 = vld [vmem:[#allocation2 + $0x138] sm:$0xff]  ;;  %v8529_v0 = vld [vmem:[%s9245_s3 + $0x8] ss:$0 sm:$0xff] }
 0x263   : > { %v4689_v51 = vsel %vm597_vm0, %v4638_v35, 0.0  ;;  %v1158_v1 = vsel %vm1118_vm4, %v873_v56, %v1035_v54  ;;  %v9619_v25 = vrot.slane %v8353_v31, 2  ;;  %v4425_v20 = vsel %vm1902_vm3, %v4422_v29, %v4424_v26 }
 0x264   : > { %v2040_v36 = vadd.f32 %v8426_v63, %v1795_v41  ;;  %v3150_v60 = vadd.f32 %v3074_v13, %v2906_v32  ;;  %v4260_v38 = vadd.f32 %v4181_v16, %v4016_v53  ;;  %v4690_v12 = vadd.f32 %v4689_v51, %v8344_v43  ;;  %v875_v16 = vpop.permute.xlu0 %874 }
 0x265   : > { %v3316_v19 = vsel %vm1902_vm3, %v9619_v25, %v3315_v21  ;;  %v2319_v15 = vmul.f32 %v8499_v6, %v9573_v37  ;;  %v9620_v13 = vrot.slane %v8387_v42, 2  ;;  %v3429_v31 = vmul.f32 %v8499_v6, %v9574_v14  ;;  %v8558_v25 = vld [vmem:[#allocation2 + $0x148] sm:$0x3] }
 0x266   : > { %v3393_v63 = vadd.f32 %v3316_v19, %v3149_v57  ;;  %v4504_v3 = vadd.f32 %v4425_v20, %v4260_v38  ;;  %v3318_v59 = vsel %vm1902_vm3, %v3315_v21, %v3317_v48  ;;  %v1207_v43 = vmul.f32 %v8499_v6, %v9591_v24 }
 0x267   : > { %v2211_v8 = vsel %vm1902_vm3, %v9620_v13, %v2210_v18  ;;  %v1275_v29 = vmul.f32 %v9592_v7, %v1158_v1  ;;  %v3394_v11 = vadd.f32 %v3318_v59, %v3150_v60  ;;  %v1601_v44 = vmul.f32 %v5784_v50, %v1158_v1 }
 0x268   : > { %v2284_v27 = vadd.f32 %v2211_v8, %v2040_v36  ;;  %4536 = vst.msk [vmem:[%s6631_s28 + $0xa8] sm:$0xff] %vm597_vm0, %v4504_v3  ;;  %v4588_v57 = vsel %vm597_vm0, %v4504_v3, 0.0  ;;  %v4639_v42 = vmul.f32 %v4504_v3, %v4504_v3  ;;  %v8517_v55 = vmul.f32 %v5027_v23, %v9616_v10 }
 0x269   : > { %v8519_v21 = vadd.f32 %v4588_v57, %v4587_v5  ;;  %v2351_v18 = vadd.f32 %v2319_v15, %v8433_v62  ;;  %v8523_v41 = vmul.f32 %v5793_v47, %v1158_v1  ;;  %v8532_v33 = vmul.f32 %v8529_v0, %v5027_v23 }
 0x26a   : > { %9621 = vst [vmem:[#allocation14_spill] sm:$0xff] %v8517_v55  ;;  %v4691_v26 = vsel %vm597_vm0, %v4639_v42, 0.0  ;;  %v3461_v56 = vadd.f32 %v3429_v31, %v3393_v63  ;;  %v2352_v54 = vadd.f32 %v8422_v39, %v2284_v27  ;;  %v2387_v62 = vmul.f32 %v5944_v4, %v1158_v1 }
 0x26b   : > { %9622 = vst [vmem:[#allocation38_spill] sm:$0xff] %v8532_v33  ;;  %v8536_v2 = vadd.f32 %v4691_v26, %v4690_v12  ;;  %v8540_v35 = vsel %vm1118_vm4, %v875_v16, %v1037_v58  ;;  %v8542_v32 = vadd.f32 %v3430_v28, %v3394_v11  ;;  %v1307_v53 = vadd.f32 %v1275_v29, %v1207_v43  ;;  %v8582_v43 = vld [vmem:[%s9246_s4 + $0x8] ss:$0 sm:$0xff] }
 0x26c   : > { %v1723_v36 = vrot.slane %v1601_v44, 1  ;;  %v8545_v48 = vmul.f32 %v5949_v61, %v1158_v1  ;;  %v8548_v51 = vadd.f32 %v2387_v62, %v2351_v18  ;;  %v8551_v39 = vmul.f32 %v5960_v49, %v1158_v1 }
 0x26d   : > { %v1356_v60 = vmul.f32 %v8499_v6, %v9593_v22  ;;  %v3497_v38 = vmul.f32 %v9451_v30, %v1158_v1  ;;  %v1357_v28 = vmul.f32 %v8418_v34, %v9593_v22  ;;  %v1358_v19 = vmul.f32 %v8558_v25, %v9593_v22 }
 0x26e   : > { %v8564_v20 = vmul.f32 %v5784_v50, %v8540_v35  ;;  %v8567_v12 = vmul.f32 %v9453_v9, %v1158_v1  ;;  %v1845_v63 = vmul.f32 %v8499_v6, %v9566_v17  ;;  %v1846_v13 = vmul.f32 %v8418_v34, %v9566_v17 }
 0x26f   : > { %v1479_v15 = vrot.slane %v1356_v60, 1  ;;  %v1276_v8 = vmul.f32 %v9592_v7, %v8540_v35  ;;  %v1208_v3 = vmul.f32 %v8418_v34, %v9591_v24  ;;  %v1480_v31 = vrot.slane %v1357_v28, 1 }
 0x270   : > { %v9306_v27 = vrot.slane %v8564_v20, 1  ;;  %v2831_v59 = vrot.slane %v8545_v48, 1  ;;  %v8585_v29 = vmul.f32 %v8582_v43, %v1158_v1  ;;  %v1482_v11 = vrot.slane %v1358_v19, 1 }
 0x271   : > { %v1847_v57 = vmul.f32 %v8558_v25, %v9566_v17  ;;  %v8590_v44 = vadd.f32 %v3497_v38, %v3461_v56  ;;  %v1481_v16 = vsel %vm1413_vm2, %v1479_v15, %v1480_v31  ;;  %v3938_v23 = vrot.slane %v8567_v12, 1 }
 0x272   : > { %v1725_v58 = vsel %vm1413_vm2, %v1723_v36, %v9306_v27  ;;  %v1552_v18 = vadd.f32 %v1481_v16, %v1307_v53  ;;  %v1968_v26 = vrot.slane %v1845_v63, 2  ;;  %v1969_v1 = vrot.slane %v1846_v13, 2  ;;  %v8624_v16 = vld [vmem:[#allocation2 + $0x158] sm:$0xff] }
 0x273   : > { %v1308_v62 = vadd.f32 %v1276_v8, %v1208_v3  ;;  %v8599_v48 = vmul.f32 %v5793_v47, %v8540_v35  ;;  %v2467_v56 = vmul.f32 %v8499_v6, %v9579_v45  ;;  %v2468_v60 = vmul.f32 %v8418_v34, %v9579_v45 }
 0x274   : > { %v1483_v38 = vsel %vm1413_vm2, %v1480_v31, %v1482_v11  ;;  %v1796_v28 = vadd.f32 %v1725_v58, %v1552_v18  ;;  %v1971_v36 = vrot.slane %v1847_v57, 2  ;;  %v2469_v53 = vmul.f32 %v8558_v25, %v9579_v45 }
 0x275   : > { %v2587_v19 = vrot.slane %v2467_v56, 1  ;;  %v2588_v12 = vrot.slane %v2468_v60, 1  ;;  %v8610_v15 = vmul.f32 %v5949_v61, %v8540_v35  ;;  %v2955_v63 = vmul.f32 %v8499_v6, %v9605_v52 }
 0x276   : > { %v2388_v13 = vmul.f32 %v5944_v4, %v8540_v35  ;;  %v1970_v8 = vsel %vm1902_vm3, %v1968_v26, %v1969_v1  ;;  %v2956_v3 = vmul.f32 %v8418_v34, %v9605_v52  ;;  %v2957_v31 = vmul.f32 %v8558_v25, %v9605_v52 }
 0x277   : > { %v4426_v11 = vrot.slane %v8585_v29, 2  ;;  %v3498_v57 = vmul.f32 %v9451_v30, %v8540_v35  ;;  %v8628_v58 = vmul.f32 %v8624_v16, %v9573_v37  ;;  %v2590_v18 = vrot.slane %v2469_v53, 1 }
 0x278   : > { %v1553_v56 = vadd.f32 %v1483_v38, %v1308_v62  ;;  %v8631_v26 = vsel %vm1902_vm3, %v1969_v1, %v1971_v36  ;;  %v2420_v46 = vadd.f32 %v2388_v13, %v2352_v54  ;;  %v8634_v42 = vadd.f32 %v1970_v8, %v1796_v28 }
 0x279   : > { %v2589_v29 = vsel %vm1413_vm2, %v2587_v19, %v2588_v12  ;;  %v2832_v5 = vrot.slane %v8610_v15, 1  ;;  %v3075_v27 = vrot.slane %v2955_v63, 2  ;;  %v3076_v40 = vrot.slane %v2956_v3, 2  ;;  %v877_v3 = vpop.permute.xlu0 %876 }
 0x27a   : > { %v3078_v52 = vrot.slane %v2957_v31, 2  ;;  %v8640_v45 = vmul.f32 %v5960_v49, %v8540_v35  ;;  %v3576_v1 = vmul.f32 %v8499_v6, %v9616_v10  ;;  %v2591_v62 = vsel %vm1413_vm2, %v2588_v12, %v2590_v18 }
 0x27b   : > { %v3577_v54 = vmul.f32 %v8418_v34, %v9616_v10  ;;  %v3578_v38 = vmul.f32 %v8558_v25, %v9616_v10  ;;  %v3821_v28 = vmul.f32 %v9453_v9, %v8540_v35  ;;  %v2663_v36 = vadd.f32 %v2589_v29, %v8548_v51  ;;  %v1039_v29 = vpop.permute.xlu1 %1038 }
 0x27c   : > { %v3694_v53 = vrot.slane %v3576_v1, 1  ;;  %v4064_v19 = vmul.f32 %v8529_v0, %v8499_v6  ;;  %v4065_v15 = vmul.f32 %v8529_v0, %v8418_v34  ;;  %v2833_v12 = vsel %vm1413_vm2, %v2831_v59, %v2832_v5 }
 0x27d   : > { %v3695_v63 = vrot.slane %v3577_v54, 1  ;;  %v3697_v13 = vrot.slane %v3578_v38, 1  ;;  %v3939_v8 = vrot.slane %v3821_v28, 1  ;;  %v4066_v31 = vmul.f32 %v8558_v25, %v8529_v0 }
 0x27e   : > { %v4182_v18 = vrot.slane %v4064_v19, 2  ;;  %v4183_v60 = vrot.slane %v4065_v15, 2  ;;  %v4309_v51 = vmul.f32 %v8582_v43, %v8540_v35  ;;  %v2664_v1 = vadd.f32 %v2591_v62, %v2420_v46 }
 0x27f   : > { %v3077_v6 = vsel %vm1902_vm3, %v3075_v27, %v3076_v40  ;;  %v3696_v34 = vsel %vm1413_vm2, %v3694_v53, %v3695_v63  ;;  %v3940_v59 = vsel %vm1413_vm2, %v3938_v23, %v3939_v8  ;;  %v2907_v54 = vadd.f32 %v2833_v12, %v2663_v36 }
 0x280   : > { %v3079_v38 = vsel %vm1902_vm3, %v3076_v40, %v3078_v52  ;;  %v3530_v28 = vadd.f32 %v3498_v57, %v8542_v32  ;;  %v3773_v25 = vadd.f32 %v3696_v34, %v8590_v44  ;;  %v3698_v19 = vsel %vm1413_vm2, %v3695_v63, %v3697_v13 }
 0x281   : > { %v4184_v15 = vsel %vm1902_vm3, %v4182_v18, %v4183_v60  ;;  %v4427_v35 = vrot.slane %v4309_v51, 2  ;;  %v1160_v46 = vsel %vm1118_vm4, %v877_v3, %v1039_v29  ;;  %v4185_v27 = vrot.slane %v4066_v31, 2 }
 0x282   : > { %v4017_v62 = vadd.f32 %v3940_v59, %v3773_v25  ;;  %v1603_v53 = vmul.f32 %v5784_v50, %v1160_v46  ;;  %v2092_v23 = vmul.f32 %v5793_v47, %v1160_v46  ;;  %v3320_v36 = vrot.slane %v8640_v45, 2 }
 0x283   : > { %v2713_v52 = vmul.f32 %v5949_v61, %v1160_v46  ;;  %v3822_v40 = vmul.f32 %v9453_v9, %v1160_v46  ;;  %v4310_v32 = vmul.f32 %v8582_v43, %v1160_v46  ;;  %v3151_v44 = vadd.f32 %v3077_v6, %v2907_v54 }
 0x284   : > { %v3774_v57 = vadd.f32 %v3698_v19, %v3530_v28  ;;  %v4261_v12 = vadd.f32 %v4184_v15, %v4017_v62  ;;  %v1726_v63 = vrot.slane %v1603_v53, 1  ;;  %v4428_v13 = vsel %vm1902_vm3, %v4426_v11, %v4427_v35  ;;  %v1041_v62 = vpop.permute.xlu1 %1040 }
 0x285   : > { %v2834_v3 = vrot.slane %v2713_v52, 1  ;;  %v3201_v31 = vmul.f32 %v5960_v49, %v1160_v46  ;;  %v3941_v18 = vrot.slane %v3822_v40, 1  ;;  %v4186_v51 = vsel %vm1902_vm3, %v4183_v60, %v4185_v27  ;;  %v879_v60 = vpop.permute.xlu0 %878 }
 0x286   : > { %v4505_v45 = vadd.f32 %v4428_v13, %v4261_v12  ;;  %v9623_v29 = vrot.slane %v8564_v20, 1  ;;  %v2215_v59 = vrot.slane %v2092_v23, 2  ;;  %v4429_v28 = vrot.slane %v4310_v32, 2 }
 0x287   : > { %v2835_v6 = vsel %vm1413_vm2, %v2832_v5, %v2834_v3  ;;  %v3942_v54 = vsel %vm1413_vm2, %v3939_v8, %v3941_v18  ;;  %v9624_v20 = vrot.slane %v8599_v48, 2  ;;  %v9625_v27 = vrot.slane %v8523_v41, 2 }
 0x288   : > { %v1727_v34 = vsel %vm1413_vm2, %v9623_v29, %v1726_v63  ;;  %4537 = vst.msk [vmem:[%s6631_s28 + $0xb0] sm:$0xff] %vm597_vm0, %v4505_v45  ;;  %v4590_v11 = vsel %vm597_vm0, %v4505_v45, 0.0  ;;  %v4640_v19 = vmul.f32 %v4505_v45, %v4505_v45  ;;  %v2908_v15 = vadd.f32 %v2835_v6, %v2664_v1  ;;  %v1043_v29 = vpop.permute.xlu1 %1042 }
 0x289   : > { %v1797_v25 = vadd.f32 %v1727_v34, %v1553_v56  ;;  %v4018_v46 = vadd.f32 %v3942_v54, %v3774_v57  ;;  %v2214_v56 = vsel %vm1902_vm3, %v9625_v27, %v9624_v20  ;;  %v3322_v53 = vrot.slane %v3201_v31, 2  ;;  %v881_v45 = vpop.permute.xlu0 %880  ;;  %v8725_v54 = vld [vmem:[#allocation2 + $0x1a0] sm:$0xff] }
 0x28a   : > { %v4591_v8 = vadd.f32 %v4590_v11, %v8519_v21  ;;  %v2285_v23 = vadd.f32 %v2214_v56, %v8634_v42  ;;  %v9626_v52 = vrot.slane %v8551_v39, 2  ;;  %v4693_v40 = vsel %vm597_vm0, %v4640_v19, 0.0  ;;  %v8705_v39 = vld [vmem:[#allocation2 + $0x150] sm:$0xff] }
 0x28b   : > { %v2042_v5 = vadd.f32 %v8631_v26, %v1797_v25  ;;  %v4262_v32 = vadd.f32 %v4186_v51, %v4018_v46  ;;  %v3152_v57 = vadd.f32 %v3079_v38, %v2908_v15  ;;  %v4430_v41 = vsel %vm1902_vm3, %v4427_v35, %v4429_v28 }
 0x28c   : > { %v3321_v1 = vsel %vm1902_vm3, %v9626_v52, %v3320_v36  ;;  %v4694_v12 = vadd.f32 %v4693_v40, %v8536_v2  ;;  %v1161_v26 = vsel %vm1118_vm4, %v879_v60, %v1041_v62  ;;  %v9627_v21 = vmov %v9624_v20  ;;  %v8753_v40 = vld [vmem:[#allocation2 + $0x160] sm:$0x3] }
 0x28d   : > { %v3395_v63 = vadd.f32 %v3321_v1, %v3151_v44  ;;  %v2216_v42 = vsel %vm1902_vm3, %v9627_v21, %v2215_v59  ;;  %v4506_v13 = vadd.f32 %v4430_v41, %v4262_v32  ;;  %v2321_v3 = vmul.f32 %v8705_v39, %v9573_v37 }
 0x28e   : > { %v2286_v31 = vadd.f32 %v2216_v42, %v2042_v5  ;;  %v3323_v38 = vsel %vm1902_vm3, %v3320_v36, %v3322_v53  ;;  %v1209_v35 = vmul.f32 %v8705_v39, %v9591_v24  ;;  %v3431_v2 = vmul.f32 %v8705_v39, %v9574_v14 }
 0x28f   : > { %4538 = vst.msk [vmem:[%s6631_s28 + $0xb8] sm:$0xff] %vm597_vm0, %v4506_v13  ;;  %v4592_v48 = vsel %vm597_vm0, %v4506_v13, 0.0  ;;  %v4641_v44 = vmul.f32 %v4506_v13, %v4506_v13  ;;  %v1277_v18 = vmul.f32 %v9592_v7, %v1161_v26  ;;  %v1604_v51 = vmul.f32 %v5784_v50, %v1161_v26 }
 0x290   : > { %v3432_v36 = vmul.f32 %v8624_v16, %v9574_v14  ;;  %v3396_v59 = vadd.f32 %v3323_v38, %v3152_v57  ;;  %v8722_v25 = vadd.f32 %v4592_v48, %v4591_v8  ;;  %v8729_v28 = vmul.f32 %v8725_v54, %v9616_v10 }
 0x291   : > { %v4695_v11 = vsel %vm597_vm0, %v4641_v44, 0.0  ;;  %v2353_v19 = vadd.f32 %v2321_v3, %v2285_v23  ;;  %v3463_v46 = vadd.f32 %v3431_v2, %v3395_v63  ;;  %v8735_v60 = vmul.f32 %v5793_v47, %v1161_v26 }
 0x292   : > { %v8732_v15 = vadd.f32 %v4695_v11, %v4694_v12  ;;  %v8738_v62 = vsel %vm1118_vm4, %v881_v45, %v1043_v29  ;;  %v2354_v20 = vadd.f32 %v8628_v58, %v2286_v31  ;;  %v1309_v27 = vadd.f32 %v1277_v18, %v1209_v35 }
 0x293   : > { %v1728_v56 = vrot.slane %v1604_v51, 1  ;;  %v2389_v5 = vmul.f32 %v5944_v4, %v1161_v26  ;;  %v8742_v53 = vadd.f32 %v3432_v36, %v3396_v59  ;;  %v8745_v8 = vmul.f32 %v5949_v61, %v1161_v26 }
 0x294   : > { %v1359_v23 = vmul.f32 %v8705_v39, %v9593_v22  ;;  %v1360_v52 = vmul.f32 %v8624_v16, %v9593_v22  ;;  %v1210_v1 = vmul.f32 %v8624_v16, %v9591_v24  ;;  %v1361_v58 = vmul.f32 %v8753_v40, %v9593_v22 }
 0x295   : > { %v8759_v32 = vmul.f32 %v5784_v50, %v8738_v62  ;;  %v1848_v57 = vmul.f32 %v8705_v39, %v9566_v17  ;;  %v1278_v41 = vmul.f32 %v9592_v7, %v8738_v62  ;;  %v1849_v21 = vmul.f32 %v8624_v16, %v9566_v17 }
 0x296   : > { %v1484_v12 = vrot.slane %v1359_v23, 1  ;;  %v1485_v63 = vrot.slane %v1360_v52, 1  ;;  %v2421_v42 = vadd.f32 %v2389_v5, %v2353_v19  ;;  %v1487_v13 = vrot.slane %v1361_v58, 1 }
 0x297   : > { %v9310_v3 = vrot.slane %v8759_v32, 1  ;;  %v1850_v31 = vmul.f32 %v8753_v40, %v9566_v17  ;;  %v2836_v38 = vrot.slane %v8745_v8, 1  ;;  %v1973_v2 = vrot.slane %v1848_v57, 2  ;;  %v9628_v8 = vld [vmem:[#allocation5_spill] sm:$0xff] }
 0x298   : > { %v1486_v35 = vsel %vm1413_vm2, %v1484_v12, %v1485_v63  ;;  %v1974_v48 = vrot.slane %v1849_v21, 2  ;;  %v8773_v44 = vmul.f32 %v5960_v49, %v1161_v26  ;;  %v3499_v18 = vmul.f32 %v9451_v30, %v1161_v26 }
 0x299   : > { %v3823_v51 = vmul.f32 %v9453_v9, %v1161_v26  ;;  %v1730_v45 = vsel %vm1413_vm2, %v1728_v56, %v9310_v3  ;;  %v8781_v29 = vmul.f32 %v8582_v43, %v1161_v26  ;;  %v1310_v36 = vadd.f32 %v1278_v41, %v1210_v1  ;;  %v9629_v41 = vld [vmem:[#allocation6_spill] sm:$0xff] }
 0x29a   : > { %v1554_v59 = vadd.f32 %v1486_v35, %v1309_v27  ;;  %v8785_v11 = vmul.f32 %v5793_v47, %v8738_v62  ;;  %v1488_v19 = vsel %vm1413_vm2, %v1485_v63, %v1487_v13  ;;  %v1976_v5 = vrot.slane %v1850_v31, 2 }
 0x29b   : > { %v2470_v23 = vmul.f32 %v8705_v39, %v9628_v8  ;;  %v2471_v52 = vmul.f32 %v8624_v16, %v9628_v8  ;;  %v1975_v56 = vsel %vm1902_vm3, %v1973_v2, %v1974_v48  ;;  %v2472_v26 = vmul.f32 %v8753_v40, %v9628_v8 }
 0x29c   : > { %v1798_v58 = vadd.f32 %v1730_v45, %v1554_v59  ;;  %v8797_v27 = vmul.f32 %v5949_v61, %v8738_v62  ;;  %v2958_v12 = vmul.f32 %v8705_v39, %v9629_v41  ;;  %v8803_v63 = vmul.f32 %v8624_v16, %v9629_v41 }
 0x29d   : > { %v2592_v1 = vrot.slane %v2470_v23, 1  ;;  %v2593_v57 = vrot.slane %v2471_v52, 1  ;;  %v3531_v21 = vadd.f32 %v3499_v18, %v3463_v46  ;;  %v3943_v13 = vrot.slane %v3823_v51, 1 }
 0x29e   : > { %v2390_v31 = vmul.f32 %v5944_v4, %v8738_v62  ;;  %v8809_v35 = vmul.f32 %v8753_v40, %v9629_v41  ;;  %v4431_v2 = vrot.slane %v8781_v29, 2  ;;  %v3500_v45 = vmul.f32 %v9451_v30, %v8738_v62 }
 0x29f   : > { %v2595_v23 = vrot.slane %v2472_v26, 1  ;;  %v1555_v52 = vadd.f32 %v1488_v19, %v1310_v36  ;;  %v8816_v6 = vsel %vm1902_vm3, %v1974_v48, %v1976_v5  ;;  %v8818_v46 = vadd.f32 %v1975_v56, %v1798_v58 }
 0x2a0   : > { %v2422_v18 = vadd.f32 %v2390_v31, %v2354_v20  ;;  %v2594_v51 = vsel %vm1413_vm2, %v2592_v1, %v2593_v57  ;;  %v2837_v34 = vrot.slane %v8797_v27, 1  ;;  %v3080_v3 = vrot.slane %v2958_v12, 2  ;;  %v883_v12 = vpop.permute.xlu0 %882 }
 0x2a1   : > { %v3081_v29 = vrot.slane %v8803_v63, 2  ;;  %v3083_v33 = vrot.slane %v8809_v35, 2  ;;  %v8826_v59 = vmul.f32 %v5960_v49, %v8738_v62  ;;  %v3579_v48 = vmul.f32 %v8705_v39, %v9616_v10 }
 0x2a2   : > { %v3580_v36 = vmul.f32 %v8624_v16, %v9616_v10  ;;  %v2596_v20 = vsel %vm1413_vm2, %v2593_v57, %v2595_v23  ;;  %v3581_v19 = vmul.f32 %v8753_v40, %v9616_v10  ;;  %v3824_v5 = vmul.f32 %v9453_v9, %v8738_v62  ;;  %v1045_v23 = vpop.permute.xlu1 %1044 }
 0x2a3   : > { %v4067_v58 = vmul.f32 %v8705_v39, %v8529_v0  ;;  %v2665_v56 = vadd.f32 %v2594_v51, %v2421_v42  ;;  %v3699_v26 = vrot.slane %v3579_v48, 1  ;;  %v4068_v1 = vmul.f32 %v8624_v16, %v8529_v0 }
 0x2a4   : > { %v3700_v27 = vrot.slane %v3580_v36, 1  ;;  %v3702_v63 = vrot.slane %v3581_v19, 1  ;;  %v3944_v31 = vrot.slane %v3824_v5, 1  ;;  %v4069_v57 = vmul.f32 %v8753_v40, %v8529_v0 }
 0x2a5   : > { %v4187_v35 = vrot.slane %v4067_v58, 2  ;;  %v2838_v55 = vsel %vm1413_vm2, %v2836_v38, %v2837_v34  ;;  %v4188_v17 = vrot.slane %v4068_v1, 2  ;;  %v4312_v39 = vmul.f32 %v8582_v43, %v8738_v62 }
 0x2a6   : > { %v3701_v41 = vsel %vm1413_vm2, %v3699_v26, %v3700_v27  ;;  %v3082_v42 = vsel %vm1902_vm3, %v3080_v3, %v3081_v29  ;;  %v3532_v16 = vadd.f32 %v3500_v45, %v8742_v53  ;;  %v3945_v48 = vsel %vm1413_vm2, %v3943_v13, %v3944_v31 }
 0x2a7   : > { %v3775_v51 = vadd.f32 %v3701_v41, %v3531_v21  ;;  %v3703_v36 = vsel %vm1413_vm2, %v3700_v27, %v3702_v63  ;;  %v4189_v40 = vsel %vm1902_vm3, %v4187_v35, %v4188_v17  ;;  %v4432_v19 = vrot.slane %v4312_v39, 2 }
 0x2a8   : > { %v1163_v38 = vsel %vm1118_vm4, %v883_v12, %v1045_v23  ;;  %v2666_v5 = vadd.f32 %v2596_v20, %v2422_v18  ;;  %v4190_v26 = vrot.slane %v4069_v57, 2  ;;  %v2909_v62 = vadd.f32 %v2838_v55, %v2665_v56 }
 0x2a9   : > { %v4019_v58 = vadd.f32 %v3945_v48, %v3775_v51  ;;  %v1606_v1 = vmul.f32 %v5784_v50, %v1163_v38  ;;  %v3325_v3 = vrot.slane %v8826_v59, 2  ;;  %v2716_v53 = vmul.f32 %v5949_v61, %v1163_v38 }
 0x2aa   : > { %v3825_v41 = vmul.f32 %v9453_v9, %v1163_v38  ;;  %v3776_v21 = vadd.f32 %v3703_v36, %v3532_v16  ;;  %v4313_v27 = vmul.f32 %v8582_v43, %v1163_v38  ;;  %v4433_v12 = vsel %vm1902_vm3, %v4431_v2, %v4432_v19 }
 0x2ab   : > { %v4263_v13 = vadd.f32 %v4189_v40, %v4019_v58  ;;  %v1731_v45 = vrot.slane %v1606_v1, 1  ;;  %v2095_v18 = vmul.f32 %v5793_v47, %v1163_v38  ;;  %v2839_v20 = vrot.slane %v2716_v53, 1 }
 0x2ac   : > { %v3946_v63 = vrot.slane %v3825_v41, 1  ;;  %v4191_v55 = vsel %vm1902_vm3, %v4188_v17, %v4190_v26  ;;  %v9630_v59 = vrot.slane %v8759_v32, 1  ;;  %v3204_v35 = vmul.f32 %v5960_v49, %v1163_v38  ;;  %v885_v38 = vpop.permute.xlu0 %884 }
 0x2ad   : > { %v4507_v56 = vadd.f32 %v4433_v12, %v4263_v13  ;;  %v2840_v39 = vsel %vm1413_vm2, %v2837_v34, %v2839_v20  ;;  %v4434_v51 = vrot.slane %v4313_v27, 2  ;;  %v3084_v40 = vsel %vm1902_vm3, %v3081_v29, %v3083_v33  ;;  %v8886_v27 = vld [vmem:[#allocation2 + $0x168] sm:$0xff]  ;;  %v8896_v20 = vld [vmem:[#allocation2 + $0x170] sm:$0xff] }
 0x2ae   : > { %v1732_v57 = vsel %vm1413_vm2, %v9630_v59, %v1731_v45  ;;  %v3947_v16 = vsel %vm1413_vm2, %v3944_v31, %v3946_v63  ;;  %v2910_v36 = vadd.f32 %v2840_v39, %v2666_v5  ;;  %v3153_v32 = vadd.f32 %v3082_v42, %v2909_v62 }
 0x2af   : > { %v1799_v23 = vadd.f32 %v1732_v57, %v1555_v52  ;;  %4539 = vst.msk [vmem:[%s6631_s28 + $0xc0] sm:$0xff] %vm597_vm0, %v4507_v56  ;;  %v4594_v2 = vsel %vm597_vm0, %v4507_v56, 0.0  ;;  %v4642_v48 = vmul.f32 %v4507_v56, %v4507_v56  ;;  %v4020_v17 = vadd.f32 %v3947_v16, %v3776_v21  ;;  %v1047_v52 = vpop.permute.xlu1 %1046 }
 0x2b0   : > { %v2220_v58 = vrot.slane %v2095_v18, 2  ;;  %v4595_v26 = vadd.f32 %v4594_v2, %v8722_v25  ;;  %v2217_v34 = vrot.slane %v8735_v60, 2  ;;  %v3324_v31 = vrot.slane %v8773_v44, 2  ;;  %v887_v59 = vpop.permute.xlu0 %886 }
 0x2b1   : > { %v4697_v1 = vsel %vm597_vm0, %v4642_v48, 0.0  ;;  %v4264_v53 = vadd.f32 %v4191_v55, %v4020_v17  ;;  %v2044_v41 = vadd.f32 %v8816_v6, %v1799_v23  ;;  %v3327_v5 = vrot.slane %v3204_v35, 2 }
 0x2b2   : > { %v4435_v21 = vsel %vm1902_vm3, %v4432_v19, %v4434_v51  ;;  %v4698_v33 = vadd.f32 %v4697_v1, %v8732_v15  ;;  %v9631_v29 = vrot.slane %v8785_v11, 2  ;;  %v3326_v42 = vsel %vm1902_vm3, %v3324_v31, %v3325_v3 }
 0x2b3   : > { %v3154_v60 = vadd.f32 %v3084_v40, %v2910_v36  ;;  %v4508_v62 = vadd.f32 %v4435_v21, %v4264_v53  ;;  %v3397_v13 = vadd.f32 %v3326_v42, %v3153_v32  ;;  %v2323_v15 = vmul.f32 %v8886_v27, %v9573_v37  ;;  %v1049_v57 = vpop.permute.xlu1 %1048 }
 0x2b4   : > { %v2219_v25 = vsel %vm1902_vm3, %v2217_v34, %v9631_v29  ;;  %v9632_v45 = vmov %v9631_v29  ;;  %v3433_v18 = vmul.f32 %v8886_v27, %v9574_v14  ;;  %v2324_v11 = vmul.f32 %v8896_v20, %v9573_v37 }
 0x2b5   : > { %v2287_v44 = vadd.f32 %v2219_v25, %v8818_v46  ;;  %v2221_v6 = vsel %vm1902_vm3, %v9632_v45, %v2220_v58  ;;  %4540 = vst.msk [vmem:[%s6631_s28 + $0xc8] sm:$0xff] %vm597_vm0, %v4508_v62  ;;  %v4596_v19 = vsel %vm597_vm0, %v4508_v62, 0.0  ;;  %v4643_v12 = vmul.f32 %v4508_v62, %v4508_v62 }
 0x2b6   : > { %v1164_v46 = vsel %vm1118_vm4, %v885_v38, %v1047_v52  ;;  %v2288_v63 = vadd.f32 %v2221_v6, %v2044_v41  ;;  %v3328_v55 = vsel %vm1902_vm3, %v3325_v3, %v3327_v5  ;;  %v8901_v56 = vadd.f32 %v4596_v19, %v4595_v26 }
 0x2b7   : > { %v8905_v35 = vmul.f32 %v8725_v54, %v8529_v0  ;;  %v3434_v23 = vmul.f32 %v8896_v20, %v9574_v14  ;;  %v3398_v39 = vadd.f32 %v3328_v55, %v3154_v60  ;;  %v4699_v16 = vsel %vm597_vm0, %v4643_v12, 0.0 }
 0x2b8   : > { %v8910_v51 = vadd.f32 %v4699_v16, %v4698_v33  ;;  %v1211_v2 = vmul.f32 %v8886_v27, %v9591_v24  ;;  %v1279_v3 = vmul.f32 %v9592_v7, %v1164_v46  ;;  %v8916_v48 = vmul.f32 %v5784_v50, %v1164_v46 }
 0x2b9   : > { %v2355_v36 = vadd.f32 %v2323_v15, %v2287_v44  ;;  %v3465_v17 = vadd.f32 %v3433_v18, %v3397_v13  ;;  %v8919_v40 = vmul.f32 %v5949_v61, %v1164_v46  ;;  %v1165_v32 = vsel %vm1118_vm4, %v887_v59, %v1049_v57 }
 0x2ba   : > { %9633 = vst [vmem:[#allocation13_spill] sm:$0xff] %v8910_v51  ;;  %v8923_v26 = vadd.f32 %v2324_v11, %v2288_v63  ;;  %v3826_v38 = vmul.f32 %v9453_v9, %v1164_v46  ;;  %v8927_v52 = vmul.f32 %v8582_v43, %v1164_v46  ;;  %v3466_v34 = vadd.f32 %v3434_v23, %v3398_v39  ;;  %v889_v23 = vpop.permute.xlu0 %888 }
 0x2bb   : > { %v8930_v31 = vmul.f32 %v5793_v47, %v1164_v46  ;;  %v2391_v1 = vmul.f32 %v5944_v4, %v1164_v46  ;;  %v3501_v53 = vmul.f32 %v9451_v30, %v1164_v46  ;;  %v8934_v41 = vadd.f32 %v1279_v3, %v1211_v2 }
 0x2bc   : > { %v1280_v21 = vmul.f32 %v9592_v7, %v1165_v32  ;;  %v1212_v33 = vmul.f32 %v8896_v20, %v9591_v24  ;;  %v8944_v42 = vmul.f32 %v5960_v49, %v1164_v46  ;;  %v3948_v62 = vrot.slane %v3826_v38, 1  ;;  %v8953_v24 = vld [vmem:[#allocation2 + $0x178] sm:$0x3] }
 0x2bd   : > { %v8940_v29 = vadd.f32 %v2391_v1, %v2355_v36  ;;  %v3533_v60 = vadd.f32 %v3501_v53, %v3465_v17  ;;  %v4436_v44 = vrot.slane %v8927_v52, 2  ;;  %v2392_v13 = vmul.f32 %v5944_v4, %v1165_v32  ;;  %v1051_v36 = vpop.permute.xlu1 %1050 }
 0x2be   : > { %v3502_v45 = vmul.f32 %v9451_v30, %v1165_v32  ;;  %v8951_v7 = vmul.f32 %v8896_v20, %v9593_v22  ;;  %v1364_v6 = vmul.f32 %v8953_v24, %v9593_v22  ;;  %v3582_v15 = vmul.f32 %v8886_v27, %v9616_v10 }
 0x2bf   : > { %v3583_v19 = vmul.f32 %v8896_v20, %v9616_v10  ;;  %v1312_v12 = vadd.f32 %v1280_v21, %v1212_v33  ;;  %v8962_v18 = vmul.f32 %v5784_v50, %v1165_v32  ;;  %v8965_v46 = vmul.f32 %v5793_v47, %v1165_v32 }
 0x2c0   : > { %v3584_v11 = vmul.f32 %v8953_v24, %v9616_v10  ;;  %v8971_v63 = vmul.f32 %v8896_v20, %v9628_v8  ;;  %v3704_v55 = vrot.slane %v3582_v15, 1  ;;  %v3827_v57 = vmul.f32 %v9453_v9, %v1165_v32 }
 0x2c1   : > { %v3705_v59 = vrot.slane %v3583_v19, 1  ;;  %v2475_v39 = vmul.f32 %v8953_v24, %v9628_v8  ;;  %v4070_v2 = vmul.f32 %v8886_v27, %v8529_v0  ;;  %v4071_v3 = vmul.f32 %v8896_v20, %v8529_v0 }
 0x2c2   : > { %v3707_v16 = vrot.slane %v3584_v11, 1  ;;  %v1492_v17 = vrot.slane %v1364_v6, 1  ;;  %v3949_v52 = vrot.slane %v3827_v57, 1  ;;  %v4315_v1 = vmul.f32 %v8582_v43, %v1165_v32 }
 0x2c3   : > { %v3706_v38 = vsel %vm1413_vm2, %v3704_v55, %v3705_v59  ;;  %v4072_v21 = vmul.f32 %v8953_v24, %v8529_v0  ;;  %v4192_v33 = vrot.slane %v4070_v2, 2  ;;  %v4193_v15 = vrot.slane %v4071_v3, 2 }
 0x2c4   : > { %v3777_v53 = vadd.f32 %v3706_v38, %v3533_v60  ;;  %v3534_v19 = vadd.f32 %v3502_v45, %v3466_v34  ;;  %v3950_v11 = vsel %vm1413_vm2, %v3948_v62, %v3949_v52  ;;  %v4437_v58 = vrot.slane %v4315_v1, 2 }
 0x2c5   : > { %v1166_v25 = vsel %vm1118_vm4, %v889_v23, %v1051_v36  ;;  %v1490_v5 = vrot.slane %v8951_v7, 1  ;;  %v3708_v6 = vsel %vm1413_vm2, %v3705_v59, %v3707_v16  ;;  %v4194_v57 = vsel %vm1902_vm3, %v4192_v33, %v4193_v15 }
 0x2c6   : > { %v4021_v55 = vadd.f32 %v3950_v11, %v3777_v53  ;;  %v2598_v60 = vrot.slane %v8971_v63, 1  ;;  %v2600_v38 = vrot.slane %v2475_v39, 1  ;;  %v8991_v51 = vmul.f32 %v5949_v61, %v1165_v32 }
 0x2c7   : > { %v8994_v34 = vmul.f32 %v5960_v49, %v1165_v32  ;;  %v1493_v62 = vsel %vm1413_vm2, %v1490_v5, %v1492_v17  ;;  %v4195_v45 = vrot.slane %v4072_v21, 2  ;;  %v3828_v7 = vmul.f32 %v9453_v9, %v1166_v25 }
 0x2c8   : > { %v4265_v23 = vadd.f32 %v4194_v57, %v4021_v55  ;;  %v3778_v59 = vadd.f32 %v3708_v6, %v3534_v19  ;;  %v4438_v16 = vsel %vm1902_vm3, %v4436_v44, %v4437_v58  ;;  %v4316_v2 = vmul.f32 %v8582_v43, %v1166_v25 }
 0x2c9   : > { %v1362_v63 = vmul.f32 %v8886_v27, %v9593_v22  ;;  %v1734_v39 = vrot.slane %v8962_v18, 1  ;;  %v2424_v32 = vadd.f32 %v2392_v13, %v8923_v26  ;;  %v3951_v36 = vrot.slane %v3828_v7, 1 }
 0x2ca   : > { %v9004_v3 = vadd.f32 %v4438_v16, %v4265_v23  ;;  %v9006_v17 = vadd.f32 %v1493_v62, %v1312_v12  ;;  %v2223_v1 = vrot.slane %v8965_v46, 2  ;;  %v2601_v53 = vsel %vm1413_vm2, %v2598_v60, %v2600_v38  ;;  %v9634_v12 = vld [vmem:[#allocation4_spill] sm:$0xff] }
 0x2cb   : > { %v2842_v44 = vrot.slane %v8991_v51, 1  ;;  %v4196_v21 = vsel %vm1902_vm3, %v4193_v15, %v4195_v45  ;;  %v3952_v22 = vsel %vm1413_vm2, %v3949_v52, %v3951_v36  ;;  %v4439_v18 = vrot.slane %v4316_v2, 2 }
 0x2cc   : > { %4541 = vst.msk [vmem:[%s6631_s28 + $0xd0] sm:$0xff] %vm597_vm0, %v9004_v3  ;;  %v1489_v26 = vrot.slane %v1362_v63, 1  ;;  %v3330_v13 = vrot.slane %v8994_v34, 2  ;;  %v4022_v33 = vadd.f32 %v3952_v22, %v3778_v59  ;;  %v1851_v19 = vmul.f32 %v8886_v27, %v9634_v12  ;;  %v9637_v63 = vld [vmem:[#allocation6_spill] sm:$0xff] }
 0x2cd   : > { %v9021_v46 = vmul.f32 %v8896_v20, %v9634_v12  ;;  %v1609_v51 = vmul.f32 %v5784_v50, %v1166_v25  ;;  %v9635_v11 = vrot.slane %v8916_v48, 1  ;;  %v2473_v6 = vmul.f32 %v8886_v27, %v9628_v8 }
 0x2ce   : > { %v1491_v15 = vsel %vm1413_vm2, %v1489_v26, %v1490_v5  ;;  %v4266_v55 = vadd.f32 %v4196_v21, %v4022_v33  ;;  %v1978_v38 = vrot.slane %v1851_v19, 2  ;;  %v2098_v62 = vmul.f32 %v5793_v47, %v1166_v25  ;;  %v9051_v21 = vld [vmem:[#allocation2 + $0x180] sm:$0xff] }
 0x2cf   : > { %v1735_v52 = vsel %vm1413_vm2, %v9635_v11, %v1734_v39  ;;  %v1556_v57 = vadd.f32 %v1491_v15, %v8934_v41  ;;  %v1979_v34 = vrot.slane %v9021_v46, 2  ;;  %v2719_v50 = vmul.f32 %v5949_v61, %v1166_v25  ;;  %v891_v15 = vpop.permute.xlu0 %890 }
 0x2d0   : > { %v4440_v5 = vsel %vm1902_vm3, %v4437_v58, %v4439_v18  ;;  %v2597_v45 = vrot.slane %v2473_v6, 1  ;;  %v3207_v48 = vmul.f32 %v5960_v49, %v1166_v25  ;;  %v1736_v59 = vrot.slane %v1609_v51, 1  ;;  %v1053_v6 = vpop.permute.xlu1 %1052 }
 0x2d1   : > { %v9036_v23 = vadd.f32 %v4440_v5, %v4266_v55  ;;  %v1800_v7 = vadd.f32 %v1735_v52, %v1556_v57  ;;  %v1980_v41 = vsel %vm1902_vm3, %v1978_v38, %v1979_v34  ;;  %v9636_v2 = vrot.slane %v8919_v40, 1  ;;  %v9056_v40 = vld [vmem:[#allocation2 + $0x188] sm:$0xff] }
 0x2d2   : > { %v2599_v16 = vsel %vm1413_vm2, %v2597_v45, %v2598_v60  ;;  %v2961_v58 = vmul.f32 %v8886_v27, %v9637_v63  ;;  %v2668_v36 = vadd.f32 %v2601_v53, %v2424_v32  ;;  %v2222_v25 = vrot.slane %v8930_v31, 2 }
 0x2d3   : > { %v2843_v47 = vsel %vm1413_vm2, %v9636_v2, %v2842_v44  ;;  %4542 = vst.msk [vmem:[%s6631_s28 + $0xd8] sm:$0xff] %vm597_vm0, %v9036_v23  ;;  %v2476_v22 = vmul.f32 %v9051_v21, %v9628_v8  ;;  %v2667_v60 = vadd.f32 %v2599_v16, %v8940_v29  ;;  %v2045_v18 = vadd.f32 %v1980_v41, %v1800_v7 }
 0x2d4   : > { %v9060_v26 = vmul.f32 %v9056_v40, %v9628_v8  ;;  %v2962_v27 = vmul.f32 %v8896_v20, %v9637_v63  ;;  %v3085_v32 = vrot.slane %v2961_v58, 2  ;;  %v2225_v53 = vrot.slane %v2098_v62, 2 }
 0x2d5   : > { %v2844_v31 = vrot.slane %v2719_v50, 1  ;;  %v3332_v33 = vrot.slane %v3207_v48, 2  ;;  %v2911_v19 = vadd.f32 %v2843_v47, %v2667_v60  ;;  %v1737_v51 = vsel %vm1413_vm2, %v1734_v39, %v1736_v59  ;;  %v1055_v60 = vpop.permute.xlu1 %1054 }
 0x2d6   : > { %v2224_v29 = vsel %vm1902_vm3, %v2222_v25, %v2223_v1  ;;  %v2325_v11 = vmul.f32 %v9051_v21, %v9573_v37  ;;  %v3086_v52 = vrot.slane %v2962_v27, 2  ;;  %v2602_v8 = vrot.slane %v2476_v22, 1  ;;  %v893_v22 = vpop.permute.xlu0 %892 }
 0x2d7   : > { %v3585_v55 = vmul.f32 %v9051_v21, %v9616_v10  ;;  %v9072_v20 = vmul.f32 %v9056_v40, %v9616_v10  ;;  %v1853_v57 = vmul.f32 %v8953_v24, %v9634_v12  ;;  %v2289_v39 = vadd.f32 %v2224_v29, %v2045_v18 }
 0x2d8   : > { %v2603_v38 = vrot.slane %v9060_v26, 1  ;;  %v3087_v62 = vsel %vm1902_vm3, %v3085_v32, %v3086_v52  ;;  %v3329_v50 = vrot.slane %v8944_v42, 2  ;;  %v2226_v5 = vsel %vm1902_vm3, %v2223_v1, %v2225_v53 }
 0x2d9   : > { %v2845_v45 = vsel %vm1413_vm2, %v2842_v44, %v2844_v31  ;;  %v3155_v48 = vadd.f32 %v3087_v62, %v2911_v19  ;;  %v3435_v7 = vmul.f32 %v9051_v21, %v9574_v14  ;;  %v1801_v41 = vadd.f32 %v1737_v51, %v9006_v17 }
 0x2da   : > { %v3333_v59 = vsel %vm1902_vm3, %v3330_v13, %v3332_v33  ;;  %v3331_v12 = vsel %vm1902_vm3, %v3329_v50, %v3330_v13  ;;  %v9087_v16 = vsel %vm1118_vm4, %v891_v15, %v1053_v6  ;;  %v3709_v47 = vrot.slane %v3585_v55, 1  ;;  %v895_v62 = vpop.permute.xlu0 %894  ;;  %v1057_v50 = vpop.permute.xlu1 %1056 }
 0x2db   : > { %v3399_v2 = vadd.f32 %v3331_v12, %v3155_v48  ;;  %v3710_v42 = vrot.slane %v9072_v20, 1  ;;  %v1981_v1 = vrot.slane %v1853_v57, 2  ;;  %v2912_v58 = vadd.f32 %v2845_v45, %v2668_v36 }
 0x2dc   : > { %v2357_v44 = vadd.f32 %v2325_v11, %v2289_v39  ;;  %v2604_v25 = vsel %vm1413_vm2, %v2602_v8, %v2603_v38  ;;  %v2963_v17 = vmul.f32 %v8953_v24, %v9637_v63  ;;  %v3503_v18 = vmul.f32 %v9451_v30, %v9087_v16 }
 0x2dd   : > { %v3467_v13 = vadd.f32 %v3435_v7, %v3399_v2  ;;  %v1982_v27 = vsel %vm1902_vm3, %v1979_v34, %v1981_v1  ;;  %v4073_v36 = vmul.f32 %v9051_v21, %v8529_v0  ;;  %v2326_v53 = vmul.f32 %v9056_v40, %v9573_v37 }
 0x2de   : > { %v2046_v32 = vadd.f32 %v1982_v27, %v1801_v41  ;;  %v3088_v31 = vrot.slane %v2963_v17, 2  ;;  %v4074_v24 = vmul.f32 %v9056_v40, %v8529_v0  ;;  %v3711_v33 = vsel %vm1413_vm2, %v3709_v47, %v3710_v42 }
 0x2df   : > { %v2393_v19 = vmul.f32 %v5944_v4, %v9087_v16  ;;  %v3535_v51 = vadd.f32 %v3503_v18, %v3467_v13  ;;  %v1168_v46 = vsel %vm1118_vm4, %v893_v22, %v1055_v60  ;;  %v3829_v34 = vmul.f32 %v9453_v9, %v9087_v16  ;;  %v9638_v60 = vld [vmem:[#allocation9_spill] sm:$0xff] }
 0x2e0   : > { %v4317_v15 = vmul.f32 %v8582_v43, %v9087_v16  ;;  %v2290_v29 = vadd.f32 %v2226_v5, %v2046_v32  ;;  %v3089_v37 = vsel %vm1902_vm3, %v3086_v52, %v3088_v31  ;;  %v3436_v0 = vmul.f32 %v9056_v40, %v9574_v14 }
 0x2e1   : > { %v3156_v11 = vadd.f32 %v3089_v37, %v2912_v58  ;;  %v4197_v6 = vrot.slane %v4073_v36, 2  ;;  %v4198_v8 = vrot.slane %v4074_v24, 2  ;;  %v2425_v55 = vadd.f32 %v2393_v19, %v2357_v44 }
 0x2e2   : > { %v2720_v20 = vmul.f32 %v5949_v61, %v9087_v16  ;;  %v2721_v57 = vmul.f32 %v5949_v61, %v1168_v46  ;;  %v3830_v39 = vmul.f32 %v9453_v9, %v1168_v46  ;;  %v3779_v45 = vadd.f32 %v3711_v33, %v3535_v51 }
 0x2e3   : > { %v2358_v5 = vadd.f32 %v2326_v53, %v2290_v29  ;;  %v3400_v48 = vadd.f32 %v3333_v59, %v3156_v11  ;;  %v4318_v52 = vmul.f32 %v8582_v43, %v1168_v46  ;;  %v3953_v7 = vrot.slane %v3829_v34, 1  ;;  %v9640_v53 = vld [vmem:[#allocation10_spill] sm:$0xff]  ;;  %v897_v34 = vpop.permute.xlu0 %896 }
 0x2e4   : > { %v4441_v41 = vrot.slane %v4317_v15, 2  ;;  %v2394_v12 = vmul.f32 %v5944_v4, %v1168_v46  ;;  %v3954_v2 = vrot.slane %v3830_v39, 1  ;;  %v4199_v1 = vsel %vm1902_vm3, %v4197_v6, %v4198_v8  ;;  %v1059_v15 = vpop.permute.xlu1 %1058  ;;  %v9642_v39 = vld [vmem:[#allocation31_spill] sm:$0xff] }
 0x2e5   : > { %v3468_v47 = vadd.f32 %v3436_v0, %v3400_v48  ;;  %v3504_v58 = vmul.f32 %v9451_v30, %v1168_v46  ;;  %v1169_v44 = vsel %vm1118_vm4, %v895_v62, %v1057_v50  ;;  %v4442_v17 = vrot.slane %v4318_v52, 2  ;;  %v5041_v48 = vld [vmem:[%s9245_s3 + $0x8] ss:$0 sm:$0xff] }
 0x2e6   : > { %v3955_v22 = vsel %vm1413_vm2, %v3953_v7, %v3954_v2  ;;  %v9639_v13 = vrot.slane %v9638_v60, 1  ;;  %v2722_v18 = vmul.f32 %v5949_v61, %v1169_v44  ;;  %v2426_v27 = vadd.f32 %v2394_v12, %v2358_v5 }
 0x2e7   : > { %v2847_v36 = vrot.slane %v2721_v57, 1  ;;  %v3536_v4 = vadd.f32 %v3504_v58, %v3468_v47  ;;  %v4023_v32 = vadd.f32 %v3955_v22, %v3779_v45  ;;  %v9641_v31 = vrot.slane %v9640_v53, 1 }
 0x2e8   : > { %v3713_v59 = vsel %vm1413_vm2, %v3710_v42, %v9639_v13  ;;  %v2849_v33 = vrot.slane %v2722_v18, 1  ;;  %v3831_v19 = vmul.f32 %v9453_v9, %v1169_v44  ;;  %v4319_v51 = vmul.f32 %v8582_v43, %v1169_v44  ;;  %v1061_v47 = vpop.permute.xlu1 %1060  ;;  %v9644_v18 = vld [vmem:[#allocation30_spill] sm:$0xff] }
 0x2e9   : > { %v2606_v24 = vsel %vm1413_vm2, %v2603_v38, %v9641_v31  ;;  %v4203_v42 = vrot.slane %v8905_v35, 2  ;;  %v2846_v61 = vrot.slane %v2720_v20, 1  ;;  %v4267_v29 = vadd.f32 %v4199_v1, %v4023_v32 }
 0x2ea   : > { %v3780_v37 = vadd.f32 %v3713_v59, %v3536_v4  ;;  %v2669_v11 = vadd.f32 %v2604_v25, %v2425_v55  ;;  %v3209_v0 = vmul.f32 %v5960_v49, %v1168_v46  ;;  %v4443_v26 = vsel %vm1902_vm3, %v4441_v41, %v4442_v17  ;;  %v5040_v55 = vld [vmem:[#allocation2 + $0x1a8] sm:$0x3] }
 0x2eb   : > { %v3956_v6 = vrot.slane %v3831_v19, 1  ;;  %v9141_v38 = vadd.f32 %v4443_v26, %v4267_v29  ;;  %v2670_v57 = vadd.f32 %v2606_v24, %v2426_v27  ;;  %v9643_v62 = vrot.slane %v9642_v39, 2  ;;  %v5042_v24 = vld [vmem:[#allocation2 + $0x198] sm:$0xff] }
 0x2ec   : > { %v2850_v50 = vsel %vm1413_vm2, %v2847_v36, %v2849_v33  ;;  %v4444_v45 = vrot.slane %v4319_v51, 2  ;;  %v2848_v25 = vsel %vm1413_vm2, %v2846_v61, %v2847_v36  ;;  %v2964_v46 = vmul.f32 %v9051_v21, %v9637_v63  ;;  %v1063_v29 = vpop.permute.xlu1 %1062 }
 0x2ed   : > { %v4201_v43 = vsel %vm1902_vm3, %v4198_v8, %v9643_v62  ;;  %v3957_v20 = vsel %vm1413_vm2, %v3954_v2, %v3956_v6  ;;  %v3590_v5 = vmul.f32 %v5040_v55, %v9616_v10  ;;  %v9155_v52 = vmul.f32 %v5041_v48, %v5040_v55  ;;  %4543 = vst.msk [vmem:[%s6631_s28 + $0xe0] sm:$0xff] %vm597_vm0, %v9141_v38  ;;  %v899_v2 = vpop.permute.xlu0 %898  ;;  %v5043_v55 = vld [vmem:[%s9246_s4 + $0x8] ss:$0 sm:$0xff] }
 0x2ee   : > { %v3210_v8 = vmul.f32 %v5960_v49, %v1169_v44  ;;  %v4024_v7 = vadd.f32 %v3957_v20, %v3780_v37  ;;  %v4645_v41 = vmul.f32 %v9036_v23, %v9036_v23  ;;  %v3208_v21 = vmul.f32 %v5960_v49, %v9087_v16 }
 0x2ef   : > { %v2965_v10 = vmul.f32 %v9056_v40, %v9637_v63  ;;  %v3090_v12 = vrot.slane %v2964_v46, 2  ;;  %v3335_v1 = vrot.slane %v3209_v0, 2  ;;  %v2914_v58 = vadd.f32 %v2850_v50, %v2670_v57  ;;  %v9646_v57 = vld [vmem:[#allocation14_spill] sm:$0xff] }
 0x2f0   : > { %v4268_v22 = vadd.f32 %v4201_v43, %v4024_v7  ;;  %v2913_v60 = vadd.f32 %v2848_v25, %v2669_v11  ;;  %v4445_v44 = vsel %vm1902_vm3, %v4442_v17, %v4444_v45  ;;  %v1170_v59 = vsel %vm1118_vm4, %v897_v34, %v1059_v15 }
 0x2f1   : > { %v3091_v13 = vrot.slane %v2965_v10, 2  ;;  %v3093_v27 = vrot.slane %v9644_v18, 2  ;;  %v3717_v36 = vrot.slane %v3590_v5, 1  ;;  %v4205_v49 = vrot.slane %v9155_v52, 2  ;;  %v901_v61 = vpop.permute.xlu0 %900 }
 0x2f2   : > { %v3337_v16 = vrot.slane %v3210_v8, 2  ;;  %v4512_v63 = vadd.f32 %v4445_v44, %v4268_v22  ;;  %v4600_v40 = vsel %vm597_vm0, %v9036_v23, 0.0  ;;  %v3334_v4 = vrot.slane %v3208_v21, 2 }
 0x2f3   : > { %v3092_v32 = vsel %vm1902_vm3, %v3090_v12, %v3091_v13  ;;  %v3094_v53 = vsel %vm1902_vm3, %v3091_v13, %v3093_v27  ;;  %v4703_v17 = vsel %vm597_vm0, %v4645_v41, 0.0  ;;  %v3437_v33 = vmul.f32 %v5042_v24, %v9574_v14 }
 0x2f4   : > { %4544 = vst.msk [vmem:[%s6631_s28 + $0xe8] sm:$0xff] %vm597_vm0, %v4512_v63  ;;  %v3157_v31 = vadd.f32 %v3092_v32, %v2913_v60  ;;  %v3832_v19 = vmul.f32 %v9453_v9, %v1170_v59  ;;  %v4598_v51 = vsel %vm597_vm0, %v9004_v3, 0.0  ;;  %v3336_v23 = vsel %vm1902_vm3, %v3334_v4, %v3335_v1 }
 0x2f5   : > { %v3158_v34 = vadd.f32 %v3094_v53, %v2914_v58  ;;  %v3438_v15 = vmul.f32 %v8725_v54, %v9574_v14  ;;  %v4644_v37 = vmul.f32 %v9004_v3, %v9004_v3  ;;  %v3338_v11 = vsel %vm1902_vm3, %v3335_v1, %v3337_v16 }
 0x2f6   : > { %v3401_v0 = vadd.f32 %v3336_v23, %v3157_v31  ;;  %v1171_v26 = vsel %vm1118_vm4, %v899_v2, %v1061_v47  ;;  %v9645_v6 = vrot.slane %v8729_v28, 1  ;;  %v9647_v39 = vrot.slane %v9646_v57, 1  ;;  %v9649_v28 = vld [vmem:[#allocation38_spill] sm:$0xff] }
 0x2f7   : > { %v3505_v43 = vmul.f32 %v9451_v30, %v1170_v59  ;;  %v3402_v50 = vadd.f32 %v3338_v11, %v3158_v34  ;;  %v3833_v14 = vmul.f32 %v9453_v9, %v1171_v26  ;;  %v3958_v20 = vrot.slane %v3832_v19, 1 }
 0x2f8   : > { %v3716_v62 = vsel %vm1413_vm2, %v9647_v39, %v9645_v6  ;;  %v3469_v54 = vadd.f32 %v3437_v33, %v3401_v0  ;;  %v3506_v3 = vmul.f32 %v9451_v30, %v1171_v26  ;;  %v1172_v45 = vsel %vm1118_vm4, %v901_v61, %v1063_v29 }
 0x2f9   : > { %v3470_v25 = vadd.f32 %v3438_v15, %v3402_v50  ;;  %v3959_v46 = vrot.slane %v3833_v14, 1  ;;  %v4321_v5 = vmul.f32 %v5043_v55, %v1171_v26  ;;  %v3834_v48 = vmul.f32 %v9453_v9, %v1172_v45 }
 0x2fa   : > { %v4701_v52 = vsel %vm597_vm0, %v4644_v37, 0.0  ;;  %v3537_v8 = vadd.f32 %v3505_v43, %v3469_v54  ;;  %v9648_v7 = vmov %v9645_v6  ;;  %v4322_v21 = vmul.f32 %v5043_v55, %v1172_v45 }
 0x2fb   : > { %v3718_v41 = vsel %vm1413_vm2, %v9648_v7, %v3717_v36  ;;  %v4320_v30 = vmul.f32 %v5043_v55, %v1170_v59  ;;  %v3538_v10 = vadd.f32 %v3506_v3, %v3470_v25  ;;  %v3960_v12 = vsel %vm1413_vm2, %v3958_v20, %v3959_v46 }
 0x2fc   : > { %v3961_v2 = vrot.slane %v3834_v48, 1  ;;  %v4646_v47 = vmul.f32 %v9141_v38, %v9141_v38  ;;  %v4602_v1 = vsel %vm597_vm0, %v9141_v38, 0.0  ;;  %v4599_v9 = vadd.f32 %v4598_v51, %v8901_v56  ;;  %v9651_v56 = vld [vmem:[#allocation13_spill] sm:$0xff] }
 0x2fd   : > { %v3781_v58 = vadd.f32 %v3716_v62, %v3537_v8  ;;  %v9650_v22 = vrot.slane %v9649_v28, 2  ;;  %v3782_v44 = vadd.f32 %v3718_v41, %v3538_v10  ;;  %v4447_v13 = vrot.slane %v4321_v5, 2 }
 0x2fe   : > { %v3962_v59 = vsel %vm1413_vm2, %v3959_v46, %v3961_v2  ;;  %v4647_v18 = vmul.f32 %v4512_v63, %v4512_v63  ;;  %v4206_v36 = vsel %vm1902_vm3, %v4203_v42, %v4205_v49  ;;  %v4449_v38 = vrot.slane %v4322_v21, 2 }
 0x2ff   : > { %v4204_v60 = vsel %vm1902_vm3, %v9650_v22, %v4203_v42  ;;  %v4025_v27 = vadd.f32 %v3960_v12, %v3781_v58  ;;  %v4601_v16 = vadd.f32 %v4600_v40, %v4599_v9  ;;  %v4702_v4 = vadd.f32 %v4701_v52, %v9651_v56 }
 0x300   : > { %v4446_v32 = vrot.slane %v4320_v30, 2  ;;  %v4026_v53 = vadd.f32 %v3962_v59, %v3782_v44  ;;  %v4705_v31 = vsel %vm597_vm0, %v4646_v47, 0.0  ;;  %v4604_v24 = vsel %vm597_vm0, %v4512_v63, 0.0 }
 0x301   : > { %v4269_v33 = vadd.f32 %v4204_v60, %v4025_v27  ;;  %v4603_v19 = vadd.f32 %v4602_v1, %v4601_v16  ;;  %v4704_v51 = vadd.f32 %v4703_v17, %v4702_v4  ;;  %v4707_v42 = vsel %vm597_vm0, %v4647_v18, 0.0 }
 0x302   : > { %v4448_v23 = vsel %vm1902_vm3, %v4446_v32, %v4447_v13  ;;  %v4270_v35 = vadd.f32 %v4206_v36, %v4026_v53  ;;  %v4450_v40 = vsel %vm1902_vm3, %v4447_v13, %v4449_v38 }
 0x303   : > { %v4513_v49 = vadd.f32 %v4448_v23, %v4269_v33  ;;  %v4605_v34 = vadd.f32 %v4604_v24, %v4603_v19  ;;  %v4706_v15 = vadd.f32 %v4705_v31, %v4704_v51 }
 0x304   : > { %v4514_v61 = vadd.f32 %v4450_v40, %v4270_v35 }
 0x305   : > { %4545 = vst.msk [vmem:[%s6631_s28 + $0xf0] sm:$0xff] %vm597_vm0, %v4513_v49  ;;  %v4606_v29 = vsel %vm597_vm0, %v4513_v49, 0.0  ;;  %v4648_v63 = vmul.f32 %v4513_v49, %v4513_v49  ;;  %v4708_v37 = vadd.f32 %v4707_v42, %v4706_v15 }
 0x306   : > { %v4607_v11 = vadd.f32 %v4606_v29, %v4605_v34  ;;  %4546 = vst.msk [vmem:[%s6631_s28 + $0xf8] sm:$0xff] %vm597_vm0, %v4514_v61  ;;  %v4608_v17 = vsel %vm597_vm0, %v4514_v61, 0.0  ;;  %v4649_v0 = vmul.f32 %v4514_v61, %v4514_v61 }
 0x307   : > { %v4709_v26 = vsel %vm597_vm0, %v4648_v63, 0.0 }
 0x308   : > { %v4710_v6 = vadd.f32 %v4709_v26, %v4708_v37  ;;  %v4609_v57 = vadd.f32 %v4608_v17, %v4607_v11  ;;  %v4711_v39 = vsel %vm597_vm0, %v4649_v0, 0.0 }
 0x30a   : > { %v4610_v62 = vrot.slane %v4609_v57, 4  ;;  %v4712_v43 = vadd.f32 %v4711_v39, %v4710_v6 }
 0x30c   : > { %v4611_v50 = vadd.f32 %v4610_v62, %v4609_v57  ;;  %v4713_v14 = vrot.slane %v4712_v43, 4 }
 0x30e   : > { %v4612_v54 = vrot.slane %v4611_v50, 2  ;;  %v4714_v20 = vadd.f32 %v4713_v14, %v4712_v43 }
 0x310   : > { %v4613_v3 = vadd.f32 %v4612_v54, %v4611_v50  ;;  %v4715_v45 = vrot.slane %v4714_v20, 2 }
 0x312   : > { %v4614_v25 = vrot.slane %v4613_v3, 1  ;;  %v4716_v46 = vadd.f32 %v4715_v45, %v4714_v20 }
 0x314   : > { %v4615_v55 = vadd.f32 %v4614_v25, %v4613_v3  ;;  %v4717_v5 = vrot.slane %v4716_v46, 1 }
 0x316   : > { %4617 = vst.msk [vmem:[%s262_s26] sm:$0x1] %vm4616_vm5, %v4615_v55  ;;  %v4718_v48 = vadd.f32 %v4717_v5, %v4716_v46 }
 0x318   : > { %4719 = vst.msk [vmem:[%s262_s26 + $0x1] sm:$0x1] %vm4616_vm5, %v4718_v48 }
 0x319 PF: > { %s17_s21 = sadd.s32 1, %s5050_s21  }
 0x31a   : > { %p14_p4 = scmp.ge.s32.totalorder %s17_s21, 4  }
 0x31c   :  { %16 = sbr.rel (!%p14_p4) target bundleno = 1 (0x1), region = 83 }

</bundles_post_ra>
